<compile_context>
chip_gen: v7x
topology: tpu7x:2x2x1
jax: 0.10.0
libtpu: 0.0.40
codegen_flags: <defaults>
</compile_context>

<pallas_src>
import jax
import jax.numpy as jnp
from jax.experimental import pallas as pl
from jax.experimental.pallas import tpu as pltpu

HIDDEN = 1000
NUM_CLASSES = 3

LANE = 128
SUBLANE = 8
HIDDEN_PAD = 1024          # round_up(1000, 128)
OUT_PAD = 128              # round_up(3, 128)
NEG_INF = -1e30
MAX_TK = 2048              # max K tile for layer 1 (keeps w1 block <= 4 MiB bf16)


def _round_up(x, m):
    return (x + m - 1) // m * m


def _input_padding(d_in):
    """Padded input-feature dim, K tile size and number of K tiles for layer 1."""
    d_in_pad = _round_up(d_in, LANE)
    if d_in_pad <= MAX_TK:
        tk = d_in_pad
    else:
        tk = MAX_TK
        d_in_pad = _round_up(d_in_pad, tk)
    return d_in_pad, tk, d_in_pad // tk


def _choose_batch_tile(b):
    """Sublane-aligned batch tile; prefers large tiles, avoids padded waste."""
    b_pad8 = _round_up(b, SUBLANE)
    if b_pad8 <= 512:
        tb = b_pad8
    else:
        tb, best_waste = 512, None
        for cand in (512, 384, 256, 128):
            waste = _round_up(b_pad8, cand)
            if best_waste is None or waste < best_waste:
                best_waste, tb = waste, cand
    return tb, _round_up(b_pad8, tb)


def _mlp_kernel(x_ref, w1_ref, b1_ref, w2_ref, b2_ref, w3_ref, b3_ref,
                w4_ref, b4_ref, o_ref, acc_ref):
    k = pl.program_id(1)

    # Layer 1 (K-tiled): accumulate x_tile @ w1_tile in f32.
    @pl.when(k == 0)
    def _():
        acc_ref[...] = jnp.zeros_like(acc_ref)

    acc_ref[...] += jnp.dot(x_ref[...], w1_ref[...],
                            preferred_element_type=jnp.float32)

    # On the final K step, finish layer 1 and run the fused layers 2-4 + softmax.
    @pl.when(k == pl.num_programs(1) - 1)
    def _():
        h = jnp.maximum(acc_ref[...] + b1_ref[...], 0.0).astype(jnp.bfloat16)
        # Layer 2: Linear(1024, 1024) + ReLU
        h = jnp.dot(h, w2_ref[...], preferred_element_type=jnp.float32) + b2_ref[...]
        h = jnp.maximum(h, 0.0).astype(jnp.bfloat16)
        # Layer 3: Linear(1024, 1024) + ReLU
        h = jnp.dot(h, w3_ref[...], preferred_element_type=jnp.float32) + b3_ref[...]
        h = jnp.maximum(h, 0.0).astype(jnp.bfloat16)
        # Layer 4: Linear(1024, 128 padded) -- padded logit columns carry -1e30 bias.
        logits = jnp.dot(h, w4_ref[...], preferred_element_type=jnp.float32) + b4_ref[...]
        # Numerically stable softmax over the (padded) feature dim, in f32.
        m = jnp.max(logits, axis=-1, keepdims=True)
        e = jnp.exp(logits - m)
        denom = jnp.sum(e, axis=-1, keepdims=True)
        o_ref[...] = e * pl.reciprocal(denom, approx=True)


def pack_params(params):
    """Pad raw f32 params ([in,out] weights, [out] biases) to (8,128)-aligned
    shapes and cast weights to bf16. Biases stay f32 (added post-accumulate)."""
    w1, b1, w2, b2, w3, b3, w4, b4 = params
    d_in = w1.shape[0]
    d_in_pad, _, _ = _input_padding(d_in)

    def pad_w(w, rows, cols):
        return jnp.pad(w, ((0, rows - w.shape[0]), (0, cols - w.shape[1]))
                       ).astype(jnp.bfloat16)

    def pad_b(b, cols, pad_value=0.0):
        return jnp.pad(b, (0, cols - b.shape[0]),
                       constant_values=pad_value).astype(jnp.float32).reshape(1, cols)

    return (
        pad_w(w1, d_in_pad, HIDDEN_PAD), pad_b(b1, HIDDEN_PAD),
        pad_w(w2, HIDDEN_PAD, HIDDEN_PAD), pad_b(b2, HIDDEN_PAD),
        pad_w(w3, HIDDEN_PAD, HIDDEN_PAD), pad_b(b3, HIDDEN_PAD),
        pad_w(w4, HIDDEN_PAD, OUT_PAD), pad_b(b4, OUT_PAD, pad_value=NEG_INF),
    )


def neural_network_forward(x, packed_params):
    """x: [B, C, H, W] float32 (NCHW). Returns softmax probs [B, 3] (float32)."""
    w1, b1, w2, b2, w3, b3, w4, b4 = packed_params
    d_in_pad = w1.shape[0]

    B = x.shape[0]
    x2d = x.reshape(B, -1)                             # nn.Flatten()
    d_in = x2d.shape[1]
    d_in_pad_chk, tk, n_k = _input_padding(d_in)
    assert d_in_pad_chk == d_in_pad, "packed params built for a different input size"

    tb, b_pad = _choose_batch_tile(B)

    # Fused preprocessing: cast to bf16 first, then a single pad for both dims.
    xb = x2d.astype(jnp.bfloat16)
    if b_pad != B or d_in_pad != d_in:
        xb = jnp.pad(xb, ((0, b_pad - B), (0, d_in_pad - d_in)))

    grid = (b_pad // tb, n_k)

    def const_spec(shape):
        # Same block every grid step -> VMEM-resident, single buffer (no 2nd copy).
        return pl.BlockSpec(shape, lambda i, k: (0, 0),
                            pipeline_mode=pl.Buffered(1))

    w1_spec = pl.BlockSpec((tk, HIDDEN_PAD), lambda i, k: (k, 0),
                           pipeline_mode=pl.Buffered(1 if n_k == 1 else 2))

    out = pl.pallas_call(
        _mlp_kernel,
        out_shape=jax.ShapeDtypeStruct((b_pad, OUT_PAD), jnp.float32),
        grid=grid,
        in_specs=[
            pl.BlockSpec((tb, tk), lambda i, k: (i, k)),          # x tile
            w1_spec, const_spec((1, HIDDEN_PAD)),
            const_spec((HIDDEN_PAD, HIDDEN_PAD)), const_spec((1, HIDDEN_PAD)),
            const_spec((HIDDEN_PAD, HIDDEN_PAD)), const_spec((1, HIDDEN_PAD)),
            const_spec((HIDDEN_PAD, OUT_PAD)), const_spec((1, OUT_PAD)),
        ],
        out_specs=pl.BlockSpec((tb, OUT_PAD), lambda i, k: (i, 0)),
        scratch_shapes=[pltpu.VMEM((tb, HIDDEN_PAD), jnp.float32)],
        compiler_params=pltpu.CompilerParams(
            dimension_semantics=("parallel", "arbitrary"),
            vmem_limit_bytes=32 << 20,
        ),
    )(xb, w1, b1, w2, b2, w3, b3, w4, b4)

    return out[:B, :NUM_CLASSES]


def init_params(key, d_in):
    """Deterministic init mimicking torch.nn.Linear default U(-1/sqrt(in), 1/sqrt(in)).
    Weights are [in_features, out_features] (transposed vs torch), biases [out]."""
    dims = [(d_in, HIDDEN), (HIDDEN, HIDDEN), (HIDDEN, HIDDEN), (HIDDEN, NUM_CLASSES)]
    params = []
    for (fan_in, fan_out) in dims:
        key, kw, kb = jax.random.split(key, 3)
        bound = 1.0 / (fan_in ** 0.5)
        w = jax.random.uniform(kw, (fan_in, fan_out), jnp.float32, -bound, bound)
        b = jax.random.uniform(kb, (fan_out,), jnp.float32, -bound, bound)
        params.extend([w, b])
    return tuple(params)


if __name__ == "__main__":
    key = jax.random.PRNGKey(0)
    k_x, k_p = jax.random.split(key)

    # NCHW input: batch=2, channels=4, spatial=16x16 -> init_input = 4*16*16 = 1024
    B, C, H, W = 2, 4, 16, 16
    x = jax.random.normal(k_x, (B, C, H, W), jnp.float32)
    raw_params = init_params(k_p, C * H * W)
    packed = pack_params(raw_params)   # pad/cast once; reuse across calls

    out = neural_network_forward(x, packed)
    out = jax.block_until_ready(out)

    # Sanity: shape [B, 3], rows sum to ~1 (softmax; bf16 activations + approx recip).
    assert out.shape == (B, NUM_CLASSES)
    assert bool(jnp.all(jnp.isfinite(out)))
    assert jnp.allclose(jnp.sum(out, axis=-1), 1.0, atol=1e-2)
    print("KERNEL_OK")
</pallas_src>

<mosaic_0001>
module attributes {stable_mosaic.version = 11 : i64} {
  func.func @_mlp_kernel(%arg0: i32, %arg1: i32, %arg2: memref<8x1024xbf16, #tpu.memory_space<vmem>>, %arg3: memref<1024x1024xbf16, #tpu.memory_space<vmem>>, %arg4: memref<1x1024xf32, #tpu.memory_space<vmem>>, %arg5: memref<1024x1024xbf16, #tpu.memory_space<vmem>>, %arg6: memref<1x1024xf32, #tpu.memory_space<vmem>>, %arg7: memref<1024x1024xbf16, #tpu.memory_space<vmem>>, %arg8: memref<1x1024xf32, #tpu.memory_space<vmem>>, %arg9: memref<1024x128xbf16, #tpu.memory_space<vmem>>, %arg10: memref<1x128xf32, #tpu.memory_space<vmem>>, %arg11: memref<8x128xf32, #tpu.memory_space<vmem>>, %arg12: memref<8x1024xf32, #tpu.memory_space<vmem>>) attributes {dimension_semantics = [#tpu.dimension_semantics<parallel>, #tpu.dimension_semantics<arbitrary>], iteration_bounds = array<i64: 1, 1>, scalar_prefetch = 0 : i64, scratch_operands = 1 : i64, tpu.core_type = #tpu.core_type<tc>, window_params = [{transform_indices = @transform_0, window_bounds = array<i64: 8, 1024>}, {pipeline_mode = #tpu.pipeline_mode<synchronous>, transform_indices = @transform_1, window_bounds = array<i64: 1024, 1024>}, {pipeline_mode = #tpu.pipeline_mode<synchronous>, transform_indices = @transform_2, window_bounds = array<i64: 1, 1024>}, {pipeline_mode = #tpu.pipeline_mode<synchronous>, transform_indices = @transform_3, window_bounds = array<i64: 1024, 1024>}, {pipeline_mode = #tpu.pipeline_mode<synchronous>, transform_indices = @transform_4, window_bounds = array<i64: 1, 1024>}, {pipeline_mode = #tpu.pipeline_mode<synchronous>, transform_indices = @transform_5, window_bounds = array<i64: 1024, 1024>}, {pipeline_mode = #tpu.pipeline_mode<synchronous>, transform_indices = @transform_6, window_bounds = array<i64: 1, 1024>}, {pipeline_mode = #tpu.pipeline_mode<synchronous>, transform_indices = @transform_7, window_bounds = array<i64: 1024, 128>}, {pipeline_mode = #tpu.pipeline_mode<synchronous>, transform_indices = @transform_8, window_bounds = array<i64: 1, 128>}, {transform_indices = @transform_9, window_bounds = array<i64: 8, 128>}]} {
    %c0_i32 = arith.constant 0 : i32
    %0 = arith.cmpi eq, %arg1, %c0_i32 : i32
    %1 = arith.extui %0 : i1 to i32
    %c0_i32_0 = arith.constant 0 : i32
    %2 = arith.cmpi ne, %1, %c0_i32_0 : i32
    scf.if %2 {
      %cst_10 = arith.constant 0.000000e+00 : f32
      %12 = vector.broadcast %cst_10 : f32 to vector<8x1024xf32>
      %c0_11 = arith.constant 0 : index
      %c0_12 = arith.constant 0 : index
      %13 = vector.load %arg12[%c0_11, %c0_12] : memref<8x1024xf32, #tpu.memory_space<vmem>>, vector<8x1024xf32>
      tpu.vector_store %arg12[%c0_11, %c0_12], %12 {strides = array<i32>} : memref<8x1024xf32, #tpu.memory_space<vmem>>, vector<8x1024xf32>,
    } else {
    }
    %c0 = arith.constant 0 : index
    %c0_1 = arith.constant 0 : index
    %3 = vector.load %arg12[%c0, %c0_1] : memref<8x1024xf32, #tpu.memory_space<vmem>>, vector<8x1024xf32>
    %c0_2 = arith.constant 0 : index
    %c0_3 = arith.constant 0 : index
    %4 = vector.load %arg2[%c0_2, %c0_3] : memref<8x1024xbf16, #tpu.memory_space<vmem>>, vector<8x1024xbf16>
    %c0_4 = arith.constant 0 : index
    %c0_5 = arith.constant 0 : index
    %5 = vector.load %arg3[%c0_4, %c0_5] : memref<1024x1024xbf16, #tpu.memory_space<vmem>>, vector<1024x1024xbf16>
    %cst = arith.constant dense<0.000000e+00> : vector<8x1024xf32>
    %6 = tpu.matmul %4, %5, %cst {dimension_numbers = #tpu.dot_dimension_numbers<[1], [0], [0], [1], [0, 0, 1, 1], [], []>} : vector<8x1024xbf16>, vector<1024x1024xbf16>, vector<8x1024xf32> -> vector<8x1024xf32>
    %7 = arith.addf %3, %6 : vector<8x1024xf32>
    %c0_6 = arith.constant 0 : index
    %c0_7 = arith.constant 0 : index
    %8 = vector.load %arg12[%c0_6, %c0_7] : memref<8x1024xf32, #tpu.memory_space<vmem>>, vector<8x1024xf32>
    tpu.vector_store %arg12[%c0_6, %c0_7], %7 {strides = array<i32>} : memref<8x1024xf32, #tpu.memory_space<vmem>>, vector<8x1024xf32>,
    %c0_i32_8 = arith.constant 0 : i32
    %9 = arith.cmpi eq, %arg1, %c0_i32_8 : i32
    %10 = arith.extui %9 : i1 to i32
    %c0_i32_9 = arith.constant 0 : i32
    %11 = arith.cmpi ne, %10, %c0_i32_9 : i32
    scf.if %11 {
      %c0_10 = arith.constant 0 : index
      %c0_11 = arith.constant 0 : index
      %12 = vector.load %arg12[%c0_10, %c0_11] : memref<8x1024xf32, #tpu.memory_space<vmem>>, vector<8x1024xf32>
      %c0_12 = arith.constant 0 : index
      %c0_13 = arith.constant 0 : index
      %13 = vector.load %arg4[%c0_12, %c0_13] : memref<1x1024xf32, #tpu.memory_space<vmem>>, vector<1x1024xf32>
      %14 = vector.broadcast %13 : vector<1x1024xf32> to vector<8x1024xf32>
      %15 = arith.addf %12, %14 : vector<8x1024xf32>
      %cst_14 = arith.constant 0.000000e+00 : f32
      %16 = vector.broadcast %cst_14 : f32 to vector<8x1024xf32>
      %17 = arith.maximumf %15, %16 : vector<8x1024xf32>
      %18 = arith.truncf %17 : vector<8x1024xf32> to vector<8x1024xbf16>
      %c0_15 = arith.constant 0 : index
      %c0_16 = arith.constant 0 : index
      %19 = vector.load %arg5[%c0_15, %c0_16] : memref<1024x1024xbf16, #tpu.memory_space<vmem>>, vector<1024x1024xbf16>
      %cst_17 = arith.constant dense<0.000000e+00> : vector<8x1024xf32>
      %20 = tpu.matmul %18, %19, %cst_17 {dimension_numbers = #tpu.dot_dimension_numbers<[1], [0], [0], [1], [0, 0, 1, 1], [], []>} : vector<8x1024xbf16>, vector<1024x1024xbf16>, vector<8x1024xf32> -> vector<8x1024xf32>
      %c0_18 = arith.constant 0 : index
      %c0_19 = arith.constant 0 : index
      %21 = vector.load %arg6[%c0_18, %c0_19] : memref<1x1024xf32, #tpu.memory_space<vmem>>, vector<1x1024xf32>
      %22 = vector.broadcast %21 : vector<1x1024xf32> to vector<8x1024xf32>
      %23 = arith.addf %20, %22 : vector<8x1024xf32>
      %cst_20 = arith.constant 0.000000e+00 : f32
      %24 = vector.broadcast %cst_20 : f32 to vector<8x1024xf32>
      %25 = arith.maximumf %23, %24 : vector<8x1024xf32>
      %26 = arith.truncf %25 : vector<8x1024xf32> to vector<8x1024xbf16>
      %c0_21 = arith.constant 0 : index
      %c0_22 = arith.constant 0 : index
      %27 = vector.load %arg7[%c0_21, %c0_22] : memref<1024x1024xbf16, #tpu.memory_space<vmem>>, vector<1024x1024xbf16>
      %cst_23 = arith.constant dense<0.000000e+00> : vector<8x1024xf32>
      %28 = tpu.matmul %26, %27, %cst_23 {dimension_numbers = #tpu.dot_dimension_numbers<[1], [0], [0], [1], [0, 0, 1, 1], [], []>} : vector<8x1024xbf16>, vector<1024x1024xbf16>, vector<8x1024xf32> -> vector<8x1024xf32>
      %c0_24 = arith.constant 0 : index
      %c0_25 = arith.constant 0 : index
      %29 = vector.load %arg8[%c0_24, %c0_25] : memref<1x1024xf32, #tpu.memory_space<vmem>>, vector<1x1024xf32>
      %30 = vector.broadcast %29 : vector<1x1024xf32> to vector<8x1024xf32>
      %31 = arith.addf %28, %30 : vector<8x1024xf32>
      %cst_26 = arith.constant 0.000000e+00 : f32
      %32 = vector.broadcast %cst_26 : f32 to vector<8x1024xf32>
      %33 = arith.maximumf %31, %32 : vector<8x1024xf32>
      %34 = arith.truncf %33 : vector<8x1024xf32> to vector<8x1024xbf16>
      %c0_27 = arith.constant 0 : index
      %c0_28 = arith.constant 0 : index
      %35 = vector.load %arg9[%c0_27, %c0_28] : memref<1024x128xbf16, #tpu.memory_space<vmem>>, vector<1024x128xbf16>
      %cst_29 = arith.constant dense<0.000000e+00> : vector<8x128xf32>
      %36 = tpu.matmul %34, %35, %cst_29 {dimension_numbers = #tpu.dot_dimension_numbers<[1], [0], [0], [1], [0, 0, 1, 1], [], []>} : vector<8x1024xbf16>, vector<1024x128xbf16>, vector<8x128xf32> -> vector<8x128xf32>
      %c0_30 = arith.constant 0 : index
      %c0_31 = arith.constant 0 : index
      %37 = vector.load %arg10[%c0_30, %c0_31] : memref<1x128xf32, #tpu.memory_space<vmem>>, vector<1x128xf32>
      %38 = vector.broadcast %37 : vector<1x128xf32> to vector<8x128xf32>
      %39 = arith.addf %36, %38 : vector<8x128xf32>
      %cst_32 = arith.constant dense<0xFF800000> : vector<8xf32>
      %40 = vector.multi_reduction <maximumf>, %39, %cst_32 [1] : vector<8x128xf32> to vector<8xf32>
      %41 = vector.shape_cast %40 : vector<8xf32> to vector<8x1xf32>
      %42 = vector.broadcast %41 : vector<8x1xf32> to vector<8x128xf32>
      %43 = arith.subf %39, %42 : vector<8x128xf32>
      %44 = math.exp %43 : vector<8x128xf32>
      %cst_33 = arith.constant dense<0.000000e+00> : vector<8xf32>
      %45 = vector.multi_reduction <add>, %44, %cst_33 [1] : vector<8x128xf32> to vector<8xf32>
      %46 = vector.shape_cast %45 : vector<8xf32> to vector<8x1xf32>
      %47 = tpu.reciprocal %46 {approx = true} : vector<8x1xf32> -> vector<8x1xf32>
      %48 = vector.broadcast %47 : vector<8x1xf32> to vector<8x128xf32>
      %49 = arith.mulf %44, %48 : vector<8x128xf32>
      %c0_34 = arith.constant 0 : index
      %c0_35 = arith.constant 0 : index
      %50 = vector.load %arg11[%c0_34, %c0_35] : memref<8x128xf32, #tpu.memory_space<vmem>>, vector<8x128xf32>
      tpu.vector_store %arg11[%c0_34, %c0_35], %49 {strides = array<i32>} : memref<8x128xf32, #tpu.memory_space<vmem>>, vector<8x128xf32>,
    } else {
    }
    return
  }
  func.func @transform_0(%arg0: i32, %arg1: i32) -> (i32, i32) {
    %c0_i32 = arith.constant 0 : i32
    return %arg0, %arg1 : i32, i32
  }
  func.func @transform_1(%arg0: i32, %arg1: i32) -> (i32, i32) {
    %c0_i32 = arith.constant 0 : i32
    %c0_i32_0 = arith.constant 0 : i32
    return %arg1, %c0_i32 : i32, i32
  }
  func.func @transform_2(%arg0: i32, %arg1: i32) -> (i32, i32) {
    %c0_i32 = arith.constant 0 : i32
    %c0_i32_0 = arith.constant 0 : i32
    %c0_i32_1 = arith.constant 0 : i32
    return %c0_i32, %c0_i32_0 : i32, i32
  }
  func.func @transform_3(%arg0: i32, %arg1: i32) -> (i32, i32) {
    %c0_i32 = arith.constant 0 : i32
    %c0_i32_0 = arith.constant 0 : i32
    %c0_i32_1 = arith.constant 0 : i32
    return %c0_i32, %c0_i32_0 : i32, i32
  }
  func.func @transform_4(%arg0: i32, %arg1: i32) -> (i32, i32) {
    %c0_i32 = arith.constant 0 : i32
    %c0_i32_0 = arith.constant 0 : i32
    %c0_i32_1 = arith.constant 0 : i32
    return %c0_i32, %c0_i32_0 : i32, i32
  }
  func.func @transform_5(%arg0: i32, %arg1: i32) -> (i32, i32) {
    %c0_i32 = arith.constant 0 : i32
    %c0_i32_0 = arith.constant 0 : i32
    %c0_i32_1 = arith.constant 0 : i32
    return %c0_i32, %c0_i32_0 : i32, i32
  }
  func.func @transform_6(%arg0: i32, %arg1: i32) -> (i32, i32) {
    %c0_i32 = arith.constant 0 : i32
    %c0_i32_0 = arith.constant 0 : i32
    %c0_i32_1 = arith.constant 0 : i32
    return %c0_i32, %c0_i32_0 : i32, i32
  }
  func.func @transform_7(%arg0: i32, %arg1: i32) -> (i32, i32) {
    %c0_i32 = arith.constant 0 : i32
    %c0_i32_0 = arith.constant 0 : i32
    %c0_i32_1 = arith.constant 0 : i32
    return %c0_i32, %c0_i32_0 : i32, i32
  }
  func.func @transform_8(%arg0: i32, %arg1: i32) -> (i32, i32) {
    %c0_i32 = arith.constant 0 : i32
    %c0_i32_0 = arith.constant 0 : i32
    %c0_i32_1 = arith.constant 0 : i32
    return %c0_i32, %c0_i32_0 : i32, i32
  }
  func.func @transform_9(%arg0: i32, %arg1: i32) -> (i32, i32) {
    %c0_i32 = arith.constant 0 : i32
    %c0_i32_0 = arith.constant 0 : i32
    return %arg0, %c0_i32 : i32, i32
  }
}

</mosaic_0001>

<bundles_post_ra>
// kernel: tpu_custom_call.1
= control target key start
LH: loop header
LB: loop body
LE: loop exit
PB: predicated region body
PF: predicated region fallthrough
CT: control target
= control target key end

     0   :  { %14 = vsyncpa [#allocation4], 0  ;;  %s14949_s0 = inlined_call_operand.hbm [shape: bf16[8,1024], index: 0, kind: input, shape index: {}]   ;;  %s14950_s1 = inlined_call_operand.hbm [shape: bf16[1024,1024], index: 1, kind: input, shape index: {}]   ;;  %s14951_s2 = inlined_call_operand.hbm [shape: f32[1,1024], index: 2, kind: input, shape index: {}]   ;;  %s14952_s3 = inlined_call_operand.hbm [shape: bf16[1024,1024], index: 3, kind: input, shape index: {}]   ;;  %s14953_s4 = inlined_call_operand.hbm [shape: f32[1,1024], index: 4, kind: input, shape index: {}]   ;;  %s14954_s5 = inlined_call_operand.hbm [shape: bf16[1024,1024], index: 5, kind: input, shape index: {}]   ;;  %s14955_s6 = inlined_call_operand.hbm [shape: f32[1,1024], index: 6, kind: input, shape index: {}]   ;;  %s14956_s7 = inlined_call_operand.hbm [shape: bf16[1024,128], index: 7, kind: input, shape index: {}]   ;;  %s14957_s8 = inlined_call_operand.hbm [shape: f32[1,128], index: 8, kind: input, shape index: {}]   ;;  %s14958_s9 = inlined_call_operand.hbm [shape: f32[8,128], index: 9, kind: output, shape index: {}]  }
   0x1   :  { %15 = vsyncpa [#allocation7], 0 }
   0x2   :  { %16 = vsyncpa [#allocation10], 0 }
   0x3   :  { %17 = vsyncpa [#allocation13], 0 }
   0x4   :  { %18 = vsyncpa [#allocation16], 0 }
   0x5   :  { %19 = vsyncpa [#allocation5], 0  ;;  %s14432_s30 = smov [#allocation6]   ;;  %s14200_s13 = scalar_lea.hbm %s14950_s1, 65536 }
   0x6   :  { %s35_s10 = sshll.u32 %s14432_s30, 4  ;;  %p14201_p0 = scmp.ne.s32.totalorder %s14950_s1, %s14200_s13  ;;  %s36_s10 = int_to_ptr.vmem [resolvable:$true] %s35_s10 }
   0x7   :  { %p14204_p1 = scmp.lt.u32.totalorder %s14200_s13, %s14950_s1 }
   0x9   :  { %p14206_p2 = pnand %p14204_p1, %p14201_p0 }
   0xb   :  { %14209 = shalt.err (!%p14206_p2)
}
   0xc   :  { %s14210_s18 = scalar_lea.vmem %s36_s10, 65536  ;;  %p14215_p4 = scmp.lt.s32.totalorder %s36_s10, %s36_s10 }
   0xd   :  { %p14211_p3 = scmp.ne.s32.totalorder %s36_s10, %s14210_s18  ;;  %p14216_p5 = scmp.lt.s32.totalorder %s14210_s18, %s14210_s18 }
   0xf   :  { %p14217_p6 = por %p14216_p5, %p14215_p4 }
  0x11   :  { %p14218_p7 = pnand %p14217_p6, %p14211_p3 }
  0x13   :  { %14221 = shalt.err (!%p14218_p7)
}
  0x14   :  { %s14433_s19 = smov 512   ;;  %s14434_s20 = smov 32  }
  0x15   :  { %41 = dma.hbm_to_vmem [thread:$0]  %s14950_s1, 65536, %s36_s10, [#allocation7], %s14433_s19, %s14433_s19, %s14434_s20  }
  0x16   :  { %s14435_s23 = smov [#allocation9]   ;;  %s14436_s25 = smov [#allocation12]  }
  0x17   :  { %s57_s24 = sshll.u32 %s14435_s23, 4  ;;  %s79_s26 = sshll.u32 %s14436_s25, 4  ;;  %s58_s24 = int_to_ptr.vmem [resolvable:$true] %s57_s24  ;;  %s80_s26 = int_to_ptr.vmem [resolvable:$true] %s79_s26 }
  0x18   :  { %s14222_s29 = scalar_lea.hbm %s14952_s3, 65536 }
  0x19   :  { %p14223_p8 = scmp.ne.s32.totalorder %s14952_s3, %s14222_s29  ;;  %p14226_p9 = scmp.lt.u32.totalorder %s14222_s29, %s14952_s3 }
  0x1b   :  { %p14228_p10 = pnand %p14226_p9, %p14223_p8 }
  0x1d   :  { %14231 = shalt.err (!%p14228_p10)
}
  0x1e   :  { %s14232_s1 = scalar_lea.vmem %s58_s24, 65536  ;;  %p14237_p12 = scmp.lt.s32.totalorder %s58_s24, %s58_s24 }
  0x1f   :  { %p14233_p11 = scmp.ne.s32.totalorder %s58_s24, %s14232_s1  ;;  %p14238_p13 = scmp.lt.s32.totalorder %s14232_s1, %s14232_s1 }
  0x21   :  { %p14239_p0 = por %p14238_p13, %p14237_p12 }
  0x23   :  { %p14240_p1 = pnand %p14239_p0, %p14233_p11 }
  0x25   :  { %14243 = shalt.err (!%p14240_p1)
}
  0x26   :  { %63 = dma.hbm_to_vmem [thread:$0]  %s14952_s3, 65536, %s58_s24, [#allocation10], %s14433_s19, %s14433_s19, %s14434_s20  }
  0x27   :  { %s14244_s17 = scalar_lea.hbm %s14954_s5, 65536 }
  0x28   :  { %p14245_p2 = scmp.ne.s32.totalorder %s14954_s5, %s14244_s17  ;;  %p14248_p3 = scmp.lt.u32.totalorder %s14244_s17, %s14954_s5 }
  0x2a   :  { %p14250_p4 = pnand %p14248_p3, %p14245_p2 }
  0x2c   :  { %14253 = shalt.err (!%p14250_p4)
}
  0x2d   :  { %s14254_s25 = scalar_lea.vmem %s80_s26, 65536  ;;  %p14259_p6 = scmp.lt.s32.totalorder %s80_s26, %s80_s26 }
  0x2e   :  { %p14255_p5 = scmp.ne.s32.totalorder %s80_s26, %s14254_s25  ;;  %p14260_p7 = scmp.lt.s32.totalorder %s14254_s25, %s14254_s25 }
  0x30   :  { %p14261_p8 = por %p14260_p7, %p14259_p6 }
  0x32   :  { %p14262_p9 = pnand %p14261_p8, %p14255_p5 }
  0x34   :  { %14265 = shalt.err (!%p14262_p9)
}
  0x35   :  { %85 = dma.hbm_to_vmem [thread:$0]  %s14954_s5, 65536, %s80_s26, [#allocation13], %s14433_s19, %s14433_s19, %s14434_s20  }
  0x36   :  { %s14437_s27 = smov [#allocation15]   ;;  %s14266_s11 = scalar_lea.hbm %s14956_s7, 8192 }
  0x37   :  { %s101_s28 = sshll.u32 %s14437_s27, 4  ;;  %p14267_p10 = scmp.ne.s32.totalorder %s14956_s7, %s14266_s11  ;;  %s102_s28 = int_to_ptr.vmem [resolvable:$true] %s101_s28 }
  0x38   :  { %p14270_p11 = scmp.lt.u32.totalorder %s14266_s11, %s14956_s7 }
  0x3a   :  { %p14272_p12 = pnand %p14270_p11, %p14267_p10 }
  0x3c   :  { %14275 = shalt.err (!%p14272_p12)
}
  0x3d   :  { %s14276_s14 = scalar_lea.vmem %s102_s28, 8192  ;;  %p14281_p0 = scmp.lt.s32.totalorder %s102_s28, %s102_s28 }
  0x3e   :  { %p14277_p13 = scmp.ne.s32.totalorder %s102_s28, %s14276_s14  ;;  %p14282_p1 = scmp.lt.s32.totalorder %s14276_s14, %s14276_s14 }
  0x40   :  { %p14283_p2 = por %p14282_p1, %p14281_p0 }
  0x42   :  { %p14284_p3 = pnand %p14283_p2, %p14277_p13 }
  0x44   :  { %14287 = shalt.err (!%p14284_p3)
}
  0x45   :  { %s14438_s5 = smov 64   ;;  %s14439_s19 = smov 4  }
  0x46   :  { %107 = dma.hbm_to_vmem [thread:$0]  %s14956_s7, 8192, %s102_s28, [#allocation16], %s14438_s5, %s14438_s5, %s14439_s19  }
  0x47   :  { %s14440_s15 = smov [#allocation3]   ;;  %s14441_s17 = smov [#allocation8]  }
  0x48   :  { %s26_s16 = sshll.u32 %s14440_s15, 4  ;;  %s48_s18 = sshll.u32 %s14441_s17, 4  ;;  %s27_s16 = int_to_ptr.vmem [resolvable:$true] %s26_s16  ;;  %s49_s18 = int_to_ptr.vmem [resolvable:$true] %s48_s18 }
  0x49   :  { %s14288_s23 = scalar_lea.hbm %s14949_s0, 512 }
  0x4a   :  { %p14289_p4 = scmp.ne.s32.totalorder %s14949_s0, %s14288_s23  ;;  %p14292_p5 = scmp.lt.u32.totalorder %s14288_s23, %s14949_s0 }
  0x4c   :  { %p14294_p6 = pnand %p14292_p5, %p14289_p4 }
  0x4e   :  { %14297 = shalt.err (!%p14294_p6)
}
  0x4f   :  { %s14298_s7 = scalar_lea.vmem %s27_s16, 512  ;;  %p14303_p8 = scmp.lt.s32.totalorder %s27_s16, %s27_s16 }
  0x50   :  { %p14299_p7 = scmp.ne.s32.totalorder %s27_s16, %s14298_s7  ;;  %p14304_p9 = scmp.lt.s32.totalorder %s14298_s7, %s14298_s7 }
  0x52   :  { %p14305_p10 = por %p14304_p9, %p14303_p8 }
  0x54   :  { %p14306_p11 = pnand %p14305_p10, %p14299_p7 }
  0x56   :  { %14309 = shalt.err (!%p14306_p11)
}
  0x57   :  { %29 = dma.hbm_to_vmem [thread:$0]  %s14949_s0, 512, %s27_s16, [#allocation4]  }
  0x58   :  { %s14310_s12 = scalar_lea.hbm %s14951_s2, 128 }
  0x59   :  { %p14311_p12 = scmp.ne.s32.totalorder %s14951_s2, %s14310_s12  ;;  %p14314_p13 = scmp.lt.u32.totalorder %s14310_s12, %s14951_s2 }
  0x5b   :  { %p14316_p0 = pnand %p14314_p13, %p14311_p12 }
  0x5d   :  { %14319 = shalt.err (!%p14316_p0)
}
  0x5e   :  { %s14320_s5 = scalar_lea.vmem %s49_s18, 128  ;;  %p14325_p2 = scmp.lt.s32.totalorder %s49_s18, %s49_s18 }
  0x5f   :  { %p14321_p1 = scmp.ne.s32.totalorder %s49_s18, %s14320_s5  ;;  %p14326_p3 = scmp.lt.s32.totalorder %s14320_s5, %s14320_s5 }
  0x61   :  { %p14327_p4 = por %p14326_p3, %p14325_p2 }
  0x63   :  { %p14328_p5 = pnand %p14327_p4, %p14321_p1 }
  0x65   :  { %14331 = shalt.err (!%p14328_p5)
}
  0x66   :  { %51 = dma.hbm_to_vmem [thread:$0]  %s14951_s2, 128, %s49_s18, [#allocation7]  }
  0x67   :  { %s14442_s20 = smov [#allocation11]   ;;  %s14443_s15 = smov [#allocation14]  }
  0x68   :  { %s70_s26 = sshll.u32 %s14442_s20, 4  ;;  %s92_s16 = sshll.u32 %s14443_s15, 4  ;;  %s71_s26 = int_to_ptr.vmem [resolvable:$true] %s70_s26  ;;  %s93_s16 = int_to_ptr.vmem [resolvable:$true] %s92_s16 }
  0x69   :  { %s14332_s22 = scalar_lea.hbm %s14953_s4, 128 }
  0x6a   :  { %p14333_p6 = scmp.ne.s32.totalorder %s14953_s4, %s14332_s22  ;;  %p14336_p7 = scmp.lt.u32.totalorder %s14332_s22, %s14953_s4 }
  0x6c   :  { %p14338_p8 = pnand %p14336_p7, %p14333_p6 }
  0x6e   :  { %14341 = shalt.err (!%p14338_p8)
}
  0x6f   :  { %s14342_s2 = scalar_lea.vmem %s71_s26, 128  ;;  %p14347_p10 = scmp.lt.s32.totalorder %s71_s26, %s71_s26 }
  0x70   :  { %p14343_p9 = scmp.ne.s32.totalorder %s71_s26, %s14342_s2  ;;  %p14348_p11 = scmp.lt.s32.totalorder %s14342_s2, %s14342_s2 }
  0x72   :  { %p14349_p12 = por %p14348_p11, %p14347_p10 }
  0x74   :  { %p14350_p13 = pnand %p14349_p12, %p14343_p9 }
  0x76   :  { %14353 = shalt.err (!%p14350_p13)
}
  0x77   :  { %73 = dma.hbm_to_vmem [thread:$0]  %s14953_s4, 128, %s71_s26, [#allocation10]  }
  0x78   :  { %s14354_s29 = scalar_lea.hbm %s14955_s6, 128 }
  0x79   :  { %p14355_p0 = scmp.ne.s32.totalorder %s14955_s6, %s14354_s29  ;;  %p14358_p1 = scmp.lt.u32.totalorder %s14354_s29, %s14955_s6 }
  0x7b   :  { %p14360_p2 = pnand %p14358_p1, %p14355_p0 }
  0x7d   :  { %14363 = shalt.err (!%p14360_p2)
}
  0x7e   :  { %s14364_s1 = scalar_lea.vmem %s93_s16, 128  ;;  %p14369_p4 = scmp.lt.s32.totalorder %s93_s16, %s93_s16 }
  0x7f   :  { %p14365_p3 = scmp.ne.s32.totalorder %s93_s16, %s14364_s1  ;;  %p14370_p5 = scmp.lt.s32.totalorder %s14364_s1, %s14364_s1 }
  0x81   :  { %p14371_p6 = por %p14370_p5, %p14369_p4 }
  0x83   :  { %p14372_p7 = pnand %p14371_p6, %p14365_p3 }
  0x85   :  { %14375 = shalt.err (!%p14372_p7)
}
  0x86   :  { %95 = dma.hbm_to_vmem [thread:$0]  %s14955_s6, 128, %s93_s16, [#allocation13]  }
  0x87   :  { %s14444_s14 = smov [#allocation17]   ;;  %s14376_s20 = scalar_lea.hbm %s14957_s8, 16 }
  0x88   :  { %s114_s5 = sshll.u32 %s14444_s14, 4  ;;  %p14377_p8 = scmp.ne.s32.totalorder %s14957_s8, %s14376_s20  ;;  %s115_s5 = int_to_ptr.vmem [resolvable:$true] %s114_s5 }
  0x89   :  { %p14380_p9 = scmp.lt.u32.totalorder %s14376_s20, %s14957_s8 }
  0x8b   :  { %p14382_p10 = pnand %p14380_p9, %p14377_p8 }
  0x8d   :  { %14385 = shalt.err (!%p14382_p10)
}
  0x8e   :  { %s14386_s22 = scalar_lea.vmem %s115_s5, 16  ;;  %s14390_s6 = scalar_lea.vmem %s115_s5, 32 }
  0x8f   :  { %p14387_p11 = scmp.ne.s32.totalorder %s115_s5, %s14386_s22  ;;  %p14391_p12 = scmp.lt.s32.totalorder %s115_s5, %s115_s5 }
  0x90   :  { %p14392_p13 = scmp.lt.s32.totalorder %s14390_s6, %s14386_s22 }
  0x92   :  { %p14393_p0 = por %p14392_p13, %p14391_p12 }
  0x94   :  { %p14394_p1 = pnand %p14393_p0, %p14387_p11 }
  0x96   :  { %14397 = shalt.err (!%p14394_p1)
}
  0x97   :  { %117 = dma.hbm_to_vmem [thread:$0]  %s14957_s8, 16, %s115_s5, [#allocation16]  }
  0x98   :  { %14420 = dma.done.wait [#allocation4], 512  }
  0x99   :  { %14421 = vsyncadd [#allocation4], 4294966784 }
  0x9a   :  { %14422 = dma.done.wait [#allocation7], 65664  }
  0x9b   :  { %14423 = vsyncadd [#allocation7], 4294901632 }
  0x9c   :  { %14424 = dma.done.wait [#allocation10], 65664  }
  0x9d   :  { %14425 = vsyncadd [#allocation10], 4294901632 }
  0x9e   :  { %14426 = dma.done.wait [#allocation13], 65664  }
  0x9f   :  { %14427 = vsyncadd [#allocation13], 4294901632 }
  0xa0   :  { %14428 = dma.done.wait [#allocation16], 8208  }
  0xa1   :  { %14429 = vsyncadd [#allocation16], 4294959088  ;;  %v170_v0 = vld [vmem:[#allocation6] sm:$0xff]  ;;  %v14615_v54 = vld [vmem:[#allocation3 + $0x8] sm:$0xff]  ;;  %s14445_s8 = smov [#allocation18]  }
  0xa2   :  { %v174_v1 = vld [vmem:[#allocation6 + $0x20] sm:$0xff]  ;;  %v14623_v59 = vcombine.high %v14615_v54, %v14615_v54  ;;  %s12286_s25 = sshll.u32 %s14445_s8, 4  ;;  %s12287_s25 = int_to_ptr.vmem [resolvable:$true] %s12286_s25 }
  0xa3   :  { %v298_v2 = vld [vmem:[#allocation6 + $0x400] sm:$0xff]  ;;  %v12308_v3 = vcombine.high %v170_v0, %v174_v1  ;;  %v12307_v5 = vcombine.low %v170_v0, %v174_v1  ;;  %s14398_s3 = scalar_lea.vmem %s12287_s25, 128  ;;  %p14403_p3 = scmp.lt.s32.totalorder %s12287_s25, %s12287_s25 }
  0xa4   :  { %v302_v4 = vld [vmem:[#allocation6 + $0x420] sm:$0xff]  ;;  %3343 = vmatprep.mubr.bf16.mxu1 %v14623_v59  ;;  %p14399_p2 = scmp.ne.s32.totalorder %s12287_s25, %s14398_s3  ;;  %p14404_p4 = scmp.lt.s32.totalorder %s14398_s3, %s14398_s3 }
  0xa5   :  { %v178_v6 = vld [vmem:[#allocation6 + $0x40] sm:$0xff]  ;;  %v12436_v8 = vcombine.high %v298_v2, %v302_v4  ;;  %v12435_v9 = vcombine.low %v298_v2, %v302_v4  ;;  %3270 = vmatprep.subr.bf16.mxu0 %v12308_v3 }
  0xa6   :  { %v182_v7 = vld [vmem:[#allocation6 + $0x60] sm:$0xff]  ;;  %3271 = vmatpush1.bf16.msra.mxu0 %v12307_v5  ;;  %p14405_p5 = por %p14404_p4, %p14403_p3 }
  0xa7   :  { %v12316_v10 = vcombine.high %v178_v6, %v182_v7  ;;  %v306_v11 = vld [vmem:[#allocation6 + $0x440] sm:$0xff]  ;;  %3311 = vmatprep.subr.bf16.mxu1 %v12436_v8  ;;  %v12315_v18 = vcombine.low %v178_v6, %v182_v7 }
  0xa8   :  { %v310_v12 = vld [vmem:[#allocation6 + $0x460] sm:$0xff]  ;;  %3312 = vmatpush1.bf16.msra.mxu1 %v12435_v9  ;;  %p14406_p6 = pnand %p14405_p5, %p14399_p2 }
  0xa9   :  { %v186_v13 = vld [vmem:[#allocation6 + $0x80] sm:$0xff]  ;;  %v12444_v14 = vcombine.high %v306_v11, %v310_v12  ;;  %3272 = vmatprep.subr.bf16.mxu0 %v12316_v10  ;;  %v12443_v19 = vcombine.low %v306_v11, %v310_v12 }
  0xaa   :  { %v190_v15 = vld [vmem:[#allocation6 + $0xa0] sm:$0xff]  ;;  %3273 = vmatpush1.bf16.msra.mxu0 %v12315_v18 }
  0xab   :  { %v314_v16 = vld [vmem:[#allocation6 + $0x480] sm:$0xff]  ;;  %v12324_v20 = vcombine.high %v186_v13, %v190_v15  ;;  %3313 = vmatprep.subr.bf16.mxu1 %v12444_v14  ;;  %v12323_v26 = vcombine.low %v186_v13, %v190_v15 }
  0xac   :  { %v318_v17 = vld [vmem:[#allocation6 + $0x4a0] sm:$0xff]  ;;  %3314 = vmatpush1.bf16.msra.mxu1 %v12443_v19 }
  0xad   :  { %v12452_v21 = vcombine.high %v314_v16, %v318_v17  ;;  %v194_v22 = vld [vmem:[#allocation6 + $0xc0] sm:$0xff]  ;;  %3274 = vmatprep.subr.bf16.mxu0 %v12324_v20  ;;  %v12451_v27 = vcombine.low %v314_v16, %v318_v17 }
  0xae   :  { %v198_v23 = vld [vmem:[#allocation6 + $0xe0] sm:$0xff]  ;;  %3275 = vmatpush1.bf16.msra.mxu0 %v12323_v26 }
  0xaf   :  { %v322_v24 = vld [vmem:[#allocation6 + $0x4c0] sm:$0xff]  ;;  %v12332_v28 = vcombine.high %v194_v22, %v198_v23  ;;  %3315 = vmatprep.subr.bf16.mxu1 %v12452_v21  ;;  %v12331_v34 = vcombine.low %v194_v22, %v198_v23 }
  0xb0   :  { %v326_v25 = vld [vmem:[#allocation6 + $0x4e0] sm:$0xff]  ;;  %3316 = vmatpush1.bf16.msra.mxu1 %v12451_v27 }
  0xb1   :  { %v12460_v29 = vcombine.high %v322_v24, %v326_v25  ;;  %v202_v30 = vld [vmem:[#allocation6 + $0x100] sm:$0xff]  ;;  %3276 = vmatprep.subr.bf16.mxu0 %v12332_v28  ;;  %v12459_v35 = vcombine.low %v322_v24, %v326_v25 }
  0xb2   :  { %v206_v31 = vld [vmem:[#allocation6 + $0x120] sm:$0xff]  ;;  %3277 = vmatpush1.bf16.msra.mxu0 %v12331_v34 }
  0xb3   :  { %v330_v32 = vld [vmem:[#allocation6 + $0x500] sm:$0xff]  ;;  %v12340_v36 = vcombine.high %v202_v30, %v206_v31  ;;  %3317 = vmatprep.subr.bf16.mxu1 %v12460_v29  ;;  %v12339_v42 = vcombine.low %v202_v30, %v206_v31 }
  0xb4   :  { %v334_v33 = vld [vmem:[#allocation6 + $0x520] sm:$0xff]  ;;  %3318 = vmatpush1.bf16.msra.mxu1 %v12459_v35 }
  0xb5   :  { %v12468_v37 = vcombine.high %v330_v32, %v334_v33  ;;  %v210_v38 = vld [vmem:[#allocation6 + $0x140] sm:$0xff]  ;;  %3278 = vmatprep.subr.bf16.mxu0 %v12340_v36  ;;  %v12467_v43 = vcombine.low %v330_v32, %v334_v33 }
  0xb6   :  { %v214_v39 = vld [vmem:[#allocation6 + $0x160] sm:$0xff]  ;;  %3279 = vmatpush1.bf16.msra.mxu0 %v12339_v42 }
  0xb7   :  { %v338_v40 = vld [vmem:[#allocation6 + $0x540] sm:$0xff]  ;;  %v12348_v44 = vcombine.high %v210_v38, %v214_v39  ;;  %3319 = vmatprep.subr.bf16.mxu1 %v12468_v37  ;;  %v12347_v50 = vcombine.low %v210_v38, %v214_v39 }
  0xb8   :  { %v342_v41 = vld [vmem:[#allocation6 + $0x560] sm:$0xff]  ;;  %3320 = vmatpush1.bf16.msra.mxu1 %v12467_v43 }
  0xb9   :  { %v12476_v45 = vcombine.high %v338_v40, %v342_v41  ;;  %v218_v46 = vld [vmem:[#allocation6 + $0x180] sm:$0xff]  ;;  %3280 = vmatprep.subr.bf16.mxu0 %v12348_v44  ;;  %v12475_v51 = vcombine.low %v338_v40, %v342_v41 }
  0xba   :  { %v222_v47 = vld [vmem:[#allocation6 + $0x1a0] sm:$0xff]  ;;  %3281 = vmatpush1.bf16.msra.mxu0 %v12347_v50 }
  0xbb   :  { %v346_v48 = vld [vmem:[#allocation6 + $0x580] sm:$0xff]  ;;  %v12356_v52 = vcombine.high %v218_v46, %v222_v47  ;;  %3321 = vmatprep.subr.bf16.mxu1 %v12476_v45  ;;  %v12355_v62 = vcombine.low %v218_v46, %v222_v47 }
  0xbc   :  { %v350_v49 = vld [vmem:[#allocation6 + $0x5a0] sm:$0xff]  ;;  %3322 = vmatpush1.bf16.msra.mxu1 %v12475_v51 }
  0xbd   :  { %v14613_v53 = vld [vmem:[#allocation3] sm:$0xff]  ;;  %v12484_v55 = vcombine.high %v346_v48, %v350_v49  ;;  %3282 = vmatprep.subr.bf16.mxu0 %v12356_v52  ;;  %v12483_v63 = vcombine.low %v346_v48, %v350_v49 }
  0xbe   :  { %v226_v56 = vld [vmem:[#allocation6 + $0x1c0] sm:$0xff]  ;;  %v14619_v58 = vcombine.high %v14613_v53, %v14613_v53  ;;  %3283 = vmatpush1.bf16.msra.mxu0 %v12355_v62 }
  0xbf   :  { %v230_v57 = vld [vmem:[#allocation6 + $0x1e0] sm:$0xff]  ;;  %3323 = vmatprep.subr.bf16.mxu1 %v12484_v55 }
  0xc0   :  { %v354_v60 = vld [vmem:[#allocation6 + $0x5c0] sm:$0xff]  ;;  %3302 = vmatprep.mubr.bf16.mxu0 %v14619_v58  ;;  %v12364_v0 = vcombine.high %v226_v56, %v230_v57  ;;  %v12363_v6 = vcombine.low %v226_v56, %v230_v57  ;;  %3324 = vmatpush1.bf16.msra.mxu1 %v12483_v63 }
  0xc1   :  { %v358_v61 = vld [vmem:[#allocation6 + $0x5e0] sm:$0xff] }
  0xc2   :  { %v12492_v1 = vcombine.high %v354_v60, %v358_v61  ;;  %v234_v2 = vld [vmem:[#allocation6 + $0x200] sm:$0xff]  ;;  %3284 = vmatprep.subr.bf16.mxu0 %v12364_v0  ;;  %v12491_v7 = vcombine.low %v354_v60, %v358_v61 }
  0xc3   :  { %v238_v3 = vld [vmem:[#allocation6 + $0x220] sm:$0xff]  ;;  %3285 = vmatpush1.bf16.msra.mxu0 %v12363_v6 }
  0xc4   :  { %v362_v4 = vld [vmem:[#allocation6 + $0x600] sm:$0xff]  ;;  %v12372_v8 = vcombine.high %v234_v2, %v238_v3  ;;  %3325 = vmatprep.subr.bf16.mxu1 %v12492_v1  ;;  %v12371_v14 = vcombine.low %v234_v2, %v238_v3 }
  0xc5   :  { %v366_v5 = vld [vmem:[#allocation6 + $0x620] sm:$0xff]  ;;  %3326 = vmatpush1.bf16.msra.mxu1 %v12491_v7 }
  0xc6   :  { %v12500_v9 = vcombine.high %v362_v4, %v366_v5  ;;  %v242_v10 = vld [vmem:[#allocation6 + $0x240] sm:$0xff]  ;;  %3286 = vmatprep.subr.bf16.mxu0 %v12372_v8  ;;  %v12499_v15 = vcombine.low %v362_v4, %v366_v5 }
  0xc7   :  { %v246_v11 = vld [vmem:[#allocation6 + $0x260] sm:$0xff]  ;;  %3287 = vmatpush1.bf16.msra.mxu0 %v12371_v14 }
  0xc8   :  { %v370_v12 = vld [vmem:[#allocation6 + $0x640] sm:$0xff]  ;;  %v12380_v16 = vcombine.high %v242_v10, %v246_v11  ;;  %3327 = vmatprep.subr.bf16.mxu1 %v12500_v9  ;;  %v12379_v22 = vcombine.low %v242_v10, %v246_v11 }
  0xc9   :  { %v374_v13 = vld [vmem:[#allocation6 + $0x660] sm:$0xff]  ;;  %3328 = vmatpush1.bf16.msra.mxu1 %v12499_v15 }
  0xca   :  { %v12508_v17 = vcombine.high %v370_v12, %v374_v13  ;;  %v250_v18 = vld [vmem:[#allocation6 + $0x280] sm:$0xff]  ;;  %3288 = vmatprep.subr.bf16.mxu0 %v12380_v16  ;;  %v12507_v23 = vcombine.low %v370_v12, %v374_v13  ;;  %v14629_v16 = vcombine.low %v14613_v53, %v14613_v53 }
  0xcb   :  { %v254_v19 = vld [vmem:[#allocation6 + $0x2a0] sm:$0xff]  ;;  %3289 = vmatpush1.bf16.msra.mxu0 %v12379_v22  ;;  %v14637_v22 = vld [vmem:[#allocation3 + $0x18] sm:$0xff] }
  0xcc   :  { %v378_v20 = vld [vmem:[#allocation6 + $0x680] sm:$0xff]  ;;  %v12388_v24 = vcombine.high %v250_v18, %v254_v19  ;;  %3329 = vmatprep.subr.bf16.mxu1 %v12508_v17  ;;  %v12387_v30 = vcombine.low %v250_v18, %v254_v19  ;;  %v14631_v19 = vld [vmem:[#allocation3 + $0x10] sm:$0xff] }
  0xcd   :  { %v382_v21 = vld [vmem:[#allocation6 + $0x6a0] sm:$0xff]  ;;  %3330 = vmatpush1.bf16.msra.mxu1 %v12507_v23 }
  0xce   :  { %v12516_v25 = vcombine.high %v378_v20, %v382_v21  ;;  %v258_v26 = vld [vmem:[#allocation6 + $0x2c0] sm:$0xff]  ;;  %3290 = vmatprep.subr.bf16.mxu0 %v12388_v24  ;;  %v12515_v31 = vcombine.low %v378_v20, %v382_v21  ;;  %v14635_v20 = vcombine.low %v14615_v54, %v14615_v54  ;;  %v14646_v54 = vcombine.high %v14637_v22, %v14637_v22 }
  0xcf   :  { %v262_v27 = vld [vmem:[#allocation6 + $0x2e0] sm:$0xff]  ;;  %3291 = vmatpush1.bf16.msra.mxu0 %v12387_v30 }
  0xd0   :  { %v386_v28 = vld [vmem:[#allocation6 + $0x6c0] sm:$0xff]  ;;  %v12396_v32 = vcombine.high %v258_v26, %v262_v27  ;;  %3331 = vmatprep.subr.bf16.mxu1 %v12516_v25  ;;  %v12395_v38 = vcombine.low %v258_v26, %v262_v27 }
  0xd1   :  { %v390_v29 = vld [vmem:[#allocation6 + $0x6e0] sm:$0xff]  ;;  %3332 = vmatpush1.bf16.msra.mxu1 %v12515_v31 }
  0xd2   :  { %v12524_v33 = vcombine.high %v386_v28, %v390_v29  ;;  %v266_v34 = vld [vmem:[#allocation6 + $0x300] sm:$0xff]  ;;  %3292 = vmatprep.subr.bf16.mxu0 %v12396_v32  ;;  %v12523_v39 = vcombine.low %v386_v28, %v390_v29  ;;  %v14641_v29 = vcombine.high %v14631_v19, %v14631_v19 }
  0xd3   :  { %v270_v35 = vld [vmem:[#allocation6 + $0x320] sm:$0xff]  ;;  %3293 = vmatpush1.bf16.msra.mxu0 %v12395_v38 }
  0xd4   :  { %v394_v36 = vld [vmem:[#allocation6 + $0x700] sm:$0xff]  ;;  %v12404_v40 = vcombine.high %v266_v34, %v270_v35  ;;  %3333 = vmatprep.subr.bf16.mxu1 %v12524_v33  ;;  %v12403_v46 = vcombine.low %v266_v34, %v270_v35 }
  0xd5   :  { %v398_v37 = vld [vmem:[#allocation6 + $0x720] sm:$0xff]  ;;  %3334 = vmatpush1.bf16.msra.mxu1 %v12523_v39 }
  0xd6   :  { %v12532_v41 = vcombine.high %v394_v36, %v398_v37  ;;  %v274_v42 = vld [vmem:[#allocation6 + $0x340] sm:$0xff]  ;;  %3294 = vmatprep.subr.bf16.mxu0 %v12404_v40  ;;  %v12531_v47 = vcombine.low %v394_v36, %v398_v37 }
  0xd7   :  { %v278_v43 = vld [vmem:[#allocation6 + $0x360] sm:$0xff]  ;;  %3295 = vmatpush1.bf16.msra.mxu0 %v12403_v46 }
  0xd8   :  { %v402_v44 = vld [vmem:[#allocation6 + $0x740] sm:$0xff]  ;;  %v12412_v48 = vcombine.high %v274_v42, %v278_v43  ;;  %3335 = vmatprep.subr.bf16.mxu1 %v12532_v41  ;;  %v12411_v56 = vcombine.low %v274_v42, %v278_v43 }
  0xd9   :  { %v406_v45 = vld [vmem:[#allocation6 + $0x760] sm:$0xff]  ;;  %3336 = vmatpush1.bf16.msra.mxu1 %v12531_v47 }
  0xda   :  { %v12540_v49 = vcombine.high %v402_v44, %v406_v45  ;;  %v282_v50 = vld [vmem:[#allocation6 + $0x380] sm:$0xff]  ;;  %3296 = vmatprep.subr.bf16.mxu0 %v12412_v48  ;;  %v12539_v57 = vcombine.low %v402_v44, %v406_v45 }
  0xdb   :  { %v286_v51 = vld [vmem:[#allocation6 + $0x3a0] sm:$0xff]  ;;  %3297 = vmatpush1.bf16.msra.mxu0 %v12411_v56 }
  0xdc   :  { %v410_v52 = vld [vmem:[#allocation6 + $0x780] sm:$0xff]  ;;  %v12420_v60 = vcombine.high %v282_v50, %v286_v51  ;;  %3337 = vmatprep.subr.bf16.mxu1 %v12540_v49  ;;  %v12419_v2 = vcombine.low %v282_v50, %v286_v51 }
  0xdd   :  { %v414_v55 = vld [vmem:[#allocation6 + $0x7a0] sm:$0xff]  ;;  %3338 = vmatpush1.bf16.msra.mxu1 %v12539_v57 }
  0xde   :  { %v12548_v61 = vcombine.high %v410_v52, %v414_v55  ;;  %v290_v62 = vld [vmem:[#allocation6 + $0x3c0] sm:$0xff]  ;;  %3298 = vmatprep.subr.bf16.mxu0 %v12420_v60  ;;  %v12547_v3 = vcombine.low %v410_v52, %v414_v55 }
  0xdf   :  { %v294_v63 = vld [vmem:[#allocation6 + $0x3e0] sm:$0xff]  ;;  %3299 = vmatpush1.bf16.msra.mxu0 %v12419_v2 }
  0xe0   :  { %v418_v0 = vld [vmem:[#allocation6 + $0x7c0] sm:$0xff]  ;;  %v12428_v4 = vcombine.high %v290_v62, %v294_v63  ;;  %3339 = vmatprep.subr.bf16.mxu1 %v12548_v61  ;;  %v12427_v10 = vcombine.low %v290_v62, %v294_v63 }
  0xe1   :  { %v422_v1 = vld [vmem:[#allocation6 + $0x7e0] sm:$0xff]  ;;  %3340 = vmatpush1.bf16.msra.mxu1 %v12547_v3 }
  0xe2   :  { %v12556_v5 = vcombine.high %v418_v0, %v422_v1  ;;  %v426_v6 = vld [vmem:[#allocation6 + $0x800] sm:$0xff]  ;;  %3300 = vmatprep.subr.bf16.mxu0 %v12428_v4  ;;  %v12555_v11 = vcombine.low %v418_v0, %v422_v1 }
  0xe3   :  { %v430_v7 = vld [vmem:[#allocation6 + $0x820] sm:$0xff]  ;;  %3301 = vmatpush1.bf16.msra.mxu0 %v12427_v10 }
  0xe4   :  { %v554_v8 = vld [vmem:[#allocation6 + $0xc00] sm:$0xff]  ;;  %v12564_v12 = vcombine.high %v426_v6, %v430_v7  ;;  %3341 = vmatprep.subr.bf16.mxu1 %v12556_v5  ;;  %v12563_v21 = vcombine.low %v426_v6, %v430_v7 }
  0xe5   :  { %v558_v9 = vld [vmem:[#allocation6 + $0xc20] sm:$0xff]  ;;  %3342 = vmatpush1.bf16.msra.mxu1 %v12555_v11 }
  0xe6   :  { %v12692_v13 = vcombine.high %v554_v8, %v558_v9  ;;  %v434_v14 = vld [vmem:[#allocation6 + $0x840] sm:$0xff]  ;;  %3352 = vmatprep.subr.bf16.mxu0 %v12564_v12  ;;  %v12691_v23 = vcombine.low %v554_v8, %v558_v9  ;;  %3303 = vmatmul.mubr.bf16.vlgmr.msra.gmra.mrb[0].mxu0 %v14629_v16 }
  0xe7   :  { %v438_v15 = vld [vmem:[#allocation6 + $0x860] sm:$0xff]  ;;  %3353 = vmatpush1.bf16.msra.mxu0 %v12563_v21  ;;  %3384 = vmatprep.mubr.bf16.mxu0 %v14641_v29 }
  0xe8   :  { %v562_v17 = vld [vmem:[#allocation6 + $0xc40] sm:$0xff]  ;;  %v12572_v24 = vcombine.high %v434_v14, %v438_v15  ;;  %3393 = vmatprep.subr.bf16.mxu1 %v12692_v13  ;;  %3344 = vmatmul.mubr.bf16.vlgmr.msra.gmra.mrb[0].mxu1 %v14635_v20  ;;  %v12571_v30 = vcombine.low %v434_v14, %v438_v15 }
  0xe9   :  { %v566_v18 = vld [vmem:[#allocation6 + $0xc60] sm:$0xff]  ;;  %3394 = vmatpush1.bf16.msra.mxu1 %v12691_v23  ;;  %3425 = vmatprep.mubr.bf16.mxu1 %v14646_v54 }
  0xea   :  { %v442_v25 = vld [vmem:[#allocation6 + $0x880] sm:$0xff]  ;;  %v12700_v53 = vcombine.high %v562_v17, %v566_v18  ;;  %3354 = vmatprep.subr.bf16.mxu0 %v12572_v24  ;;  %v12699_v31 = vcombine.low %v562_v17, %v566_v18 }
  0xeb   :  { %v446_v26 = vld [vmem:[#allocation6 + $0x8a0] sm:$0xff]  ;;  %3355 = vmatpush1.bf16.msra.mxu0 %v12571_v30 }
  0xec   :  { %v570_v27 = vld [vmem:[#allocation6 + $0xc80] sm:$0xff]  ;;  %v12580_v32 = vcombine.high %v442_v25, %v446_v26  ;;  %3395 = vmatprep.subr.bf16.mxu1 %v12700_v53  ;;  %v12579_v38 = vcombine.low %v442_v25, %v446_v26 }
  0xed   :  { %v574_v28 = vld [vmem:[#allocation6 + $0xca0] sm:$0xff]  ;;  %3396 = vmatpush1.bf16.msra.mxu1 %v12699_v31 }
  0xee   :  { %v450_v33 = vld [vmem:[#allocation6 + $0x8c0] sm:$0xff]  ;;  %v12708_v36 = vcombine.high %v570_v27, %v574_v28  ;;  %3356 = vmatprep.subr.bf16.mxu0 %v12580_v32  ;;  %v12707_v39 = vcombine.low %v570_v27, %v574_v28 }
  0xef   :  { %v454_v34 = vld [vmem:[#allocation6 + $0x8e0] sm:$0xff]  ;;  %3357 = vmatpush1.bf16.msra.mxu0 %v12579_v38 }
  0xf0   :  { %v578_v35 = vld [vmem:[#allocation6 + $0xcc0] sm:$0xff]  ;;  %v12588_v40 = vcombine.high %v450_v33, %v454_v34  ;;  %3397 = vmatprep.subr.bf16.mxu1 %v12708_v36  ;;  %v12587_v46 = vcombine.low %v450_v33, %v454_v34 }
  0xf1   :  { %v582_v37 = vld [vmem:[#allocation6 + $0xce0] sm:$0xff]  ;;  %3398 = vmatpush1.bf16.msra.mxu1 %v12707_v39 }
  0xf2   :  { %v458_v41 = vld [vmem:[#allocation6 + $0x900] sm:$0xff]  ;;  %v12716_v44 = vcombine.high %v578_v35, %v582_v37  ;;  %3358 = vmatprep.subr.bf16.mxu0 %v12588_v40  ;;  %v12715_v47 = vcombine.low %v578_v35, %v582_v37 }
  0xf3   :  { %v462_v42 = vld [vmem:[#allocation6 + $0x920] sm:$0xff]  ;;  %3359 = vmatpush1.bf16.msra.mxu0 %v12587_v46 }
  0xf4   :  { %v586_v43 = vld [vmem:[#allocation6 + $0xd00] sm:$0xff]  ;;  %v12596_v48 = vcombine.high %v458_v41, %v462_v42  ;;  %3399 = vmatprep.subr.bf16.mxu1 %v12716_v44  ;;  %v12595_v56 = vcombine.low %v458_v41, %v462_v42 }
  0xf5   :  { %v590_v45 = vld [vmem:[#allocation6 + $0xd20] sm:$0xff]  ;;  %3400 = vmatpush1.bf16.msra.mxu1 %v12715_v47 }
  0xf6   :  { %v466_v49 = vld [vmem:[#allocation6 + $0x940] sm:$0xff]  ;;  %v12724_v52 = vcombine.high %v586_v43, %v590_v45  ;;  %3360 = vmatprep.subr.bf16.mxu0 %v12596_v48  ;;  %v12723_v57 = vcombine.low %v586_v43, %v590_v45 }
  0xf7   :  { %v470_v50 = vld [vmem:[#allocation6 + $0x960] sm:$0xff]  ;;  %3361 = vmatpush1.bf16.msra.mxu0 %v12595_v56 }
  0xf8   :  { %v594_v51 = vld [vmem:[#allocation6 + $0xd40] sm:$0xff]  ;;  %v12604_v60 = vcombine.high %v466_v49, %v470_v50  ;;  %3401 = vmatprep.subr.bf16.mxu1 %v12724_v52  ;;  %v12603_v2 = vcombine.low %v466_v49, %v470_v50 }
  0xf9   :  { %v598_v55 = vld [vmem:[#allocation6 + $0xd60] sm:$0xff]  ;;  %3402 = vmatpush1.bf16.msra.mxu1 %v12723_v57 }
  0xfa   :  { %v474_v61 = vld [vmem:[#allocation6 + $0x980] sm:$0xff]  ;;  %v12732_v0 = vcombine.high %v594_v51, %v598_v55  ;;  %3362 = vmatprep.subr.bf16.mxu0 %v12604_v60  ;;  %v12731_v3 = vcombine.low %v594_v51, %v598_v55 }
  0xfb   :  { %v478_v62 = vld [vmem:[#allocation6 + $0x9a0] sm:$0xff]  ;;  %3363 = vmatpush1.bf16.msra.mxu0 %v12603_v2 }
  0xfc   :  { %v602_v63 = vld [vmem:[#allocation6 + $0xd80] sm:$0xff]  ;;  %v12612_v4 = vcombine.high %v474_v61, %v478_v62  ;;  %3403 = vmatprep.subr.bf16.mxu1 %v12732_v0  ;;  %v12611_v10 = vcombine.low %v474_v61, %v478_v62 }
  0xfd   :  { %v606_v1 = vld [vmem:[#allocation6 + $0xda0] sm:$0xff]  ;;  %3404 = vmatpush1.bf16.msra.mxu1 %v12731_v3 }
  0xfe   :  { %v482_v5 = vld [vmem:[#allocation6 + $0x9c0] sm:$0xff]  ;;  %v12740_v8 = vcombine.high %v602_v63, %v606_v1  ;;  %3364 = vmatprep.subr.bf16.mxu0 %v12612_v4  ;;  %v12739_v11 = vcombine.low %v602_v63, %v606_v1 }
  0xff   :  { %v486_v6 = vld [vmem:[#allocation6 + $0x9e0] sm:$0xff]  ;;  %3365 = vmatpush1.bf16.msra.mxu0 %v12611_v10 }
 0x100   :  { %v610_v7 = vld [vmem:[#allocation6 + $0xdc0] sm:$0xff]  ;;  %v12620_v12 = vcombine.high %v482_v5, %v486_v6  ;;  %3405 = vmatprep.subr.bf16.mxu1 %v12740_v8  ;;  %v12619_v21 = vcombine.low %v482_v5, %v486_v6 }
 0x101   :  { %v614_v9 = vld [vmem:[#allocation6 + $0xde0] sm:$0xff]  ;;  %3406 = vmatpush1.bf16.msra.mxu1 %v12739_v11 }
 0x102   :  { %v490_v13 = vld [vmem:[#allocation6 + $0xa00] sm:$0xff]  ;;  %v12748_v17 = vcombine.high %v610_v7, %v614_v9  ;;  %3366 = vmatprep.subr.bf16.mxu0 %v12620_v12  ;;  %v12747_v23 = vcombine.low %v610_v7, %v614_v9 }
 0x103   :  { %v494_v14 = vld [vmem:[#allocation6 + $0xa20] sm:$0xff]  ;;  %3367 = vmatpush1.bf16.msra.mxu0 %v12619_v21 }
 0x104   :  { %v618_v15 = vld [vmem:[#allocation6 + $0xe00] sm:$0xff]  ;;  %v12628_v24 = vcombine.high %v490_v13, %v494_v14  ;;  %3407 = vmatprep.subr.bf16.mxu1 %v12748_v17  ;;  %v12627_v30 = vcombine.low %v490_v13, %v494_v14 }
 0x105   :  { %v622_v18 = vld [vmem:[#allocation6 + $0xe20] sm:$0xff]  ;;  %3408 = vmatpush1.bf16.msra.mxu1 %v12747_v23 }
 0x106   :  { %v498_v25 = vld [vmem:[#allocation6 + $0xa40] sm:$0xff]  ;;  %v12756_v27 = vcombine.high %v618_v15, %v622_v18  ;;  %3368 = vmatprep.subr.bf16.mxu0 %v12628_v24  ;;  %v12755_v31 = vcombine.low %v618_v15, %v622_v18 }
 0x107   :  { %v502_v26 = vld [vmem:[#allocation6 + $0xa60] sm:$0xff]  ;;  %3369 = vmatpush1.bf16.msra.mxu0 %v12627_v30 }
 0x108   :  { %v626_v53 = vld [vmem:[#allocation6 + $0xe40] sm:$0xff]  ;;  %v12636_v32 = vcombine.high %v498_v25, %v502_v26  ;;  %3409 = vmatprep.subr.bf16.mxu1 %v12756_v27  ;;  %v12635_v38 = vcombine.low %v498_v25, %v502_v26  ;;  %v171_v25 = vld [vmem:[#allocation6 + $0x8] sm:$0xff] }
 0x109   :  { %v630_v28 = vld [vmem:[#allocation6 + $0xe60] sm:$0xff]  ;;  %3410 = vmatpush1.bf16.msra.mxu1 %v12755_v31  ;;  %v175_v26 = vld [vmem:[#allocation6 + $0x28] sm:$0xff] }
 0x10a   :  { %v506_v33 = vld [vmem:[#allocation6 + $0xa80] sm:$0xff]  ;;  %v12764_v36 = vcombine.high %v626_v53, %v630_v28  ;;  %3370 = vmatprep.subr.bf16.mxu0 %v12636_v32  ;;  %v12763_v39 = vcombine.low %v626_v53, %v630_v28  ;;  %v299_v53 = vld [vmem:[#allocation6 + $0x408] sm:$0xff]  ;;  %v12310_v32 = vcombine.high %v171_v25, %v175_v26 }
 0x10b   :  { %v510_v34 = vld [vmem:[#allocation6 + $0xaa0] sm:$0xff]  ;;  %3371 = vmatpush1.bf16.msra.mxu0 %v12635_v38  ;;  %v303_v28 = vld [vmem:[#allocation6 + $0x428] sm:$0xff]  ;;  %v14653_v38 = vcombine.low %v14631_v19, %v14631_v19 }
 0x10c   :  { %v634_v35 = vld [vmem:[#allocation6 + $0xe80] sm:$0xff]  ;;  %v12644_v40 = vcombine.high %v506_v33, %v510_v34  ;;  %3411 = vmatprep.subr.bf16.mxu1 %v12764_v36  ;;  %v12643_v46 = vcombine.low %v506_v33, %v510_v34  ;;  %v179_v33 = vld [vmem:[#allocation6 + $0x48] sm:$0xff]  ;;  %v12438_v36 = vcombine.high %v299_v53, %v303_v28 }
 0x10d   :  { %v638_v37 = vld [vmem:[#allocation6 + $0xea0] sm:$0xff]  ;;  %3412 = vmatpush1.bf16.msra.mxu1 %v12763_v39  ;;  %v183_v34 = vld [vmem:[#allocation6 + $0x68] sm:$0xff]  ;;  %v12309_v39 = vcombine.low %v171_v25, %v175_v26 }
 0x10e   :  { %v514_v41 = vld [vmem:[#allocation6 + $0xac0] sm:$0xff]  ;;  %v12772_v44 = vcombine.high %v634_v35, %v638_v37  ;;  %3372 = vmatprep.subr.bf16.mxu0 %v12644_v40  ;;  %v12771_v47 = vcombine.low %v634_v35, %v638_v37  ;;  %v307_v35 = vld [vmem:[#allocation6 + $0x448] sm:$0xff]  ;;  %v14657_v40 = vcombine.low %v14637_v22, %v14637_v22  ;;  %v12317_v19 = vcombine.low %v179_v33, %v183_v34 }
 0x10f   :  { %v518_v42 = vld [vmem:[#allocation6 + $0xae0] sm:$0xff]  ;;  %3373 = vmatpush1.bf16.msra.mxu0 %v12643_v46  ;;  %v311_v37 = vld [vmem:[#allocation6 + $0x468] sm:$0xff] }
 0x110   :  { %v642_v43 = vld [vmem:[#allocation6 + $0xec0] sm:$0xff]  ;;  %v12652_v48 = vcombine.high %v514_v41, %v518_v42  ;;  %3413 = vmatprep.subr.bf16.mxu1 %v12772_v44  ;;  %v12651_v56 = vcombine.low %v514_v41, %v518_v42  ;;  %v12437_v41 = vcombine.low %v299_v53, %v303_v28  ;;  %v12318_v42 = vcombine.high %v179_v33, %v183_v34  ;;  %v187_v44 = vld [vmem:[#allocation6 + $0x88] sm:$0xff] }
 0x111   :  { %v646_v45 = vld [vmem:[#allocation6 + $0xee0] sm:$0xff]  ;;  %3414 = vmatpush1.bf16.msra.mxu1 %v12771_v47  ;;  %v315_v46 = vld [vmem:[#allocation6 + $0x488] sm:$0xff]  ;;  %v12445_v22 = vcombine.low %v307_v35, %v311_v37 }
 0x112   :  { %v522_v49 = vld [vmem:[#allocation6 + $0xb00] sm:$0xff]  ;;  %v12780_v52 = vcombine.high %v642_v43, %v646_v45  ;;  %3374 = vmatprep.subr.bf16.mxu0 %v12652_v48  ;;  %v12779_v57 = vcombine.low %v642_v43, %v646_v45  ;;  %v12446_v43 = vcombine.high %v307_v35, %v311_v37  ;;  %v191_v45 = vld [vmem:[#allocation6 + $0xa8] sm:$0xff] }
 0x113   :  { %v526_v50 = vld [vmem:[#allocation6 + $0xb20] sm:$0xff]  ;;  %3375 = vmatpush1.bf16.msra.mxu0 %v12651_v56  ;;  %v319_v47 = vld [vmem:[#allocation6 + $0x4a8] sm:$0xff]  ;;  %v12326_v48 = vcombine.high %v187_v44, %v191_v45  ;;  %v12325_v56 = vcombine.low %v187_v44, %v191_v45 }
 0x114   :  { %v650_v51 = vld [vmem:[#allocation6 + $0xf00] sm:$0xff]  ;;  %v12660_v60 = vcombine.high %v522_v49, %v526_v50  ;;  %3415 = vmatprep.subr.bf16.mxu1 %v12780_v52  ;;  %v12659_v2 = vcombine.low %v522_v49, %v526_v50  ;;  %v12454_v49 = vcombine.high %v315_v46, %v319_v47  ;;  %v195_v50 = vld [vmem:[#allocation6 + $0xc8] sm:$0xff] }
 0x115   :  { %v654_v55 = vld [vmem:[#allocation6 + $0xf20] sm:$0xff]  ;;  %3416 = vmatpush1.bf16.msra.mxu1 %v12779_v57  ;;  %v323_v52 = vld [vmem:[#allocation6 + $0x4c8] sm:$0xff]  ;;  %v12453_v57 = vcombine.low %v315_v46, %v319_v47 }
 0x116   :  { %v530_v61 = vld [vmem:[#allocation6 + $0xb40] sm:$0xff]  ;;  %v12788_v0 = vcombine.high %v650_v51, %v654_v55  ;;  %3376 = vmatprep.subr.bf16.mxu0 %v12660_v60  ;;  %v12787_v3 = vcombine.low %v650_v51, %v654_v55  ;;  %v199_v51 = vld [vmem:[#allocation6 + $0xe8] sm:$0xff] }
 0x117   :  { %v534_v62 = vld [vmem:[#allocation6 + $0xb60] sm:$0xff]  ;;  %3377 = vmatpush1.bf16.msra.mxu0 %v12659_v2  ;;  %v327_v55 = vld [vmem:[#allocation6 + $0x4e8] sm:$0xff]  ;;  %v12334_v60 = vcombine.high %v195_v50, %v199_v51  ;;  %v12333_v2 = vcombine.low %v195_v50, %v199_v51 }
 0x118   :  { %v658_v63 = vld [vmem:[#allocation6 + $0xf40] sm:$0xff]  ;;  %v12668_v4 = vcombine.high %v530_v61, %v534_v62  ;;  %3417 = vmatprep.subr.bf16.mxu1 %v12788_v0  ;;  %v12667_v10 = vcombine.low %v530_v61, %v534_v62  ;;  %v12462_v61 = vcombine.high %v323_v52, %v327_v55  ;;  %v203_v62 = vld [vmem:[#allocation6 + $0x108] sm:$0xff] }
 0x119   :  { %v662_v1 = vld [vmem:[#allocation6 + $0xf60] sm:$0xff]  ;;  %3418 = vmatpush1.bf16.msra.mxu1 %v12787_v3  ;;  %v331_v0 = vld [vmem:[#allocation6 + $0x508] sm:$0xff]  ;;  %v12461_v3 = vcombine.low %v323_v52, %v327_v55 }
 0x11a   :  { %v538_v5 = vld [vmem:[#allocation6 + $0xb80] sm:$0xff]  ;;  %v12796_v8 = vcombine.high %v658_v63, %v662_v1  ;;  %3378 = vmatprep.subr.bf16.mxu0 %v12668_v4  ;;  %v12795_v11 = vcombine.low %v658_v63, %v662_v1  ;;  %v207_v63 = vld [vmem:[#allocation6 + $0x128] sm:$0xff] }
 0x11b   :  { %v542_v6 = vld [vmem:[#allocation6 + $0xba0] sm:$0xff]  ;;  %3379 = vmatpush1.bf16.msra.mxu0 %v12667_v10  ;;  %v335_v1 = vld [vmem:[#allocation6 + $0x528] sm:$0xff]  ;;  %v12342_v4 = vcombine.high %v203_v62, %v207_v63  ;;  %v12341_v10 = vcombine.low %v203_v62, %v207_v63 }
 0x11c   :  { %v666_v7 = vld [vmem:[#allocation6 + $0xf80] sm:$0xff]  ;;  %v12676_v12 = vcombine.high %v538_v5, %v542_v6  ;;  %3419 = vmatprep.subr.bf16.mxu1 %v12796_v8  ;;  %v12675_v21 = vcombine.low %v538_v5, %v542_v6  ;;  %v12470_v5 = vcombine.high %v331_v0, %v335_v1  ;;  %v211_v6 = vld [vmem:[#allocation6 + $0x148] sm:$0xff] }
 0x11d   :  { %v670_v9 = vld [vmem:[#allocation6 + $0xfa0] sm:$0xff]  ;;  %3420 = vmatpush1.bf16.msra.mxu1 %v12795_v11  ;;  %v339_v8 = vld [vmem:[#allocation6 + $0x548] sm:$0xff]  ;;  %v12469_v11 = vcombine.low %v331_v0, %v335_v1 }
 0x11e   :  { %v546_v13 = vld [vmem:[#allocation6 + $0xbc0] sm:$0xff]  ;;  %v12804_v17 = vcombine.high %v666_v7, %v670_v9  ;;  %3380 = vmatprep.subr.bf16.mxu0 %v12676_v12  ;;  %v12803_v23 = vcombine.low %v666_v7, %v670_v9  ;;  %v215_v7 = vld [vmem:[#allocation6 + $0x168] sm:$0xff] }
 0x11f   :  { %v550_v14 = vld [vmem:[#allocation6 + $0xbe0] sm:$0xff]  ;;  %3381 = vmatpush1.bf16.msra.mxu0 %v12675_v21  ;;  %v343_v9 = vld [vmem:[#allocation6 + $0x568] sm:$0xff]  ;;  %v12350_v12 = vcombine.high %v211_v6, %v215_v7  ;;  %v12349_v21 = vcombine.low %v211_v6, %v215_v7 }
 0x120   :  { %v674_v15 = vld [vmem:[#allocation6 + $0xfc0] sm:$0xff]  ;;  %v12684_v24 = vcombine.high %v546_v13, %v550_v14  ;;  %3421 = vmatprep.subr.bf16.mxu1 %v12804_v17  ;;  %v12683_v30 = vcombine.low %v546_v13, %v550_v14  ;;  %v12478_v13 = vcombine.high %v339_v8, %v343_v9  ;;  %v219_v14 = vld [vmem:[#allocation6 + $0x188] sm:$0xff] }
 0x121   :  { %v678_v18 = vld [vmem:[#allocation6 + $0xfe0] sm:$0xff]  ;;  %3422 = vmatpush1.bf16.msra.mxu1 %v12803_v23  ;;  %v347_v17 = vld [vmem:[#allocation6 + $0x588] sm:$0xff]  ;;  %v12477_v23 = vcombine.low %v339_v8, %v343_v9 }
 0x122   :  { %v12812_v27 = vcombine.high %v674_v15, %v678_v18  ;;  %3382 = vmatprep.subr.bf16.mxu0 %v12684_v24  ;;  %v12811_v31 = vcombine.low %v674_v15, %v678_v18  ;;  %v223_v15 = vld [vmem:[#allocation6 + $0x1a8] sm:$0xff] }
 0x123   :  { %3383 = vmatpush1.bf16.msra.mxu0 %v12683_v30  ;;  %v351_v18 = vld [vmem:[#allocation6 + $0x5a8] sm:$0xff]  ;;  %v12358_v24 = vcombine.high %v219_v14, %v223_v15  ;;  %v12357_v30 = vcombine.low %v219_v14, %v223_v15 }
 0x124   :  { %3423 = vmatprep.subr.bf16.mxu1 %v12812_v27  ;;  %3434 = vmatprep.subr.bf16.mxu0 %v12310_v32  ;;  %v12486_v25 = vcombine.high %v347_v17, %v351_v18  ;;  %v227_v26 = vld [vmem:[#allocation6 + $0x1c8] sm:$0xff] }
 0x125   :  { %3424 = vmatpush1.bf16.msra.mxu1 %v12811_v31  ;;  %v231_v53 = vld [vmem:[#allocation6 + $0x1e8] sm:$0xff]  ;;  %v12485_v31 = vcombine.low %v347_v17, %v351_v18 }
 0x126   :  { %3475 = vmatprep.subr.bf16.mxu1 %v12438_v36  ;;  %3385 = vmatmul.mubr.bf16.vlgmr.msra.gmra.mrb[4].mxu0 %v14653_v38  ;;  %v355_v27 = vld [vmem:[#allocation6 + $0x5c8] sm:$0xff]  ;;  %v12366_v32 = vcombine.high %v227_v26, %v231_v53 }
 0x127   :  { %3435 = vmatpush1.bf16.msra.mxu0 %v12309_v39  ;;  %3466 = vmatprep.mubr.bf16.mxu0 %v14619_v58  ;;  %v359_v28 = vld [vmem:[#allocation6 + $0x5e8] sm:$0xff]  ;;  %v12365_v39 = vcombine.low %v227_v26, %v231_v53 }
 0x128   :  { %3426 = vmatmul.mubr.bf16.vlgmr.msra.gmra.mrb[4].mxu1 %v14657_v40  ;;  %3436 = vmatprep.subr.bf16.mxu0 %v12318_v42  ;;  %v12494_v33 = vcombine.high %v355_v27, %v359_v28  ;;  %v235_v34 = vld [vmem:[#allocation6 + $0x208] sm:$0xff] }
 0x129   :  { %3476 = vmatpush1.bf16.msra.mxu1 %v12437_v41  ;;  %3507 = vmatprep.mubr.bf16.mxu1 %v14623_v59  ;;  %v239_v35 = vld [vmem:[#allocation6 + $0x228] sm:$0xff]  ;;  %v12493_v41 = vcombine.low %v355_v27, %v359_v28 }
 0x12a   :  { %3477 = vmatprep.subr.bf16.mxu1 %v12446_v43  ;;  %v363_v36 = vld [vmem:[#allocation6 + $0x608] sm:$0xff]  ;;  %v12374_v42 = vcombine.high %v235_v34, %v239_v35 }
 0x12b   :  { %3437 = vmatpush1.bf16.msra.mxu0 %v12317_v19  ;;  %v367_v37 = vld [vmem:[#allocation6 + $0x628] sm:$0xff]  ;;  %v12373_v19 = vcombine.low %v235_v34, %v239_v35 }
 0x12c   :  { %3438 = vmatprep.subr.bf16.mxu0 %v12326_v48  ;;  %v12502_v43 = vcombine.high %v363_v36, %v367_v37  ;;  %v243_v44 = vld [vmem:[#allocation6 + $0x248] sm:$0xff] }
 0x12d   :  { %3478 = vmatpush1.bf16.msra.mxu1 %v12445_v22  ;;  %v247_v45 = vld [vmem:[#allocation6 + $0x268] sm:$0xff]  ;;  %v12501_v22 = vcombine.low %v363_v36, %v367_v37 }
 0x12e   :  { %3479 = vmatprep.subr.bf16.mxu1 %v12454_v49  ;;  %v371_v46 = vld [vmem:[#allocation6 + $0x648] sm:$0xff]  ;;  %v12382_v48 = vcombine.high %v243_v44, %v247_v45 }
 0x12f   :  { %3439 = vmatpush1.bf16.msra.mxu0 %v12325_v56  ;;  %v375_v47 = vld [vmem:[#allocation6 + $0x668] sm:$0xff]  ;;  %v12381_v56 = vcombine.low %v243_v44, %v247_v45 }
 0x130   :  { %3440 = vmatprep.subr.bf16.mxu0 %v12334_v60  ;;  %v12510_v49 = vcombine.high %v371_v46, %v375_v47  ;;  %v251_v50 = vld [vmem:[#allocation6 + $0x288] sm:$0xff] }
 0x131   :  { %3480 = vmatpush1.bf16.msra.mxu1 %v12453_v57  ;;  %v255_v51 = vld [vmem:[#allocation6 + $0x2a8] sm:$0xff]  ;;  %v12509_v57 = vcombine.low %v371_v46, %v375_v47 }
 0x132   :  { %3481 = vmatprep.subr.bf16.mxu1 %v12462_v61  ;;  %v379_v52 = vld [vmem:[#allocation6 + $0x688] sm:$0xff]  ;;  %v12390_v60 = vcombine.high %v251_v50, %v255_v51 }
 0x133   :  { %3441 = vmatpush1.bf16.msra.mxu0 %v12333_v2  ;;  %v383_v55 = vld [vmem:[#allocation6 + $0x6a8] sm:$0xff]  ;;  %v12389_v2 = vcombine.low %v251_v50, %v255_v51 }
 0x134   :  { %3442 = vmatprep.subr.bf16.mxu0 %v12342_v4  ;;  %v12518_v61 = vcombine.high %v379_v52, %v383_v55  ;;  %v259_v62 = vld [vmem:[#allocation6 + $0x2c8] sm:$0xff] }
 0x135   :  { %3482 = vmatpush1.bf16.msra.mxu1 %v12461_v3  ;;  %v263_v63 = vld [vmem:[#allocation6 + $0x2e8] sm:$0xff]  ;;  %v12517_v3 = vcombine.low %v379_v52, %v383_v55 }
 0x136   :  { %3483 = vmatprep.subr.bf16.mxu1 %v12470_v5  ;;  %v387_v0 = vld [vmem:[#allocation6 + $0x6c8] sm:$0xff]  ;;  %v12398_v4 = vcombine.high %v259_v62, %v263_v63 }
 0x137   :  { %3443 = vmatpush1.bf16.msra.mxu0 %v12341_v10  ;;  %v391_v1 = vld [vmem:[#allocation6 + $0x6e8] sm:$0xff]  ;;  %v12397_v10 = vcombine.low %v259_v62, %v263_v63 }
 0x138   :  { %3444 = vmatprep.subr.bf16.mxu0 %v12350_v12  ;;  %v12526_v5 = vcombine.high %v387_v0, %v391_v1  ;;  %v267_v6 = vld [vmem:[#allocation6 + $0x308] sm:$0xff] }
 0x139   :  { %3484 = vmatpush1.bf16.msra.mxu1 %v12469_v11  ;;  %v271_v7 = vld [vmem:[#allocation6 + $0x328] sm:$0xff]  ;;  %v12525_v11 = vcombine.low %v387_v0, %v391_v1 }
 0x13a   :  { %3485 = vmatprep.subr.bf16.mxu1 %v12478_v13  ;;  %v395_v8 = vld [vmem:[#allocation6 + $0x708] sm:$0xff]  ;;  %v12406_v12 = vcombine.high %v267_v6, %v271_v7 }
 0x13b   :  { %3445 = vmatpush1.bf16.msra.mxu0 %v12349_v21  ;;  %v399_v9 = vld [vmem:[#allocation6 + $0x728] sm:$0xff]  ;;  %v12405_v21 = vcombine.low %v267_v6, %v271_v7 }
 0x13c   :  { %3446 = vmatprep.subr.bf16.mxu0 %v12358_v24  ;;  %v12534_v13 = vcombine.high %v395_v8, %v399_v9  ;;  %v275_v14 = vld [vmem:[#allocation6 + $0x348] sm:$0xff] }
 0x13d   :  { %3486 = vmatpush1.bf16.msra.mxu1 %v12477_v23  ;;  %v279_v15 = vld [vmem:[#allocation6 + $0x368] sm:$0xff]  ;;  %v12533_v23 = vcombine.low %v395_v8, %v399_v9 }
 0x13e   :  { %3487 = vmatprep.subr.bf16.mxu1 %v12486_v25  ;;  %v403_v17 = vld [vmem:[#allocation6 + $0x748] sm:$0xff]  ;;  %v12414_v24 = vcombine.high %v275_v14, %v279_v15 }
 0x13f   :  { %3447 = vmatpush1.bf16.msra.mxu0 %v12357_v30  ;;  %v407_v18 = vld [vmem:[#allocation6 + $0x768] sm:$0xff]  ;;  %v12413_v30 = vcombine.low %v275_v14, %v279_v15 }
 0x140   :  { %3448 = vmatprep.subr.bf16.mxu0 %v12366_v32  ;;  %v12542_v25 = vcombine.high %v403_v17, %v407_v18  ;;  %v283_v26 = vld [vmem:[#allocation6 + $0x388] sm:$0xff] }
 0x141   :  { %3488 = vmatpush1.bf16.msra.mxu1 %v12485_v31  ;;  %v287_v53 = vld [vmem:[#allocation6 + $0x3a8] sm:$0xff]  ;;  %v12541_v31 = vcombine.low %v403_v17, %v407_v18 }
 0x142   :  { %3489 = vmatprep.subr.bf16.mxu1 %v12494_v33  ;;  %v411_v27 = vld [vmem:[#allocation6 + $0x788] sm:$0xff]  ;;  %v12422_v32 = vcombine.high %v283_v26, %v287_v53 }
 0x143   :  { %3449 = vmatpush1.bf16.msra.mxu0 %v12365_v39  ;;  %v415_v28 = vld [vmem:[#allocation6 + $0x7a8] sm:$0xff]  ;;  %v12421_v39 = vcombine.low %v283_v26, %v287_v53 }
 0x144   :  { %3450 = vmatprep.subr.bf16.mxu0 %v12374_v42  ;;  %v12550_v33 = vcombine.high %v411_v27, %v415_v28  ;;  %v291_v34 = vld [vmem:[#allocation6 + $0x3c8] sm:$0xff] }
 0x145   :  { %3490 = vmatpush1.bf16.msra.mxu1 %v12493_v41  ;;  %v295_v35 = vld [vmem:[#allocation6 + $0x3e8] sm:$0xff]  ;;  %v12549_v41 = vcombine.low %v411_v27, %v415_v28 }
 0x146   :  { %3491 = vmatprep.subr.bf16.mxu1 %v12502_v43  ;;  %v419_v36 = vld [vmem:[#allocation6 + $0x7c8] sm:$0xff]  ;;  %v12430_v42 = vcombine.high %v291_v34, %v295_v35 }
 0x147   :  { %3451 = vmatpush1.bf16.msra.mxu0 %v12373_v19  ;;  %v423_v37 = vld [vmem:[#allocation6 + $0x7e8] sm:$0xff]  ;;  %v12429_v19 = vcombine.low %v291_v34, %v295_v35 }
 0x148   :  { %3452 = vmatprep.subr.bf16.mxu0 %v12382_v48  ;;  %v12558_v43 = vcombine.high %v419_v36, %v423_v37  ;;  %v427_v44 = vld [vmem:[#allocation6 + $0x808] sm:$0xff] }
 0x149   :  { %3492 = vmatpush1.bf16.msra.mxu1 %v12501_v22  ;;  %v431_v45 = vld [vmem:[#allocation6 + $0x828] sm:$0xff]  ;;  %v12557_v22 = vcombine.low %v419_v36, %v423_v37 }
 0x14a   :  { %3493 = vmatprep.subr.bf16.mxu1 %v12510_v49  ;;  %v555_v46 = vld [vmem:[#allocation6 + $0xc08] sm:$0xff]  ;;  %v12566_v48 = vcombine.high %v427_v44, %v431_v45 }
 0x14b   :  { %3453 = vmatpush1.bf16.msra.mxu0 %v12381_v56  ;;  %v559_v47 = vld [vmem:[#allocation6 + $0xc28] sm:$0xff]  ;;  %v12565_v56 = vcombine.low %v427_v44, %v431_v45 }
 0x14c   :  { %3454 = vmatprep.subr.bf16.mxu0 %v12390_v60  ;;  %v12694_v49 = vcombine.high %v555_v46, %v559_v47  ;;  %v435_v50 = vld [vmem:[#allocation6 + $0x848] sm:$0xff] }
 0x14d   :  { %3494 = vmatpush1.bf16.msra.mxu1 %v12509_v57  ;;  %v439_v51 = vld [vmem:[#allocation6 + $0x868] sm:$0xff]  ;;  %v12693_v57 = vcombine.low %v555_v46, %v559_v47 }
 0x14e   :  { %3495 = vmatprep.subr.bf16.mxu1 %v12518_v61  ;;  %v563_v52 = vld [vmem:[#allocation6 + $0xc48] sm:$0xff]  ;;  %v12574_v60 = vcombine.high %v435_v50, %v439_v51 }
 0x14f   :  { %3455 = vmatpush1.bf16.msra.mxu0 %v12389_v2  ;;  %v567_v55 = vld [vmem:[#allocation6 + $0xc68] sm:$0xff]  ;;  %v12573_v2 = vcombine.low %v435_v50, %v439_v51 }
 0x150   :  { %3456 = vmatprep.subr.bf16.mxu0 %v12398_v4  ;;  %v12702_v61 = vcombine.high %v563_v52, %v567_v55  ;;  %v443_v62 = vld [vmem:[#allocation6 + $0x888] sm:$0xff] }
 0x151   :  { %3496 = vmatpush1.bf16.msra.mxu1 %v12517_v3  ;;  %v447_v63 = vld [vmem:[#allocation6 + $0x8a8] sm:$0xff]  ;;  %v12701_v3 = vcombine.low %v563_v52, %v567_v55 }
 0x152   :  { %3497 = vmatprep.subr.bf16.mxu1 %v12526_v5  ;;  %v571_v0 = vld [vmem:[#allocation6 + $0xc88] sm:$0xff]  ;;  %v12582_v4 = vcombine.high %v443_v62, %v447_v63 }
 0x153   :  { %3457 = vmatpush1.bf16.msra.mxu0 %v12397_v10  ;;  %v575_v1 = vld [vmem:[#allocation6 + $0xca8] sm:$0xff]  ;;  %v12581_v10 = vcombine.low %v443_v62, %v447_v63 }
 0x154   :  { %3458 = vmatprep.subr.bf16.mxu0 %v12406_v12  ;;  %v12710_v5 = vcombine.high %v571_v0, %v575_v1  ;;  %v451_v6 = vld [vmem:[#allocation6 + $0x8c8] sm:$0xff] }
 0x155   :  { %3498 = vmatpush1.bf16.msra.mxu1 %v12525_v11  ;;  %v455_v7 = vld [vmem:[#allocation6 + $0x8e8] sm:$0xff]  ;;  %v12709_v11 = vcombine.low %v571_v0, %v575_v1 }
 0x156   :  { %3499 = vmatprep.subr.bf16.mxu1 %v12534_v13  ;;  %v579_v8 = vld [vmem:[#allocation6 + $0xcc8] sm:$0xff]  ;;  %v12590_v12 = vcombine.high %v451_v6, %v455_v7 }
 0x157   :  { %3459 = vmatpush1.bf16.msra.mxu0 %v12405_v21  ;;  %v583_v9 = vld [vmem:[#allocation6 + $0xce8] sm:$0xff]  ;;  %v12589_v21 = vcombine.low %v451_v6, %v455_v7 }
 0x158   :  { %3460 = vmatprep.subr.bf16.mxu0 %v12414_v24  ;;  %v12718_v13 = vcombine.high %v579_v8, %v583_v9  ;;  %v459_v14 = vld [vmem:[#allocation6 + $0x908] sm:$0xff] }
 0x159   :  { %3500 = vmatpush1.bf16.msra.mxu1 %v12533_v23  ;;  %v463_v15 = vld [vmem:[#allocation6 + $0x928] sm:$0xff]  ;;  %v12717_v23 = vcombine.low %v579_v8, %v583_v9 }
 0x15a   :  { %3501 = vmatprep.subr.bf16.mxu1 %v12542_v25  ;;  %v587_v17 = vld [vmem:[#allocation6 + $0xd08] sm:$0xff]  ;;  %v12598_v24 = vcombine.high %v459_v14, %v463_v15 }
 0x15b   :  { %3461 = vmatpush1.bf16.msra.mxu0 %v12413_v30  ;;  %v591_v18 = vld [vmem:[#allocation6 + $0xd28] sm:$0xff]  ;;  %v12597_v30 = vcombine.low %v459_v14, %v463_v15 }
 0x15c   :  { %3462 = vmatprep.subr.bf16.mxu0 %v12422_v32  ;;  %v12726_v25 = vcombine.high %v587_v17, %v591_v18  ;;  %v467_v26 = vld [vmem:[#allocation6 + $0x948] sm:$0xff] }
 0x15d   :  { %3502 = vmatpush1.bf16.msra.mxu1 %v12541_v31  ;;  %v471_v53 = vld [vmem:[#allocation6 + $0x968] sm:$0xff]  ;;  %v12725_v31 = vcombine.low %v587_v17, %v591_v18 }
 0x15e   :  { %3503 = vmatprep.subr.bf16.mxu1 %v12550_v33  ;;  %v595_v27 = vld [vmem:[#allocation6 + $0xd48] sm:$0xff]  ;;  %v12606_v32 = vcombine.high %v467_v26, %v471_v53 }
 0x15f   :  { %3463 = vmatpush1.bf16.msra.mxu0 %v12421_v39  ;;  %v599_v28 = vld [vmem:[#allocation6 + $0xd68] sm:$0xff]  ;;  %v12605_v39 = vcombine.low %v467_v26, %v471_v53 }
 0x160   :  { %3464 = vmatprep.subr.bf16.mxu0 %v12430_v42  ;;  %v12734_v33 = vcombine.high %v595_v27, %v599_v28  ;;  %v475_v34 = vld [vmem:[#allocation6 + $0x988] sm:$0xff] }
 0x161   :  { %3504 = vmatpush1.bf16.msra.mxu1 %v12549_v41  ;;  %v479_v35 = vld [vmem:[#allocation6 + $0x9a8] sm:$0xff]  ;;  %v12733_v41 = vcombine.low %v595_v27, %v599_v28 }
 0x162   :  { %3505 = vmatprep.subr.bf16.mxu1 %v12558_v43  ;;  %v603_v36 = vld [vmem:[#allocation6 + $0xd88] sm:$0xff]  ;;  %v12614_v42 = vcombine.high %v475_v34, %v479_v35 }
 0x163   :  { %3465 = vmatpush1.bf16.msra.mxu0 %v12429_v19  ;;  %v607_v37 = vld [vmem:[#allocation6 + $0xda8] sm:$0xff]  ;;  %v12613_v19 = vcombine.low %v475_v34, %v479_v35 }
 0x164   :  { %3516 = vmatprep.subr.bf16.mxu0 %v12566_v48  ;;  %v12742_v43 = vcombine.high %v603_v36, %v607_v37  ;;  %v483_v44 = vld [vmem:[#allocation6 + $0x9c8] sm:$0xff] }
 0x165   :  { %3506 = vmatpush1.bf16.msra.mxu1 %v12557_v22  ;;  %v487_v45 = vld [vmem:[#allocation6 + $0x9e8] sm:$0xff]  ;;  %v12741_v22 = vcombine.low %v603_v36, %v607_v37 }
 0x166   :  { %3557 = vmatprep.subr.bf16.mxu1 %v12694_v49  ;;  %3467 = vmatmul.mubr.bf16.vlgmr.msra.gmra.mrb[8].mxu0 %v14629_v16  ;;  %v611_v46 = vld [vmem:[#allocation6 + $0xdc8] sm:$0xff]  ;;  %v12622_v48 = vcombine.high %v483_v44, %v487_v45 }
 0x167   :  { %3517 = vmatpush1.bf16.msra.mxu0 %v12565_v56  ;;  %3548 = vmatprep.mubr.bf16.mxu0 %v14641_v29  ;;  %v615_v47 = vld [vmem:[#allocation6 + $0xde8] sm:$0xff]  ;;  %v12621_v56 = vcombine.low %v483_v44, %v487_v45 }
 0x168   :  { %3508 = vmatmul.mubr.bf16.vlgmr.msra.gmra.mrb[8].mxu1 %v14635_v20  ;;  %3518 = vmatprep.subr.bf16.mxu0 %v12574_v60  ;;  %v12750_v49 = vcombine.high %v611_v46, %v615_v47  ;;  %v491_v50 = vld [vmem:[#allocation6 + $0xa08] sm:$0xff] }
 0x169   :  { %3558 = vmatpush1.bf16.msra.mxu1 %v12693_v57  ;;  %3589 = vmatprep.mubr.bf16.mxu1 %v14646_v54  ;;  %v495_v51 = vld [vmem:[#allocation6 + $0xa28] sm:$0xff]  ;;  %v12749_v57 = vcombine.low %v611_v46, %v615_v47 }
 0x16a   :  { %3559 = vmatprep.subr.bf16.mxu1 %v12702_v61  ;;  %v619_v52 = vld [vmem:[#allocation6 + $0xe08] sm:$0xff]  ;;  %v12630_v60 = vcombine.high %v491_v50, %v495_v51 }
 0x16b   :  { %3519 = vmatpush1.bf16.msra.mxu0 %v12573_v2  ;;  %v623_v55 = vld [vmem:[#allocation6 + $0xe28] sm:$0xff]  ;;  %v12629_v2 = vcombine.low %v491_v50, %v495_v51 }
 0x16c   :  { %3520 = vmatprep.subr.bf16.mxu0 %v12582_v4  ;;  %v12758_v61 = vcombine.high %v619_v52, %v623_v55  ;;  %v499_v62 = vld [vmem:[#allocation6 + $0xa48] sm:$0xff] }
 0x16d   :  { %3560 = vmatpush1.bf16.msra.mxu1 %v12701_v3  ;;  %v503_v63 = vld [vmem:[#allocation6 + $0xa68] sm:$0xff]  ;;  %v12757_v3 = vcombine.low %v619_v52, %v623_v55 }
 0x16e   :  { %3561 = vmatprep.subr.bf16.mxu1 %v12710_v5  ;;  %v627_v0 = vld [vmem:[#allocation6 + $0xe48] sm:$0xff]  ;;  %v12638_v4 = vcombine.high %v499_v62, %v503_v63 }
 0x16f   :  { %3521 = vmatpush1.bf16.msra.mxu0 %v12581_v10  ;;  %v631_v1 = vld [vmem:[#allocation6 + $0xe68] sm:$0xff]  ;;  %v12637_v10 = vcombine.low %v499_v62, %v503_v63  ;;  %v172_v62 = vld [vmem:[#allocation6 + $0x10] sm:$0xff] }
 0x170   :  { %3522 = vmatprep.subr.bf16.mxu0 %v12590_v12  ;;  %v12766_v5 = vcombine.high %v627_v0, %v631_v1  ;;  %v507_v6 = vld [vmem:[#allocation6 + $0xa88] sm:$0xff]  ;;  %v176_v63 = vld [vmem:[#allocation6 + $0x30] sm:$0xff] }
 0x171   :  { %3562 = vmatpush1.bf16.msra.mxu1 %v12709_v11  ;;  %v511_v7 = vld [vmem:[#allocation6 + $0xaa8] sm:$0xff]  ;;  %v12765_v11 = vcombine.low %v627_v0, %v631_v1  ;;  %v300_v0 = vld [vmem:[#allocation6 + $0x410] sm:$0xff] }
 0x172   :  { %3563 = vmatprep.subr.bf16.mxu1 %v12718_v13  ;;  %v635_v8 = vld [vmem:[#allocation6 + $0xe88] sm:$0xff]  ;;  %v12646_v12 = vcombine.high %v507_v6, %v511_v7  ;;  %v304_v1 = vld [vmem:[#allocation6 + $0x430] sm:$0xff] }
 0x173   :  { %3523 = vmatpush1.bf16.msra.mxu0 %v12589_v21  ;;  %v639_v9 = vld [vmem:[#allocation6 + $0xea8] sm:$0xff]  ;;  %v12645_v21 = vcombine.low %v507_v6, %v511_v7  ;;  %v180_v6 = vld [vmem:[#allocation6 + $0x50] sm:$0xff] }
 0x174   :  { %3524 = vmatprep.subr.bf16.mxu0 %v12598_v24  ;;  %v12774_v13 = vcombine.high %v635_v8, %v639_v9  ;;  %v515_v14 = vld [vmem:[#allocation6 + $0xac8] sm:$0xff]  ;;  %v184_v7 = vld [vmem:[#allocation6 + $0x70] sm:$0xff] }
 0x175   :  { %3564 = vmatpush1.bf16.msra.mxu1 %v12717_v23  ;;  %v519_v15 = vld [vmem:[#allocation6 + $0xae8] sm:$0xff]  ;;  %v12773_v23 = vcombine.low %v635_v8, %v639_v9  ;;  %v308_v8 = vld [vmem:[#allocation6 + $0x450] sm:$0xff] }
 0x176   :  { %3565 = vmatprep.subr.bf16.mxu1 %v12726_v25  ;;  %v643_v17 = vld [vmem:[#allocation6 + $0xec8] sm:$0xff]  ;;  %v12654_v24 = vcombine.high %v515_v14, %v519_v15  ;;  %v312_v9 = vld [vmem:[#allocation6 + $0x470] sm:$0xff] }
 0x177   :  { %3525 = vmatpush1.bf16.msra.mxu0 %v12597_v30  ;;  %v647_v18 = vld [vmem:[#allocation6 + $0xee8] sm:$0xff]  ;;  %v12653_v30 = vcombine.low %v515_v14, %v519_v15  ;;  %v188_v14 = vld [vmem:[#allocation6 + $0x90] sm:$0xff] }
 0x178   :  { %3526 = vmatprep.subr.bf16.mxu0 %v12606_v32  ;;  %v12782_v25 = vcombine.high %v643_v17, %v647_v18  ;;  %v523_v26 = vld [vmem:[#allocation6 + $0xb08] sm:$0xff]  ;;  %v192_v15 = vld [vmem:[#allocation6 + $0xb0] sm:$0xff] }
 0x179   :  { %3566 = vmatpush1.bf16.msra.mxu1 %v12725_v31  ;;  %v527_v53 = vld [vmem:[#allocation6 + $0xb28] sm:$0xff]  ;;  %v12781_v31 = vcombine.low %v643_v17, %v647_v18  ;;  %v316_v17 = vld [vmem:[#allocation6 + $0x490] sm:$0xff] }
 0x17a   :  { %3567 = vmatprep.subr.bf16.mxu1 %v12734_v33  ;;  %v651_v27 = vld [vmem:[#allocation6 + $0xf08] sm:$0xff]  ;;  %v12662_v32 = vcombine.high %v523_v26, %v527_v53  ;;  %v320_v18 = vld [vmem:[#allocation6 + $0x4b0] sm:$0xff] }
 0x17b   :  { %3527 = vmatpush1.bf16.msra.mxu0 %v12605_v39  ;;  %v655_v28 = vld [vmem:[#allocation6 + $0xf28] sm:$0xff]  ;;  %v12661_v39 = vcombine.low %v523_v26, %v527_v53  ;;  %v196_v26 = vld [vmem:[#allocation6 + $0xd0] sm:$0xff] }
 0x17c   :  { %3528 = vmatprep.subr.bf16.mxu0 %v12614_v42  ;;  %v12790_v33 = vcombine.high %v651_v27, %v655_v28  ;;  %v531_v34 = vld [vmem:[#allocation6 + $0xb48] sm:$0xff]  ;;  %v200_v53 = vld [vmem:[#allocation6 + $0xf0] sm:$0xff] }
 0x17d   :  { %3568 = vmatpush1.bf16.msra.mxu1 %v12733_v41  ;;  %v535_v35 = vld [vmem:[#allocation6 + $0xb68] sm:$0xff]  ;;  %v12789_v41 = vcombine.low %v651_v27, %v655_v28  ;;  %v324_v27 = vld [vmem:[#allocation6 + $0x4d0] sm:$0xff] }
 0x17e   :  { %3569 = vmatprep.subr.bf16.mxu1 %v12742_v43  ;;  %v659_v36 = vld [vmem:[#allocation6 + $0xf48] sm:$0xff]  ;;  %v12670_v42 = vcombine.high %v531_v34, %v535_v35  ;;  %v328_v28 = vld [vmem:[#allocation6 + $0x4f0] sm:$0xff] }
 0x17f   :  { %3529 = vmatpush1.bf16.msra.mxu0 %v12613_v19  ;;  %v663_v37 = vld [vmem:[#allocation6 + $0xf68] sm:$0xff]  ;;  %v12669_v19 = vcombine.low %v531_v34, %v535_v35  ;;  %v204_v34 = vld [vmem:[#allocation6 + $0x110] sm:$0xff] }
 0x180   :  { %3530 = vmatprep.subr.bf16.mxu0 %v12622_v48  ;;  %v12798_v43 = vcombine.high %v659_v36, %v663_v37  ;;  %v539_v44 = vld [vmem:[#allocation6 + $0xb88] sm:$0xff]  ;;  %v208_v35 = vld [vmem:[#allocation6 + $0x130] sm:$0xff] }
 0x181   :  { %3570 = vmatpush1.bf16.msra.mxu1 %v12741_v22  ;;  %v543_v45 = vld [vmem:[#allocation6 + $0xba8] sm:$0xff]  ;;  %v12797_v22 = vcombine.low %v659_v36, %v663_v37  ;;  %v332_v36 = vld [vmem:[#allocation6 + $0x510] sm:$0xff] }
 0x182   :  { %3571 = vmatprep.subr.bf16.mxu1 %v12750_v49  ;;  %v667_v46 = vld [vmem:[#allocation6 + $0xf88] sm:$0xff]  ;;  %v12678_v48 = vcombine.high %v539_v44, %v543_v45  ;;  %v336_v37 = vld [vmem:[#allocation6 + $0x530] sm:$0xff] }
 0x183   :  { %3531 = vmatpush1.bf16.msra.mxu0 %v12621_v56  ;;  %v671_v47 = vld [vmem:[#allocation6 + $0xfa8] sm:$0xff]  ;;  %v12677_v56 = vcombine.low %v539_v44, %v543_v45  ;;  %v212_v44 = vld [vmem:[#allocation6 + $0x150] sm:$0xff] }
 0x184   :  { %3532 = vmatprep.subr.bf16.mxu0 %v12630_v60  ;;  %v12806_v49 = vcombine.high %v667_v46, %v671_v47  ;;  %v547_v50 = vld [vmem:[#allocation6 + $0xbc8] sm:$0xff]  ;;  %v216_v45 = vld [vmem:[#allocation6 + $0x170] sm:$0xff] }
 0x185   :  { %3572 = vmatpush1.bf16.msra.mxu1 %v12749_v57  ;;  %v551_v51 = vld [vmem:[#allocation6 + $0xbe8] sm:$0xff]  ;;  %v12805_v57 = vcombine.low %v667_v46, %v671_v47  ;;  %v340_v46 = vld [vmem:[#allocation6 + $0x550] sm:$0xff] }
 0x186   :  { %3573 = vmatprep.subr.bf16.mxu1 %v12758_v61  ;;  %v675_v52 = vld [vmem:[#allocation6 + $0xfc8] sm:$0xff]  ;;  %v12686_v60 = vcombine.high %v547_v50, %v551_v51  ;;  %v344_v47 = vld [vmem:[#allocation6 + $0x570] sm:$0xff] }
 0x187   :  { %3533 = vmatpush1.bf16.msra.mxu0 %v12629_v2  ;;  %v679_v55 = vld [vmem:[#allocation6 + $0xfe8] sm:$0xff]  ;;  %v12685_v2 = vcombine.low %v547_v50, %v551_v51  ;;  %v220_v50 = vld [vmem:[#allocation6 + $0x190] sm:$0xff] }
 0x188   :  { %3534 = vmatprep.subr.bf16.mxu0 %v12638_v4  ;;  %v12814_v61 = vcombine.high %v675_v52, %v679_v55  ;;  %v12312_v4 = vcombine.high %v172_v62, %v176_v63  ;;  %v224_v51 = vld [vmem:[#allocation6 + $0x1b0] sm:$0xff] }
 0x189   :  { %3574 = vmatpush1.bf16.msra.mxu1 %v12757_v3  ;;  %v12813_v3 = vcombine.low %v675_v52, %v679_v55  ;;  %v348_v52 = vld [vmem:[#allocation6 + $0x590] sm:$0xff] }
 0x18a   :  { %3575 = vmatprep.subr.bf16.mxu1 %v12766_v5  ;;  %v12440_v5 = vcombine.high %v300_v0, %v304_v1  ;;  %v352_v55 = vld [vmem:[#allocation6 + $0x5b0] sm:$0xff] }
 0x18b   :  { %3535 = vmatpush1.bf16.msra.mxu0 %v12637_v10  ;;  %v12311_v10 = vcombine.low %v172_v62, %v176_v63  ;;  %v12488_v62 = vcombine.high %v348_v52, %v352_v55  ;;  %v228_v63 = vld [vmem:[#allocation6 + $0x1d0] sm:$0xff] }
 0x18c   :  { %3536 = vmatprep.subr.bf16.mxu0 %v12646_v12  ;;  %v12320_v12 = vcombine.high %v180_v6, %v184_v7 }
 0x18d   :  { %3576 = vmatpush1.bf16.msra.mxu1 %v12765_v11  ;;  %v12439_v11 = vcombine.low %v300_v0, %v304_v1  ;;  %v232_v0 = vld [vmem:[#allocation6 + $0x1f0] sm:$0xff] }
 0x18e   :  { %3577 = vmatprep.subr.bf16.mxu1 %v12774_v13  ;;  %v12448_v13 = vcombine.high %v308_v8, %v312_v9 }
 0x18f   :  { %3537 = vmatpush1.bf16.msra.mxu0 %v12645_v21  ;;  %v12319_v21 = vcombine.low %v180_v6, %v184_v7 }
 0x190   :  { %3538 = vmatprep.subr.bf16.mxu0 %v12654_v24  ;;  %v12328_v24 = vcombine.high %v188_v14, %v192_v15 }
 0x191   :  { %3578 = vmatpush1.bf16.msra.mxu1 %v12773_v23  ;;  %v12447_v23 = vcombine.low %v308_v8, %v312_v9  ;;  %v12359_v8 = vcombine.low %v220_v50, %v224_v51 }
 0x192   :  { %3579 = vmatprep.subr.bf16.mxu1 %v12782_v25  ;;  %v12456_v25 = vcombine.high %v316_v17, %v320_v18 }
 0x193   :  { %3539 = vmatpush1.bf16.msra.mxu0 %v12653_v30  ;;  %v12327_v30 = vcombine.low %v188_v14, %v192_v15  ;;  %v236_v15 = vld [vmem:[#allocation6 + $0x210] sm:$0xff] }
 0x194   :  { %3540 = vmatprep.subr.bf16.mxu0 %v12662_v32  ;;  %v12336_v32 = vcombine.high %v196_v26, %v200_v53 }
 0x195   :  { %3580 = vmatpush1.bf16.msra.mxu1 %v12781_v31  ;;  %v12455_v31 = vcombine.low %v316_v17, %v320_v18  ;;  %v240_v17 = vld [vmem:[#allocation6 + $0x230] sm:$0xff] }
 0x196   :  { %3581 = vmatprep.subr.bf16.mxu1 %v12790_v33  ;;  %v12464_v33 = vcombine.high %v324_v27, %v328_v28 }
 0x197   :  { %3541 = vmatpush1.bf16.msra.mxu0 %v12661_v39  ;;  %v12335_v39 = vcombine.low %v196_v26, %v200_v53  ;;  %v12376_v26 = vcombine.high %v236_v15, %v240_v17 }
 0x198   :  { %3542 = vmatprep.subr.bf16.mxu0 %v12670_v42  ;;  %v12344_v42 = vcombine.high %v204_v34, %v208_v35 }
 0x199   :  { %3582 = vmatpush1.bf16.msra.mxu1 %v12789_v41  ;;  %v12463_v41 = vcombine.low %v324_v27, %v328_v28  ;;  %v244_v27 = vld [vmem:[#allocation6 + $0x250] sm:$0xff] }
 0x19a   :  { %3583 = vmatprep.subr.bf16.mxu1 %v12798_v43  ;;  %v12472_v43 = vcombine.high %v332_v36, %v336_v37  ;;  %v248_v28 = vld [vmem:[#allocation6 + $0x270] sm:$0xff] }
 0x19b   :  { %3543 = vmatpush1.bf16.msra.mxu0 %v12669_v19  ;;  %v12343_v19 = vcombine.low %v204_v34, %v208_v35  ;;  %v12384_v34 = vcombine.high %v244_v27, %v248_v28 }
 0x19c   :  { %3544 = vmatprep.subr.bf16.mxu0 %v12678_v48  ;;  %v12352_v48 = vcombine.high %v212_v44, %v216_v45 }
 0x19d   :  { %3584 = vmatpush1.bf16.msra.mxu1 %v12797_v22  ;;  %v12471_v22 = vcombine.low %v332_v36, %v336_v37  ;;  %v252_v36 = vld [vmem:[#allocation6 + $0x290] sm:$0xff] }
 0x19e   :  { %3585 = vmatprep.subr.bf16.mxu1 %v12806_v49  ;;  %v12480_v49 = vcombine.high %v340_v46, %v344_v47  ;;  %v256_v37 = vld [vmem:[#allocation6 + $0x2b0] sm:$0xff] }
 0x19f   :  { %3545 = vmatpush1.bf16.msra.mxu0 %v12677_v56  ;;  %v12351_v56 = vcombine.low %v212_v44, %v216_v45  ;;  %v12392_v44 = vcombine.high %v252_v36, %v256_v37 }
 0x1a0   :  { %3546 = vmatprep.subr.bf16.mxu0 %v12686_v60  ;;  %v12360_v60 = vcombine.high %v220_v50, %v224_v51 }
 0x1a1   :  { %3586 = vmatpush1.bf16.msra.mxu1 %v12805_v57  ;;  %v12479_v57 = vcombine.low %v340_v46, %v344_v47  ;;  %v260_v46 = vld [vmem:[#allocation6 + $0x2d0] sm:$0xff] }
 0x1a2   :  { %3587 = vmatprep.subr.bf16.mxu1 %v12814_v61  ;;  %v264_v47 = vld [vmem:[#allocation6 + $0x2f0] sm:$0xff] }
 0x1a3   :  { %3547 = vmatpush1.bf16.msra.mxu0 %v12685_v2  ;;  %v12400_v50 = vcombine.high %v260_v46, %v264_v47 }
 0x1a4   :  { %3598 = vmatprep.subr.bf16.mxu0 %v12312_v4  ;;  %v360_v4 = vld [vmem:[#allocation6 + $0x5f0] sm:$0xff] }
 0x1a5   :  { %3588 = vmatpush1.bf16.msra.mxu1 %v12813_v3  ;;  %v356_v3 = vld [vmem:[#allocation6 + $0x5d0] sm:$0xff] }
 0x1a6   :  { %3639 = vmatprep.subr.bf16.mxu1 %v12440_v5  ;;  %3549 = vmatmul.mubr.bf16.vlgmr.msra.gmra.mrb[12].mxu0 %v14653_v38  ;;  %v12496_v14 = vcombine.high %v356_v3, %v360_v4 }
 0x1a7   :  { %3599 = vmatpush1.bf16.msra.mxu0 %v12311_v10  ;;  %3630 = vmatprep.mubr.bf16.mxu0 %v14619_v58 }
 0x1a8   :  { %3590 = vmatmul.mubr.bf16.vlgmr.msra.gmra.mrb[12].mxu1 %v14657_v40  ;;  %3600 = vmatprep.subr.bf16.mxu0 %v12320_v12  ;;  %v12368_v12 = vcombine.high %v228_v63, %v232_v0 }
 0x1a9   :  { %3640 = vmatpush1.bf16.msra.mxu1 %v12439_v11  ;;  %3671 = vmatprep.mubr.bf16.mxu1 %v14623_v59  ;;  %v12487_v11 = vcombine.low %v348_v52, %v352_v55  ;;  %v268_v52 = vld [vmem:[#allocation6 + $0x310] sm:$0xff] }
 0x1aa   :  { %3641 = vmatprep.subr.bf16.mxu1 %v12448_v13  ;;  %v272_v55 = vld [vmem:[#allocation6 + $0x330] sm:$0xff] }
 0x1ab   :  { %3601 = vmatpush1.bf16.msra.mxu0 %v12319_v21  ;;  %v364_v21 = vld [vmem:[#allocation6 + $0x610] sm:$0xff] }
 0x1ac   :  { %3602 = vmatprep.subr.bf16.mxu0 %v12328_v24  ;;  %v12367_v24 = vcombine.low %v228_v63, %v232_v0  ;;  %v276_v0 = vld [vmem:[#allocation6 + $0x350] sm:$0xff] }
 0x1ad   :  { %3642 = vmatpush1.bf16.msra.mxu1 %v12447_v23  ;;  %v368_v23 = vld [vmem:[#allocation6 + $0x630] sm:$0xff] }
 0x1ae   :  { %3643 = vmatprep.subr.bf16.mxu1 %v12456_v25  ;;  %v12495_v25 = vcombine.low %v356_v3, %v360_v4  ;;  %v12504_v53 = vcombine.high %v364_v21, %v368_v23  ;;  %v408_v3 = vld [vmem:[#allocation6 + $0x770] sm:$0xff]  ;;  %v12407_v4 = vcombine.low %v268_v52, %v272_v55 }
 0x1af   :  { %3603 = vmatpush1.bf16.msra.mxu0 %v12327_v30  ;;  %v372_v30 = vld [vmem:[#allocation6 + $0x650] sm:$0xff] }
 0x1b0   :  { %3604 = vmatprep.subr.bf16.mxu0 %v12336_v32  ;;  %v12375_v32 = vcombine.low %v236_v15, %v240_v17 }
 0x1b1   :  { %3644 = vmatpush1.bf16.msra.mxu1 %v12455_v31  ;;  %v376_v31 = vld [vmem:[#allocation6 + $0x670] sm:$0xff] }
 0x1b2   :  { %3645 = vmatprep.subr.bf16.mxu1 %v12464_v33  ;;  %v12503_v33 = vcombine.low %v364_v21, %v368_v23  ;;  %v12512_v35 = vcombine.high %v372_v30, %v376_v31  ;;  %v292_v21 = vld [vmem:[#allocation6 + $0x3d0] sm:$0xff] }
 0x1b3   :  { %3605 = vmatpush1.bf16.msra.mxu0 %v12335_v39  ;;  %v380_v39 = vld [vmem:[#allocation6 + $0x690] sm:$0xff] }
 0x1b4   :  { %3606 = vmatprep.subr.bf16.mxu0 %v12344_v42  ;;  %v12383_v42 = vcombine.low %v244_v27, %v248_v28  ;;  %v296_v23 = vld [vmem:[#allocation6 + $0x3f0] sm:$0xff] }
 0x1b5   :  { %3646 = vmatpush1.bf16.msra.mxu1 %v12463_v41  ;;  %v384_v41 = vld [vmem:[#allocation6 + $0x6b0] sm:$0xff]  ;;  %v12432_v27 = vcombine.high %v292_v21, %v296_v23 }
 0x1b6   :  { %3647 = vmatprep.subr.bf16.mxu1 %v12472_v43  ;;  %v12511_v43 = vcombine.low %v372_v30, %v376_v31  ;;  %v12520_v45 = vcombine.high %v380_v39, %v384_v41  ;;  %v428_v30 = vld [vmem:[#allocation6 + $0x810] sm:$0xff] }
 0x1b7   :  { %3607 = vmatpush1.bf16.msra.mxu0 %v12343_v19  ;;  %v388_v19 = vld [vmem:[#allocation6 + $0x6d0] sm:$0xff] }
 0x1b8   :  { %3608 = vmatprep.subr.bf16.mxu0 %v12352_v48  ;;  %v12391_v48 = vcombine.low %v252_v36, %v256_v37  ;;  %v432_v31 = vld [vmem:[#allocation6 + $0x830] sm:$0xff] }
 0x1b9   :  { %3648 = vmatpush1.bf16.msra.mxu1 %v12471_v22  ;;  %v3304_v61 = vpop.f32.mrb[0].mxu0  ;;  %v392_v22 = vld [vmem:[#allocation6 + $0x6f0] sm:$0xff]  ;;  %v12568_v36 = vcombine.high %v428_v30, %v432_v31 }
 0x1ba   :  { %3649 = vmatprep.subr.bf16.mxu1 %v12480_v49  ;;  %v3306_v2 = vpop.f32.mrb[1].mxu0  ;;  %v12519_v49 = vcombine.low %v380_v39, %v384_v41  ;;  %v12528_v51 = vcombine.high %v388_v19, %v392_v22  ;;  %v436_v39 = vld [vmem:[#allocation6 + $0x850] sm:$0xff] }
 0x1bb   :  { %v3345_v1 = vpop.f32.mrb[0].mxu1  ;;  %v3308_v7 = vpop.f32.mrb[2].mxu0  ;;  %3609 = vmatpush1.bf16.msra.mxu0 %v12351_v56  ;;  %v396_v56 = vld [vmem:[#allocation6 + $0x710] sm:$0xff] }
 0x1bc   :  { %v14671_v5 = vadd.f32 %v3345_v1, %v3304_v61  ;;  %v3347_v6 = vpop.f32.mrb[1].mxu1  ;;  %v3309_v10 = vpop.f32.mrb[3].mxu0  ;;  %3610 = vmatprep.subr.bf16.mxu0 %v12360_v60  ;;  %v12399_v60 = vcombine.low %v260_v46, %v264_v47  ;;  %v12527_v61 = vcombine.low %v388_v19, %v392_v22  ;;  %v280_v1 = vld [vmem:[#allocation6 + $0x370] sm:$0xff] }
 0x1bd   :  { %v14673_v9 = vadd.f32 %v3347_v6, %v3306_v2  ;;  %3650 = vmatpush1.bf16.msra.mxu1 %v12479_v57  ;;  %v3349_v13 = vpop.f32.mrb[2].mxu1  ;;  %v400_v57 = vld [vmem:[#allocation6 + $0x730] sm:$0xff]  ;;  %v12416_v7 = vcombine.high %v276_v0, %v280_v1 }
 0x1be   :  { %3651 = vmatprep.subr.bf16.mxu1 %v12488_v62  ;;  %v3350_v18 = vpop.f32.mrb[3].mxu1  ;;  %v12408_v62 = vcombine.high %v268_v52, %v272_v55  ;;  %v12536_v63 = vcombine.high %v396_v56, %v400_v57  ;;  %v404_v2 = vld [vmem:[#allocation6 + $0x750] sm:$0xff]  ;;  %v12535_v6 = vcombine.low %v396_v56, %v400_v57 }
 0x1bf   :  { %3611 = vmatpush1.bf16.msra.mxu0 %v12359_v8  ;;  %v12544_v8 = vcombine.high %v404_v2, %v408_v3  ;;  %v284_v10 = vld [vmem:[#allocation6 + $0x390] sm:$0xff]  ;;  %v12543_v15 = vcombine.low %v404_v2, %v408_v3 }
 0x1c0   :  { %3612 = vmatprep.subr.bf16.mxu0 %v12368_v12  ;;  %v412_v12 = vld [vmem:[#allocation6 + $0x790] sm:$0xff] }
 0x1c1   :  { %3652 = vmatpush1.bf16.msra.mxu1 %v12487_v11  ;;  %v288_v11 = vld [vmem:[#allocation6 + $0x3b0] sm:$0xff] }
 0x1c2   :  { %3653 = vmatprep.subr.bf16.mxu1 %v12496_v14  ;;  %v416_v13 = vld [vmem:[#allocation6 + $0x7b0] sm:$0xff]  ;;  %v12415_v14 = vcombine.low %v276_v0, %v280_v1  ;;  %v12424_v17 = vcombine.high %v284_v10, %v288_v11 }
 0x1c3   :  { %3613 = vmatpush1.bf16.msra.mxu0 %v12367_v24  ;;  %v12552_v18 = vcombine.high %v412_v12, %v416_v13  ;;  %v420_v24 = vld [vmem:[#allocation6 + $0x7d0] sm:$0xff] }
 0x1c4   :  { %3614 = vmatprep.subr.bf16.mxu0 %v12376_v26  ;;  %v12423_v26 = vcombine.low %v284_v10, %v288_v11  ;;  %v440_v41 = vld [vmem:[#allocation6 + $0x870] sm:$0xff] }
 0x1c5   :  { %3654 = vmatpush1.bf16.msra.mxu1 %v12495_v25  ;;  %v424_v25 = vld [vmem:[#allocation6 + $0x7f0] sm:$0xff]  ;;  %v12576_v46 = vcombine.high %v436_v39, %v440_v41 }
 0x1c6   :  { %3655 = vmatprep.subr.bf16.mxu1 %v12504_v53  ;;  %v12551_v53 = vcombine.low %v412_v12, %v416_v13  ;;  %v12560_v28 = vcombine.high %v420_v24, %v424_v25  ;;  %v444_v19 = vld [vmem:[#allocation6 + $0x890] sm:$0xff] }
 0x1c7   :  { %3615 = vmatpush1.bf16.msra.mxu0 %v12375_v32  ;;  %v556_v32 = vld [vmem:[#allocation6 + $0xc10] sm:$0xff] }
 0x1c8   :  { %3616 = vmatprep.subr.bf16.mxu0 %v12384_v34  ;;  %v12431_v34 = vcombine.low %v292_v21, %v296_v23  ;;  %v448_v22 = vld [vmem:[#allocation6 + $0x8b0] sm:$0xff] }
 0x1c9   :  { %3656 = vmatpush1.bf16.msra.mxu1 %v12503_v33  ;;  %v560_v33 = vld [vmem:[#allocation6 + $0xc30] sm:$0xff]  ;;  %v12584_v52 = vcombine.high %v444_v19, %v448_v22 }
 0x1ca   :  { %3657 = vmatprep.subr.bf16.mxu1 %v12512_v35  ;;  %v12559_v35 = vcombine.low %v420_v24, %v424_v25  ;;  %v12696_v37 = vcombine.high %v556_v32, %v560_v33  ;;  %v452_v56 = vld [vmem:[#allocation6 + $0x8d0] sm:$0xff] }
 0x1cb   :  { %3617 = vmatpush1.bf16.msra.mxu0 %v12383_v42  ;;  %v564_v42 = vld [vmem:[#allocation6 + $0xc50] sm:$0xff] }
 0x1cc   :  { %3618 = vmatprep.subr.bf16.mxu0 %v12392_v44  ;;  %v12567_v44 = vcombine.low %v428_v30, %v432_v31  ;;  %v456_v57 = vld [vmem:[#allocation6 + $0x8f0] sm:$0xff] }
 0x1cd   :  { %3658 = vmatpush1.bf16.msra.mxu1 %v12511_v43  ;;  %v568_v43 = vld [vmem:[#allocation6 + $0xc70] sm:$0xff]  ;;  %v12592_v0 = vcombine.high %v452_v56, %v456_v57 }
 0x1ce   :  { %3659 = vmatprep.subr.bf16.mxu1 %v12520_v45  ;;  %v12695_v45 = vcombine.low %v556_v32, %v560_v33  ;;  %v12704_v47 = vcombine.high %v564_v42, %v568_v43  ;;  %v460_v2 = vld [vmem:[#allocation6 + $0x910] sm:$0xff] }
 0x1cf   :  { %3619 = vmatpush1.bf16.msra.mxu0 %v12391_v48  ;;  %v572_v48 = vld [vmem:[#allocation6 + $0xc90] sm:$0xff] }
 0x1d0   :  { %3620 = vmatprep.subr.bf16.mxu0 %v12400_v50  ;;  %v12575_v50 = vcombine.low %v436_v39, %v440_v41  ;;  %v464_v3 = vld [vmem:[#allocation6 + $0x930] sm:$0xff] }
 0x1d1   :  { %3660 = vmatpush1.bf16.msra.mxu1 %v12519_v49  ;;  %v576_v49 = vld [vmem:[#allocation6 + $0xcb0] sm:$0xff]  ;;  %v12600_v10 = vcombine.high %v460_v2, %v464_v3 }
 0x1d2   :  { %3661 = vmatprep.subr.bf16.mxu1 %v12528_v51  ;;  %v12703_v51 = vcombine.low %v564_v42, %v568_v43  ;;  %v12712_v55 = vcombine.high %v572_v48, %v576_v49  ;;  %v468_v12 = vld [vmem:[#allocation6 + $0x950] sm:$0xff] }
 0x1d3   :  { %3621 = vmatpush1.bf16.msra.mxu0 %v12399_v60  ;;  %v580_v60 = vld [vmem:[#allocation6 + $0xcd0] sm:$0xff] }
 0x1d4   :  { %3622 = vmatprep.subr.bf16.mxu0 %v12408_v62  ;;  %v12583_v62 = vcombine.low %v444_v19, %v448_v22  ;;  %v472_v13 = vld [vmem:[#allocation6 + $0x970] sm:$0xff] }
 0x1d5   :  { %3662 = vmatpush1.bf16.msra.mxu1 %v12527_v61  ;;  %v584_v61 = vld [vmem:[#allocation6 + $0xcf0] sm:$0xff]  ;;  %v12608_v21 = vcombine.high %v468_v12, %v472_v13 }
 0x1d6   :  { %3663 = vmatprep.subr.bf16.mxu1 %v12536_v63  ;;  %v12711_v63 = vcombine.low %v572_v48, %v576_v49  ;;  %v12720_v1 = vcombine.high %v580_v60, %v584_v61  ;;  %v476_v24 = vld [vmem:[#allocation6 + $0x990] sm:$0xff] }
 0x1d7   :  { %3623 = vmatpush1.bf16.msra.mxu0 %v12407_v4  ;;  %v588_v4 = vld [vmem:[#allocation6 + $0xd10] sm:$0xff] }
 0x1d8   :  { %3624 = vmatprep.subr.bf16.mxu0 %v12416_v7  ;;  %v12591_v7 = vcombine.low %v452_v56, %v456_v57  ;;  %v480_v25 = vld [vmem:[#allocation6 + $0x9b0] sm:$0xff] }
 0x1d9   :  { %3664 = vmatpush1.bf16.msra.mxu1 %v12535_v6  ;;  %v592_v6 = vld [vmem:[#allocation6 + $0xd30] sm:$0xff]  ;;  %v12616_v30 = vcombine.high %v476_v24, %v480_v25 }
 0x1da   :  { %3665 = vmatprep.subr.bf16.mxu1 %v12544_v8  ;;  %v12719_v8 = vcombine.low %v580_v60, %v584_v61  ;;  %v12728_v11 = vcombine.high %v588_v4, %v592_v6  ;;  %v484_v33 = vld [vmem:[#allocation6 + $0x9d0] sm:$0xff] }
 0x1db   :  { %3625 = vmatpush1.bf16.msra.mxu0 %v12415_v14  ;;  %v596_v14 = vld [vmem:[#allocation6 + $0xd50] sm:$0xff] }
 0x1dc   :  { %3626 = vmatprep.subr.bf16.mxu0 %v12424_v17  ;;  %v12599_v17 = vcombine.low %v460_v2, %v464_v3  ;;  %v612_v39 = vld [vmem:[#allocation6 + $0xdd0] sm:$0xff] }
 0x1dd   :  { %3666 = vmatpush1.bf16.msra.mxu1 %v12543_v15  ;;  %v600_v15 = vld [vmem:[#allocation6 + $0xd70] sm:$0xff] }
 0x1de   :  { %3667 = vmatprep.subr.bf16.mxu1 %v12552_v18  ;;  %v12727_v18 = vcombine.low %v588_v4, %v592_v6  ;;  %v12736_v23 = vcombine.high %v596_v14, %v600_v15  ;;  %v616_v41 = vld [vmem:[#allocation6 + $0xdf0] sm:$0xff] }
 0x1df   :  { %3627 = vmatpush1.bf16.msra.mxu0 %v12423_v26  ;;  %v604_v26 = vld [vmem:[#allocation6 + $0xd90] sm:$0xff]  ;;  %v12751_v57 = vcombine.low %v612_v39, %v616_v41 }
 0x1e0   :  { %3628 = vmatprep.subr.bf16.mxu0 %v12432_v27  ;;  %v12607_v27 = vcombine.low %v468_v12, %v472_v13 }
 0x1e1   :  { %3668 = vmatpush1.bf16.msra.mxu1 %v12551_v53  ;;  %v608_v53 = vld [vmem:[#allocation6 + $0xdb0] sm:$0xff] }
 0x1e2   :  { %3669 = vmatprep.subr.bf16.mxu1 %v12560_v28  ;;  %v12735_v28 = vcombine.low %v596_v14, %v600_v15  ;;  %v12744_v32 = vcombine.high %v604_v26, %v608_v53  ;;  %v12743_v19 = vcombine.low %v604_v26, %v608_v53 }
 0x1e3   :  { %3629 = vmatpush1.bf16.msra.mxu0 %v12431_v34  ;;  %v488_v34 = vld [vmem:[#allocation6 + $0x9f0] sm:$0xff] }
 0x1e4   :  { %3680 = vmatprep.subr.bf16.mxu0 %v12568_v36  ;;  %v12624_v22 = vcombine.high %v484_v33, %v488_v34  ;;  %v12623_v56 = vcombine.low %v484_v33, %v488_v34 }
 0x1e5   :  { %3670 = vmatpush1.bf16.msra.mxu1 %v12559_v35 }
 0x1e6   :  { %3721 = vmatprep.subr.bf16.mxu1 %v12696_v37  ;;  %3631 = vmatmul.mubr.bf16.vlgmr.msra.gmra.mrb[16].mxu0 %v14629_v16 }
 0x1e7   :  { %3681 = vmatpush1.bf16.msra.mxu0 %v12567_v44  ;;  %3712 = vmatprep.mubr.bf16.mxu0 %v14641_v29 }
 0x1e8   :  { %3672 = vmatmul.mubr.bf16.vlgmr.msra.gmra.mrb[16].mxu1 %v14635_v20  ;;  %3682 = vmatprep.subr.bf16.mxu0 %v12576_v46 }
 0x1e9   :  { %3722 = vmatpush1.bf16.msra.mxu1 %v12695_v45  ;;  %3753 = vmatprep.mubr.bf16.mxu1 %v14646_v54  ;;  %v12615_v45 = vcombine.low %v476_v24, %v480_v25 }
 0x1ea   :  { %3723 = vmatprep.subr.bf16.mxu1 %v12704_v47 }
 0x1eb   :  { %3683 = vmatpush1.bf16.msra.mxu0 %v12575_v50  ;;  %v492_v50 = vld [vmem:[#allocation6 + $0xa10] sm:$0xff] }
 0x1ec   :  { %3684 = vmatprep.subr.bf16.mxu0 %v12584_v52 }
 0x1ed   :  { %3724 = vmatpush1.bf16.msra.mxu1 %v12703_v51  ;;  %v496_v51 = vld [vmem:[#allocation6 + $0xa30] sm:$0xff] }
 0x1ee   :  { %3725 = vmatprep.subr.bf16.mxu1 %v12712_v55  ;;  %v624_v55 = vld [vmem:[#allocation6 + $0xe30] sm:$0xff]  ;;  %v12632_v60 = vcombine.high %v492_v50, %v496_v51  ;;  %v12631_v2 = vcombine.low %v492_v50, %v496_v51 }
 0x1ef   :  { %3685 = vmatpush1.bf16.msra.mxu0 %v12583_v62  ;;  %v500_v62 = vld [vmem:[#allocation6 + $0xa50] sm:$0xff] }
 0x1f0   :  { %3686 = vmatprep.subr.bf16.mxu0 %v12592_v0  ;;  %v628_v0 = vld [vmem:[#allocation6 + $0xe50] sm:$0xff] }
 0x1f1   :  { %3726 = vmatpush1.bf16.msra.mxu1 %v12711_v63  ;;  %v504_v63 = vld [vmem:[#allocation6 + $0xa70] sm:$0xff] }
 0x1f2   :  { %3727 = vmatprep.subr.bf16.mxu1 %v12720_v1  ;;  %v632_v1 = vld [vmem:[#allocation6 + $0xe70] sm:$0xff]  ;;  %v12640_v4 = vcombine.high %v500_v62, %v504_v63  ;;  %v12639_v12 = vcombine.low %v500_v62, %v504_v63 }
 0x1f3   :  { %3687 = vmatpush1.bf16.msra.mxu0 %v12591_v7  ;;  %v12768_v6 = vcombine.high %v628_v0, %v632_v1  ;;  %v508_v7 = vld [vmem:[#allocation6 + $0xa90] sm:$0xff]  ;;  %v12767_v13 = vcombine.low %v628_v0, %v632_v1  ;;  %v173_v0 = vld [vmem:[#allocation6 + $0x18] sm:$0xff] }
 0x1f4   :  { %3688 = vmatprep.subr.bf16.mxu0 %v12600_v10  ;;  %v636_v10 = vld [vmem:[#allocation6 + $0xe90] sm:$0xff]  ;;  %v177_v1 = vld [vmem:[#allocation6 + $0x38] sm:$0xff] }
 0x1f5   :  { %3728 = vmatpush1.bf16.msra.mxu1 %v12719_v8  ;;  %v512_v8 = vld [vmem:[#allocation6 + $0xab0] sm:$0xff] }
 0x1f6   :  { %3729 = vmatprep.subr.bf16.mxu1 %v12728_v11  ;;  %v640_v11 = vld [vmem:[#allocation6 + $0xeb0] sm:$0xff]  ;;  %v12648_v14 = vcombine.high %v508_v7, %v512_v8  ;;  %v12647_v24 = vcombine.low %v508_v7, %v512_v8  ;;  %v12314_v7 = vcombine.high %v173_v0, %v177_v1 }
 0x1f7   :  { %3689 = vmatpush1.bf16.msra.mxu0 %v12599_v17  ;;  %v12776_v15 = vcombine.high %v636_v10, %v640_v11  ;;  %v516_v17 = vld [vmem:[#allocation6 + $0xad0] sm:$0xff]  ;;  %v12775_v25 = vcombine.low %v636_v10, %v640_v11  ;;  %v181_v10 = vld [vmem:[#allocation6 + $0x58] sm:$0xff] }
 0x1f8   :  { %3690 = vmatprep.subr.bf16.mxu0 %v12608_v21  ;;  %v644_v21 = vld [vmem:[#allocation6 + $0xed0] sm:$0xff]  ;;  %v185_v11 = vld [vmem:[#allocation6 + $0x78] sm:$0xff] }
 0x1f9   :  { %3730 = vmatpush1.bf16.msra.mxu1 %v12727_v18  ;;  %v3386_v31 = vpop.f32.mrb[4].mxu0  ;;  %v520_v18 = vld [vmem:[#allocation6 + $0xaf0] sm:$0xff] }
 0x1fa   :  { %3731 = vmatprep.subr.bf16.mxu1 %v12736_v23  ;;  %v3387_v35 = vadd.f32 %v3386_v31, %v14671_v5  ;;  %v3388_v36 = vpop.f32.mrb[5].mxu0  ;;  %v12752_v5 = vcombine.high %v612_v39, %v616_v41  ;;  %v648_v23 = vld [vmem:[#allocation6 + $0xef0] sm:$0xff]  ;;  %v12656_v26 = vcombine.high %v516_v17, %v520_v18 }
 0x1fb   :  { %v3427_v37 = vpop.f32.mrb[4].mxu1  ;;  %v3389_v42 = vadd.f32 %v3388_v36, %v14673_v9  ;;  %v3390_v43 = vpop.f32.mrb[6].mxu0  ;;  %3691 = vmatpush1.bf16.msra.mxu0 %v12607_v27  ;;  %v620_v9 = vld [vmem:[#allocation6 + $0xe10] sm:$0xff]  ;;  %v12784_v53 = vcombine.high %v644_v21, %v648_v23  ;;  %v12783_v33 = vcombine.low %v644_v21, %v648_v23  ;;  %v189_v21 = vld [vmem:[#allocation6 + $0x98] sm:$0xff] }
 0x1fc   :  { %v3429_v44 = vpop.f32.mrb[5].mxu1  ;;  %v14681_v46 = vadd.f32 %v3427_v37, %v3387_v35  ;;  %v3391_v47 = vpop.f32.mrb[7].mxu0  ;;  %3692 = vmatprep.subr.bf16.mxu0 %v12616_v30  ;;  %v12760_v61 = vcombine.high %v620_v9, %v624_v55  ;;  %v12759_v3 = vcombine.low %v620_v9, %v624_v55  ;;  %v524_v27 = vld [vmem:[#allocation6 + $0xb10] sm:$0xff]  ;;  %v193_v23 = vld [vmem:[#allocation6 + $0xb8] sm:$0xff] }
 0x1fd   :  { %3732 = vmatpush1.bf16.msra.mxu1 %v12735_v28  ;;  %v3431_v48 = vpop.f32.mrb[6].mxu1  ;;  %v14683_v49 = vadd.f32 %v3429_v44, %v3389_v42  ;;  %v528_v28 = vld [vmem:[#allocation6 + $0xb30] sm:$0xff] }
 0x1fe   :  { %3733 = vmatprep.subr.bf16.mxu1 %v12744_v32  ;;  %v3432_v52 = vpop.f32.mrb[7].mxu1  ;;  %v652_v30 = vld [vmem:[#allocation6 + $0xf10] sm:$0xff]  ;;  %v12655_v32 = vcombine.low %v516_v17, %v520_v18  ;;  %v12664_v34 = vcombine.high %v524_v27, %v528_v28  ;;  %v12663_v42 = vcombine.low %v524_v27, %v528_v28  ;;  %v12322_v17 = vcombine.high %v181_v10, %v185_v11 }
 0x1ff   :  { %3693 = vmatpush1.bf16.msra.mxu0 %v12615_v45  ;;  %v656_v31 = vld [vmem:[#allocation6 + $0xf30] sm:$0xff]  ;;  %v12330_v27 = vcombine.high %v189_v21, %v193_v23 }
 0x200   :  { %3694 = vmatprep.subr.bf16.mxu0 %v12624_v22  ;;  %v12792_v35 = vcombine.high %v652_v30, %v656_v31  ;;  %v532_v36 = vld [vmem:[#allocation6 + $0xb50] sm:$0xff]  ;;  %v12791_v43 = vcombine.low %v652_v30, %v656_v31  ;;  %v197_v30 = vld [vmem:[#allocation6 + $0xd8] sm:$0xff] }
 0x201   :  { %3734 = vmatpush1.bf16.msra.mxu1 %v12743_v19  ;;  %v536_v37 = vld [vmem:[#allocation6 + $0xb70] sm:$0xff]  ;;  %v201_v31 = vld [vmem:[#allocation6 + $0xf8] sm:$0xff] }
 0x202   :  { %3735 = vmatprep.subr.bf16.mxu1 %v12752_v5  ;;  %v660_v39 = vld [vmem:[#allocation6 + $0xf50] sm:$0xff]  ;;  %v12672_v44 = vcombine.high %v532_v36, %v536_v37  ;;  %v12671_v5 = vcombine.low %v532_v36, %v536_v37  ;;  %v12338_v36 = vcombine.high %v197_v30, %v201_v31 }
 0x203   :  { %3695 = vmatpush1.bf16.msra.mxu0 %v12623_v56  ;;  %v664_v41 = vld [vmem:[#allocation6 + $0xf70] sm:$0xff] }
 0x204   :  { %3696 = vmatprep.subr.bf16.mxu0 %v12632_v60  ;;  %v12800_v45 = vcombine.high %v660_v39, %v664_v41  ;;  %v540_v47 = vld [vmem:[#allocation6 + $0xb90] sm:$0xff]  ;;  %v12799_v50 = vcombine.low %v660_v39, %v664_v41  ;;  %v205_v39 = vld [vmem:[#allocation6 + $0x118] sm:$0xff] }
 0x205   :  { %3736 = vmatpush1.bf16.msra.mxu1 %v12751_v57  ;;  %v544_v19 = vld [vmem:[#allocation6 + $0xbb0] sm:$0xff]  ;;  %v209_v41 = vld [vmem:[#allocation6 + $0x138] sm:$0xff] }
 0x206   :  { %3737 = vmatprep.subr.bf16.mxu1 %v12760_v61  ;;  %v668_v22 = vld [vmem:[#allocation6 + $0xf90] sm:$0xff]  ;;  %v12680_v51 = vcombine.high %v540_v47, %v544_v19  ;;  %v12679_v60 = vcombine.low %v540_v47, %v544_v19  ;;  %v213_v47 = vld [vmem:[#allocation6 + $0x158] sm:$0xff] }
 0x207   :  { %3697 = vmatpush1.bf16.msra.mxu0 %v12631_v2  ;;  %v672_v48 = vld [vmem:[#allocation6 + $0xfb0] sm:$0xff]  ;;  %v301_v2 = vld [vmem:[#allocation6 + $0x418] sm:$0xff] }
 0x208   :  { %3698 = vmatprep.subr.bf16.mxu0 %v12640_v4  ;;  %v12808_v52 = vcombine.high %v668_v22, %v672_v48  ;;  %v548_v9 = vld [vmem:[#allocation6 + $0xbd0] sm:$0xff]  ;;  %v12807_v61 = vcombine.low %v668_v22, %v672_v48  ;;  %v217_v19 = vld [vmem:[#allocation6 + $0x178] sm:$0xff] }
 0x209   :  { %3738 = vmatpush1.bf16.msra.mxu1 %v12759_v3  ;;  %v552_v55 = vld [vmem:[#allocation6 + $0xbf0] sm:$0xff]  ;;  %v305_v3 = vld [vmem:[#allocation6 + $0x438] sm:$0xff] }
 0x20a   :  { %3739 = vmatprep.subr.bf16.mxu1 %v12768_v6  ;;  %v676_v56 = vld [vmem:[#allocation6 + $0xfd0] sm:$0xff]  ;;  %v12688_v62 = vcombine.high %v548_v9, %v552_v55  ;;  %v12687_v4 = vcombine.low %v548_v9, %v552_v55  ;;  %v12442_v8 = vcombine.high %v301_v2, %v305_v3  ;;  %v341_v22 = vld [vmem:[#allocation6 + $0x558] sm:$0xff] }
 0x20b   :  { %3699 = vmatpush1.bf16.msra.mxu0 %v12639_v12  ;;  %v680_v57 = vld [vmem:[#allocation6 + $0xff0] sm:$0xff]  ;;  %v309_v12 = vld [vmem:[#allocation6 + $0x458] sm:$0xff] }
 0x20c   :  { %3700 = vmatprep.subr.bf16.mxu0 %v12648_v14  ;;  %v12816_v63 = vcombine.high %v676_v56, %v680_v57  ;;  %v12815_v6 = vcombine.low %v676_v56, %v680_v57  ;;  %v12313_v14 = vcombine.low %v173_v0, %v177_v1  ;;  %v345_v48 = vld [vmem:[#allocation6 + $0x578] sm:$0xff] }
 0x20d   :  { %3740 = vmatpush1.bf16.msra.mxu1 %v12767_v13  ;;  %v313_v13 = vld [vmem:[#allocation6 + $0x478] sm:$0xff] }
 0x20e   :  { %3741 = vmatprep.subr.bf16.mxu1 %v12776_v15  ;;  %v12441_v15 = vcombine.low %v301_v2, %v305_v3  ;;  %v12450_v18 = vcombine.high %v309_v12, %v313_v13  ;;  %v221_v9 = vld [vmem:[#allocation6 + $0x198] sm:$0xff] }
 0x20f   :  { %3701 = vmatpush1.bf16.msra.mxu0 %v12647_v24  ;;  %v317_v24 = vld [vmem:[#allocation6 + $0x498] sm:$0xff] }
 0x210   :  { %3702 = vmatprep.subr.bf16.mxu0 %v12656_v26  ;;  %v12321_v26 = vcombine.low %v181_v10, %v185_v11  ;;  %v225_v55 = vld [vmem:[#allocation6 + $0x1b8] sm:$0xff] }
 0x211   :  { %3742 = vmatpush1.bf16.msra.mxu1 %v12775_v25  ;;  %v321_v25 = vld [vmem:[#allocation6 + $0x4b8] sm:$0xff] }
 0x212   :  { %3743 = vmatprep.subr.bf16.mxu1 %v12784_v53  ;;  %v12449_v53 = vcombine.low %v309_v12, %v313_v13  ;;  %v12458_v28 = vcombine.high %v317_v24, %v321_v25  ;;  %v349_v56 = vld [vmem:[#allocation6 + $0x598] sm:$0xff]  ;;  %v12361_v12 = vcombine.low %v221_v9, %v225_v55 }
 0x213   :  { %3703 = vmatpush1.bf16.msra.mxu0 %v12655_v32  ;;  %v325_v32 = vld [vmem:[#allocation6 + $0x4d8] sm:$0xff] }
 0x214   :  { %3704 = vmatprep.subr.bf16.mxu0 %v12664_v34  ;;  %v12329_v34 = vcombine.low %v189_v21, %v193_v23  ;;  %v353_v57 = vld [vmem:[#allocation6 + $0x5b8] sm:$0xff] }
 0x215   :  { %3744 = vmatpush1.bf16.msra.mxu1 %v12783_v33  ;;  %v329_v33 = vld [vmem:[#allocation6 + $0x4f8] sm:$0xff]  ;;  %v12490_v0 = vcombine.high %v349_v56, %v353_v57 }
 0x216   :  { %3745 = vmatprep.subr.bf16.mxu1 %v12792_v35  ;;  %v12457_v35 = vcombine.low %v317_v24, %v321_v25  ;;  %v12466_v37 = vcombine.high %v325_v32, %v329_v33  ;;  %v229_v1 = vld [vmem:[#allocation6 + $0x1d8] sm:$0xff] }
 0x217   :  { %3705 = vmatpush1.bf16.msra.mxu0 %v12663_v42  ;;  %v333_v42 = vld [vmem:[#allocation6 + $0x518] sm:$0xff] }
 0x218   :  { %3706 = vmatprep.subr.bf16.mxu0 %v12672_v44  ;;  %v12337_v44 = vcombine.low %v197_v30, %v201_v31  ;;  %v233_v2 = vld [vmem:[#allocation6 + $0x1f8] sm:$0xff] }
 0x219   :  { %3746 = vmatpush1.bf16.msra.mxu1 %v12791_v43  ;;  %v337_v43 = vld [vmem:[#allocation6 + $0x538] sm:$0xff] }
 0x21a   :  { %3747 = vmatprep.subr.bf16.mxu1 %v12800_v45  ;;  %v12346_v45 = vcombine.high %v205_v39, %v209_v41  ;;  %v237_v23 = vld [vmem:[#allocation6 + $0x218] sm:$0xff] }
 0x21b   :  { %3707 = vmatpush1.bf16.msra.mxu0 %v12671_v5  ;;  %v12345_v5 = vcombine.low %v205_v39, %v209_v41  ;;  %v241_v24 = vld [vmem:[#allocation6 + $0x238] sm:$0xff] }
 0x21c   :  { %3708 = vmatprep.subr.bf16.mxu0 %v12680_v51  ;;  %v12354_v51 = vcombine.high %v213_v47, %v217_v19  ;;  %v12378_v30 = vcombine.high %v237_v23, %v241_v24 }
 0x21d   :  { %3748 = vmatpush1.bf16.msra.mxu1 %v12799_v50  ;;  %v12473_v50 = vcombine.low %v333_v42, %v337_v43 }
 0x21e   :  { %3749 = vmatprep.subr.bf16.mxu1 %v12808_v52  ;;  %v12482_v52 = vcombine.high %v341_v22, %v345_v48 }
 0x21f   :  { %3709 = vmatpush1.bf16.msra.mxu0 %v12679_v60  ;;  %v12353_v60 = vcombine.low %v213_v47, %v217_v19 }
 0x220   :  { %3710 = vmatprep.subr.bf16.mxu0 %v12688_v62  ;;  %v12362_v62 = vcombine.high %v221_v9, %v225_v55 }
 0x221   :  { %3750 = vmatpush1.bf16.msra.mxu1 %v12807_v61  ;;  %v12481_v61 = vcombine.low %v341_v22, %v345_v48  ;;  %v261_v22 = vld [vmem:[#allocation6 + $0x2d8] sm:$0xff] }
 0x222   :  { %3751 = vmatprep.subr.bf16.mxu1 %v12816_v63  ;;  %v265_v48 = vld [vmem:[#allocation6 + $0x2f8] sm:$0xff] }
 0x223   :  { %3711 = vmatpush1.bf16.msra.mxu0 %v12687_v4  ;;  %v12402_v9 = vcombine.high %v261_v22, %v265_v48 }
 0x224   :  { %3762 = vmatprep.subr.bf16.mxu0 %v12314_v7  ;;  %v361_v7 = vld [vmem:[#allocation6 + $0x5f8] sm:$0xff] }
 0x225   :  { %3752 = vmatpush1.bf16.msra.mxu1 %v12815_v6  ;;  %v357_v6 = vld [vmem:[#allocation6 + $0x5d8] sm:$0xff] }
 0x226   :  { %3803 = vmatprep.subr.bf16.mxu1 %v12442_v8  ;;  %3713 = vmatmul.mubr.bf16.vlgmr.msra.gmra.mrb[20].mxu0 %v14653_v38  ;;  %v12498_v21 = vcombine.high %v357_v6, %v361_v7 }
 0x227   :  { %3763 = vmatpush1.bf16.msra.mxu0 %v12313_v14  ;;  %3794 = vmatprep.mubr.bf16.mxu0 %v14619_v58  ;;  %v12465_v58 = vcombine.low %v325_v32, %v329_v33  ;;  %v245_v32 = vld [vmem:[#allocation6 + $0x258] sm:$0xff] }
 0x228   :  { %3754 = vmatmul.mubr.bf16.vlgmr.msra.gmra.mrb[20].mxu1 %v14657_v40  ;;  %3764 = vmatprep.subr.bf16.mxu0 %v12322_v17  ;;  %v12370_v17 = vcombine.high %v229_v1, %v233_v2  ;;  %v249_v33 = vld [vmem:[#allocation6 + $0x278] sm:$0xff] }
 0x229   :  { %3804 = vmatpush1.bf16.msra.mxu1 %v12441_v15  ;;  %3835 = vmatprep.mubr.bf16.mxu1 %v14623_v59  ;;  %v12474_v59 = vcombine.high %v333_v42, %v337_v43  ;;  %v12489_v15 = vcombine.low %v349_v56, %v353_v57  ;;  %v12386_v39 = vcombine.high %v245_v32, %v249_v33  ;;  %v253_v42 = vld [vmem:[#allocation6 + $0x298] sm:$0xff] }
 0x22a   :  { %3805 = vmatprep.subr.bf16.mxu1 %v12450_v18  ;;  %v257_v43 = vld [vmem:[#allocation6 + $0x2b8] sm:$0xff] }
 0x22b   :  { %3765 = vmatpush1.bf16.msra.mxu0 %v12321_v26  ;;  %v365_v26 = vld [vmem:[#allocation6 + $0x618] sm:$0xff]  ;;  %v12394_v47 = vcombine.high %v253_v42, %v257_v43 }
 0x22c   :  { %3766 = vmatprep.subr.bf16.mxu0 %v12330_v27  ;;  %v12369_v27 = vcombine.low %v229_v1, %v233_v2  ;;  %v269_v56 = vld [vmem:[#allocation6 + $0x318] sm:$0xff] }
 0x22d   :  { %3806 = vmatpush1.bf16.msra.mxu1 %v12449_v53  ;;  %v369_v53 = vld [vmem:[#allocation6 + $0x638] sm:$0xff] }
 0x22e   :  { %3807 = vmatprep.subr.bf16.mxu1 %v12458_v28  ;;  %v12497_v28 = vcombine.low %v357_v6, %v361_v7  ;;  %v12506_v31 = vcombine.high %v365_v26, %v369_v53  ;;  %v273_v57 = vld [vmem:[#allocation6 + $0x338] sm:$0xff] }
 0x22f   :  { %3767 = vmatpush1.bf16.msra.mxu0 %v12329_v34  ;;  %v373_v34 = vld [vmem:[#allocation6 + $0x658] sm:$0xff]  ;;  %v12409_v7 = vcombine.low %v269_v56, %v273_v57 }
 0x230   :  { %3768 = vmatprep.subr.bf16.mxu0 %v12338_v36  ;;  %v12377_v36 = vcombine.low %v237_v23, %v241_v24  ;;  %v277_v2 = vld [vmem:[#allocation6 + $0x358] sm:$0xff] }
 0x231   :  { %3808 = vmatpush1.bf16.msra.mxu1 %v12457_v35  ;;  %v377_v35 = vld [vmem:[#allocation6 + $0x678] sm:$0xff] }
 0x232   :  { %3809 = vmatprep.subr.bf16.mxu1 %v12466_v37  ;;  %v12505_v37 = vcombine.low %v365_v26, %v369_v53  ;;  %v12514_v41 = vcombine.high %v373_v34, %v377_v35  ;;  %v409_v6 = vld [vmem:[#allocation6 + $0x778] sm:$0xff] }
 0x233   :  { %3769 = vmatpush1.bf16.msra.mxu0 %v12337_v44  ;;  %v381_v44 = vld [vmem:[#allocation6 + $0x698] sm:$0xff] }
 0x234   :  { %3770 = vmatprep.subr.bf16.mxu0 %v12346_v45  ;;  %v12385_v45 = vcombine.low %v245_v32, %v249_v33  ;;  %v293_v26 = vld [vmem:[#allocation6 + $0x3d8] sm:$0xff] }
 0x235   :  { %3810 = vmatpush1.bf16.msra.mxu1 %v12465_v58  ;;  %v385_v58 = vld [vmem:[#allocation6 + $0x6b8] sm:$0xff] }
 0x236   :  { %3811 = vmatprep.subr.bf16.mxu1 %v12474_v59  ;;  %v12513_v59 = vcombine.low %v373_v34, %v377_v35  ;;  %v12522_v19 = vcombine.high %v381_v44, %v385_v58  ;;  %v297_v53 = vld [vmem:[#allocation6 + $0x3f8] sm:$0xff] }
 0x237   :  { %3771 = vmatpush1.bf16.msra.mxu0 %v12345_v5  ;;  %v389_v5 = vld [vmem:[#allocation6 + $0x6d8] sm:$0xff]  ;;  %v12434_v32 = vcombine.high %v293_v26, %v297_v53 }
 0x238   :  { %3772 = vmatprep.subr.bf16.mxu0 %v12354_v51  ;;  %v12393_v51 = vcombine.low %v253_v42, %v257_v43  ;;  %v429_v34 = vld [vmem:[#allocation6 + $0x818] sm:$0xff] }
 0x239   :  { %3812 = vmatpush1.bf16.msra.mxu1 %v12473_v50  ;;  %v3468_v63 = vpop.f32.mrb[8].mxu0  ;;  %v393_v50 = vld [vmem:[#allocation6 + $0x6f8] sm:$0xff] }
 0x23a   :  { %3813 = vmatprep.subr.bf16.mxu1 %v12482_v52  ;;  %v3470_v4 = vpop.f32.mrb[9].mxu0  ;;  %v12521_v52 = vcombine.low %v381_v44, %v385_v58  ;;  %v12530_v55 = vcombine.high %v389_v5, %v393_v50  ;;  %v433_v35 = vld [vmem:[#allocation6 + $0x838] sm:$0xff] }
 0x23b   :  { %v3509_v3 = vpop.f32.mrb[8].mxu1  ;;  %v3472_v11 = vpop.f32.mrb[10].mxu0  ;;  %3773 = vmatpush1.bf16.msra.mxu0 %v12353_v60  ;;  %v397_v60 = vld [vmem:[#allocation6 + $0x718] sm:$0xff]  ;;  %v12570_v42 = vcombine.high %v429_v34, %v433_v35 }
 0x23c   :  { %v14689_v8 = vadd.f32 %v3509_v3, %v3468_v63  ;;  %v3511_v10 = vpop.f32.mrb[9].mxu1  ;;  %v3473_v14 = vpop.f32.mrb[11].mxu0  ;;  %3774 = vmatprep.subr.bf16.mxu0 %v12362_v62  ;;  %v12401_v62 = vcombine.low %v261_v22, %v265_v48  ;;  %v12529_v63 = vcombine.low %v389_v5, %v393_v50  ;;  %v281_v3 = vld [vmem:[#allocation6 + $0x378] sm:$0xff] }
 0x23d   :  { %v14691_v13 = vadd.f32 %v3511_v10, %v3470_v4  ;;  %3814 = vmatpush1.bf16.msra.mxu1 %v12481_v61  ;;  %v3513_v18 = vpop.f32.mrb[10].mxu1  ;;  %v401_v61 = vld [vmem:[#allocation6 + $0x738] sm:$0xff]  ;;  %v12418_v11 = vcombine.high %v277_v2, %v281_v3 }
 0x23e   :  { %3815 = vmatprep.subr.bf16.mxu1 %v12490_v0  ;;  %v3514_v25 = vpop.f32.mrb[11].mxu1  ;;  %v12410_v0 = vcombine.high %v269_v56, %v273_v57  ;;  %v12538_v1 = vcombine.high %v397_v60, %v401_v61  ;;  %v405_v4 = vld [vmem:[#allocation6 + $0x758] sm:$0xff]  ;;  %v12537_v10 = vcombine.low %v397_v60, %v401_v61 }
 0x23f   :  { %3775 = vmatpush1.bf16.msra.mxu0 %v12361_v12  ;;  %v12546_v12 = vcombine.high %v405_v4, %v409_v6  ;;  %v285_v14 = vld [vmem:[#allocation6 + $0x398] sm:$0xff]  ;;  %v12545_v23 = vcombine.low %v405_v4, %v409_v6 }
 0x240   :  { %3776 = vmatprep.subr.bf16.mxu0 %v12370_v17  ;;  %v413_v17 = vld [vmem:[#allocation6 + $0x798] sm:$0xff] }
 0x241   :  { %3816 = vmatpush1.bf16.msra.mxu1 %v12489_v15  ;;  %v289_v15 = vld [vmem:[#allocation6 + $0x3b8] sm:$0xff] }
 0x242   :  { %3817 = vmatprep.subr.bf16.mxu1 %v12498_v21  ;;  %v417_v18 = vld [vmem:[#allocation6 + $0x7b8] sm:$0xff]  ;;  %v12417_v21 = vcombine.low %v277_v2, %v281_v3  ;;  %v12426_v24 = vcombine.high %v285_v14, %v289_v15 }
 0x243   :  { %3777 = vmatpush1.bf16.msra.mxu0 %v12369_v27  ;;  %v12554_v25 = vcombine.high %v413_v17, %v417_v18  ;;  %v421_v27 = vld [vmem:[#allocation6 + $0x7d8] sm:$0xff] }
 0x244   :  { %3778 = vmatprep.subr.bf16.mxu0 %v12378_v30  ;;  %v12425_v30 = vcombine.low %v285_v14, %v289_v15  ;;  %v437_v44 = vld [vmem:[#allocation6 + $0x858] sm:$0xff] }
 0x245   :  { %3818 = vmatpush1.bf16.msra.mxu1 %v12497_v28  ;;  %v425_v28 = vld [vmem:[#allocation6 + $0x7f8] sm:$0xff] }
 0x246   :  { %3819 = vmatprep.subr.bf16.mxu1 %v12506_v31  ;;  %v12553_v31 = vcombine.low %v413_v17, %v417_v18  ;;  %v12562_v33 = vcombine.high %v421_v27, %v425_v28  ;;  %v441_v58 = vld [vmem:[#allocation6 + $0x878] sm:$0xff] }
 0x247   :  { %3779 = vmatpush1.bf16.msra.mxu0 %v12377_v36  ;;  %v557_v36 = vld [vmem:[#allocation6 + $0xc18] sm:$0xff]  ;;  %v12578_v22 = vcombine.high %v437_v44, %v441_v58 }
 0x248   :  { %3780 = vmatprep.subr.bf16.mxu0 %v12386_v39  ;;  %v12433_v39 = vcombine.low %v293_v26, %v297_v53  ;;  %v445_v5 = vld [vmem:[#allocation6 + $0x898] sm:$0xff] }
 0x249   :  { %3820 = vmatpush1.bf16.msra.mxu1 %v12505_v37  ;;  %v561_v37 = vld [vmem:[#allocation6 + $0xc38] sm:$0xff] }
 0x24a   :  { %3821 = vmatprep.subr.bf16.mxu1 %v12514_v41  ;;  %v12561_v41 = vcombine.low %v421_v27, %v425_v28  ;;  %v12698_v43 = vcombine.high %v557_v36, %v561_v37  ;;  %v449_v50 = vld [vmem:[#allocation6 + $0x8b8] sm:$0xff] }
 0x24b   :  { %3781 = vmatpush1.bf16.msra.mxu0 %v12385_v45  ;;  %v565_v45 = vld [vmem:[#allocation6 + $0xc58] sm:$0xff]  ;;  %v12586_v56 = vcombine.high %v445_v5, %v449_v50 }
 0x24c   :  { %3782 = vmatprep.subr.bf16.mxu0 %v12394_v47  ;;  %v12569_v47 = vcombine.low %v429_v34, %v433_v35  ;;  %v453_v60 = vld [vmem:[#allocation6 + $0x8d8] sm:$0xff] }
 0x24d   :  { %3822 = vmatpush1.bf16.msra.mxu1 %v12513_v59  ;;  %v569_v59 = vld [vmem:[#allocation6 + $0xc78] sm:$0xff] }
 0x24e   :  { %3823 = vmatprep.subr.bf16.mxu1 %v12522_v19  ;;  %v12697_v19 = vcombine.low %v557_v36, %v561_v37  ;;  %v12706_v48 = vcombine.high %v565_v45, %v569_v59  ;;  %v457_v61 = vld [vmem:[#allocation6 + $0x8f8] sm:$0xff] }
 0x24f   :  { %3783 = vmatpush1.bf16.msra.mxu0 %v12393_v51  ;;  %v573_v51 = vld [vmem:[#allocation6 + $0xc98] sm:$0xff] }
 0x250   :  { %3784 = vmatprep.subr.bf16.mxu0 %v12402_v9  ;;  %v12577_v9 = vcombine.low %v437_v44, %v441_v58  ;;  %v461_v2 = vld [vmem:[#allocation6 + $0x918] sm:$0xff] }
 0x251   :  { %3824 = vmatpush1.bf16.msra.mxu1 %v12521_v52  ;;  %v577_v52 = vld [vmem:[#allocation6 + $0xcb8] sm:$0xff] }
 0x252   :  { %3825 = vmatprep.subr.bf16.mxu1 %v12530_v55  ;;  %v12705_v55 = vcombine.low %v565_v45, %v569_v59  ;;  %v12714_v57 = vcombine.high %v573_v51, %v577_v52  ;;  %v465_v3 = vld [vmem:[#allocation6 + $0x938] sm:$0xff] }
 0x253   :  { %3785 = vmatpush1.bf16.msra.mxu0 %v12401_v62  ;;  %v581_v62 = vld [vmem:[#allocation6 + $0xcd8] sm:$0xff]  ;;  %v12601_v17 = vcombine.low %v461_v2, %v465_v3 }
 0x254   :  { %3786 = vmatprep.subr.bf16.mxu0 %v12410_v0  ;;  %v12594_v0 = vcombine.high %v453_v60, %v457_v61  ;;  %v589_v4 = vld [vmem:[#allocation6 + $0xd18] sm:$0xff] }
 0x255   :  { %3826 = vmatpush1.bf16.msra.mxu1 %v12529_v63  ;;  %v585_v63 = vld [vmem:[#allocation6 + $0xcf8] sm:$0xff] }
 0x256   :  { %3827 = vmatprep.subr.bf16.mxu1 %v12538_v1  ;;  %v12722_v1 = vcombine.high %v581_v62, %v585_v63  ;;  %v593_v6 = vld [vmem:[#allocation6 + $0xd38] sm:$0xff] }
 0x257   :  { %3787 = vmatpush1.bf16.msra.mxu0 %v12409_v7  ;;  %v12593_v7 = vcombine.low %v453_v60, %v457_v61  ;;  %v597_v14 = vld [vmem:[#allocation6 + $0xd58] sm:$0xff]  ;;  %v12729_v18 = vcombine.low %v589_v4, %v593_v6 }
 0x258   :  { %3788 = vmatprep.subr.bf16.mxu0 %v12418_v11  ;;  %v469_v11 = vld [vmem:[#allocation6 + $0x958] sm:$0xff] }
 0x259   :  { %3828 = vmatpush1.bf16.msra.mxu1 %v12537_v10  ;;  %v12602_v10 = vcombine.high %v461_v2, %v465_v3  ;;  %v601_v15 = vld [vmem:[#allocation6 + $0xd78] sm:$0xff] }
 0x25a   :  { %3829 = vmatprep.subr.bf16.mxu1 %v12546_v12  ;;  %v473_v12 = vld [vmem:[#allocation6 + $0x978] sm:$0xff]  ;;  %v12737_v28 = vcombine.low %v597_v14, %v601_v15 }
 0x25b   :  { %3789 = vmatpush1.bf16.msra.mxu0 %v12417_v21  ;;  %v12610_v21 = vcombine.high %v469_v11, %v473_v12  ;;  %v605_v26 = vld [vmem:[#allocation6 + $0xd98] sm:$0xff]  ;;  %v12609_v27 = vcombine.low %v469_v11, %v473_v12 }
 0x25c   :  { %3790 = vmatprep.subr.bf16.mxu0 %v12426_v24  ;;  %v477_v24 = vld [vmem:[#allocation6 + $0x998] sm:$0xff] }
 0x25d   :  { %3830 = vmatpush1.bf16.msra.mxu1 %v12545_v23  ;;  %v12738_v23 = vcombine.high %v597_v14, %v601_v15  ;;  %v609_v53 = vld [vmem:[#allocation6 + $0xdb8] sm:$0xff] }
 0x25e   :  { %3831 = vmatprep.subr.bf16.mxu1 %v12554_v25  ;;  %v481_v25 = vld [vmem:[#allocation6 + $0x9b8] sm:$0xff] }
 0x25f   :  { %3791 = vmatpush1.bf16.msra.mxu0 %v12425_v30  ;;  %v12618_v30 = vcombine.high %v477_v24, %v481_v25  ;;  %v489_v34 = vld [vmem:[#allocation6 + $0x9f8] sm:$0xff]  ;;  %v12617_v58 = vcombine.low %v477_v24, %v481_v25 }
 0x260   :  { %3792 = vmatprep.subr.bf16.mxu0 %v12434_v32  ;;  %v12746_v32 = vcombine.high %v605_v26, %v609_v53  ;;  %v501_v60 = vld [vmem:[#allocation6 + $0xa58] sm:$0xff] }
 0x261   :  { %3832 = vmatpush1.bf16.msra.mxu1 %v12553_v31  ;;  %v505_v61 = vld [vmem:[#allocation6 + $0xa78] sm:$0xff] }
 0x262   :  { %3833 = vmatprep.subr.bf16.mxu1 %v12562_v33  ;;  %v485_v33 = vld [vmem:[#allocation6 + $0x9d8] sm:$0xff] }
 0x263   :  { %3793 = vmatpush1.bf16.msra.mxu0 %v12433_v39  ;;  %v613_v39 = vld [vmem:[#allocation6 + $0xdd8] sm:$0xff] }
 0x264   :  { %3844 = vmatprep.subr.bf16.mxu0 %v12570_v42  ;;  %v509_v2 = vld [vmem:[#allocation6 + $0xa98] sm:$0xff] }
 0x265   :  { %3834 = vmatpush1.bf16.msra.mxu1 %v12561_v41  ;;  %v617_v41 = vld [vmem:[#allocation6 + $0xdf8] sm:$0xff] }
 0x266   :  { %3885 = vmatprep.subr.bf16.mxu1 %v12698_v43  ;;  %3795 = vmatmul.mubr.bf16.vlgmr.msra.gmra.mrb[24].mxu0 %v14629_v16  ;;  %v12585_v16 = vcombine.low %v445_v5, %v449_v50  ;;  %v493_v5 = vld [vmem:[#allocation6 + $0xa18] sm:$0xff] }
 0x267   :  { %3845 = vmatpush1.bf16.msra.mxu0 %v12569_v47  ;;  %3876 = vmatprep.mubr.bf16.mxu0 %v14641_v29  ;;  %v12721_v29 = vcombine.low %v581_v62, %v585_v63  ;;  %v12745_v47 = vcombine.low %v605_v26, %v609_v53  ;;  %v497_v50 = vld [vmem:[#allocation6 + $0xa38] sm:$0xff]  ;;  %v3955_v26 = vlaneseq }
 0x268   :  { %3836 = vmatmul.mubr.bf16.vlgmr.msra.gmra.mrb[24].mxu1 %v14635_v20  ;;  %3846 = vmatprep.subr.bf16.mxu0 %v12578_v22  ;;  %v12713_v20 = vcombine.low %v573_v51, %v577_v52  ;;  %v625_v52 = vld [vmem:[#allocation6 + $0xe38] sm:$0xff] }
 0x269   :  { %3886 = vmatpush1.bf16.msra.mxu1 %v12697_v19  ;;  %3917 = vmatprep.mubr.bf16.mxu1 %v14646_v54  ;;  %v12730_v54 = vcombine.high %v589_v4, %v593_v6  ;;  %v12626_v19 = vcombine.high %v485_v33, %v489_v34  ;;  %v629_v62 = vld [vmem:[#allocation6 + $0xe58] sm:$0xff] }
 0x26a   :  { %3887 = vmatprep.subr.bf16.mxu1 %v12706_v48  ;;  %v633_v63 = vld [vmem:[#allocation6 + $0xe78] sm:$0xff] }
 0x26b   :  { %3847 = vmatpush1.bf16.msra.mxu0 %v12577_v9  ;;  %v12625_v9 = vcombine.low %v485_v33, %v489_v34  ;;  %v513_v3 = vld [vmem:[#allocation6 + $0xab8] sm:$0xff] }
 0x26c   :  { %3848 = vmatprep.subr.bf16.mxu0 %v12586_v56  ;;  %v12634_v56 = vcombine.high %v493_v5, %v497_v50  ;;  %v637_v4 = vld [vmem:[#allocation6 + $0xe98] sm:$0xff] }
 0x26d   :  { %3888 = vmatpush1.bf16.msra.mxu1 %v12705_v55  ;;  %v12753_v55 = vcombine.low %v613_v39, %v617_v41  ;;  %v641_v6 = vld [vmem:[#allocation6 + $0xeb8] sm:$0xff] }
 0x26e   :  { %3889 = vmatprep.subr.bf16.mxu1 %v12714_v57  ;;  %v517_v11 = vld [vmem:[#allocation6 + $0xad8] sm:$0xff] }
 0x26f   :  { %3849 = vmatpush1.bf16.msra.mxu0 %v12585_v16  ;;  %v12633_v16 = vcombine.low %v493_v5, %v497_v50  ;;  %v521_v12 = vld [vmem:[#allocation6 + $0xaf8] sm:$0xff] }
 0x270   :  { %3850 = vmatprep.subr.bf16.mxu0 %v12594_v0  ;;  %v12642_v0 = vcombine.high %v501_v60, %v505_v61  ;;  %v645_v14 = vld [vmem:[#allocation6 + $0xed8] sm:$0xff] }
 0x271   :  { %3890 = vmatpush1.bf16.msra.mxu1 %v12713_v20  ;;  %v649_v15 = vld [vmem:[#allocation6 + $0xef8] sm:$0xff] }
 0x272   :  { %3891 = vmatprep.subr.bf16.mxu1 %v12722_v1  ;;  %v12770_v1 = vcombine.high %v629_v62, %v633_v63  ;;  %v525_v24 = vld [vmem:[#allocation6 + $0xb18] sm:$0xff] }
 0x273   :  { %3851 = vmatpush1.bf16.msra.mxu0 %v12593_v7  ;;  %v12641_v7 = vcombine.low %v501_v60, %v505_v61  ;;  %v529_v25 = vld [vmem:[#allocation6 + $0xb38] sm:$0xff] }
 0x274   :  { %3852 = vmatprep.subr.bf16.mxu0 %v12602_v10  ;;  %v12650_v10 = vcombine.high %v509_v2, %v513_v3  ;;  %v653_v53 = vld [vmem:[#allocation6 + $0xf18] sm:$0xff] }
 0x275   :  { %3892 = vmatpush1.bf16.msra.mxu1 %v12721_v29  ;;  %v12769_v29 = vcombine.low %v629_v62, %v633_v63  ;;  %v533_v33 = vld [vmem:[#allocation6 + $0xb58] sm:$0xff]  ;;  %v4019_v63 = vld [vmem:[#allocation9] sm:$0xff] }
 0x276   :  { %3893 = vmatprep.subr.bf16.mxu1 %v12730_v54  ;;  %v12778_v54 = vcombine.high %v637_v4, %v641_v6  ;;  %v537_v34 = vld [vmem:[#allocation6 + $0xb78] sm:$0xff] }
 0x277   :  { %3853 = vmatpush1.bf16.msra.mxu0 %v12601_v17  ;;  %v12649_v17 = vcombine.low %v509_v2, %v513_v3 }
 0x278   :  { %3854 = vmatprep.subr.bf16.mxu0 %v12610_v21  ;;  %v12658_v21 = vcombine.high %v517_v11, %v521_v12 }
 0x279   :  { %3894 = vmatpush1.bf16.msra.mxu1 %v12729_v18  ;;  %v3550_v31 = vpop.f32.mrb[12].mxu0  ;;  %v12777_v18 = vcombine.low %v637_v4, %v641_v6 }
 0x27a   :  { %3895 = vmatprep.subr.bf16.mxu1 %v12738_v23  ;;  %v3551_v35 = vadd.f32 %v3550_v31, %v14689_v8  ;;  %v3552_v36 = vpop.f32.mrb[13].mxu0  ;;  %v12754_v8 = vcombine.high %v613_v39, %v617_v41  ;;  %v12786_v23 = vcombine.high %v645_v14, %v649_v15  ;;  %v12666_v31 = vcombine.high %v525_v24, %v529_v25 }
 0x27b   :  { %v3591_v37 = vpop.f32.mrb[12].mxu1  ;;  %v3553_v42 = vadd.f32 %v3552_v36, %v14691_v13  ;;  %v3554_v43 = vpop.f32.mrb[14].mxu0  ;;  %3855 = vmatpush1.bf16.msra.mxu0 %v12609_v27  ;;  %v621_v13 = vld [vmem:[#allocation6 + $0xe18] sm:$0xff]  ;;  %v12665_v39 = vcombine.low %v525_v24, %v529_v25  ;;  %v4040_v24 = vld [vmem:[#allocation9 + $0xa8] sm:$0xff] }
 0x27c   :  { %v3593_v44 = vpop.f32.mrb[13].mxu1  ;;  %v14699_v45 = vadd.f32 %v3591_v37, %v3551_v35  ;;  %v3555_v59 = vpop.f32.mrb[15].mxu0  ;;  %3856 = vmatprep.subr.bf16.mxu0 %v12618_v30  ;;  %v12762_v57 = vcombine.high %v621_v13, %v625_v52  ;;  %v12761_v20 = vcombine.low %v621_v13, %v625_v52  ;;  %v657_v27 = vld [vmem:[#allocation6 + $0xf38] sm:$0xff]  ;;  %v12785_v30 = vcombine.low %v645_v14, %v649_v15  ;;  %v4035_v15 = vld [vmem:[#allocation9 + $0x80] sm:$0xff] }
 0x27d   :  { %3896 = vmatpush1.bf16.msra.mxu1 %v12737_v28  ;;  %v3595_v22 = vpop.f32.mrb[14].mxu1  ;;  %v14701_v48 = vadd.f32 %v3593_v44, %v3553_v42  ;;  %v12657_v28 = vcombine.low %v517_v11, %v521_v12  ;;  %v14703_v35 = vshrl.u32 %v3955_v26, 7  ;;  %v661_v36 = vld [vmem:[#allocation6 + $0xf58] sm:$0xff]  ;;  %v12793_v41 = vcombine.low %v653_v53, %v657_v27  ;;  %v4028_v11 = vld [vmem:[#allocation9 + $0x48] sm:$0xff] }
 0x27e   :  { %3897 = vmatprep.subr.bf16.mxu1 %v12746_v32  ;;  %v3596_v51 = vpop.f32.mrb[15].mxu1  ;;  %v12794_v32 = vcombine.high %v653_v53, %v657_v27  ;;  %v665_v37 = vld [vmem:[#allocation6 + $0xf78] sm:$0xff]  ;;  %v12674_v42 = vcombine.high %v533_v33, %v537_v34  ;;  %v14708_v22 = vld [vmem:[#allocation8] sm:$0xff]  ;;  %v4032_v12 = vld [vmem:[#allocation9 + $0x68] sm:$0xff] }
 0x27f   :  { %3857 = vmatpush1.bf16.msra.mxu0 %v12617_v58  ;;  %v12802_v43 = vcombine.high %v661_v36, %v665_v37  ;;  %v541_v44 = vld [vmem:[#allocation6 + $0xb98] sm:$0xff]  ;;  %v14706_v59 = vsub.s32 1, %v14703_v35  ;;  %v12801_v5 = vcombine.low %v661_v36, %v665_v37  ;;  %v12829_v26 = vcombine.low %v4028_v11, %v4032_v12  ;;  %v4051_v36 = vld [vmem:[#allocation9 + $0x100] sm:$0xff] }
 0x280   :  { %3858 = vmatprep.subr.bf16.mxu0 %v12626_v19  ;;  %v545_v58 = vld [vmem:[#allocation6 + $0xbb8] sm:$0xff]  ;;  %v4055_v37 = vld [vmem:[#allocation9 + $0x120] sm:$0xff] }
 0x281   :  { %3898 = vmatpush1.bf16.msra.mxu1 %v12745_v47  ;;  %v669_v47 = vld [vmem:[#allocation6 + $0xf98] sm:$0xff]  ;;  %v12682_v50 = vcombine.high %v541_v44, %v545_v58 }
 0x282   :  { %3899 = vmatprep.subr.bf16.mxu1 %v12754_v8  ;;  %v673_v19 = vld [vmem:[#allocation6 + $0xfb8] sm:$0xff]  ;;  %v12673_v8 = vcombine.low %v533_v33, %v537_v34 }
 0x283   :  { %3859 = vmatpush1.bf16.msra.mxu0 %v12625_v9  ;;  %v12810_v51 = vcombine.high %v669_v47, %v673_v19  ;;  %v549_v13 = vld [vmem:[#allocation6 + $0xbd8] sm:$0xff]  ;;  %v3962_v9 = vrot.slane %v14708_v22, %v14706_v59  ;;  %v12809_v60 = vcombine.low %v669_v47, %v673_v19  ;;  %v4059_v47 = vld [vmem:[#allocation9 + $0x140] sm:$0xff] }
 0x284   :  { %3860 = vmatprep.subr.bf16.mxu0 %v12634_v56  ;;  %v553_v52 = vld [vmem:[#allocation6 + $0xbf8] sm:$0xff]  ;;  %v4063_v19 = vld [vmem:[#allocation9 + $0x160] sm:$0xff] }
 0x285   :  { %3900 = vmatpush1.bf16.msra.mxu1 %v12753_v55  ;;  %v677_v55 = vld [vmem:[#allocation6 + $0xfd8] sm:$0xff]  ;;  %v12690_v61 = vcombine.high %v549_v13, %v553_v52  ;;  %v12689_v2 = vcombine.low %v549_v13, %v553_v52  ;;  %v12860_v13 = vcombine.high %v4059_v47, %v4063_v19 }
 0x286   :  { %3901 = vmatprep.subr.bf16.mxu1 %v12762_v57  ;;  %v681_v56 = vld [vmem:[#allocation6 + $0xff8] sm:$0xff]  ;;  %v12681_v57 = vcombine.low %v541_v44, %v545_v58  ;;  %v12852_v44 = vcombine.high %v4051_v36, %v4055_v37 }
 0x287   :  { %3861 = vmatpush1.bf16.msra.mxu0 %v12633_v16  ;;  %v12818_v62 = vcombine.high %v677_v55, %v681_v56  ;;  %v4023_v16 = vld [vmem:[#allocation9 + $0x20] sm:$0xff]  ;;  %v12817_v3 = vcombine.low %v677_v55, %v681_v56  ;;  %v4068_v56 = vld [vmem:[#allocation9 + $0x188] sm:$0xff] }
 0x288   :  { %3862 = vmatprep.subr.bf16.mxu0 %v12642_v0  ;;  %v4020_v0 = vld [vmem:[#allocation9 + $0x8] sm:$0xff]  ;;  %v12820_v4 = vcombine.high %v4019_v63, %v4023_v16  ;;  %v4071_v55 = vld [vmem:[#allocation9 + $0x1a0] sm:$0xff] }
 0x289   :  { %3902 = vmatpush1.bf16.msra.mxu1 %v12761_v20  ;;  %v3996_v20 = vadd.f32 %v3962_v9, %v14683_v49  ;;  %v4067_v9 = vld [vmem:[#allocation9 + $0x180] sm:$0xff] }
 0x28a   :  { %3903 = vmatprep.subr.bf16.mxu1 %v12770_v1  ;;  %v4024_v1 = vld [vmem:[#allocation9 + $0x28] sm:$0xff] }
 0x28b   :  { %3863 = vmatpush1.bf16.msra.mxu0 %v12641_v7  ;;  %v12822_v6 = vcombine.high %v4020_v0, %v4024_v1  ;;  %v4004_v7 = vmax.f32 %v3996_v20, 0.0  ;;  %v12821_v49 = vcombine.low %v4020_v0, %v4024_v1  ;;  %v4075_v20 = vld [vmem:[#allocation9 + $0x1c0] sm:$0xff] }
 0x28c   :  { %3864 = vmatprep.subr.bf16.mxu0 %v12650_v10  ;;  %v4031_v10 = vld [vmem:[#allocation9 + $0x60] sm:$0xff] }
 0x28d   :  { %3904 = vmatpush1.bf16.msra.mxu1 %v12769_v29  ;;  %v4027_v29 = vld [vmem:[#allocation9 + $0x40] sm:$0xff] }
 0x28e   :  { %3905 = vmatprep.subr.bf16.mxu1 %v12778_v54  ;;  %v12819_v54 = vcombine.low %v4019_v63, %v4023_v16  ;;  %v12828_v14 = vcombine.high %v4027_v29, %v4031_v10  ;;  %v12827_v25 = vcombine.low %v4027_v29, %v4031_v10  ;;  %v4079_v0 = vld [vmem:[#allocation9 + $0x1e0] sm:$0xff]  ;;  %v12867_v10 = vcombine.low %v4067_v9, %v4071_v55 }
 0x28f   :  { %3865 = vmatpush1.bf16.msra.mxu0 %v12649_v17  ;;  %v4039_v17 = vld [vmem:[#allocation9 + $0xa0] sm:$0xff] }
 0x290   :  { %3866 = vmatprep.subr.bf16.mxu0 %v12658_v21  ;;  %v12830_v21 = vcombine.high %v4028_v11, %v4032_v12  ;;  %v12836_v53 = vcombine.high %v4035_v15, %v4039_v17 }
 0x291   :  { %3906 = vmatpush1.bf16.msra.mxu1 %v12777_v18  ;;  %v14713_v18 = vpack.c.bf16 %v4004_v7, %v4004_v7 }
 0x292   :  { %3907 = vmatprep.subr.bf16.mxu1 %v12786_v23  ;;  %v4036_v23 = vld [vmem:[#allocation9 + $0x88] sm:$0xff] }
 0x293   :  { %3867 = vmatpush1.bf16.msra.mxu0 %v12657_v28  ;;  %v12838_v27 = vcombine.high %v4036_v23, %v4040_v24  ;;  %v4043_v28 = vld [vmem:[#allocation9 + $0xc0] sm:$0xff] }
 0x294   :  { %3868 = vmatprep.subr.bf16.mxu0 %v12666_v31  ;;  %v4048_v31 = vld [vmem:[#allocation9 + $0xe8] sm:$0xff] }
 0x295   :  { %3908 = vmatpush1.bf16.msra.mxu1 %v12785_v30  ;;  %v4047_v30 = vld [vmem:[#allocation9 + $0xe0] sm:$0xff] }
 0x296   :  { %3909 = vmatprep.subr.bf16.mxu1 %v12794_v32  ;;  %v12835_v32 = vcombine.low %v4035_v15, %v4039_v17  ;;  %v12844_v33 = vcombine.high %v4043_v28, %v4047_v30  ;;  %v4083_v17 = vld [vmem:[#allocation9 + $0x200] sm:$0xff] }
 0x297   :  { %3869 = vmatpush1.bf16.msra.mxu0 %v12665_v39  ;;  %v4052_v39 = vld [vmem:[#allocation9 + $0x108] sm:$0xff] }
 0x298   :  { %3870 = vmatprep.subr.bf16.mxu0 %v12674_v42  ;;  %v12843_v42 = vcombine.low %v4043_v28, %v4047_v30  ;;  %v4091_v30 = vld [vmem:[#allocation9 + $0x240] sm:$0xff] }
 0x299   :  { %3910 = vmatpush1.bf16.msra.mxu1 %v12793_v41  ;;  %v4056_v41 = vld [vmem:[#allocation9 + $0x128] sm:$0xff] }
 0x29a   :  { %3911 = vmatprep.subr.bf16.mxu1 %v12802_v43  ;;  %v12854_v58 = vcombine.high %v4052_v39, %v4056_v41 }
 0x29b   :  { %3871 = vmatpush1.bf16.msra.mxu0 %v12673_v8  ;;  %v4060_v8 = vld [vmem:[#allocation9 + $0x148] sm:$0xff] }
 0x29c   :  { %3872 = vmatprep.subr.bf16.mxu0 %v12682_v50  ;;  %v12851_v50 = vcombine.low %v4051_v36, %v4055_v37  ;;  %v4099_v37 = vld [vmem:[#allocation9 + $0x280] sm:$0xff] }
 0x29d   :  { %3912 = vmatpush1.bf16.msra.mxu1 %v12801_v5  ;;  %v4064_v5 = vld [vmem:[#allocation9 + $0x168] sm:$0xff] }
 0x29e   :  { %3913 = vmatprep.subr.bf16.mxu1 %v12810_v51  ;;  %v12853_v51 = vcombine.low %v4052_v39, %v4056_v41  ;;  %v12862_v52 = vcombine.high %v4060_v8, %v4064_v5  ;;  %v4103_v39 = vld [vmem:[#allocation9 + $0x2a0] sm:$0xff]  ;;  %v4100_v41 = vld [vmem:[#allocation9 + $0x288] sm:$0xff] }
 0x29f   :  { %3873 = vmatpush1.bf16.msra.mxu0 %v12681_v57  ;;  %v4072_v57 = vld [vmem:[#allocation9 + $0x1a8] sm:$0xff] }
 0x2a0   :  { %3874 = vmatprep.subr.bf16.mxu0 %v12690_v61  ;;  %v12861_v61 = vcombine.low %v4060_v8, %v4064_v5  ;;  %v12870_v16 = vcombine.high %v4068_v56, %v4072_v57  ;;  %v12869_v12 = vcombine.low %v4068_v56, %v4072_v57  ;;  %v4111_v8 = vld [vmem:[#allocation9 + $0x2e0] sm:$0xff]  ;;  %v4108_v5 = vld [vmem:[#allocation9 + $0x2c8] sm:$0xff] }
 0x2a1   :  { %3914 = vmatpush1.bf16.msra.mxu1 %v12809_v60  ;;  %v12859_v60 = vcombine.low %v4059_v47, %v4063_v19  ;;  %v4107_v19 = vld [vmem:[#allocation9 + $0x2c0] sm:$0xff]  ;;  %v4116_v57 = vld [vmem:[#allocation9 + $0x308] sm:$0xff] }
 0x2a2   :  { %3915 = vmatprep.subr.bf16.mxu1 %v12818_v62  ;;  %v12868_v62 = vcombine.high %v4067_v9, %v4071_v55  ;;  %v4115_v55 = vld [vmem:[#allocation9 + $0x300] sm:$0xff] }
 0x2a3   :  { %3875 = vmatpush1.bf16.msra.mxu0 %v12689_v2  ;;  %v4119_v56 = vld [vmem:[#allocation9 + $0x320] sm:$0xff] }
 0x2a4   :  { %7133 = vmatprep.subr.bf16.mxu0 %v12820_v4  ;;  %v4080_v4 = vld [vmem:[#allocation9 + $0x1e8] sm:$0xff] }
 0x2a5   :  { %3916 = vmatpush1.bf16.msra.mxu1 %v12817_v3  ;;  %v4076_v3 = vld [vmem:[#allocation9 + $0x1c8] sm:$0xff] }
 0x2a6   :  { %7297 = vmatprep.subr.bf16.mxu1 %v12822_v6  ;;  %3877 = vmatmul.mubr.bf16.vlgmr.msra.gmra.mrb[28].mxu0 %v14653_v38  ;;  %v4044_v38 = vld [vmem:[#allocation9 + $0xc8] sm:$0xff]  ;;  %v12878_v15 = vcombine.high %v4076_v3, %v4080_v4 }
 0x2a7   :  { %7134 = vmatpush1.bf16.msra.mxu0 %v12819_v54  ;;  %7165 = vmatprep.mubr.bf16.mxu0 %v14713_v18  ;;  %v12846_v34 = vcombine.high %v4044_v38, %v4048_v31  ;;  %v12845_v43 = vcombine.low %v4044_v38, %v4048_v31  ;;  %v4095_v38 = vld [vmem:[#allocation9 + $0x260] sm:$0xff]  ;;  %v4092_v31 = vld [vmem:[#allocation9 + $0x248] sm:$0xff] }
 0x2a8   :  { %3918 = vmatmul.mubr.bf16.vlgmr.msra.gmra.mrb[28].mxu1 %v14657_v40  ;;  %7135 = vmatprep.subr.bf16.mxu0 %v12828_v14  ;;  %v12837_v40 = vcombine.low %v4036_v23, %v4040_v24  ;;  %v4084_v24 = vld [vmem:[#allocation9 + $0x208] sm:$0xff] }
 0x2a9   :  { %7298 = vmatpush1.bf16.msra.mxu1 %v12821_v49  ;;  %7329 = vmatprep.mubr.bf16.mxu1 %v14713_v18  ;;  %v12876_v49 = vcombine.high %v4075_v20, %v4079_v0 }
 0x2aa   :  { %7299 = vmatprep.subr.bf16.mxu1 %v12830_v21  ;;  %v4087_v21 = vld [vmem:[#allocation9 + $0x220] sm:$0xff] }
 0x2ab   :  { %7136 = vmatpush1.bf16.msra.mxu0 %v12827_v25  ;;  %v4088_v25 = vld [vmem:[#allocation9 + $0x228] sm:$0xff] }
 0x2ac   :  { %7137 = vmatprep.subr.bf16.mxu0 %v12836_v53  ;;  %v12877_v53 = vcombine.low %v4076_v3, %v4080_v4  ;;  %v12886_v28 = vcombine.high %v4084_v24, %v4088_v25  ;;  %v12915_v3 = vcombine.low %v4115_v55, %v4119_v56  ;;  %v14724_v4 = vsub.s32 0, %v14703_v35 }
 0x2ad   :  { %7300 = vmatpush1.bf16.msra.mxu1 %v12829_v26  ;;  %v12875_v26 = vcombine.low %v4075_v20, %v4079_v0  ;;  %v4123_v20 = vld [vmem:[#allocation9 + $0x340] sm:$0xff] }
 0x2ae   :  { %7301 = vmatprep.subr.bf16.mxu1 %v12838_v27  ;;  %v12884_v27 = vcombine.high %v4083_v17, %v4087_v21  ;;  %v4127_v0 = vld [vmem:[#allocation9 + $0x360] sm:$0xff] }
 0x2af   :  { %7138 = vmatpush1.bf16.msra.mxu0 %v12835_v32  ;;  %v4096_v32 = vld [vmem:[#allocation9 + $0x268] sm:$0xff] }
 0x2b0   :  { %7139 = vmatprep.subr.bf16.mxu0 %v12844_v33  ;;  %v12885_v33 = vcombine.low %v4084_v24, %v4088_v25  ;;  %v12894_v36 = vcombine.high %v4092_v31, %v4096_v32 }
 0x2b1   :  { %7302 = vmatpush1.bf16.msra.mxu1 %v12837_v40  ;;  %v12883_v40 = vcombine.low %v4083_v17, %v4087_v21  ;;  %v12923_v17 = vcombine.low %v4123_v20, %v4127_v0  ;;  %v3958_v21 = vrot.slane %v14708_v22, %v14724_v4 }
 0x2b2   :  { %7303 = vmatprep.subr.bf16.mxu1 %v12846_v34  ;;  %v12892_v34 = vcombine.high %v4091_v30, %v4095_v38 }
 0x2b3   :  { %7140 = vmatpush1.bf16.msra.mxu0 %v12843_v42  ;;  %v4104_v42 = vld [vmem:[#allocation9 + $0x2a8] sm:$0xff] }
 0x2b4   :  { %7141 = vmatprep.subr.bf16.mxu0 %v12852_v44  ;;  %v12893_v44 = vcombine.low %v4092_v31, %v4096_v32  ;;  %v12902_v47 = vcombine.high %v4100_v41, %v4104_v42  ;;  %v3995_v31 = vadd.f32 %v3958_v21, %v14681_v46 }
 0x2b5   :  { %7304 = vmatpush1.bf16.msra.mxu1 %v12845_v43  ;;  %v12891_v43 = vcombine.low %v4091_v30, %v4095_v38  ;;  %v4144_v30 = vld [vmem:[#allocation9 + $0x3e8] sm:$0xff] }
 0x2b6   :  { %7305 = vmatprep.subr.bf16.mxu1 %v12854_v58  ;;  %v12900_v58 = vcombine.high %v4099_v37, %v4103_v39 }
 0x2b7   :  { %7142 = vmatpush1.bf16.msra.mxu0 %v12851_v50  ;;  %v4112_v50 = vld [vmem:[#allocation9 + $0x2e8] sm:$0xff] }
 0x2b8   :  { %7143 = vmatprep.subr.bf16.mxu0 %v12860_v13  ;;  %v12901_v13 = vcombine.low %v4100_v41, %v4104_v42  ;;  %v12910_v9 = vcombine.high %v4108_v5, %v4112_v50  ;;  %v4152_v41 = vld [vmem:[#allocation9 + $0x428] sm:$0xff] }
 0x2b9   :  { %7306 = vmatpush1.bf16.msra.mxu1 %v12853_v51  ;;  %v3632_v63 = vpop.f32.mrb[16].mxu0  ;;  %v12899_v51 = vcombine.low %v4099_v37, %v4103_v39  ;;  %v4148_v39 = vld [vmem:[#allocation9 + $0x408] sm:$0xff] }
 0x2ba   :  { %7307 = vmatprep.subr.bf16.mxu1 %v12862_v52  ;;  %v3634_v2 = vpop.f32.mrb[17].mxu0  ;;  %v12908_v52 = vcombine.high %v4107_v19, %v4111_v8  ;;  %v12950_v46 = vcombine.high %v4148_v39, %v4152_v41 }
 0x2bb   :  { %v3673_v1 = vpop.f32.mrb[16].mxu1  ;;  %v3636_v29 = vpop.f32.mrb[18].mxu0  ;;  %7144 = vmatpush1.bf16.msra.mxu0 %v12859_v60  ;;  %v4120_v60 = vld [vmem:[#allocation9 + $0x328] sm:$0xff] }
 0x2bc   :  { %v14719_v6 = vadd.f32 %v3673_v1, %v3632_v63  ;;  %v3675_v7 = vpop.f32.mrb[17].mxu1  ;;  %v3637_v11 = vpop.f32.mrb[19].mxu0  ;;  %7145 = vmatprep.subr.bf16.mxu0 %v12868_v62  ;;  %v12909_v62 = vcombine.low %v4108_v5, %v4112_v50  ;;  %v12916_v63 = vcombine.high %v4115_v55, %v4119_v56  ;;  %v4124_v1 = vld [vmem:[#allocation9 + $0x348] sm:$0xff]  ;;  %v12924_v29 = vcombine.high %v4123_v20, %v4127_v0  ;;  %v4167_v55 = vld [vmem:[#allocation9 + $0x4a0] sm:$0xff] }
 0x2bd   :  { %v14721_v54 = vadd.f32 %v3675_v7, %v3634_v2  ;;  %7308 = vmatpush1.bf16.msra.mxu1 %v12861_v61  ;;  %v3677_v14 = vpop.f32.mrb[18].mxu1  ;;  %v12907_v61 = vcombine.low %v4107_v19, %v4111_v8  ;;  %v4128_v2 = vld [vmem:[#allocation9 + $0x368] sm:$0xff]  ;;  %v12917_v7 = vcombine.low %v4116_v57, %v4120_v60  ;;  %v4131_v11 = vld [vmem:[#allocation9 + $0x380] sm:$0xff] }
 0x2be   :  { %7309 = vmatprep.subr.bf16.mxu1 %v12870_v16  ;;  %v3678_v23 = vpop.f32.mrb[19].mxu1  ;;  %v12918_v16 = vcombine.high %v4116_v57, %v4120_v60  ;;  %v4132_v14 = vld [vmem:[#allocation9 + $0x388] sm:$0xff]  ;;  %v4155_v19 = vld [vmem:[#allocation9 + $0x440] sm:$0xff] }
 0x2bf   :  { %7146 = vmatpush1.bf16.msra.mxu0 %v12867_v10  ;;  %v12926_v10 = vcombine.high %v4124_v1, %v4128_v2  ;;  %v12925_v23 = vcombine.low %v4124_v1, %v4128_v2  ;;  %v4159_v8 = vld [vmem:[#allocation9 + $0x460] sm:$0xff]  ;;  %v4156_v50 = vld [vmem:[#allocation9 + $0x448] sm:$0xff] }
 0x2c0   :  { %7147 = vmatprep.subr.bf16.mxu0 %v12876_v49  ;;  %v14727_v49 = vsub.s32 3, %v14703_v35  ;;  %v4164_v60 = vld [vmem:[#allocation9 + $0x488] sm:$0xff]  ;;  %v4171_v0 = vld [vmem:[#allocation9 + $0x4c0] sm:$0xff] }
 0x2c1   :  { %7310 = vmatpush1.bf16.msra.mxu1 %v12869_v12  ;;  %v4135_v12 = vld [vmem:[#allocation9 + $0x3a0] sm:$0xff]  ;;  %v4172_v2 = vld [vmem:[#allocation9 + $0x4c8] sm:$0xff] }
 0x2c2   :  { %7311 = vmatprep.subr.bf16.mxu1 %v12878_v15  ;;  %v4136_v15 = vld [vmem:[#allocation9 + $0x3a8] sm:$0xff]  ;;  %v12932_v24 = vcombine.high %v4131_v11, %v4135_v12  ;;  %v12931_v38 = vcombine.low %v4131_v11, %v4135_v12  ;;  %v4175_v1 = vld [vmem:[#allocation9 + $0x4e0] sm:$0xff] }
 0x2c3   :  { %7148 = vmatpush1.bf16.msra.mxu0 %v12875_v26  ;;  %v12934_v25 = vcombine.high %v4132_v14, %v4136_v15  ;;  %v4139_v26 = vld [vmem:[#allocation9 + $0x3c0] sm:$0xff]  ;;  %v12933_v32 = vcombine.low %v4132_v14, %v4136_v15  ;;  %v4180_v15 = vld [vmem:[#allocation9 + $0x508] sm:$0xff]  ;;  %v12971_v21 = vcombine.low %v4171_v0, %v4175_v1 }
 0x2c4   :  { %7149 = vmatprep.subr.bf16.mxu0 %v12884_v27  ;;  %v3970_v27 = vrot.slane %v14708_v22, %v14727_v49  ;;  %v4179_v12 = vld [vmem:[#allocation9 + $0x500] sm:$0xff] }
 0x2c5   :  { %7312 = vmatpush1.bf16.msra.mxu1 %v12877_v53  ;;  %v4143_v53 = vld [vmem:[#allocation9 + $0x3e0] sm:$0xff] }
 0x2c6   :  { %7313 = vmatprep.subr.bf16.mxu1 %v12886_v28  ;;  %v4140_v28 = vld [vmem:[#allocation9 + $0x3c8] sm:$0xff]  ;;  %v3998_v37 = vadd.f32 %v3970_v27, %v14701_v48  ;;  %v12939_v42 = vcombine.low %v4139_v26, %v4143_v53  ;;  %v12949_v48 = vcombine.low %v4148_v39, %v4152_v41  ;;  %v4183_v14 = vld [vmem:[#allocation9 + $0x520] sm:$0xff] }
 0x2c7   :  { %7150 = vmatpush1.bf16.msra.mxu0 %v12883_v40  ;;  %v12940_v40 = vcombine.high %v4139_v26, %v4143_v53  ;;  %v4187_v26 = vld [vmem:[#allocation9 + $0x540] sm:$0xff]  ;;  %v4188_v27 = vld [vmem:[#allocation9 + $0x548] sm:$0xff] }
 0x2c8   :  { %7151 = vmatprep.subr.bf16.mxu0 %v12892_v34  ;;  %v4147_v34 = vld [vmem:[#allocation9 + $0x400] sm:$0xff] }
 0x2c9   :  { %7314 = vmatpush1.bf16.msra.mxu1 %v12885_v33  ;;  %v12942_v33 = vcombine.high %v4140_v28, %v4144_v30  ;;  %v4191_v53 = vld [vmem:[#allocation9 + $0x560] sm:$0xff] }
 0x2ca   :  { %7315 = vmatprep.subr.bf16.mxu1 %v12894_v36  ;;  %v4151_v36 = vld [vmem:[#allocation9 + $0x420] sm:$0xff] }
 0x2cb   :  { %7152 = vmatpush1.bf16.msra.mxu0 %v12891_v43  ;;  %v4003_v43 = vmax.f32 %v3995_v31, 0.0  ;;  %v12947_v5 = vcombine.low %v4147_v34, %v4151_v36  ;;  %v12988_v31 = vcombine.high %v4187_v26, %v4191_v53 }
 0x2cc   :  { %7153 = vmatprep.subr.bf16.mxu0 %v12900_v58  ;;  %v12948_v58 = vcombine.high %v4147_v34, %v4151_v36  ;;  %v4196_v34 = vld [vmem:[#allocation9 + $0x588] sm:$0xff] }
 0x2cd   :  { %7316 = vmatpush1.bf16.msra.mxu1 %v12893_v44  ;;  %v12941_v44 = vcombine.low %v4140_v28, %v4144_v30  ;;  %v4192_v28 = vld [vmem:[#allocation9 + $0x568] sm:$0xff]  ;;  %v12979_v30 = vcombine.low %v4179_v12, %v4183_v14 }
 0x2ce   :  { %7317 = vmatprep.subr.bf16.mxu1 %v12902_v47  ;;  %v4006_v47 = vmax.f32 %v3998_v37, 0.0  ;;  %v4200_v36 = vld [vmem:[#allocation9 + $0x5a8] sm:$0xff]  ;;  %v12987_v37 = vcombine.low %v4187_v26, %v4191_v53  ;;  %v12989_v39 = vcombine.low %v4188_v27, %v4192_v28 }
 0x2cf   :  { %7154 = vmatpush1.bf16.msra.mxu0 %v12899_v51  ;;  %v4160_v51 = vld [vmem:[#allocation9 + $0x468] sm:$0xff] }
 0x2d0   :  { %7155 = vmatprep.subr.bf16.mxu0 %v12908_v52  ;;  %v12956_v52 = vcombine.high %v4155_v19, %v4159_v8  ;;  %v14737_v56 = vpack.c.bf16 %v4006_v47, %v4006_v47  ;;  %v12958_v57 = vcombine.high %v4156_v50, %v4160_v51  ;;  %v4232_v26 = vld [vmem:[#allocation9 + $0x6a8] sm:$0xff] }
 0x2d1   :  { %7318 = vmatpush1.bf16.msra.mxu1 %v12901_v13  ;;  %v14735_v13 = vpack.c.bf16 %v4003_v43, %v4003_v43  ;;  %v12998_v43 = vcombine.high %v4196_v34, %v4200_v36 }
 0x2d2   :  { %7319 = vmatprep.subr.bf16.mxu1 %v12910_v9  ;;  %v4163_v9 = vld [vmem:[#allocation9 + $0x480] sm:$0xff] }
 0x2d3   :  { %7156 = vmatpush1.bf16.msra.mxu0 %v12907_v61  ;;  %v4168_v61 = vld [vmem:[#allocation9 + $0x4a8] sm:$0xff] }
 0x2d4   :  { %7157 = vmatprep.subr.bf16.mxu0 %v12916_v63  ;;  %v12957_v63 = vcombine.low %v4156_v50, %v4160_v51  ;;  %v12966_v20 = vcombine.high %v4164_v60, %v4168_v61 }
 0x2d5   :  { %7320 = vmatpush1.bf16.msra.mxu1 %v12909_v62  ;;  %v12955_v62 = vcombine.low %v4155_v19, %v4159_v8  ;;  %v4204_v8 = vld [vmem:[#allocation9 + $0x5c8] sm:$0xff] }
 0x2d6   :  { %7321 = vmatprep.subr.bf16.mxu1 %v12918_v16  ;;  %v12964_v16 = vcombine.high %v4163_v9, %v4167_v55 }
 0x2d7   :  { %7158 = vmatpush1.bf16.msra.mxu0 %v12915_v3  ;;  %v4176_v3 = vld [vmem:[#allocation9 + $0x4e8] sm:$0xff] }
 0x2d8   :  { %7159 = vmatprep.subr.bf16.mxu0 %v12924_v29  ;;  %v12965_v29 = vcombine.low %v4164_v60, %v4168_v61  ;;  %v12974_v11 = vcombine.high %v4172_v2, %v4176_v3 }
 0x2d9   :  { %7322 = vmatpush1.bf16.msra.mxu1 %v12917_v7  ;;  %v12963_v7 = vcombine.low %v4163_v9, %v4167_v55 }
 0x2da   :  { %7323 = vmatprep.subr.bf16.mxu1 %v12926_v10  ;;  %v12972_v10 = vcombine.high %v4171_v0, %v4175_v1  ;;  %v4216_v0 = vld [vmem:[#allocation9 + $0x628] sm:$0xff] }
 0x2db   :  { %7160 = vmatpush1.bf16.msra.mxu0 %v12923_v17  ;;  %v4184_v17 = vld [vmem:[#allocation9 + $0x528] sm:$0xff] }
 0x2dc   :  { %7161 = vmatprep.subr.bf16.mxu0 %v12932_v24  ;;  %v12980_v24 = vcombine.high %v4179_v12, %v4183_v14  ;;  %v4224_v12 = vld [vmem:[#allocation9 + $0x668] sm:$0xff] }
 0x2dd   :  { %7324 = vmatpush1.bf16.msra.mxu1 %v12925_v23  ;;  %v12973_v23 = vcombine.low %v4172_v2, %v4176_v3 }
 0x2de   :  { %7325 = vmatprep.subr.bf16.mxu1 %v12934_v25  ;;  %v12982_v25 = vcombine.high %v4180_v15, %v4184_v17 }
 0x2df   :  { %7162 = vmatpush1.bf16.msra.mxu0 %v12931_v38  ;;  %v12981_v38 = vcombine.low %v4180_v15, %v4184_v17 }
 0x2e0   :  { %7163 = vmatprep.subr.bf16.mxu0 %v12940_v40  ;;  %v4195_v40 = vld [vmem:[#allocation9 + $0x580] sm:$0xff] }
 0x2e1   :  { %7326 = vmatpush1.bf16.msra.mxu1 %v12933_v32  ;;  %v12990_v32 = vcombine.high %v4188_v27, %v4192_v28 }
 0x2e2   :  { %7327 = vmatprep.subr.bf16.mxu1 %v12942_v33  ;;  %v4199_v33 = vld [vmem:[#allocation9 + $0x5a0] sm:$0xff] }
 0x2e3   :  { %7164 = vmatpush1.bf16.msra.mxu0 %v12939_v42  ;;  %v12996_v41 = vcombine.high %v4195_v40, %v4199_v33 }
 0x2e4   :  { %7174 = vmatprep.subr.bf16.mxu0 %v12948_v58  ;;  %v4207_v58 = vld [vmem:[#allocation9 + $0x5e0] sm:$0xff] }
 0x2e5   :  { %7328 = vmatpush1.bf16.msra.mxu1 %v12941_v44  ;;  %v4203_v44 = vld [vmem:[#allocation9 + $0x5c0] sm:$0xff] }
 0x2e6   :  { %7338 = vmatprep.subr.bf16.mxu1 %v12950_v46  ;;  %7166 = vmatmul.mubr.bf16.vlgmr.msra.gmra.mrb[32].mxu0 %v14735_v13  ;;  %v13004_v60 = vcombine.high %v4203_v44, %v4207_v58  ;;  %v13003_v1 = vcombine.low %v4203_v44, %v4207_v58 }
 0x2e7   :  { %7175 = vmatpush1.bf16.msra.mxu0 %v12947_v5  ;;  %7206 = vmatprep.mubr.bf16.mxu0 %v14737_v56  ;;  %v4208_v5 = vld [vmem:[#allocation9 + $0x5e8] sm:$0xff] }
 0x2e8   :  { %7330 = vmatmul.mubr.bf16.vlgmr.msra.gmra.mrb[32].mxu1 %v14735_v13  ;;  %7176 = vmatprep.subr.bf16.mxu0 %v12956_v52  ;;  %v12995_v52 = vcombine.low %v4195_v40, %v4199_v33  ;;  %v13005_v2 = vcombine.low %v4204_v8, %v4208_v5  ;;  %v4240_v40 = vld [vmem:[#allocation9 + $0x6e8] sm:$0xff] }
 0x2e9   :  { %7339 = vmatpush1.bf16.msra.mxu1 %v12949_v48  ;;  %7370 = vmatprep.mubr.bf16.mxu1 %v14737_v56 }
 0x2ea   :  { %7340 = vmatprep.subr.bf16.mxu1 %v12958_v57  ;;  %v12997_v57 = vcombine.low %v4196_v34, %v4200_v36 }
 0x2eb   :  { %7177 = vmatpush1.bf16.msra.mxu0 %v12955_v62 }
 0x2ec   :  { %7178 = vmatprep.subr.bf16.mxu0 %v12964_v16  ;;  %v4215_v16 = vld [vmem:[#allocation9 + $0x620] sm:$0xff] }
 0x2ed   :  { %7341 = vmatpush1.bf16.msra.mxu1 %v12957_v63  ;;  %v4211_v63 = vld [vmem:[#allocation9 + $0x600] sm:$0xff] }
 0x2ee   :  { %7342 = vmatprep.subr.bf16.mxu1 %v12966_v20  ;;  %v13012_v3 = vcombine.high %v4211_v63, %v4215_v16  ;;  %v13011_v14 = vcombine.low %v4211_v63, %v4215_v16  ;;  %v4260_v63 = vld [vmem:[#allocation9 + $0x788] sm:$0xff] }
 0x2ef   :  { %7179 = vmatpush1.bf16.msra.mxu0 %v12963_v7  ;;  %v4264_v16 = vld [vmem:[#allocation9 + $0x7a8] sm:$0xff] }
 0x2f0   :  { %7180 = vmatprep.subr.bf16.mxu0 %v12972_v10  ;;  %v4223_v10 = vld [vmem:[#allocation9 + $0x660] sm:$0xff] }
 0x2f1   :  { %7343 = vmatpush1.bf16.msra.mxu1 %v12965_v29  ;;  %v4219_v29 = vld [vmem:[#allocation9 + $0x640] sm:$0xff] }
 0x2f2   :  { %7344 = vmatprep.subr.bf16.mxu1 %v12974_v11  ;;  %v4220_v11 = vld [vmem:[#allocation9 + $0x648] sm:$0xff]  ;;  %v13020_v17 = vcombine.high %v4219_v29, %v4223_v10  ;;  %v13019_v53 = vcombine.low %v4219_v29, %v4223_v10 }
 0x2f3   :  { %7181 = vmatpush1.bf16.msra.mxu0 %v12971_v21  ;;  %v13022_v21 = vcombine.high %v4220_v11, %v4224_v12  ;;  %v13021_v27 = vcombine.low %v4220_v11, %v4224_v12  ;;  %v4268_v10 = vld [vmem:[#allocation9 + $0x7c8] sm:$0xff] }
 0x2f4   :  { %7182 = vmatprep.subr.bf16.mxu0 %v12980_v24  ;;  %v4231_v24 = vld [vmem:[#allocation9 + $0x6a0] sm:$0xff]  ;;  %v4272_v11 = vld [vmem:[#allocation9 + $0x7e8] sm:$0xff] }
 0x2f5   :  { %7345 = vmatpush1.bf16.msra.mxu1 %v12973_v23  ;;  %v4227_v23 = vld [vmem:[#allocation9 + $0x680] sm:$0xff] }
 0x2f6   :  { %7346 = vmatprep.subr.bf16.mxu1 %v12982_v25  ;;  %v4228_v25 = vld [vmem:[#allocation9 + $0x688] sm:$0xff]  ;;  %v13028_v28 = vcombine.high %v4227_v23, %v4231_v24  ;;  %v13027_v33 = vcombine.low %v4227_v23, %v4231_v24  ;;  %v4275_v23 = vld [vmem:[#allocation9 + $0x800] sm:$0xff] }
 0x2f7   :  { %7183 = vmatpush1.bf16.msra.mxu0 %v12979_v30  ;;  %v13030_v30 = vcombine.high %v4228_v25, %v4232_v26  ;;  %v13029_v34 = vcombine.low %v4228_v25, %v4232_v26  ;;  %v4279_v24 = vld [vmem:[#allocation9 + $0x820] sm:$0xff]  ;;  %v4276_v26 = vld [vmem:[#allocation9 + $0x808] sm:$0xff] }
 0x2f8   :  { %7184 = vmatprep.subr.bf16.mxu0 %v12988_v31  ;;  %v4239_v31 = vld [vmem:[#allocation9 + $0x6e0] sm:$0xff] }
 0x2f9   :  { %7347 = vmatpush1.bf16.msra.mxu1 %v12981_v38  ;;  %v3714_v42 = vpop.f32.mrb[20].mxu0  ;;  %v4235_v38 = vld [vmem:[#allocation9 + $0x6c0] sm:$0xff] }
 0x2fa   :  { %7348 = vmatprep.subr.bf16.mxu1 %v12990_v32  ;;  %v3715_v46 = vadd.f32 %v3714_v42, %v14719_v6  ;;  %v3716_v47 = vpop.f32.mrb[21].mxu0  ;;  %v13006_v6 = vcombine.high %v4204_v8, %v4208_v5  ;;  %v4236_v32 = vld [vmem:[#allocation9 + $0x6c8] sm:$0xff]  ;;  %v13036_v36 = vcombine.high %v4235_v38, %v4239_v31  ;;  %v13035_v44 = vcombine.low %v4235_v38, %v4239_v31  ;;  %v4255_v8 = vld [vmem:[#allocation9 + $0x760] sm:$0xff] }
 0x2fb   :  { %v3755_v19 = vpop.f32.mrb[20].mxu1  ;;  %v3717_v50 = vadd.f32 %v3716_v47, %v14721_v54  ;;  %v3718_v51 = vpop.f32.mrb[22].mxu0  ;;  %7185 = vmatpush1.bf16.msra.mxu0 %v12987_v37  ;;  %v4212_v54 = vld [vmem:[#allocation9 + $0x608] sm:$0xff]  ;;  %v13038_v37 = vcombine.high %v4236_v32, %v4240_v40  ;;  %v13037_v58 = vcombine.low %v4236_v32, %v4240_v40  ;;  %v4283_v31 = vld [vmem:[#allocation9 + $0x840] sm:$0xff]  ;;  %v13075_v40 = vcombine.low %v4275_v23, %v4279_v24 }
 0x2fc   :  { %v3757_v48 = vpop.f32.mrb[21].mxu1  ;;  %v14745_v9 = vadd.f32 %v3755_v19, %v3715_v46  ;;  %v3719_v55 = vpop.f32.mrb[23].mxu0  ;;  %7186 = vmatprep.subr.bf16.mxu0 %v12996_v41  ;;  %v13014_v7 = vcombine.high %v4212_v54, %v4216_v0  ;;  %v13013_v15 = vcombine.low %v4212_v54, %v4216_v0  ;;  %v4247_v41 = vld [vmem:[#allocation9 + $0x720] sm:$0xff]  ;;  %v4244_v42 = vld [vmem:[#allocation9 + $0x708] sm:$0xff] }
 0x2fd   :  { %7349 = vmatpush1.bf16.msra.mxu1 %v12989_v39  ;;  %v3759_v61 = vpop.f32.mrb[22].mxu1  ;;  %v14747_v62 = vadd.f32 %v3757_v48, %v3717_v50  ;;  %v4243_v39 = vld [vmem:[#allocation9 + $0x700] sm:$0xff]  ;;  %v4252_v5 = vld [vmem:[#allocation9 + $0x748] sm:$0xff]  ;;  %v14750_v48 = vsub.s32 2, %v14703_v35 }
 0x2fe   :  { %7350 = vmatprep.subr.bf16.mxu1 %v12998_v43  ;;  %v3760_v20 = vpop.f32.mrb[23].mxu1  ;;  %v4248_v43 = vld [vmem:[#allocation9 + $0x728] sm:$0xff]  ;;  %v13044_v46 = vcombine.high %v4243_v39, %v4247_v41  ;;  %v4251_v19 = vld [vmem:[#allocation9 + $0x740] sm:$0xff]  ;;  %v13043_v51 = vcombine.low %v4243_v39, %v4247_v41 }
 0x2ff   :  { %7187 = vmatpush1.bf16.msra.mxu0 %v12995_v52  ;;  %v13046_v47 = vcombine.high %v4244_v42, %v4248_v43  ;;  %v4256_v50 = vld [vmem:[#allocation9 + $0x768] sm:$0xff]  ;;  %v13045_v52 = vcombine.low %v4244_v42, %v4248_v43  ;;  %v13052_v55 = vcombine.high %v4251_v19, %v4255_v8  ;;  %v4263_v61 = vld [vmem:[#allocation9 + $0x7a0] sm:$0xff]  ;;  %v13051_v20 = vcombine.low %v4251_v19, %v4255_v8 }
 0x300   :  { %7188 = vmatprep.subr.bf16.mxu0 %v13004_v60  ;;  %v4259_v60 = vld [vmem:[#allocation9 + $0x780] sm:$0xff]  ;;  %v3966_v54 = vrot.slane %v14708_v22, %v14750_v48  ;;  %v13053_v0 = vcombine.low %v4252_v5, %v4256_v50 }
 0x301   :  { %7351 = vmatpush1.bf16.msra.mxu1 %v12997_v57  ;;  %v13054_v57 = vcombine.high %v4252_v5, %v4256_v50  ;;  %v13059_v12 = vcombine.low %v4259_v60, %v4263_v61  ;;  %v4287_v32 = vld [vmem:[#allocation9 + $0x860] sm:$0xff] }
 0x302   :  { %7352 = vmatprep.subr.bf16.mxu1 %v13006_v6  ;;  %v14753_v6 = vsub.s32 5, %v14703_v35  ;;  %v4291_v39 = vld [vmem:[#allocation9 + $0x880] sm:$0xff] }
 0x303   :  { %7189 = vmatpush1.bf16.msra.mxu0 %v13003_v1  ;;  %v13060_v1 = vcombine.high %v4259_v60, %v4263_v61  ;;  %v4295_v41 = vld [vmem:[#allocation9 + $0x8a0] sm:$0xff] }
 0x304   :  { %7190 = vmatprep.subr.bf16.mxu0 %v13012_v3  ;;  %v4267_v3 = vld [vmem:[#allocation9 + $0x7c0] sm:$0xff]  ;;  %v3978_v29 = vrot.slane %v14708_v22, %v14753_v6  ;;  %v13092_v19 = vcombine.high %v4291_v39, %v4295_v41 }
 0x305   :  { %7353 = vmatpush1.bf16.msra.mxu1 %v13005_v2  ;;  %v13062_v2 = vcombine.high %v4260_v63, %v4264_v16  ;;  %v4299_v5 = vld [vmem:[#allocation9 + $0x8c0] sm:$0xff] }
 0x306   :  { %7354 = vmatprep.subr.bf16.mxu1 %v13014_v7  ;;  %v4271_v7 = vld [vmem:[#allocation9 + $0x7e0] sm:$0xff]  ;;  %v4000_v25 = vadd.f32 %v3978_v29, %v14747_v62 }
 0x307   :  { %7191 = vmatpush1.bf16.msra.mxu0 %v13011_v14  ;;  %v3997_v14 = vadd.f32 %v3966_v54, %v14699_v45  ;;  %v13067_v22 = vcombine.low %v4267_v3, %v4271_v7  ;;  %v4303_v50 = vld [vmem:[#allocation9 + $0x8e0] sm:$0xff]  ;;  %v4312_v54 = vld [vmem:[#allocation9 + $0x928] sm:$0xff] }
 0x308   :  { %7192 = vmatprep.subr.bf16.mxu0 %v13020_v17  ;;  %v13068_v17 = vcombine.high %v4267_v3, %v4271_v7  ;;  %v4008_v38 = vmax.f32 %v4000_v25, 0.0  ;;  %v13100_v60 = vcombine.high %v4299_v5, %v4303_v50  ;;  %v4315_v7 = vld [vmem:[#allocation9 + $0x940] sm:$0xff]  ;;  %v4328_v25 = vld [vmem:[#allocation9 + $0x9a8] sm:$0xff] }
 0x309   :  { %7355 = vmatpush1.bf16.msra.mxu1 %v13013_v15  ;;  %v13061_v15 = vcombine.low %v4260_v63, %v4264_v16  ;;  %v4307_v63 = vld [vmem:[#allocation9 + $0x900] sm:$0xff] }
 0x30a   :  { %7356 = vmatprep.subr.bf16.mxu1 %v13022_v21  ;;  %v13070_v21 = vcombine.high %v4268_v10, %v4272_v11  ;;  %v14763_v42 = vpack.c.bf16 %v4008_v38, %v4008_v38  ;;  %v4311_v16 = vld [vmem:[#allocation9 + $0x920] sm:$0xff] }
 0x30b   :  { %7193 = vmatpush1.bf16.msra.mxu0 %v13019_v53  ;;  %v4280_v53 = vld [vmem:[#allocation9 + $0x828] sm:$0xff]  ;;  %v4319_v29 = vld [vmem:[#allocation9 + $0x960] sm:$0xff] }
 0x30c   :  { %7194 = vmatprep.subr.bf16.mxu0 %v13028_v28  ;;  %v13069_v28 = vcombine.low %v4268_v10, %v4272_v11  ;;  %v13078_v45 = vcombine.high %v4276_v26, %v4280_v53  ;;  %v13077_v62 = vcombine.low %v4276_v26, %v4280_v53  ;;  %v4316_v10 = vld [vmem:[#allocation9 + $0x948] sm:$0xff]  ;;  %v13115_v26 = vcombine.low %v4315_v7, %v4319_v29 }
 0x30d   :  { %7357 = vmatpush1.bf16.msra.mxu1 %v13021_v27  ;;  %v4005_v27 = vmax.f32 %v3997_v14, 0.0  ;;  %v4320_v11 = vld [vmem:[#allocation9 + $0x968] sm:$0xff] }
 0x30e   :  { %7358 = vmatprep.subr.bf16.mxu1 %v13030_v30  ;;  %v13076_v30 = vcombine.high %v4275_v23, %v4279_v24  ;;  %v4327_v23 = vld [vmem:[#allocation9 + $0x9a0] sm:$0xff]  ;;  %v4324_v24 = vld [vmem:[#allocation9 + $0x988] sm:$0xff]  ;;  %v13117_v53 = vcombine.low %v4316_v10, %v4320_v11 }
 0x30f   :  { %7195 = vmatpush1.bf16.msra.mxu0 %v13027_v33  ;;  %v4284_v33 = vld [vmem:[#allocation9 + $0x848] sm:$0xff] }
 0x310   :  { %7196 = vmatprep.subr.bf16.mxu0 %v13036_v36  ;;  %v14761_v36 = vpack.c.bf16 %v4005_v27, %v4005_v27 }
 0x311   :  { %7359 = vmatpush1.bf16.msra.mxu1 %v13029_v34  ;;  %v4288_v34 = vld [vmem:[#allocation9 + $0x868] sm:$0xff] }
 0x312   :  { %7360 = vmatprep.subr.bf16.mxu1 %v13038_v37  ;;  %v13084_v37 = vcombine.high %v4283_v31, %v4287_v32  ;;  %v13086_v43 = vcombine.high %v4284_v33, %v4288_v34 }
 0x313   :  { %7197 = vmatpush1.bf16.msra.mxu0 %v13035_v44  ;;  %v4292_v44 = vld [vmem:[#allocation9 + $0x888] sm:$0xff] }
 0x314   :  { %7198 = vmatprep.subr.bf16.mxu0 %v13044_v46  ;;  %v13083_v46 = vcombine.low %v4283_v31, %v4287_v32  ;;  %v4332_v32 = vld [vmem:[#allocation9 + $0x9c8] sm:$0xff] }
 0x315   :  { %7361 = vmatpush1.bf16.msra.mxu1 %v13037_v58  ;;  %v4296_v58 = vld [vmem:[#allocation9 + $0x8a8] sm:$0xff] }
 0x316   :  { %7362 = vmatprep.subr.bf16.mxu1 %v13046_v47  ;;  %v13085_v47 = vcombine.low %v4284_v33, %v4288_v34  ;;  %v13094_v8 = vcombine.high %v4292_v44, %v4296_v58 }
 0x317   :  { %7199 = vmatpush1.bf16.msra.mxu0 %v13043_v51  ;;  %v4300_v51 = vld [vmem:[#allocation9 + $0x8c8] sm:$0xff] }
 0x318   :  { %7200 = vmatprep.subr.bf16.mxu0 %v13052_v55  ;;  %v13091_v55 = vcombine.low %v4291_v39, %v4295_v41 }
 0x319   :  { %7363 = vmatpush1.bf16.msra.mxu1 %v13045_v52  ;;  %v4304_v52 = vld [vmem:[#allocation9 + $0x8e8] sm:$0xff] }
 0x31a   :  { %7364 = vmatprep.subr.bf16.mxu1 %v13054_v57  ;;  %v13093_v57 = vcombine.low %v4292_v44, %v4296_v58  ;;  %v13102_v61 = vcombine.high %v4300_v51, %v4304_v52 }
 0x31b   :  { %7201 = vmatpush1.bf16.msra.mxu0 %v13051_v20  ;;  %v4308_v20 = vld [vmem:[#allocation9 + $0x908] sm:$0xff] }
 0x31c   :  { %7202 = vmatprep.subr.bf16.mxu0 %v13060_v1  ;;  %v13101_v1 = vcombine.low %v4300_v51, %v4304_v52  ;;  %v13110_v3 = vcombine.high %v4308_v20, %v4312_v54  ;;  %v13109_v14 = vcombine.low %v4308_v20, %v4312_v54 }
 0x31d   :  { %7365 = vmatpush1.bf16.msra.mxu1 %v13053_v0  ;;  %v13099_v0 = vcombine.low %v4299_v5, %v4303_v50  ;;  %v4340_v5 = vld [vmem:[#allocation9 + $0xa08] sm:$0xff] }
 0x31e   :  { %7366 = vmatprep.subr.bf16.mxu1 %v13062_v2  ;;  %v13108_v2 = vcombine.high %v4307_v63, %v4311_v16  ;;  %v4344_v50 = vld [vmem:[#allocation9 + $0xa28] sm:$0xff] }
 0x31f   :  { %7203 = vmatpush1.bf16.msra.mxu0 %v13059_v12  ;;  %v13107_v12 = vcombine.low %v4307_v63, %v4311_v16  ;;  %v4348_v63 = vld [vmem:[#allocation9 + $0xa48] sm:$0xff]  ;;  %v13141_v54 = vcombine.low %v4340_v5, %v4344_v50 }
 0x320   :  { %7204 = vmatprep.subr.bf16.mxu0 %v13068_v17  ;;  %v13118_v17 = vcombine.high %v4316_v10, %v4320_v11  ;;  %v4352_v16 = vld [vmem:[#allocation9 + $0xa68] sm:$0xff] }
 0x321   :  { %7367 = vmatpush1.bf16.msra.mxu1 %v13061_v15  ;;  %v13116_v15 = vcombine.high %v4315_v7, %v4319_v29  ;;  %v4356_v7 = vld [vmem:[#allocation9 + $0xa88] sm:$0xff]  ;;  %v13149_v11 = vcombine.low %v4348_v63, %v4352_v16 }
 0x322   :  { %7368 = vmatprep.subr.bf16.mxu1 %v13070_v21  ;;  %v4323_v21 = vld [vmem:[#allocation9 + $0x980] sm:$0xff]  ;;  %v4360_v29 = vld [vmem:[#allocation9 + $0xaa8] sm:$0xff] }
 0x323   :  { %7205 = vmatpush1.bf16.msra.mxu0 %v13067_v22  ;;  %v13124_v22 = vcombine.high %v4323_v21, %v4327_v23 }
 0x324   :  { %7215 = vmatprep.subr.bf16.mxu0 %v13076_v30  ;;  %v4331_v30 = vld [vmem:[#allocation9 + $0x9c0] sm:$0xff] }
 0x325   :  { %7369 = vmatpush1.bf16.msra.mxu1 %v13069_v28  ;;  %v13126_v28 = vcombine.high %v4324_v24, %v4328_v25 }
 0x326   :  { %7379 = vmatprep.subr.bf16.mxu1 %v13078_v45  ;;  %7207 = vmatmul.mubr.bf16.vlgmr.msra.gmra.mrb[32].mxu0 %v14761_v36  ;;  %v4335_v45 = vld [vmem:[#allocation9 + $0x9e0] sm:$0xff] }
 0x327   :  { %7216 = vmatpush1.bf16.msra.mxu0 %v13075_v40  ;;  %7247 = vmatprep.mubr.bf16.mxu0 %v14763_v42  ;;  %v4336_v40 = vld [vmem:[#allocation9 + $0x9e8] sm:$0xff]  ;;  %v13132_v44 = vcombine.high %v4331_v30, %v4335_v45  ;;  %v13131_v51 = vcombine.low %v4331_v30, %v4335_v45 }
 0x328   :  { %7371 = vmatmul.mubr.bf16.vlgmr.msra.gmra.mrb[32].mxu1 %v14761_v36  ;;  %7217 = vmatprep.subr.bf16.mxu0 %v13084_v37  ;;  %v13123_v37 = vcombine.low %v4323_v21, %v4327_v23  ;;  %v13133_v52 = vcombine.low %v4332_v32, %v4336_v40  ;;  %v4364_v21 = vld [vmem:[#allocation9 + $0xac8] sm:$0xff] }
 0x329   :  { %7380 = vmatpush1.bf16.msra.mxu1 %v13077_v62  ;;  %7411 = vmatprep.mubr.bf16.mxu1 %v14763_v42  ;;  %v4368_v23 = vld [vmem:[#allocation9 + $0xae8] sm:$0xff] }
 0x32a   :  { %7381 = vmatprep.subr.bf16.mxu1 %v13086_v43  ;;  %v13125_v43 = vcombine.low %v4324_v24, %v4328_v25  ;;  %v13157_v25 = vcombine.low %v4356_v7, %v4360_v29  ;;  %v4376_v30 = vld [vmem:[#allocation9 + $0xb28] sm:$0xff] }
 0x32b   :  { %7218 = vmatpush1.bf16.msra.mxu0 %v13083_v46  ;;  %v13134_v46 = vcombine.high %v4332_v32, %v4336_v40  ;;  %v4379_v40 = vld [vmem:[#allocation9 + $0xb40] sm:$0xff] }
 0x32c   :  { %7219 = vmatprep.subr.bf16.mxu0 %v13092_v19  ;;  %v4343_v19 = vld [vmem:[#allocation9 + $0xa20] sm:$0xff] }
 0x32d   :  { %7382 = vmatpush1.bf16.msra.mxu1 %v13085_v47  ;;  %v4339_v47 = vld [vmem:[#allocation9 + $0xa00] sm:$0xff] }
 0x32e   :  { %7383 = vmatprep.subr.bf16.mxu1 %v13094_v8  ;;  %v13139_v20 = vcombine.low %v4339_v47, %v4343_v19 }
 0x32f   :  { %7220 = vmatpush1.bf16.msra.mxu0 %v13091_v55  ;;  %v13140_v55 = vcombine.high %v4339_v47, %v4343_v19  ;;  %v4387_v47 = vld [vmem:[#allocation9 + $0xb80] sm:$0xff] }
 0x330   :  { %7221 = vmatprep.subr.bf16.mxu0 %v13100_v60  ;;  %v4347_v60 = vld [vmem:[#allocation9 + $0xa40] sm:$0xff] }
 0x331   :  { %7384 = vmatpush1.bf16.msra.mxu1 %v13093_v57  ;;  %v13142_v57 = vcombine.high %v4340_v5, %v4344_v50  ;;  %v4391_v19 = vld [vmem:[#allocation9 + $0xba0] sm:$0xff]  ;;  %v4392_v5 = vld [vmem:[#allocation9 + $0xba8] sm:$0xff] }
 0x332   :  { %7385 = vmatprep.subr.bf16.mxu1 %v13102_v61  ;;  %v4351_v61 = vld [vmem:[#allocation9 + $0xa60] sm:$0xff] }
 0x333   :  { %7222 = vmatpush1.bf16.msra.mxu0 %v13099_v0  ;;  %v13148_v0 = vcombine.high %v4347_v60, %v4351_v61  ;;  %v13147_v10 = vcombine.low %v4347_v60, %v4351_v61  ;;  %v4395_v61 = vld [vmem:[#allocation9 + $0xbc0] sm:$0xff] }
 0x334   :  { %7223 = vmatprep.subr.bf16.mxu0 %v13108_v2  ;;  %v4355_v2 = vld [vmem:[#allocation9 + $0xa80] sm:$0xff] }
 0x335   :  { %7386 = vmatpush1.bf16.msra.mxu1 %v13101_v1  ;;  %v13150_v1 = vcombine.high %v4348_v63, %v4352_v16  ;;  %v4399_v63 = vld [vmem:[#allocation9 + $0xbe0] sm:$0xff]  ;;  %v4396_v16 = vld [vmem:[#allocation9 + $0xbc8] sm:$0xff] }
 0x336   :  { %7387 = vmatprep.subr.bf16.mxu1 %v13110_v3  ;;  %v4359_v3 = vld [vmem:[#allocation9 + $0xaa0] sm:$0xff] }
 0x337   :  { %7224 = vmatpush1.bf16.msra.mxu0 %v13107_v12  ;;  %v13156_v12 = vcombine.high %v4355_v2, %v4359_v3  ;;  %v13155_v24 = vcombine.low %v4355_v2, %v4359_v3  ;;  %v13196_v2 = vcombine.high %v4395_v61, %v4399_v63 }
 0x338   :  { %7225 = vmatprep.subr.bf16.mxu0 %v13116_v15  ;;  %v4363_v15 = vld [vmem:[#allocation9 + $0xac0] sm:$0xff] }
 0x339   :  { %7388 = vmatpush1.bf16.msra.mxu1 %v13109_v14  ;;  %v3796_v27 = vpop.f32.mrb[24].mxu0  ;;  %v13158_v14 = vcombine.high %v4356_v7, %v4360_v29  ;;  %v4403_v7 = vld [vmem:[#allocation9 + $0xc00] sm:$0xff] }
 0x33a   :  { %7389 = vmatprep.subr.bf16.mxu1 %v13118_v17  ;;  %v3798_v31 = vpop.f32.mrb[25].mxu0  ;;  %v4367_v17 = vld [vmem:[#allocation9 + $0xae0] sm:$0xff] }
 0x33b   :  { %v3837_v38 = vpop.f32.mrb[24].mxu1  ;;  %v3800_v62 = vpop.f32.mrb[26].mxu0  ;;  %7226 = vmatpush1.bf16.msra.mxu0 %v13115_v26  ;;  %v13164_v26 = vcombine.high %v4363_v15, %v4367_v17  ;;  %v13163_v45 = vcombine.low %v4363_v15, %v4367_v17  ;;  %v4407_v29 = vld [vmem:[#allocation9 + $0xc20] sm:$0xff] }
 0x33c   :  { %v14769_v33 = vadd.f32 %v3837_v38, %v3796_v27  ;;  %v3839_v34 = vpop.f32.mrb[25].mxu1  ;;  %v3801_v41 = vpop.f32.mrb[27].mxu0  ;;  %7227 = vmatprep.subr.bf16.mxu0 %v13124_v22  ;;  %v4371_v22 = vld [vmem:[#allocation9 + $0xb00] sm:$0xff]  ;;  %v13165_v38 = vcombine.low %v4364_v21, %v4368_v23  ;;  %v4380_v62 = vld [vmem:[#allocation9 + $0xb48] sm:$0xff]  ;;  %v13204_v17 = vcombine.high %v4403_v7, %v4407_v29 }
 0x33d   :  { %v14771_v39 = vadd.f32 %v3839_v34, %v3798_v31  ;;  %7390 = vmatpush1.bf16.msra.mxu1 %v13117_v53  ;;  %v3841_v58 = vpop.f32.mrb[26].mxu1  ;;  %v13166_v53 = vcombine.high %v4364_v21, %v4368_v23  ;;  %v4375_v27 = vld [vmem:[#allocation9 + $0xb20] sm:$0xff] }
 0x33e   :  { %7391 = vmatprep.subr.bf16.mxu1 %v13126_v28  ;;  %v3842_v8 = vpop.f32.mrb[27].mxu1  ;;  %v4372_v28 = vld [vmem:[#allocation9 + $0xb08] sm:$0xff]  ;;  %v13172_v31 = vcombine.high %v4371_v22, %v4375_v27  ;;  %v4383_v34 = vld [vmem:[#allocation9 + $0xb60] sm:$0xff]  ;;  %v13171_v41 = vcombine.low %v4371_v22, %v4375_v27 }
 0x33f   :  { %7228 = vmatpush1.bf16.msra.mxu0 %v13123_v37  ;;  %v13174_v32 = vcombine.high %v4372_v28, %v4376_v30  ;;  %v4384_v37 = vld [vmem:[#allocation9 + $0xb68] sm:$0xff]  ;;  %v13180_v58 = vcombine.high %v4379_v40, %v4383_v34  ;;  %v13179_v50 = vcombine.low %v4379_v40, %v4383_v34  ;;  %v4415_v23 = vld [vmem:[#allocation9 + $0xc60] sm:$0xff] }
 0x340   :  { %7229 = vmatprep.subr.bf16.mxu0 %v13132_v44  ;;  %v13173_v44 = vcombine.low %v4372_v28, %v4376_v30  ;;  %v4388_v8 = vld [vmem:[#allocation9 + $0xb88] sm:$0xff]  ;;  %v4419_v30 = vld [vmem:[#allocation9 + $0xc80] sm:$0xff] }
 0x341   :  { %7392 = vmatpush1.bf16.msra.mxu1 %v13125_v43  ;;  %v14774_v43 = vsub.s32 4, %v14703_v35  ;;  %v13190_v60 = vcombine.high %v4388_v8, %v4392_v5 }
 0x342   :  { %7393 = vmatprep.subr.bf16.mxu1 %v13134_v46  ;;  %v13182_v46 = vcombine.high %v4380_v62, %v4384_v37 }
 0x343   :  { %7230 = vmatpush1.bf16.msra.mxu0 %v13131_v51  ;;  %v14776_v51 = vld [vmem:[#allocation8] sm:$0xff] }
 0x344   :  { %7231 = vmatprep.subr.bf16.mxu0 %v13140_v55  ;;  %v13181_v55 = vcombine.low %v4380_v62, %v4384_v37  ;;  %v4427_v37 = vld [vmem:[#allocation9 + $0xcc0] sm:$0xff] }
 0x345   :  { %7394 = vmatpush1.bf16.msra.mxu1 %v13133_v52  ;;  %v3974_v52 = vrot.slane %v14776_v51, %v14774_v43 }
 0x346   :  { %7395 = vmatprep.subr.bf16.mxu1 %v13142_v57  ;;  %v13188_v57 = vcombine.high %v4387_v47, %v4391_v19 }
 0x347   :  { %7232 = vmatpush1.bf16.msra.mxu0 %v13139_v20  ;;  %v4400_v20 = vld [vmem:[#allocation9 + $0xbe8] sm:$0xff] }
 0x348   :  { %7233 = vmatprep.subr.bf16.mxu0 %v13148_v0  ;;  %v3999_v0 = vadd.f32 %v3974_v52, %v14745_v9  ;;  %v13198_v3 = vcombine.high %v4396_v16, %v4400_v20  ;;  %v13197_v15 = vcombine.low %v4396_v16, %v4400_v20  ;;  %v4411_v9 = vld [vmem:[#allocation9 + $0xc40] sm:$0xff]  ;;  %v4436_v52 = vld [vmem:[#allocation9 + $0xd08] sm:$0xff] }
 0x349   :  { %7396 = vmatpush1.bf16.msra.mxu1 %v13141_v54  ;;  %v13187_v54 = vcombine.low %v4387_v47, %v4391_v19  ;;  %v13212_v27 = vcombine.high %v4411_v9, %v4415_v23  ;;  %v4443_v16 = vld [vmem:[#allocation9 + $0xd40] sm:$0xff] }
 0x34a   :  { %7397 = vmatprep.subr.bf16.mxu1 %v13150_v1  ;;  %v13189_v1 = vcombine.low %v4388_v8, %v4392_v5  ;;  %v4435_v5 = vld [vmem:[#allocation9 + $0xd00] sm:$0xff] }
 0x34b   :  { %7234 = vmatpush1.bf16.msra.mxu0 %v13147_v10  ;;  %v4404_v10 = vld [vmem:[#allocation9 + $0xc08] sm:$0xff]  ;;  %v4447_v20 = vld [vmem:[#allocation9 + $0xd60] sm:$0xff] }
 0x34c   :  { %7235 = vmatprep.subr.bf16.mxu0 %v13156_v12  ;;  %v13195_v12 = vcombine.low %v4395_v61, %v4399_v63 }
 0x34d   :  { %7398 = vmatpush1.bf16.msra.mxu1 %v13149_v11  ;;  %v4408_v11 = vld [vmem:[#allocation9 + $0xc28] sm:$0xff] }
 0x34e   :  { %7399 = vmatprep.subr.bf16.mxu1 %v13158_v14  ;;  %v4007_v14 = vmax.f32 %v3999_v0, 0.0  ;;  %v13206_v21 = vcombine.high %v4404_v10, %v4408_v11  ;;  %v13205_v22 = vcombine.low %v4404_v10, %v4408_v11  ;;  %v4448_v0 = vld [vmem:[#allocation9 + $0xd68] sm:$0xff]  ;;  %v4455_v10 = vld [vmem:[#allocation9 + $0xda0] sm:$0xff] }
 0x34f   :  { %7236 = vmatpush1.bf16.msra.mxu0 %v13155_v24  ;;  %v4412_v24 = vld [vmem:[#allocation9 + $0xc48] sm:$0xff] }
 0x350   :  { %7237 = vmatprep.subr.bf16.mxu0 %v13164_v26  ;;  %v13203_v26 = vcombine.low %v4403_v7, %v4407_v29  ;;  %v4451_v29 = vld [vmem:[#allocation9 + $0xd80] sm:$0xff]  ;;  %v4452_v11 = vld [vmem:[#allocation9 + $0xd88] sm:$0xff] }
 0x351   :  { %7400 = vmatpush1.bf16.msra.mxu1 %v13157_v25  ;;  %v4416_v25 = vld [vmem:[#allocation9 + $0xc68] sm:$0xff] }
 0x352   :  { %7401 = vmatprep.subr.bf16.mxu1 %v13166_v53  ;;  %v14781_v53 = vpack.c.bf16 %v4007_v14, %v4007_v14  ;;  %v13214_v28 = vcombine.high %v4412_v24, %v4416_v25  ;;  %v13213_v40 = vcombine.low %v4412_v24, %v4416_v25  ;;  %v13243_v14 = vcombine.low %v4443_v16, %v4447_v20  ;;  %v4459_v24 = vld [vmem:[#allocation9 + $0xdc0] sm:$0xff] }
 0x353   :  { %7238 = vmatpush1.bf16.msra.mxu0 %v13163_v45  ;;  %v4423_v45 = vld [vmem:[#allocation9 + $0xca0] sm:$0xff] }
 0x354   :  { %7239 = vmatprep.subr.bf16.mxu0 %v13172_v31  ;;  %v4424_v31 = vld [vmem:[#allocation9 + $0xca8] sm:$0xff]  ;;  %v13220_v34 = vcombine.high %v4419_v30, %v4423_v45  ;;  %v4463_v25 = vld [vmem:[#allocation9 + $0xde0] sm:$0xff] }
 0x355   :  { %7402 = vmatpush1.bf16.msra.mxu1 %v13165_v38  ;;  %v4420_v38 = vld [vmem:[#allocation9 + $0xc88] sm:$0xff] }
 0x356   :  { %7403 = vmatprep.subr.bf16.mxu1 %v13174_v32  ;;  %v13211_v32 = vcombine.low %v4411_v9, %v4415_v23  ;;  %v13222_v62 = vcombine.high %v4420_v38, %v4424_v31  ;;  %v13221_v47 = vcombine.low %v4420_v38, %v4424_v31 }
 0x357   :  { %7240 = vmatpush1.bf16.msra.mxu0 %v13171_v41  ;;  %v4431_v41 = vld [vmem:[#allocation9 + $0xce0] sm:$0xff] }
 0x358   :  { %7241 = vmatprep.subr.bf16.mxu0 %v13180_v58  ;;  %v4432_v58 = vld [vmem:[#allocation9 + $0xce8] sm:$0xff]  ;;  %v13228_v19 = vcombine.high %v4427_v37, %v4431_v41 }
 0x359   :  { %7404 = vmatpush1.bf16.msra.mxu1 %v13173_v44  ;;  %v4428_v44 = vld [vmem:[#allocation9 + $0xcc8] sm:$0xff] }
 0x35a   :  { %7405 = vmatprep.subr.bf16.mxu1 %v13182_v46  ;;  %v13219_v46 = vcombine.low %v4419_v30, %v4423_v45  ;;  %v13230_v8 = vcombine.high %v4428_v44, %v4432_v58  ;;  %v4464_v30 = vld [vmem:[#allocation9 + $0xde8] sm:$0xff] }
 0x35b   :  { %7242 = vmatpush1.bf16.msra.mxu0 %v13179_v50  ;;  %v4439_v50 = vld [vmem:[#allocation9 + $0xd20] sm:$0xff] }
 0x35c   :  { %7243 = vmatprep.subr.bf16.mxu0 %v13188_v57  ;;  %v13227_v57 = vcombine.low %v4427_v37, %v4431_v41  ;;  %v13236_v61 = vcombine.high %v4435_v5, %v4439_v50 }
 0x35d   :  { %7406 = vmatpush1.bf16.msra.mxu1 %v13181_v55  ;;  %v4440_v55 = vld [vmem:[#allocation9 + $0xd28] sm:$0xff] }
 0x35e   :  { %7407 = vmatprep.subr.bf16.mxu1 %v13190_v60  ;;  %v13229_v60 = vcombine.low %v4428_v44, %v4432_v58  ;;  %v13238_v63 = vcombine.high %v4436_v52, %v4440_v55 }
 0x35f   :  { %7244 = vmatpush1.bf16.msra.mxu0 %v13187_v54  ;;  %v4444_v54 = vld [vmem:[#allocation9 + $0xd48] sm:$0xff] }
 0x360   :  { %7245 = vmatprep.subr.bf16.mxu0 %v13196_v2  ;;  %v13237_v2 = vcombine.low %v4436_v52, %v4440_v55  ;;  %v13246_v7 = vcombine.high %v4444_v54, %v4448_v0 }
 0x361   :  { %7408 = vmatpush1.bf16.msra.mxu1 %v13189_v1  ;;  %v13235_v1 = vcombine.low %v4435_v5, %v4439_v50  ;;  %v4468_v5 = vld [vmem:[#allocation9 + $0xe08] sm:$0xff] }
 0x362   :  { %7409 = vmatprep.subr.bf16.mxu1 %v13198_v3  ;;  %v13244_v3 = vcombine.high %v4443_v16, %v4447_v20  ;;  %v4472_v50 = vld [vmem:[#allocation9 + $0xe28] sm:$0xff] }
 0x363   :  { %7246 = vmatpush1.bf16.msra.mxu0 %v13195_v12  ;;  %v4456_v12 = vld [vmem:[#allocation9 + $0xda8] sm:$0xff] }
 0x364   :  { %7256 = vmatprep.subr.bf16.mxu0 %v13204_v17  ;;  %v13245_v17 = vcombine.low %v4444_v54, %v4448_v0  ;;  %v13254_v23 = vcombine.high %v4452_v11, %v4456_v12  ;;  %v13253_v37 = vcombine.low %v4452_v11, %v4456_v12  ;;  %v4476_v16 = vld [vmem:[#allocation9 + $0xe48] sm:$0xff] }
 0x365   :  { %7410 = vmatpush1.bf16.msra.mxu1 %v13197_v15  ;;  %v14786_v15 = vsub.s32 7, %v14703_v35  ;;  %v4480_v20 = vld [vmem:[#allocation9 + $0xe68] sm:$0xff] }
 0x366   :  { %7420 = vmatprep.subr.bf16.mxu1 %v13206_v21  ;;  %7248 = vmatmul.mubr.bf16.vlgmr.msra.gmra.mrb[32].mxu0 %v14781_v53  ;;  %v13252_v21 = vcombine.high %v4451_v29, %v4455_v10  ;;  %v4488_v11 = vld [vmem:[#allocation9 + $0xea8] sm:$0xff] }
 0x367   :  { %7257 = vmatpush1.bf16.msra.mxu0 %v13203_v26 }
 0x368   :  { %7412 = vmatmul.mubr.bf16.vlgmr.msra.gmra.mrb[32].mxu1 %v14781_v53  ;;  %7258 = vmatprep.subr.bf16.mxu0 %v13212_v27 }
 0x369   :  { %7421 = vmatpush1.bf16.msra.mxu1 %v13205_v22 }
 0x36a   :  { %7422 = vmatprep.subr.bf16.mxu1 %v13214_v28  ;;  %v4460_v28 = vld [vmem:[#allocation9 + $0xdc8] sm:$0xff] }
 0x36b   :  { %7259 = vmatpush1.bf16.msra.mxu0 %v13211_v32  ;;  %v3986_v32 = vrot.slane %v14776_v51, %v14786_v15  ;;  %v13262_v58 = vcombine.high %v4460_v28, %v4464_v30  ;;  %v13261_v52 = vcombine.low %v4460_v28, %v4464_v30  ;;  %v4499_v30 = vld [vmem:[#allocation9 + $0xf00] sm:$0xff] }
 0x36c   :  { %7260 = vmatprep.subr.bf16.mxu0 %v13220_v34 }
 0x36d   :  { %7423 = vmatpush1.bf16.msra.mxu1 %v13213_v40  ;;  %v13251_v40 = vcombine.low %v4451_v29, %v4455_v10  ;;  %v4487_v29 = vld [vmem:[#allocation9 + $0xea0] sm:$0xff]  ;;  %v4484_v10 = vld [vmem:[#allocation9 + $0xe88] sm:$0xff] }
 0x36e   :  { %7424 = vmatprep.subr.bf16.mxu1 %v13222_v62 }
 0x36f   :  { %7261 = vmatpush1.bf16.msra.mxu0 %v13219_v46  ;;  %v4467_v46 = vld [vmem:[#allocation9 + $0xe00] sm:$0xff] }
 0x370   :  { %7262 = vmatprep.subr.bf16.mxu0 %v13228_v19 }
 0x371   :  { %7425 = vmatpush1.bf16.msra.mxu1 %v13221_v47 }
 0x372   :  { %7426 = vmatprep.subr.bf16.mxu1 %v13230_v8  ;;  %v13259_v8 = vcombine.low %v4459_v24, %v4463_v25 }
 0x373   :  { %7263 = vmatpush1.bf16.msra.mxu0 %v13227_v57 }
 0x374   :  { %7264 = vmatprep.subr.bf16.mxu0 %v13236_v61  ;;  %v4479_v61 = vld [vmem:[#allocation9 + $0xe60] sm:$0xff] }
 0x375   :  { %7427 = vmatpush1.bf16.msra.mxu1 %v13229_v60  ;;  %v4475_v60 = vld [vmem:[#allocation9 + $0xe40] sm:$0xff] }
 0x376   :  { %7428 = vmatprep.subr.bf16.mxu1 %v13238_v63  ;;  %v13270_v63 = vcombine.high %v4468_v5, %v4472_v50  ;;  %v13275_v12 = vcombine.low %v4475_v60, %v4479_v61 }
 0x377   :  { %7265 = vmatpush1.bf16.msra.mxu0 %v13235_v1  ;;  %v13269_v1 = vcombine.low %v4468_v5, %v4472_v50  ;;  %v4515_v5 = vld [vmem:[#allocation9 + $0xf80] sm:$0xff] }
 0x378   :  { %7266 = vmatprep.subr.bf16.mxu0 %v13244_v3  ;;  %v13278_v3 = vcombine.high %v4476_v16, %v4480_v20  ;;  %v4519_v50 = vld [vmem:[#allocation9 + $0xfa0] sm:$0xff] }
 0x379   :  { %7429 = vmatpush1.bf16.msra.mxu1 %v13237_v2  ;;  %v3878_v9 = vpop.f32.mrb[28].mxu0  ;;  %v13276_v2 = vcombine.high %v4475_v60, %v4479_v61 }
 0x37a   :  { %7430 = vmatprep.subr.bf16.mxu1 %v13246_v7  ;;  %v3879_v26 = vadd.f32 %v3878_v9, %v14769_v33  ;;  %v3880_v22 = vpop.f32.mrb[29].mxu0  ;;  %v13260_v33 = vcombine.high %v4459_v24, %v4463_v25  ;;  %v4483_v7 = vld [vmem:[#allocation9 + $0xe80] sm:$0xff]  ;;  %v4492_v24 = vld [vmem:[#allocation9 + $0xec8] sm:$0xff] }
 0x37b   :  { %v3919_v27 = vpop.f32.mrb[28].mxu1  ;;  %v3881_v45 = vadd.f32 %v3880_v22, %v14771_v39  ;;  %v3882_v38 = vpop.f32.mrb[30].mxu0  ;;  %7267 = vmatpush1.bf16.msra.mxu0 %v13243_v14  ;;  %v4471_v39 = vld [vmem:[#allocation9 + $0xe20] sm:$0xff]  ;;  %v13277_v14 = vcombine.low %v4476_v16, %v4480_v20  ;;  %v4496_v25 = vld [vmem:[#allocation9 + $0xee8] sm:$0xff]  ;;  %v13285_v22 = vcombine.low %v4484_v10, %v4488_v11 }
 0x37c   :  { %v3921_v31 = vpop.f32.mrb[29].mxu1  ;;  %v14792_v34 = vadd.f32 %v3919_v27, %v3879_v26  ;;  %v3883_v62 = vpop.f32.mrb[31].mxu0  ;;  %7268 = vmatprep.subr.bf16.mxu0 %v13252_v21  ;;  %v13268_v55 = vcombine.high %v4467_v46, %v4471_v39  ;;  %v13267_v0 = vcombine.low %v4467_v46, %v4471_v39  ;;  %v13286_v21 = vcombine.high %v4484_v10, %v4488_v11  ;;  %v4491_v9 = vld [vmem:[#allocation9 + $0xec0] sm:$0xff]  ;;  %v4500_v38 = vld [vmem:[#allocation9 + $0xf08] sm:$0xff]  ;;  %v4021_v10 = vld [vmem:[#allocation9 + $0x10] sm:$0xff] }
 0x37d   :  { %7431 = vmatpush1.bf16.msra.mxu1 %v13245_v17  ;;  %v3923_v41 = vpop.f32.mrb[30].mxu1  ;;  %v3922_v44 = vadd.f32 %v3921_v31, %v3881_v45  ;;  %v13284_v17 = vcombine.high %v4483_v7, %v4487_v29  ;;  %v13283_v26 = vcombine.low %v4483_v7, %v4487_v29  ;;  %v13294_v28 = vcombine.high %v4492_v24, %v4496_v25  ;;  %v4503_v45 = vld [vmem:[#allocation9 + $0xf20] sm:$0xff]  ;;  %v4504_v31 = vld [vmem:[#allocation9 + $0xf28] sm:$0xff]  ;;  %v4025_v11 = vld [vmem:[#allocation9 + $0x30] sm:$0xff] }
 0x37e   :  { %7432 = vmatprep.subr.bf16.mxu1 %v13254_v23  ;;  %v3924_v47 = vpop.f32.mrb[31].mxu1  ;;  %v4495_v23 = vld [vmem:[#allocation9 + $0xee0] sm:$0xff]  ;;  %v13300_v62 = vcombine.high %v4499_v30, %v4503_v45  ;;  %v13299_v46 = vcombine.low %v4499_v30, %v4503_v45  ;;  %v14799_v39 = vsub.s32 6, %v14703_v35  ;;  %v13316_v35 = vcombine.high %v4515_v5, %v4519_v50 }
 0x37f   :  { %v4002_v19 = vadd.f32 %v3986_v32, %v3922_v44  ;;  %7269 = vmatpush1.bf16.msra.mxu0 %v13251_v40  ;;  %v13292_v27 = vcombine.high %v4491_v9, %v4495_v23  ;;  %v13291_v32 = vcombine.low %v4491_v9, %v4495_v23  ;;  %v13293_v40 = vcombine.low %v4492_v24, %v4496_v25  ;;  %v4511_v41 = vld [vmem:[#allocation9 + $0xf60] sm:$0xff]  ;;  %v4508_v44 = vld [vmem:[#allocation9 + $0xf48] sm:$0xff]  ;;  %v4033_v25 = vld [vmem:[#allocation9 + $0x70] sm:$0xff] }
 0x380   :  { %7270 = vmatprep.subr.bf16.mxu0 %v13260_v33  ;;  %v4507_v33 = vld [vmem:[#allocation9 + $0xf40] sm:$0xff]  ;;  %v13301_v47 = vcombine.low %v4500_v38, %v4504_v31  ;;  %v3982_v60 = vrot.slane %v14776_v51, %v14799_v39  ;;  %v12824_v23 = vcombine.high %v4021_v10, %v4025_v11 }
 0x381   :  { %7433 = vmatpush1.bf16.msra.mxu1 %v13253_v37  ;;  %v4010_v57 = vmax.f32 %v4002_v19, 0.0  ;;  %v13302_v37 = vcombine.high %v4500_v38, %v4504_v31  ;;  %v13308_v19 = vcombine.high %v4507_v33, %v4511_v41  ;;  %v4523_v16 = vld [vmem:[#allocation9 + $0xfc0] sm:$0xff]  ;;  %v4037_v38 = vld [vmem:[#allocation9 + $0x90] sm:$0xff] }
 0x382   :  { %7434 = vmatprep.subr.bf16.mxu1 %v13262_v58  ;;  %v4512_v58 = vld [vmem:[#allocation9 + $0xf68] sm:$0xff]  ;;  %v4527_v20 = vld [vmem:[#allocation9 + $0xfe0] sm:$0xff]  ;;  %v4041_v31 = vld [vmem:[#allocation9 + $0xb0] sm:$0xff] }
 0x383   :  { %v14794_v54 = vpack.c.bf16 %v4010_v57, %v4010_v57  ;;  %7271 = vmatpush1.bf16.msra.mxu0 %v13259_v8  ;;  %v13310_v8 = vcombine.high %v4508_v44, %v4512_v58  ;;  %v13307_v57 = vcombine.low %v4507_v33, %v4511_v41  ;;  %v13309_v61 = vcombine.low %v4508_v44, %v4512_v58  ;;  %v4045_v58 = vld [vmem:[#allocation9 + $0xd0] sm:$0xff] }
 0x384   :  { %7272 = vmatprep.subr.bf16.mxu0 %v13268_v55  ;;  %v4520_v55 = vld [vmem:[#allocation9 + $0xfa8] sm:$0xff]  ;;  %v13324_v29 = vcombine.high %v4523_v16, %v4527_v20  ;;  %v12840_v41 = vcombine.high %v4037_v38, %v4041_v31 }
 0x385   :  { %7435 = vmatpush1.bf16.msra.mxu1 %v13261_v52  ;;  %7288 = vmatprep.mubr.bf16.mxu0 %v14794_v54  ;;  %v4516_v52 = vld [vmem:[#allocation9 + $0xf88] sm:$0xff] }
 0x386   :  { %7452 = vmatprep.mubr.bf16.mxu1 %v14794_v54  ;;  %7436 = vmatprep.subr.bf16.mxu1 %v13270_v63  ;;  %v13318_v63 = vcombine.high %v4516_v52, %v4520_v55  ;;  %v13317_v7 = vcombine.low %v4516_v52, %v4520_v55  ;;  %v4053_v55 = vld [vmem:[#allocation9 + $0x110] sm:$0xff] }
 0x387   :  { %7273 = vmatpush1.bf16.msra.mxu0 %v13267_v0  ;;  %v4524_v0 = vld [vmem:[#allocation9 + $0xfc8] sm:$0xff] }
 0x388   :  { %7274 = vmatprep.subr.bf16.mxu0 %v13276_v2  ;;  %v13315_v2 = vcombine.low %v4515_v5, %v4519_v50 }
 0x389   :  { %7437 = vmatpush1.bf16.msra.mxu1 %v13269_v1  ;;  %v4528_v1 = vld [vmem:[#allocation9 + $0xfe8] sm:$0xff] }
 0x38a   :  { %7438 = vmatprep.subr.bf16.mxu1 %v13278_v3  ;;  %v4001_v3 = vadd.f32 %v3982_v60, %v14792_v34  ;;  %v13326_v51 = vcombine.high %v4524_v0, %v4528_v1  ;;  %v13325_v9 = vcombine.low %v4524_v0, %v4528_v1  ;;  %v4029_v34 = vld [vmem:[#allocation9 + $0x50] sm:$0xff]  ;;  %v4054_v60 = vld [vmem:[#allocation9 + $0x118] sm:$0xff] }
 0x38b   :  { %7275 = vmatpush1.bf16.msra.mxu0 %v13275_v12  ;;  %v4022_v12 = vld [vmem:[#allocation9 + $0x18] sm:$0xff]  ;;  %v12832_v45 = vcombine.high %v4029_v34, %v4033_v25  ;;  %v4065_v0 = vld [vmem:[#allocation9 + $0x170] sm:$0xff] }
 0x38c   :  { %7276 = vmatprep.subr.bf16.mxu0 %v13284_v17  ;;  %v13323_v17 = vcombine.low %v4523_v16, %v4527_v20  ;;  %v4061_v20 = vld [vmem:[#allocation9 + $0x150] sm:$0xff]  ;;  %v4062_v1 = vld [vmem:[#allocation9 + $0x158] sm:$0xff] }
 0x38d   :  { %7439 = vmatpush1.bf16.msra.mxu1 %v13277_v14  ;;  %v4026_v14 = vld [vmem:[#allocation9 + $0x38] sm:$0xff] }
 0x38e   :  { %7440 = vmatprep.subr.bf16.mxu1 %v13286_v21  ;;  %v4009_v21 = vmax.f32 %v4001_v3, 0.0  ;;  %v12826_v24 = vcombine.high %v4022_v12, %v4026_v14  ;;  %v12825_v30 = vcombine.low %v4022_v12, %v4026_v14  ;;  %v4070_v12 = vld [vmem:[#allocation9 + $0x198] sm:$0xff] }
 0x38f   :  { %7277 = vmatpush1.bf16.msra.mxu0 %v13283_v26  ;;  %v12823_v26 = vcombine.low %v4021_v10, %v4025_v11  ;;  %v4069_v10 = vld [vmem:[#allocation9 + $0x190] sm:$0xff]  ;;  %v4074_v14 = vld [vmem:[#allocation9 + $0x1b8] sm:$0xff] }
 0x390   :  { %7278 = vmatprep.subr.bf16.mxu0 %v13292_v27  ;;  %v4034_v27 = vld [vmem:[#allocation9 + $0x78] sm:$0xff]  ;;  %v4073_v11 = vld [vmem:[#allocation9 + $0x1b0] sm:$0xff] }
 0x391   :  { %7441 = vmatpush1.bf16.msra.mxu1 %v13285_v22  ;;  %v4030_v22 = vld [vmem:[#allocation9 + $0x58] sm:$0xff] }
 0x392   :  { %7442 = vmatprep.subr.bf16.mxu1 %v13294_v28  ;;  %v14804_v28 = vpack.c.bf16 %v4009_v21, %v4009_v21  ;;  %v12833_v33 = vcombine.low %v4030_v22, %v4034_v27 }
 0x393   :  { %7279 = vmatpush1.bf16.msra.mxu0 %v13291_v32  ;;  %v12834_v32 = vcombine.high %v4030_v22, %v4034_v27  ;;  %v12871_v22 = vcombine.low %v4069_v10, %v4073_v11  ;;  %v12873_v27 = vcombine.low %v4070_v12, %v4074_v14 }
 0x394   :  { %7280 = vmatprep.subr.bf16.mxu0 %v13300_v62  ;;  %v4042_v62 = vld [vmem:[#allocation9 + $0xb8] sm:$0xff] }
 0x395   :  { %7443 = vmatpush1.bf16.msra.mxu1 %v13293_v40  ;;  %v4038_v40 = vld [vmem:[#allocation9 + $0x98] sm:$0xff] }
 0x396   :  { %7444 = vmatprep.subr.bf16.mxu1 %v13302_v37  ;;  %v12831_v37 = vcombine.low %v4029_v34, %v4033_v25  ;;  %v12842_v44 = vcombine.high %v4038_v40, %v4042_v62  ;;  %v12841_v5 = vcombine.low %v4038_v40, %v4042_v62  ;;  %v4081_v34 = vld [vmem:[#allocation9 + $0x1f0] sm:$0xff]  ;;  %v4078_v25 = vld [vmem:[#allocation9 + $0x1d8] sm:$0xff] }
 0x397   :  { %7281 = vmatpush1.bf16.msra.mxu0 %v13299_v46  ;;  %v4049_v46 = vld [vmem:[#allocation9 + $0xf0] sm:$0xff]  ;;  %v4090_v40 = vld [vmem:[#allocation9 + $0x238] sm:$0xff] }
 0x398   :  { %7282 = vmatprep.subr.bf16.mxu0 %v13308_v19  ;;  %v4050_v19 = vld [vmem:[#allocation9 + $0xf8] sm:$0xff]  ;;  %v12848_v50 = vcombine.high %v4045_v58, %v4049_v46 }
 0x399   :  { %7445 = vmatpush1.bf16.msra.mxu1 %v13301_v47  ;;  %v4046_v47 = vld [vmem:[#allocation9 + $0xd8] sm:$0xff] }
 0x39a   :  { %7446 = vmatprep.subr.bf16.mxu1 %v13310_v8  ;;  %v12839_v8 = vcombine.low %v4037_v38, %v4041_v31  ;;  %v12850_v52 = vcombine.high %v4046_v47, %v4050_v19  ;;  %v4085_v38 = vld [vmem:[#allocation9 + $0x210] sm:$0xff] }
 0x39b   :  { %7283 = vmatpush1.bf16.msra.mxu0 %v13307_v57  ;;  %v4057_v57 = vld [vmem:[#allocation9 + $0x130] sm:$0xff] }
 0x39c   :  { %7284 = vmatprep.subr.bf16.mxu0 %v13316_v35  ;;  %v12849_v35 = vcombine.low %v4046_v47, %v4050_v19  ;;  %v12855_v3 = vcombine.low %v4053_v55, %v4057_v57  ;;  %v4089_v31 = vld [vmem:[#allocation9 + $0x230] sm:$0xff]  ;;  %v4098_v47 = vld [vmem:[#allocation9 + $0x278] sm:$0xff] }
 0x39d   :  { %7447 = vmatpush1.bf16.msra.mxu1 %v13309_v61  ;;  %v4058_v61 = vld [vmem:[#allocation9 + $0x138] sm:$0xff]  ;;  %v12887_v19 = vcombine.low %v4085_v38, %v4089_v31 }
 0x39e   :  { %7448 = vmatprep.subr.bf16.mxu1 %v13318_v63  ;;  %v12856_v63 = vcombine.high %v4053_v55, %v4057_v57  ;;  %v12858_v16 = vcombine.high %v4054_v60, %v4058_v61  ;;  %v4105_v55 = vld [vmem:[#allocation9 + $0x2b0] sm:$0xff]  ;;  %v4102_v57 = vld [vmem:[#allocation9 + $0x298] sm:$0xff] }
 0x39f   :  { %7285 = vmatpush1.bf16.msra.mxu0 %v13315_v2  ;;  %v4066_v2 = vld [vmem:[#allocation9 + $0x178] sm:$0xff] }
 0x3a0   :  { %7286 = vmatprep.subr.bf16.mxu0 %v13324_v29  ;;  %v12864_v29 = vcombine.high %v4061_v20, %v4065_v0  ;;  %v12865_v21 = vcombine.low %v4062_v1, %v4066_v2 }
 0x3a1   :  { %7449 = vmatpush1.bf16.msra.mxu1 %v13317_v7  ;;  %v12857_v7 = vcombine.low %v4054_v60, %v4058_v61  ;;  %v4106_v60 = vld [vmem:[#allocation9 + $0x2b8] sm:$0xff] }
 0x3a2   :  { %7450 = vmatprep.subr.bf16.mxu1 %v13326_v51  ;;  %v12866_v51 = vcombine.high %v4062_v1, %v4066_v2  ;;  %v4114_v1 = vld [vmem:[#allocation9 + $0x2f8] sm:$0xff] }
 0x3a3   :  { %7287 = vmatpush1.bf16.msra.mxu0 %v13323_v17  ;;  %v12863_v17 = vcombine.low %v4061_v20, %v4065_v0  ;;  %v4113_v20 = vld [vmem:[#allocation9 + $0x2f0] sm:$0xff]  ;;  %v4110_v0 = vld [vmem:[#allocation9 + $0x2d8] sm:$0xff] }
 0x3a4   :  { %7461 = vmatprep.subr.bf16.mxu0 %v12824_v23  ;;  %v12874_v23 = vcombine.high %v4070_v12, %v4074_v14  ;;  %v4122_v12 = vld [vmem:[#allocation9 + $0x338] sm:$0xff] }
 0x3a5   :  { %7451 = vmatpush1.bf16.msra.mxu1 %v13325_v9  ;;  %v12872_v9 = vcombine.high %v4069_v10, %v4073_v11  ;;  %v4121_v10 = vld [vmem:[#allocation9 + $0x330] sm:$0xff]  ;;  %v4118_v11 = vld [vmem:[#allocation9 + $0x318] sm:$0xff] }
 0x3a6   :  { %7625 = vmatprep.subr.bf16.mxu1 %v12826_v24  ;;  %7289 = vmatmul.mubr.bf16.vlgmr.msra.gmra.mrb[32].mxu0 %v14804_v28  ;;  %v4077_v24 = vld [vmem:[#allocation9 + $0x1d0] sm:$0xff] }
 0x3a7   :  { %7462 = vmatpush1.bf16.msra.mxu0 %v12823_v26  ;;  %7493 = vmatprep.mubr.bf16.mxu0 %v14713_v18  ;;  %v4082_v26 = vld [vmem:[#allocation9 + $0x1f8] sm:$0xff]  ;;  %v12879_v62 = vcombine.low %v4077_v24, %v4081_v34 }
 0x3a8   :  { %7453 = vmatmul.mubr.bf16.vlgmr.msra.gmra.mrb[32].mxu1 %v14804_v28  ;;  %7463 = vmatprep.subr.bf16.mxu0 %v12832_v45  ;;  %v12882_v45 = vcombine.high %v4078_v25, %v4082_v26 }
 0x3a9   :  { %7626 = vmatpush1.bf16.msra.mxu1 %v12825_v30  ;;  %7657 = vmatprep.mubr.bf16.mxu1 %v14713_v18  ;;  %v12847_v18 = vcombine.low %v4045_v58, %v4049_v46  ;;  %v12880_v30 = vcombine.high %v4077_v24, %v4081_v34  ;;  %v4097_v58 = vld [vmem:[#allocation9 + $0x270] sm:$0xff]  ;;  %v4094_v46 = vld [vmem:[#allocation9 + $0x258] sm:$0xff] }
 0x3aa   :  { %7627 = vmatprep.subr.bf16.mxu1 %v12834_v32  ;;  %v4086_v32 = vld [vmem:[#allocation9 + $0x218] sm:$0xff]  ;;  %v4129_v24 = vld [vmem:[#allocation9 + $0x370] sm:$0xff] }
 0x3ab   :  { %7464 = vmatpush1.bf16.msra.mxu0 %v12831_v37  ;;  %v12881_v37 = vcombine.low %v4078_v25, %v4082_v26  ;;  %v4126_v34 = vld [vmem:[#allocation9 + $0x358] sm:$0xff] }
 0x3ac   :  { %7465 = vmatprep.subr.bf16.mxu0 %v12840_v41  ;;  %v12890_v41 = vcombine.high %v4086_v32, %v4090_v40  ;;  %v4130_v25 = vld [vmem:[#allocation9 + $0x378] sm:$0xff] }
 0x3ad   :  { %7628 = vmatpush1.bf16.msra.mxu1 %v12833_v33  ;;  %v12888_v33 = vcombine.high %v4085_v38, %v4089_v31  ;;  %v4137_v38 = vld [vmem:[#allocation9 + $0x3b0] sm:$0xff]  ;;  %v4134_v31 = vld [vmem:[#allocation9 + $0x398] sm:$0xff] }
 0x3ae   :  { %7629 = vmatprep.subr.bf16.mxu1 %v12842_v44  ;;  %v4093_v44 = vld [vmem:[#allocation9 + $0x250] sm:$0xff] }
 0x3af   :  { %7466 = vmatpush1.bf16.msra.mxu0 %v12839_v8  ;;  %v12889_v8 = vcombine.low %v4086_v32, %v4090_v40  ;;  %v12895_v61 = vcombine.low %v4093_v44, %v4097_v58  ;;  %v4138_v32 = vld [vmem:[#allocation9 + $0x3b8] sm:$0xff] }
 0x3b0   :  { %7467 = vmatprep.subr.bf16.mxu0 %v12848_v50  ;;  %v12898_v50 = vcombine.high %v4094_v46, %v4098_v47 }
 0x3b1   :  { %7630 = vmatpush1.bf16.msra.mxu1 %v12841_v5  ;;  %v12896_v5 = vcombine.high %v4093_v44, %v4097_v58  ;;  %v4145_v44 = vld [vmem:[#allocation9 + $0x3f0] sm:$0xff]  ;;  %v4142_v58 = vld [vmem:[#allocation9 + $0x3d8] sm:$0xff] }
 0x3b2   :  { %7631 = vmatprep.subr.bf16.mxu1 %v12850_v52  ;;  %v4101_v52 = vld [vmem:[#allocation9 + $0x290] sm:$0xff] }
 0x3b3   :  { %7468 = vmatpush1.bf16.msra.mxu0 %v12847_v18  ;;  %v12897_v18 = vcombine.low %v4094_v46, %v4098_v47  ;;  %v12903_v2 = vcombine.low %v4101_v52, %v4105_v55  ;;  %v4146_v46 = vld [vmem:[#allocation9 + $0x3f8] sm:$0xff] }
 0x3b4   :  { %7469 = vmatprep.subr.bf16.mxu0 %v12856_v63  ;;  %v12906_v63 = vcombine.high %v4102_v57, %v4106_v60 }
 0x3b5   :  { %7632 = vmatpush1.bf16.msra.mxu1 %v12849_v35  ;;  %v12904_v35 = vcombine.high %v4101_v52, %v4105_v55  ;;  %v4153_v52 = vld [vmem:[#allocation9 + $0x430] sm:$0xff]  ;;  %v4150_v55 = vld [vmem:[#allocation9 + $0x418] sm:$0xff] }
 0x3b6   :  { %7633 = vmatprep.subr.bf16.mxu1 %v12858_v16  ;;  %v4109_v16 = vld [vmem:[#allocation9 + $0x2d0] sm:$0xff] }
 0x3b7   :  { %7470 = vmatpush1.bf16.msra.mxu0 %v12855_v3  ;;  %v12905_v3 = vcombine.low %v4102_v57, %v4106_v60  ;;  %v12911_v14 = vcombine.low %v4109_v16, %v4113_v20  ;;  %v4154_v57 = vld [vmem:[#allocation9 + $0x438] sm:$0xff] }
 0x3b8   :  { %7471 = vmatprep.subr.bf16.mxu0 %v12864_v29  ;;  %v12914_v29 = vcombine.high %v4110_v0, %v4114_v1 }
 0x3b9   :  { %7634 = vmatpush1.bf16.msra.mxu1 %v12857_v7  ;;  %v12912_v7 = vcombine.high %v4109_v16, %v4113_v20  ;;  %v4161_v16 = vld [vmem:[#allocation9 + $0x470] sm:$0xff] }
 0x3ba   :  { %7635 = vmatprep.subr.bf16.mxu1 %v12866_v51  ;;  %v4117_v51 = vld [vmem:[#allocation9 + $0x310] sm:$0xff] }
 0x3bb   :  { %7472 = vmatpush1.bf16.msra.mxu0 %v12863_v17  ;;  %v12913_v17 = vcombine.low %v4110_v0, %v4114_v1  ;;  %v12919_v26 = vcombine.low %v4117_v51, %v4121_v10  ;;  %v4158_v0 = vld [vmem:[#allocation9 + $0x458] sm:$0xff] }
 0x3bc   :  { %7473 = vmatprep.subr.bf16.mxu0 %v12872_v9  ;;  %v12922_v9 = vcombine.high %v4118_v11, %v4122_v12  ;;  %v4162_v1 = vld [vmem:[#allocation9 + $0x478] sm:$0xff] }
 0x3bd   :  { %7636 = vmatpush1.bf16.msra.mxu1 %v12865_v21  ;;  %v12920_v21 = vcombine.high %v4117_v51, %v4121_v10  ;;  %v12962_v51 = vcombine.high %v4158_v0, %v4162_v1  ;;  %v4166_v10 = vld [vmem:[#allocation9 + $0x498] sm:$0xff] }
 0x3be   :  { %7637 = vmatprep.subr.bf16.mxu1 %v12874_v23  ;;  %v4125_v23 = vld [vmem:[#allocation9 + $0x350] sm:$0xff] }
 0x3bf   :  { %7474 = vmatpush1.bf16.msra.mxu0 %v12871_v22  ;;  %v12921_v22 = vcombine.low %v4118_v11, %v4122_v12  ;;  %v12927_v40 = vcombine.low %v4125_v23, %v4129_v24  ;;  %v4170_v11 = vld [vmem:[#allocation9 + $0x4b8] sm:$0xff] }
 0x3c0   :  { %7475 = vmatprep.subr.bf16.mxu0 %v12880_v30  ;;  %v12930_v30 = vcombine.high %v4126_v34, %v4130_v25 }
 0x3c1   :  { %7638 = vmatpush1.bf16.msra.mxu1 %v12873_v27  ;;  %v12928_v27 = vcombine.high %v4125_v23, %v4129_v24  ;;  %v4177_v23 = vld [vmem:[#allocation9 + $0x4f0] sm:$0xff]  ;;  %v4174_v24 = vld [vmem:[#allocation9 + $0x4d8] sm:$0xff] }
 0x3c2   :  { %7639 = vmatprep.subr.bf16.mxu1 %v12882_v45  ;;  %v4133_v45 = vld [vmem:[#allocation9 + $0x390] sm:$0xff] }
 0x3c3   :  { %7476 = vmatpush1.bf16.msra.mxu0 %v12879_v62  ;;  %v12929_v62 = vcombine.low %v4126_v34, %v4130_v25  ;;  %v12935_v47 = vcombine.low %v4133_v45, %v4137_v38  ;;  %v4178_v34 = vld [vmem:[#allocation9 + $0x4f8] sm:$0xff] }
 0x3c4   :  { %7477 = vmatprep.subr.bf16.mxu0 %v12888_v33  ;;  %v12938_v33 = vcombine.high %v4134_v31, %v4138_v32 }
 0x3c5   :  { %7640 = vmatpush1.bf16.msra.mxu1 %v12881_v37  ;;  %v12936_v37 = vcombine.high %v4133_v45, %v4137_v38  ;;  %v4182_v45 = vld [vmem:[#allocation9 + $0x518] sm:$0xff] }
 0x3c6   :  { %7641 = vmatprep.subr.bf16.mxu1 %v12890_v41  ;;  %v4141_v41 = vld [vmem:[#allocation9 + $0x3d0] sm:$0xff]  ;;  %v4186_v38 = vld [vmem:[#allocation9 + $0x538] sm:$0xff] }
 0x3c7   :  { %7478 = vmatpush1.bf16.msra.mxu0 %v12887_v19  ;;  %v12937_v19 = vcombine.low %v4134_v31, %v4138_v32  ;;  %v12943_v60 = vcombine.low %v4141_v41, %v4145_v44  ;;  %v12977_v31 = vcombine.low %v4174_v24, %v4178_v34 }
 0x3c8   :  { %7479 = vmatprep.subr.bf16.mxu0 %v12896_v5  ;;  %v12946_v5 = vcombine.high %v4142_v58, %v4146_v46 }
 0x3c9   :  { %7642 = vmatpush1.bf16.msra.mxu1 %v12889_v8  ;;  %v12944_v8 = vcombine.high %v4141_v41, %v4145_v44  ;;  %v4194_v41 = vld [vmem:[#allocation9 + $0x578] sm:$0xff] }
 0x3ca   :  { %7643 = vmatprep.subr.bf16.mxu1 %v12898_v50  ;;  %v4149_v50 = vld [vmem:[#allocation9 + $0x410] sm:$0xff] }
 0x3cb   :  { %7480 = vmatpush1.bf16.msra.mxu0 %v12895_v61  ;;  %v12945_v61 = vcombine.low %v4142_v58, %v4146_v46  ;;  %v12951_v20 = vcombine.low %v4149_v50, %v4153_v52  ;;  %v12985_v58 = vcombine.low %v4182_v45, %v4186_v38 }
 0x3cc   :  { %7481 = vmatprep.subr.bf16.mxu0 %v12904_v35  ;;  %v12954_v35 = vcombine.high %v4150_v55, %v4154_v57 }
 0x3cd   :  { %7644 = vmatpush1.bf16.msra.mxu1 %v12897_v18  ;;  %v12952_v18 = vcombine.high %v4149_v50, %v4153_v52  ;;  %v4202_v50 = vld [vmem:[#allocation9 + $0x5b8] sm:$0xff] }
 0x3ce   :  { %7645 = vmatprep.subr.bf16.mxu1 %v12906_v63  ;;  %v4157_v63 = vld [vmem:[#allocation9 + $0x450] sm:$0xff] }
 0x3cf   :  { %7482 = vmatpush1.bf16.msra.mxu0 %v12903_v2  ;;  %v12953_v2 = vcombine.low %v4150_v55, %v4154_v57  ;;  %v12959_v12 = vcombine.low %v4157_v63, %v4161_v16 }
 0x3d0   :  { %7483 = vmatprep.subr.bf16.mxu0 %v12912_v7  ;;  %v4165_v7 = vld [vmem:[#allocation9 + $0x490] sm:$0xff] }
 0x3d1   :  { %7646 = vmatpush1.bf16.msra.mxu1 %v12905_v3  ;;  %v12960_v3 = vcombine.high %v4157_v63, %v4161_v16  ;;  %v4210_v63 = vld [vmem:[#allocation9 + $0x5f8] sm:$0xff] }
 0x3d2   :  { %7647 = vmatprep.subr.bf16.mxu1 %v12914_v29  ;;  %v4169_v29 = vld [vmem:[#allocation9 + $0x4b0] sm:$0xff] }
 0x3d3   :  { %7484 = vmatpush1.bf16.msra.mxu0 %v12911_v14  ;;  %v12961_v14 = vcombine.low %v4158_v0, %v4162_v1  ;;  %v12967_v25 = vcombine.low %v4165_v7, %v4169_v29 }
 0x3d4   :  { %7485 = vmatprep.subr.bf16.mxu0 %v12920_v21  ;;  %v12970_v21 = vcombine.high %v4166_v10, %v4170_v11 }
 0x3d5   :  { %7648 = vmatpush1.bf16.msra.mxu1 %v12913_v17  ;;  %v12968_v17 = vcombine.high %v4165_v7, %v4169_v29  ;;  %v4214_v7 = vld [vmem:[#allocation9 + $0x618] sm:$0xff] }
 0x3d6   :  { %7649 = vmatprep.subr.bf16.mxu1 %v12922_v9  ;;  %v4173_v9 = vld [vmem:[#allocation9 + $0x4d0] sm:$0xff]  ;;  %v4218_v29 = vld [vmem:[#allocation9 + $0x638] sm:$0xff] }
 0x3d7   :  { %7486 = vmatpush1.bf16.msra.mxu0 %v12919_v26  ;;  %v12976_v26 = vcombine.high %v4173_v9, %v4177_v23 }
 0x3d8   :  { %7487 = vmatprep.subr.bf16.mxu0 %v12928_v27  ;;  %v4181_v27 = vld [vmem:[#allocation9 + $0x510] sm:$0xff] }
 0x3d9   :  { %7650 = vmatpush1.bf16.msra.mxu1 %v12921_v22  ;;  %v12978_v22 = vcombine.high %v4174_v24, %v4178_v34  ;;  %v13017_v24 = vcombine.low %v4214_v7, %v4218_v29 }
 0x3da   :  { %7651 = vmatprep.subr.bf16.mxu1 %v12930_v30  ;;  %v4185_v30 = vld [vmem:[#allocation9 + $0x530] sm:$0xff] }
 0x3db   :  { %7488 = vmatpush1.bf16.msra.mxu0 %v12927_v40  ;;  %v12984_v32 = vcombine.high %v4181_v27, %v4185_v30  ;;  %v12986_v40 = vcombine.high %v4182_v45, %v4186_v38  ;;  %v12983_v44 = vcombine.low %v4181_v27, %v4185_v30  ;;  %v4234_v27 = vld [vmem:[#allocation9 + $0x6b8] sm:$0xff] }
 0x3dc   :  { %7489 = vmatprep.subr.bf16.mxu0 %v12936_v37  ;;  %v4193_v37 = vld [vmem:[#allocation9 + $0x570] sm:$0xff] }
 0x3dd   :  { %7652 = vmatpush1.bf16.msra.mxu1 %v12929_v62  ;;  %v4189_v62 = vld [vmem:[#allocation9 + $0x550] sm:$0xff] }
 0x3de   :  { %7653 = vmatprep.subr.bf16.mxu1 %v12938_v33  ;;  %v4190_v33 = vld [vmem:[#allocation9 + $0x558] sm:$0xff]  ;;  %v12992_v46 = vcombine.high %v4189_v62, %v4193_v37  ;;  %v12991_v52 = vcombine.low %v4189_v62, %v4193_v37 }
 0x3df   :  { %7490 = vmatpush1.bf16.msra.mxu0 %v12935_v47  ;;  %v12994_v47 = vcombine.high %v4190_v33, %v4194_v41  ;;  %v12993_v55 = vcombine.low %v4190_v33, %v4194_v41  ;;  %v4242_v62 = vld [vmem:[#allocation9 + $0x6f8] sm:$0xff] }
 0x3e0   :  { %7491 = vmatprep.subr.bf16.mxu0 %v12944_v8  ;;  %v4201_v8 = vld [vmem:[#allocation9 + $0x5b0] sm:$0xff] }
 0x3e1   :  { %7654 = vmatpush1.bf16.msra.mxu1 %v12937_v19  ;;  %v4197_v19 = vld [vmem:[#allocation9 + $0x590] sm:$0xff] }
 0x3e2   :  { %7655 = vmatprep.subr.bf16.mxu1 %v12946_v5  ;;  %v4198_v5 = vld [vmem:[#allocation9 + $0x598] sm:$0xff]  ;;  %v13000_v57 = vcombine.high %v4197_v19, %v4201_v8  ;;  %v12999_v16 = vcombine.low %v4197_v19, %v4201_v8 }
 0x3e3   :  { %7492 = vmatpush1.bf16.msra.mxu0 %v12943_v60  ;;  %v13002_v60 = vcombine.high %v4198_v5, %v4202_v50  ;;  %v4250_v19 = vld [vmem:[#allocation9 + $0x738] sm:$0xff] }
 0x3e4   :  { %7502 = vmatprep.subr.bf16.mxu0 %v12952_v18  ;;  %v4209_v18 = vld [vmem:[#allocation9 + $0x5f0] sm:$0xff] }
 0x3e5   :  { %7656 = vmatpush1.bf16.msra.mxu1 %v12945_v61  ;;  %v4205_v61 = vld [vmem:[#allocation9 + $0x5d0] sm:$0xff] }
 0x3e6   :  { %7666 = vmatprep.subr.bf16.mxu1 %v12954_v35  ;;  %7494 = vmatmul.mubr.bf16.vlgmr.msra.gmra.mrb[36].mxu0 %v14735_v13  ;;  %v4206_v35 = vld [vmem:[#allocation9 + $0x5d8] sm:$0xff]  ;;  %v13008_v0 = vcombine.high %v4205_v61, %v4209_v18 }
 0x3e7   :  { %7503 = vmatpush1.bf16.msra.mxu0 %v12951_v20  ;;  %7534 = vmatprep.mubr.bf16.mxu0 %v14737_v56  ;;  %v13001_v20 = vcombine.low %v4198_v5, %v4202_v50  ;;  %v13010_v1 = vcombine.high %v4206_v35, %v4210_v63 }
 0x3e8   :  { %7658 = vmatmul.mubr.bf16.vlgmr.msra.gmra.mrb[36].mxu1 %v14735_v13  ;;  %7504 = vmatprep.subr.bf16.mxu0 %v12960_v3  ;;  %v12969_v13 = vcombine.low %v4166_v10, %v4170_v11  ;;  %v4217_v3 = vld [vmem:[#allocation9 + $0x630] sm:$0xff]  ;;  %v13009_v10 = vcombine.low %v4206_v35, %v4210_v63 }
 0x3e9   :  { %7667 = vmatpush1.bf16.msra.mxu1 %v12953_v2  ;;  %7698 = vmatprep.mubr.bf16.mxu1 %v14737_v56  ;;  %v12975_v56 = vcombine.low %v4173_v9, %v4177_v23  ;;  %v4213_v2 = vld [vmem:[#allocation9 + $0x610] sm:$0xff]  ;;  %v4226_v9 = vld [vmem:[#allocation9 + $0x678] sm:$0xff] }
 0x3ea   :  { %7668 = vmatprep.subr.bf16.mxu1 %v12962_v51  ;;  %v13007_v51 = vcombine.low %v4205_v61, %v4209_v18  ;;  %v13016_v11 = vcombine.high %v4213_v2, %v4217_v3  ;;  %v13015_v23 = vcombine.low %v4213_v2, %v4217_v3  ;;  %v4258_v61 = vld [vmem:[#allocation9 + $0x778] sm:$0xff] }
 0x3eb   :  { %7505 = vmatpush1.bf16.msra.mxu0 %v12959_v12  ;;  %v13018_v12 = vcombine.high %v4214_v7, %v4218_v29  ;;  %v4266_v2 = vld [vmem:[#allocation9 + $0x7b8] sm:$0xff] }
 0x3ec   :  { %7506 = vmatprep.subr.bf16.mxu0 %v12968_v17  ;;  %v4225_v17 = vld [vmem:[#allocation9 + $0x670] sm:$0xff] }
 0x3ed   :  { %7669 = vmatpush1.bf16.msra.mxu1 %v12961_v14  ;;  %v4221_v14 = vld [vmem:[#allocation9 + $0x650] sm:$0xff] }
 0x3ee   :  { %7670 = vmatprep.subr.bf16.mxu1 %v12970_v21  ;;  %v4222_v21 = vld [vmem:[#allocation9 + $0x658] sm:$0xff]  ;;  %v13024_v34 = vcombine.high %v4221_v14, %v4225_v17  ;;  %v13023_v30 = vcombine.low %v4221_v14, %v4225_v17 }
 0x3ef   :  { %7507 = vmatpush1.bf16.msra.mxu0 %v12967_v25  ;;  %v13026_v25 = vcombine.high %v4222_v21, %v4226_v9  ;;  %v13025_v45 = vcombine.low %v4222_v21, %v4226_v9  ;;  %v4274_v14 = vld [vmem:[#allocation9 + $0x7f8] sm:$0xff] }
 0x3f0   :  { %7508 = vmatprep.subr.bf16.mxu0 %v12976_v26  ;;  %v4233_v26 = vld [vmem:[#allocation9 + $0x6b0] sm:$0xff] }
 0x3f1   :  { %7671 = vmatpush1.bf16.msra.mxu1 %v12969_v13  ;;  %v4229_v13 = vld [vmem:[#allocation9 + $0x690] sm:$0xff] }
 0x3f2   :  { %7672 = vmatprep.subr.bf16.mxu1 %v12978_v22  ;;  %v4230_v22 = vld [vmem:[#allocation9 + $0x698] sm:$0xff]  ;;  %v13032_v38 = vcombine.high %v4229_v13, %v4233_v26  ;;  %v13031_v37 = vcombine.low %v4229_v13, %v4233_v26 }
 0x3f3   :  { %7509 = vmatpush1.bf16.msra.mxu0 %v12975_v56  ;;  %v13034_v56 = vcombine.high %v4230_v22, %v4234_v27  ;;  %v13033_v33 = vcombine.low %v4230_v22, %v4234_v27  ;;  %v4282_v13 = vld [vmem:[#allocation9 + $0x838] sm:$0xff] }
 0x3f4   :  { %7510 = vmatprep.subr.bf16.mxu0 %v12984_v32  ;;  %v4241_v32 = vld [vmem:[#allocation9 + $0x6f0] sm:$0xff] }
 0x3f5   :  { %7673 = vmatpush1.bf16.msra.mxu1 %v12977_v31  ;;  %v4237_v31 = vld [vmem:[#allocation9 + $0x6d0] sm:$0xff] }
 0x3f6   :  { %7674 = vmatprep.subr.bf16.mxu1 %v12986_v40  ;;  %v4238_v40 = vld [vmem:[#allocation9 + $0x6d8] sm:$0xff]  ;;  %v13040_v41 = vcombine.high %v4237_v31, %v4241_v32  ;;  %v13039_v8 = vcombine.low %v4237_v31, %v4241_v32 }
 0x3f7   :  { %7511 = vmatpush1.bf16.msra.mxu0 %v12983_v44  ;;  %v13042_v44 = vcombine.high %v4238_v40, %v4242_v62  ;;  %v13041_v5 = vcombine.low %v4238_v40, %v4242_v62  ;;  %v4286_v31 = vld [vmem:[#allocation9 + $0x858] sm:$0xff] }
 0x3f8   :  { %7512 = vmatprep.subr.bf16.mxu0 %v12992_v46  ;;  %v4249_v46 = vld [vmem:[#allocation9 + $0x730] sm:$0xff]  ;;  %v4290_v32 = vld [vmem:[#allocation9 + $0x878] sm:$0xff] }
 0x3f9   :  { %7675 = vmatpush1.bf16.msra.mxu1 %v12985_v58  ;;  %v4245_v58 = vld [vmem:[#allocation9 + $0x710] sm:$0xff] }
 0x3fa   :  { %7676 = vmatprep.subr.bf16.mxu1 %v12994_v47  ;;  %v4246_v47 = vld [vmem:[#allocation9 + $0x718] sm:$0xff]  ;;  %v13048_v50 = vcombine.high %v4245_v58, %v4249_v46  ;;  %v13047_v18 = vcombine.low %v4245_v58, %v4249_v46 }
 0x3fb   :  { %7513 = vmatpush1.bf16.msra.mxu0 %v12991_v52  ;;  %v13050_v52 = vcombine.high %v4246_v47, %v4250_v19  ;;  %v13049_v35 = vcombine.low %v4246_v47, %v4250_v19  ;;  %v4298_v58 = vld [vmem:[#allocation9 + $0x8b8] sm:$0xff]  ;;  %v13089_v47 = vcombine.low %v4286_v31, %v4290_v32 }
 0x3fc   :  { %7514 = vmatprep.subr.bf16.mxu0 %v13000_v57  ;;  %v4257_v57 = vld [vmem:[#allocation9 + $0x770] sm:$0xff] }
 0x3fd   :  { %7677 = vmatpush1.bf16.msra.mxu1 %v12993_v55  ;;  %v4253_v55 = vld [vmem:[#allocation9 + $0x750] sm:$0xff] }
 0x3fe   :  { %7678 = vmatprep.subr.bf16.mxu1 %v13002_v60  ;;  %v4254_v60 = vld [vmem:[#allocation9 + $0x758] sm:$0xff]  ;;  %v13056_v63 = vcombine.high %v4253_v55, %v4257_v57  ;;  %v13055_v3 = vcombine.low %v4253_v55, %v4257_v57 }
 0x3ff   :  { %7515 = vmatpush1.bf16.msra.mxu0 %v12999_v16  ;;  %v13058_v16 = vcombine.high %v4254_v60, %v4258_v61  ;;  %v13057_v7 = vcombine.low %v4254_v60, %v4258_v61  ;;  %v4306_v55 = vld [vmem:[#allocation9 + $0x8f8] sm:$0xff] }
 0x400   :  { %7516 = vmatprep.subr.bf16.mxu0 %v13008_v0  ;;  %v4265_v0 = vld [vmem:[#allocation9 + $0x7b0] sm:$0xff] }
 0x401   :  { %7679 = vmatpush1.bf16.msra.mxu1 %v13001_v20  ;;  %v4261_v20 = vld [vmem:[#allocation9 + $0x790] sm:$0xff] }
 0x402   :  { %7680 = vmatprep.subr.bf16.mxu1 %v13010_v1  ;;  %v4262_v1 = vld [vmem:[#allocation9 + $0x798] sm:$0xff]  ;;  %v13064_v29 = vcombine.high %v4261_v20, %v4265_v0  ;;  %v13063_v17 = vcombine.low %v4261_v20, %v4265_v0 }
 0x403   :  { %7517 = vmatpush1.bf16.msra.mxu0 %v13007_v51  ;;  %v13066_v51 = vcombine.high %v4262_v1, %v4266_v2  ;;  %v13065_v21 = vcombine.low %v4262_v1, %v4266_v2  ;;  %v4317_v2 = vld [vmem:[#allocation9 + $0x950] sm:$0xff] }
 0x404   :  { %7518 = vmatprep.subr.bf16.mxu0 %v13016_v11  ;;  %v4273_v11 = vld [vmem:[#allocation9 + $0x7f0] sm:$0xff] }
 0x405   :  { %7681 = vmatpush1.bf16.msra.mxu1 %v13009_v10  ;;  %v4269_v10 = vld [vmem:[#allocation9 + $0x7d0] sm:$0xff] }
 0x406   :  { %7682 = vmatprep.subr.bf16.mxu1 %v13018_v12  ;;  %v4270_v12 = vld [vmem:[#allocation9 + $0x7d8] sm:$0xff]  ;;  %v13072_v9 = vcombine.high %v4269_v10, %v4273_v11  ;;  %v13071_v26 = vcombine.low %v4269_v10, %v4273_v11 }
 0x407   :  { %7519 = vmatpush1.bf16.msra.mxu0 %v13015_v23  ;;  %v13074_v23 = vcombine.high %v4270_v12, %v4274_v14  ;;  %v13073_v22 = vcombine.low %v4270_v12, %v4274_v14  ;;  %v4325_v14 = vld [vmem:[#allocation9 + $0x990] sm:$0xff] }
 0x408   :  { %7520 = vmatprep.subr.bf16.mxu0 %v13024_v34  ;;  %v4281_v34 = vld [vmem:[#allocation9 + $0x830] sm:$0xff] }
 0x409   :  { %7683 = vmatpush1.bf16.msra.mxu1 %v13017_v24  ;;  %v4277_v24 = vld [vmem:[#allocation9 + $0x810] sm:$0xff] }
 0x40a   :  { %7684 = vmatprep.subr.bf16.mxu1 %v13026_v25  ;;  %v4278_v25 = vld [vmem:[#allocation9 + $0x818] sm:$0xff]  ;;  %v13080_v27 = vcombine.high %v4277_v24, %v4281_v34 }
 0x40b   :  { %7521 = vmatpush1.bf16.msra.mxu0 %v13023_v30  ;;  %v13082_v30 = vcombine.high %v4278_v25, %v4282_v13  ;;  %v13081_v40 = vcombine.low %v4278_v25, %v4282_v13  ;;  %v4333_v13 = vld [vmem:[#allocation9 + $0x9d0] sm:$0xff] }
 0x40c   :  { %7522 = vmatprep.subr.bf16.mxu0 %v13032_v38  ;;  %v4289_v38 = vld [vmem:[#allocation9 + $0x870] sm:$0xff] }
 0x40d   :  { %7685 = vmatpush1.bf16.msra.mxu1 %v13025_v45  ;;  %v4285_v45 = vld [vmem:[#allocation9 + $0x850] sm:$0xff] }
 0x40e   :  { %7686 = vmatprep.subr.bf16.mxu1 %v13034_v56  ;;  %v13079_v56 = vcombine.low %v4277_v24, %v4281_v34  ;;  %v13088_v62 = vcombine.high %v4285_v45, %v4289_v38  ;;  %v13087_v46 = vcombine.low %v4285_v45, %v4289_v38 }
 0x40f   :  { %7523 = vmatpush1.bf16.msra.mxu0 %v13031_v37  ;;  %v4293_v37 = vld [vmem:[#allocation9 + $0x890] sm:$0xff] }
 0x410   :  { %7524 = vmatprep.subr.bf16.mxu0 %v13040_v41  ;;  %v13090_v41 = vcombine.high %v4286_v31, %v4290_v32  ;;  %v4341_v31 = vld [vmem:[#allocation9 + $0xa10] sm:$0xff] }
 0x411   :  { %7687 = vmatpush1.bf16.msra.mxu1 %v13033_v33  ;;  %v4297_v33 = vld [vmem:[#allocation9 + $0x8b0] sm:$0xff] }
 0x412   :  { %7688 = vmatprep.subr.bf16.mxu1 %v13042_v44  ;;  %v4294_v44 = vld [vmem:[#allocation9 + $0x898] sm:$0xff]  ;;  %v13096_v19 = vcombine.high %v4293_v37, %v4297_v33  ;;  %v13095_v57 = vcombine.low %v4293_v37, %v4297_v33  ;;  %v4345_v32 = vld [vmem:[#allocation9 + $0xa30] sm:$0xff] }
 0x413   :  { %7525 = vmatpush1.bf16.msra.mxu0 %v13039_v8  ;;  %v13098_v8 = vcombine.high %v4294_v44, %v4298_v58 }
 0x414   :  { %7526 = vmatprep.subr.bf16.mxu0 %v13048_v50  ;;  %v4305_v50 = vld [vmem:[#allocation9 + $0x8f0] sm:$0xff] }
 0x415   :  { %7689 = vmatpush1.bf16.msra.mxu1 %v13041_v5  ;;  %v4301_v5 = vld [vmem:[#allocation9 + $0x8d0] sm:$0xff] }
 0x416   :  { %7690 = vmatprep.subr.bf16.mxu1 %v13050_v52  ;;  %v4302_v52 = vld [vmem:[#allocation9 + $0x8d8] sm:$0xff]  ;;  %v13104_v60 = vcombine.high %v4301_v5, %v4305_v50 }
 0x417   :  { %7527 = vmatpush1.bf16.msra.mxu0 %v13047_v18  ;;  %v13106_v61 = vcombine.high %v4302_v52, %v4306_v55  ;;  %v4309_v18 = vld [vmem:[#allocation9 + $0x910] sm:$0xff]  ;;  %v13105_v20 = vcombine.low %v4302_v52, %v4306_v55 }
 0x418   :  { %7528 = vmatprep.subr.bf16.mxu0 %v13056_v63  ;;  %v4310_v63 = vld [vmem:[#allocation9 + $0x918] sm:$0xff]  ;;  %v4357_v55 = vld [vmem:[#allocation9 + $0xa90] sm:$0xff] }
 0x419   :  { %7691 = vmatpush1.bf16.msra.mxu1 %v13049_v35  ;;  %v4313_v35 = vld [vmem:[#allocation9 + $0x930] sm:$0xff] }
 0x41a   :  { %7692 = vmatprep.subr.bf16.mxu1 %v13058_v16  ;;  %v4314_v16 = vld [vmem:[#allocation9 + $0x938] sm:$0xff]  ;;  %v13112_v0 = vcombine.high %v4309_v18, %v4313_v35 }
 0x41b   :  { %7529 = vmatpush1.bf16.msra.mxu0 %v13055_v3  ;;  %v13114_v1 = vcombine.high %v4310_v63, %v4314_v16  ;;  %v4321_v3 = vld [vmem:[#allocation9 + $0x970] sm:$0xff]  ;;  %v13113_v10 = vcombine.low %v4310_v63, %v4314_v16 }
 0x41c   :  { %7530 = vmatprep.subr.bf16.mxu0 %v13064_v29  ;;  %v4322_v29 = vld [vmem:[#allocation9 + $0x978] sm:$0xff]  ;;  %v13120_v11 = vcombine.high %v4317_v2, %v4321_v3  ;;  %v4365_v16 = vld [vmem:[#allocation9 + $0xad0] sm:$0xff] }
 0x41d   :  { %7693 = vmatpush1.bf16.msra.mxu1 %v13057_v7  ;;  %v4318_v7 = vld [vmem:[#allocation9 + $0x958] sm:$0xff] }
 0x41e   :  { %7694 = vmatprep.subr.bf16.mxu1 %v13066_v51  ;;  %v13111_v51 = vcombine.low %v4309_v18, %v4313_v35  ;;  %v13122_v12 = vcombine.high %v4318_v7, %v4322_v29  ;;  %v13121_v24 = vcombine.low %v4318_v7, %v4322_v29  ;;  %v4373_v29 = vld [vmem:[#allocation9 + $0xb10] sm:$0xff] }
 0x41f   :  { %7531 = vmatpush1.bf16.msra.mxu0 %v13063_v17  ;;  %v4329_v17 = vld [vmem:[#allocation9 + $0x9b0] sm:$0xff] }
 0x420   :  { %7532 = vmatprep.subr.bf16.mxu0 %v13072_v9  ;;  %v4330_v9 = vld [vmem:[#allocation9 + $0x9b8] sm:$0xff]  ;;  %v13128_v34 = vcombine.high %v4325_v14, %v4329_v17 }
 0x421   :  { %7695 = vmatpush1.bf16.msra.mxu1 %v13065_v21  ;;  %v4326_v21 = vld [vmem:[#allocation9 + $0x998] sm:$0xff] }
 0x422   :  { %7696 = vmatprep.subr.bf16.mxu1 %v13074_v23  ;;  %v13119_v23 = vcombine.low %v4317_v2, %v4321_v3  ;;  %v13130_v25 = vcombine.high %v4326_v21, %v4330_v9  ;;  %v13129_v45 = vcombine.low %v4326_v21, %v4330_v9  ;;  %v4381_v9 = vld [vmem:[#allocation9 + $0xb50] sm:$0xff] }
 0x423   :  { %7533 = vmatpush1.bf16.msra.mxu0 %v13071_v26  ;;  %v4337_v26 = vld [vmem:[#allocation9 + $0x9f0] sm:$0xff] }
 0x424   :  { %7543 = vmatprep.subr.bf16.mxu0 %v13080_v27  ;;  %v4338_v27 = vld [vmem:[#allocation9 + $0x9f8] sm:$0xff]  ;;  %v13136_v38 = vcombine.high %v4333_v13, %v4337_v26  ;;  %v13135_v37 = vcombine.low %v4333_v13, %v4337_v26 }
 0x425   :  { %7697 = vmatpush1.bf16.msra.mxu1 %v13073_v22  ;;  %v4334_v22 = vld [vmem:[#allocation9 + $0x9d8] sm:$0xff] }
 0x426   :  { %7707 = vmatprep.subr.bf16.mxu1 %v13082_v30  ;;  %7535 = vmatmul.mubr.bf16.vlgmr.msra.gmra.mrb[36].mxu0 %v14761_v36  ;;  %v13127_v30 = vcombine.low %v4325_v14, %v4329_v17  ;;  %v13137_v33 = vcombine.low %v4334_v22, %v4338_v27 }
 0x427   :  { %7544 = vmatpush1.bf16.msra.mxu0 %v13079_v56  ;;  %7575 = vmatprep.mubr.bf16.mxu0 %v14763_v42  ;;  %v13138_v56 = vcombine.high %v4334_v22, %v4338_v27  ;;  %v4389_v27 = vld [vmem:[#allocation9 + $0xb90] sm:$0xff] }
 0x428   :  { %7699 = vmatmul.mubr.bf16.vlgmr.msra.gmra.mrb[36].mxu1 %v14761_v36  ;;  %7545 = vmatprep.subr.bf16.mxu0 %v13088_v62  ;;  %v13097_v36 = vcombine.low %v4294_v44, %v4298_v58  ;;  %v4346_v62 = vld [vmem:[#allocation9 + $0xa38] sm:$0xff]  ;;  %v4349_v58 = vld [vmem:[#allocation9 + $0xa50] sm:$0xff] }
 0x429   :  { %7708 = vmatpush1.bf16.msra.mxu1 %v13081_v40  ;;  %7739 = vmatprep.mubr.bf16.mxu1 %v14763_v42  ;;  %v13103_v42 = vcombine.low %v4301_v5, %v4305_v50  ;;  %v4342_v40 = vld [vmem:[#allocation9 + $0xa18] sm:$0xff] }
 0x42a   :  { %7709 = vmatprep.subr.bf16.mxu1 %v13090_v41  ;;  %v13144_v41 = vcombine.high %v4341_v31, %v4345_v32  ;;  %v13146_v44 = vcombine.high %v4342_v40, %v4346_v62  ;;  %v13145_v5 = vcombine.low %v4342_v40, %v4346_v62  ;;  %v4397_v62 = vld [vmem:[#allocation9 + $0xbd0] sm:$0xff] }
 0x42b   :  { %7546 = vmatpush1.bf16.msra.mxu0 %v13087_v46  ;;  %v4353_v46 = vld [vmem:[#allocation9 + $0xa70] sm:$0xff] }
 0x42c   :  { %7547 = vmatprep.subr.bf16.mxu0 %v13096_v19  ;;  %v4354_v19 = vld [vmem:[#allocation9 + $0xa78] sm:$0xff]  ;;  %v13152_v50 = vcombine.high %v4349_v58, %v4353_v46 }
 0x42d   :  { %7710 = vmatpush1.bf16.msra.mxu1 %v13089_v47  ;;  %v4350_v47 = vld [vmem:[#allocation9 + $0xa58] sm:$0xff] }
 0x42e   :  { %7711 = vmatprep.subr.bf16.mxu1 %v13098_v8  ;;  %v13143_v8 = vcombine.low %v4341_v31, %v4345_v32  ;;  %v13154_v52 = vcombine.high %v4350_v47, %v4354_v19  ;;  %v13153_v18 = vcombine.low %v4350_v47, %v4354_v19  ;;  %v4405_v19 = vld [vmem:[#allocation9 + $0xc10] sm:$0xff] }
 0x42f   :  { %7548 = vmatpush1.bf16.msra.mxu0 %v13095_v57  ;;  %v4361_v57 = vld [vmem:[#allocation9 + $0xab0] sm:$0xff] }
 0x430   :  { %7549 = vmatprep.subr.bf16.mxu0 %v13104_v60  ;;  %v4362_v60 = vld [vmem:[#allocation9 + $0xab8] sm:$0xff]  ;;  %v13160_v35 = vcombine.high %v4357_v55, %v4361_v57 }
 0x431   :  { %7712 = vmatpush1.bf16.msra.mxu1 %v13097_v36  ;;  %v4358_v36 = vld [vmem:[#allocation9 + $0xa98] sm:$0xff] }
 0x432   :  { %7713 = vmatprep.subr.bf16.mxu1 %v13106_v61  ;;  %v13151_v61 = vcombine.low %v4349_v58, %v4353_v46  ;;  %v13162_v63 = vcombine.high %v4358_v36, %v4362_v60  ;;  %v13161_v2 = vcombine.low %v4358_v36, %v4362_v60  ;;  %v4413_v60 = vld [vmem:[#allocation9 + $0xc50] sm:$0xff] }
 0x433   :  { %7550 = vmatpush1.bf16.msra.mxu0 %v13103_v42  ;;  %v4369_v42 = vld [vmem:[#allocation9 + $0xaf0] sm:$0xff] }
 0x434   :  { %7551 = vmatprep.subr.bf16.mxu0 %v13112_v0  ;;  %v4370_v0 = vld [vmem:[#allocation9 + $0xaf8] sm:$0xff]  ;;  %v13168_v3 = vcombine.high %v4365_v16, %v4369_v42 }
 0x435   :  { %7714 = vmatpush1.bf16.msra.mxu1 %v13105_v20  ;;  %v4366_v20 = vld [vmem:[#allocation9 + $0xad8] sm:$0xff] }
 0x436   :  { %7715 = vmatprep.subr.bf16.mxu1 %v13114_v1  ;;  %v13159_v1 = vcombine.low %v4357_v55, %v4361_v57  ;;  %v13170_v7 = vcombine.high %v4366_v20, %v4370_v0  ;;  %v13169_v14 = vcombine.low %v4366_v20, %v4370_v0  ;;  %v4421_v20 = vld [vmem:[#allocation9 + $0xc90] sm:$0xff] }
 0x437   :  { %7552 = vmatpush1.bf16.msra.mxu0 %v13111_v51  ;;  %v4377_v51 = vld [vmem:[#allocation9 + $0xb30] sm:$0xff] }
 0x438   :  { %7553 = vmatprep.subr.bf16.mxu0 %v13120_v11  ;;  %v4378_v11 = vld [vmem:[#allocation9 + $0xb38] sm:$0xff]  ;;  %v13176_v17 = vcombine.high %v4373_v29, %v4377_v51  ;;  %v4425_v0 = vld [vmem:[#allocation9 + $0xcb0] sm:$0xff] }
 0x439   :  { %7716 = vmatpush1.bf16.msra.mxu1 %v13113_v10  ;;  %v4374_v10 = vld [vmem:[#allocation9 + $0xb18] sm:$0xff] }
 0x43a   :  { %7717 = vmatprep.subr.bf16.mxu1 %v13122_v12  ;;  %v13167_v12 = vcombine.low %v4365_v16, %v4369_v42  ;;  %v13178_v21 = vcombine.high %v4374_v10, %v4378_v11  ;;  %v13177_v13 = vcombine.low %v4374_v10, %v4378_v11  ;;  %v4429_v11 = vld [vmem:[#allocation9 + $0xcd0] sm:$0xff] }
 0x43b   :  { %7554 = vmatpush1.bf16.msra.mxu0 %v13119_v23  ;;  %v4385_v23 = vld [vmem:[#allocation9 + $0xb70] sm:$0xff] }
 0x43c   :  { %7555 = vmatprep.subr.bf16.mxu0 %v13128_v34  ;;  %v4386_v34 = vld [vmem:[#allocation9 + $0xb78] sm:$0xff]  ;;  %v13184_v26 = vcombine.high %v4381_v9, %v4385_v23 }
 0x43d   :  { %7718 = vmatpush1.bf16.msra.mxu1 %v13121_v24  ;;  %v4382_v24 = vld [vmem:[#allocation9 + $0xb58] sm:$0xff] }
 0x43e   :  { %7719 = vmatprep.subr.bf16.mxu1 %v13130_v25  ;;  %v13175_v25 = vcombine.low %v4373_v29, %v4377_v51  ;;  %v13186_v22 = vcombine.high %v4382_v24, %v4386_v34  ;;  %v13185_v31 = vcombine.low %v4382_v24, %v4386_v34  ;;  %v13224_v51 = vcombine.high %v4421_v20, %v4425_v0  ;;  %v4437_v24 = vld [vmem:[#allocation9 + $0xd10] sm:$0xff] }
 0x43f   :  { %7556 = vmatpush1.bf16.msra.mxu0 %v13127_v30  ;;  %v4393_v30 = vld [vmem:[#allocation9 + $0xbb0] sm:$0xff] }
 0x440   :  { %7557 = vmatprep.subr.bf16.mxu0 %v13136_v38  ;;  %v4394_v38 = vld [vmem:[#allocation9 + $0xbb8] sm:$0xff]  ;;  %v13192_v32 = vcombine.high %v4389_v27, %v4393_v30  ;;  %v4441_v34 = vld [vmem:[#allocation9 + $0xd30] sm:$0xff] }
 0x441   :  { %7720 = vmatpush1.bf16.msra.mxu1 %v13129_v45  ;;  %v4390_v45 = vld [vmem:[#allocation9 + $0xb98] sm:$0xff] }
 0x442   :  { %7721 = vmatprep.subr.bf16.mxu1 %v13138_v56  ;;  %v13183_v56 = vcombine.low %v4381_v9, %v4385_v23  ;;  %v13194_v40 = vcombine.high %v4390_v45, %v4394_v38  ;;  %v13193_v58 = vcombine.low %v4390_v45, %v4394_v38  ;;  %v4449_v45 = vld [vmem:[#allocation9 + $0xd70] sm:$0xff]  ;;  %v4446_v38 = vld [vmem:[#allocation9 + $0xd58] sm:$0xff] }
 0x443   :  { %7558 = vmatpush1.bf16.msra.mxu0 %v13135_v37  ;;  %v4401_v37 = vld [vmem:[#allocation9 + $0xbf0] sm:$0xff] }
 0x444   :  { %7559 = vmatprep.subr.bf16.mxu0 %v13144_v41  ;;  %v4402_v41 = vld [vmem:[#allocation9 + $0xbf8] sm:$0xff]  ;;  %v13200_v46 = vcombine.high %v4397_v62, %v4401_v37 }
 0x445   :  { %7722 = vmatpush1.bf16.msra.mxu1 %v13137_v33  ;;  %v4398_v33 = vld [vmem:[#allocation9 + $0xbd8] sm:$0xff] }
 0x446   :  { %7723 = vmatprep.subr.bf16.mxu1 %v13146_v44  ;;  %v13191_v44 = vcombine.low %v4389_v27, %v4393_v30  ;;  %v13202_v47 = vcombine.high %v4398_v33, %v4402_v41  ;;  %v13201_v55 = vcombine.low %v4398_v33, %v4402_v41  ;;  %v4445_v30 = vld [vmem:[#allocation9 + $0xd50] sm:$0xff]  ;;  %v4454_v41 = vld [vmem:[#allocation9 + $0xd98] sm:$0xff] }
 0x447   :  { %7560 = vmatpush1.bf16.msra.mxu0 %v13143_v8  ;;  %v4409_v8 = vld [vmem:[#allocation9 + $0xc30] sm:$0xff] }
 0x448   :  { %7561 = vmatprep.subr.bf16.mxu0 %v13152_v50  ;;  %v4410_v50 = vld [vmem:[#allocation9 + $0xc38] sm:$0xff]  ;;  %v13208_v57 = vcombine.high %v4405_v19, %v4409_v8  ;;  %v4457_v33 = vld [vmem:[#allocation9 + $0xdb0] sm:$0xff] }
 0x449   :  { %7724 = vmatpush1.bf16.msra.mxu1 %v13145_v5  ;;  %v4406_v5 = vld [vmem:[#allocation9 + $0xc18] sm:$0xff] }
 0x44a   :  { %7725 = vmatprep.subr.bf16.mxu1 %v13154_v52  ;;  %v13199_v52 = vcombine.low %v4397_v62, %v4401_v37  ;;  %v13210_v36 = vcombine.high %v4406_v5, %v4410_v50  ;;  %v13209_v16 = vcombine.low %v4406_v5, %v4410_v50  ;;  %v4453_v37 = vld [vmem:[#allocation9 + $0xd90] sm:$0xff] }
 0x44b   :  { %7562 = vmatpush1.bf16.msra.mxu0 %v13151_v61  ;;  %v4417_v61 = vld [vmem:[#allocation9 + $0xc70] sm:$0xff] }
 0x44c   :  { %7563 = vmatprep.subr.bf16.mxu0 %v13160_v35  ;;  %v4414_v35 = vld [vmem:[#allocation9 + $0xc58] sm:$0xff]  ;;  %v13216_v42 = vcombine.high %v4413_v60, %v4417_v61  ;;  %v4461_v5 = vld [vmem:[#allocation9 + $0xdd0] sm:$0xff] }
 0x44d   :  { %7726 = vmatpush1.bf16.msra.mxu1 %v13153_v18  ;;  %v13207_v18 = vcombine.low %v4405_v19, %v4409_v8  ;;  %v4465_v50 = vld [vmem:[#allocation9 + $0xdf0] sm:$0xff] }
 0x44e   :  { %7727 = vmatprep.subr.bf16.mxu1 %v13162_v63  ;;  %v4418_v63 = vld [vmem:[#allocation9 + $0xc78] sm:$0xff] }
 0x44f   :  { %7564 = vmatpush1.bf16.msra.mxu0 %v13159_v1  ;;  %v13218_v1 = vcombine.high %v4414_v35, %v4418_v63  ;;  %v13217_v29 = vcombine.low %v4414_v35, %v4418_v63 }
 0x450   :  { %7565 = vmatprep.subr.bf16.mxu0 %v13168_v3  ;;  %v4426_v3 = vld [vmem:[#allocation9 + $0xcb8] sm:$0xff] }
 0x451   :  { %7728 = vmatpush1.bf16.msra.mxu1 %v13161_v2  ;;  %v4422_v2 = vld [vmem:[#allocation9 + $0xc98] sm:$0xff] }
 0x452   :  { %7729 = vmatprep.subr.bf16.mxu1 %v13170_v7  ;;  %v13215_v7 = vcombine.low %v4413_v60, %v4417_v61  ;;  %v13226_v10 = vcombine.high %v4422_v2, %v4426_v3 }
 0x453   :  { %7566 = vmatpush1.bf16.msra.mxu0 %v13167_v12  ;;  %v4433_v12 = vld [vmem:[#allocation9 + $0xcf0] sm:$0xff] }
 0x454   :  { %7567 = vmatprep.subr.bf16.mxu0 %v13176_v17  ;;  %v4434_v17 = vld [vmem:[#allocation9 + $0xcf8] sm:$0xff]  ;;  %v13232_v9 = vcombine.high %v4429_v11, %v4433_v12 }
 0x455   :  { %7730 = vmatpush1.bf16.msra.mxu1 %v13169_v14  ;;  %v4430_v14 = vld [vmem:[#allocation9 + $0xcd8] sm:$0xff] }
 0x456   :  { %7731 = vmatprep.subr.bf16.mxu1 %v13178_v21  ;;  %v13223_v21 = vcombine.low %v4421_v20, %v4425_v0  ;;  %v13234_v23 = vcombine.high %v4430_v14, %v4434_v17 }
 0x457   :  { %7568 = vmatpush1.bf16.msra.mxu0 %v13175_v25  ;;  %v4438_v25 = vld [vmem:[#allocation9 + $0xd18] sm:$0xff] }
 0x458   :  { %7569 = vmatprep.subr.bf16.mxu0 %v13184_v26  ;;  %v13233_v26 = vcombine.low %v4430_v14, %v4434_v17  ;;  %v4481_v14 = vld [vmem:[#allocation9 + $0xe70] sm:$0xff]  ;;  %v4478_v17 = vld [vmem:[#allocation9 + $0xe58] sm:$0xff] }
 0x459   :  { %7732 = vmatpush1.bf16.msra.mxu1 %v13177_v13  ;;  %v4442_v13 = vld [vmem:[#allocation9 + $0xd38] sm:$0xff] }
 0x45a   :  { %7733 = vmatprep.subr.bf16.mxu1 %v13186_v22  ;;  %v13240_v22 = vcombine.high %v4437_v24, %v4441_v34  ;;  %v13242_v27 = vcombine.high %v4438_v25, %v4442_v13 }
 0x45b   :  { %7570 = vmatpush1.bf16.msra.mxu0 %v13183_v56  ;;  %v4450_v56 = vld [vmem:[#allocation9 + $0xd78] sm:$0xff] }
 0x45c   :  { %7571 = vmatprep.subr.bf16.mxu0 %v13192_v32  ;;  %v13241_v32 = vcombine.low %v4438_v25, %v4442_v13  ;;  %v13250_v62 = vcombine.high %v4446_v38, %v4450_v56  ;;  %v4489_v25 = vld [vmem:[#allocation9 + $0xeb0] sm:$0xff]  ;;  %v4486_v13 = vld [vmem:[#allocation9 + $0xe98] sm:$0xff] }
 0x45d   :  { %7734 = vmatpush1.bf16.msra.mxu1 %v13185_v31  ;;  %v13239_v31 = vcombine.low %v4437_v24, %v4441_v34  ;;  %v4485_v34 = vld [vmem:[#allocation9 + $0xe90] sm:$0xff] }
 0x45e   :  { %7735 = vmatprep.subr.bf16.mxu1 %v13194_v40  ;;  %v13248_v40 = vcombine.high %v4445_v30, %v4449_v45 }
 0x45f   :  { %7572 = vmatpush1.bf16.msra.mxu0 %v13191_v44  ;;  %v4458_v44 = vld [vmem:[#allocation9 + $0xdb8] sm:$0xff] }
 0x460   :  { %7573 = vmatprep.subr.bf16.mxu0 %v13200_v46  ;;  %v13249_v46 = vcombine.low %v4446_v38, %v4450_v56  ;;  %v13258_v8 = vcombine.high %v4454_v41, %v4458_v44  ;;  %v4497_v38 = vld [vmem:[#allocation9 + $0xef0] sm:$0xff]  ;;  %v4494_v56 = vld [vmem:[#allocation9 + $0xed8] sm:$0xff] }
 0x461   :  { %7736 = vmatpush1.bf16.msra.mxu1 %v13193_v58  ;;  %v13247_v58 = vcombine.low %v4445_v30, %v4449_v45  ;;  %v4493_v45 = vld [vmem:[#allocation9 + $0xed0] sm:$0xff] }
 0x462   :  { %7737 = vmatprep.subr.bf16.mxu1 %v13202_v47  ;;  %v13256_v47 = vcombine.high %v4453_v37, %v4457_v33 }
 0x463   :  { %7574 = vmatpush1.bf16.msra.mxu0 %v13199_v52 }
 0x464   :  { %7584 = vmatprep.subr.bf16.mxu0 %v13208_v57  ;;  %v4462_v57 = vld [vmem:[#allocation9 + $0xdd8] sm:$0xff] }
 0x465   :  { %7738 = vmatpush1.bf16.msra.mxu1 %v13201_v55 }
 0x466   :  { %7748 = vmatprep.subr.bf16.mxu1 %v13210_v36  ;;  %7576 = vmatmul.mubr.bf16.vlgmr.msra.gmra.mrb[36].mxu0 %v14781_v53  ;;  %v4466_v36 = vld [vmem:[#allocation9 + $0xdf8] sm:$0xff] }
 0x467   :  { %7585 = vmatpush1.bf16.msra.mxu0 %v13207_v18  ;;  %7616 = vmatprep.mubr.bf16.mxu0 %v14794_v54  ;;  %v13255_v18 = vcombine.low %v4453_v37, %v4457_v33  ;;  %v13266_v0 = vcombine.high %v4462_v57, %v4466_v36  ;;  %v4501_v33 = vld [vmem:[#allocation9 + $0xf10] sm:$0xff] }
 0x468   :  { %7740 = vmatmul.mubr.bf16.vlgmr.msra.gmra.mrb[36].mxu1 %v14781_v53  ;;  %7586 = vmatprep.subr.bf16.mxu0 %v13216_v42  ;;  %v13225_v53 = vcombine.low %v4422_v2, %v4426_v3  ;;  %v13264_v42 = vcombine.high %v4461_v5, %v4465_v50  ;;  %v4473_v2 = vld [vmem:[#allocation9 + $0xe30] sm:$0xff]  ;;  %v4470_v3 = vld [vmem:[#allocation9 + $0xe18] sm:$0xff] }
 0x469   :  { %7749 = vmatpush1.bf16.msra.mxu1 %v13209_v16  ;;  %7780 = vmatprep.mubr.bf16.mxu1 %v14794_v54  ;;  %v13231_v54 = vcombine.low %v4429_v11, %v4433_v12  ;;  %v13257_v16 = vcombine.low %v4454_v41, %v4458_v44  ;;  %v4477_v12 = vld [vmem:[#allocation9 + $0xe50] sm:$0xff]  ;;  %v4502_v44 = vld [vmem:[#allocation9 + $0xf18] sm:$0xff] }
 0x46a   :  { %7750 = vmatprep.subr.bf16.mxu1 %v13218_v1  ;;  %v4469_v1 = vld [vmem:[#allocation9 + $0xe10] sm:$0xff] }
 0x46b   :  { %7587 = vmatpush1.bf16.msra.mxu0 %v13215_v7  ;;  %v4474_v7 = vld [vmem:[#allocation9 + $0xe38] sm:$0xff]  ;;  %v4505_v41 = vld [vmem:[#allocation9 + $0xf30] sm:$0xff] }
 0x46c   :  { %7588 = vmatprep.subr.bf16.mxu0 %v13224_v51  ;;  %v13265_v51 = vcombine.low %v4462_v57, %v4466_v36  ;;  %v13274_v11 = vcombine.high %v4470_v3, %v4474_v7  ;;  %v4513_v57 = vld [vmem:[#allocation9 + $0xf70] sm:$0xff]  ;;  %v4510_v36 = vld [vmem:[#allocation9 + $0xf58] sm:$0xff] }
 0x46d   :  { %7751 = vmatpush1.bf16.msra.mxu1 %v13217_v29  ;;  %v13263_v29 = vcombine.low %v4461_v5, %v4465_v50  ;;  %v4509_v50 = vld [vmem:[#allocation9 + $0xf50] sm:$0xff] }
 0x46e   :  { %7752 = vmatprep.subr.bf16.mxu1 %v13226_v10  ;;  %v13272_v10 = vcombine.high %v4469_v1, %v4473_v2 }
 0x46f   :  { %7589 = vmatpush1.bf16.msra.mxu0 %v13223_v21  ;;  %v4482_v21 = vld [vmem:[#allocation9 + $0xe78] sm:$0xff] }
 0x470   :  { %7590 = vmatprep.subr.bf16.mxu0 %v13232_v9  ;;  %v13273_v9 = vcombine.low %v4470_v3, %v4474_v7  ;;  %v13282_v24 = vcombine.high %v4478_v17, %v4482_v21  ;;  %v13311_v3 = vcombine.low %v4509_v50, %v4513_v57 }
 0x471   :  { %7753 = vmatpush1.bf16.msra.mxu1 %v13225_v53  ;;  %v13271_v53 = vcombine.low %v4469_v1, %v4473_v2  ;;  %v4522_v1 = vld [vmem:[#allocation9 + $0xfb8] sm:$0xff]  ;;  %v14830_v2 = vld [vmem:[#allocation11] sm:$0xff] }
 0x472   :  { %7754 = vmatprep.subr.bf16.mxu1 %v13234_v23  ;;  %v13280_v23 = vcombine.high %v4477_v12, %v4481_v14 }
 0x473   :  { %7591 = vmatpush1.bf16.msra.mxu0 %v13231_v54  ;;  %v4490_v54 = vld [vmem:[#allocation9 + $0xeb8] sm:$0xff] }
 0x474   :  { %7592 = vmatprep.subr.bf16.mxu0 %v13240_v22  ;;  %v13281_v22 = vcombine.low %v4478_v17, %v4482_v21  ;;  %v13290_v30 = vcombine.high %v4486_v13, %v4490_v54  ;;  %v4530_v17 = vld [vmem:[#allocation9 + $0xff8] sm:$0xff] }
 0x475   :  { %7755 = vmatpush1.bf16.msra.mxu1 %v13233_v26  ;;  %v13279_v26 = vcombine.low %v4477_v12, %v4481_v14  ;;  %v4540_v12 = vrot.slane %v14830_v2, %v14706_v59  ;;  %v4526_v14 = vld [vmem:[#allocation9 + $0xfd8] sm:$0xff] }
 0x476   :  { %7756 = vmatprep.subr.bf16.mxu1 %v13242_v27  ;;  %v13288_v27 = vcombine.high %v4485_v34, %v4489_v25 }
 0x477   :  { %7593 = vmatpush1.bf16.msra.mxu0 %v13239_v31  ;;  %v4498_v31 = vld [vmem:[#allocation9 + $0xef8] sm:$0xff] }
 0x478   :  { %7594 = vmatprep.subr.bf16.mxu0 %v13248_v40  ;;  %v13289_v40 = vcombine.low %v4486_v13, %v4490_v54  ;;  %v13298_v37 = vcombine.high %v4494_v56, %v4498_v31  ;;  %v7806_v13 = vld [vmem:[#allocation12 + $0x8] sm:$0xff] }
 0x479   :  { %7757 = vmatpush1.bf16.msra.mxu1 %v13241_v32  ;;  %v14822_v19 = vpop.f32.mrb[32].mxu0  ;;  %v13287_v32 = vcombine.low %v4485_v34, %v4489_v25  ;;  %v7809_v34 = vld [vmem:[#allocation12 + $0x20] sm:$0xff]  ;;  %v7810_v54 = vld [vmem:[#allocation12 + $0x28] sm:$0xff] }
 0x47a   :  { %7758 = vmatprep.subr.bf16.mxu1 %v13250_v62  ;;  %v14826_v55 = vpop.f32.mrb[33].mxu0  ;;  %v13296_v62 = vcombine.high %v4493_v45, %v4497_v38 }
 0x47b   :  { %v14824_v52 = vpop.f32.mrb[32].mxu1  ;;  %v7294_v61 = vpop.f32.mrb[34].mxu0  ;;  %7595 = vmatpush1.bf16.msra.mxu0 %v13247_v58  ;;  %v4506_v58 = vld [vmem:[#allocation9 + $0xf38] sm:$0xff]  ;;  %v13997_v25 = vadd.f32 %v14826_v55, %v4540_v12  ;;  %v13333_v55 = vcombine.low %v7806_v13, %v7810_v54  ;;  %v7846_v12 = vld [vmem:[#allocation12 + $0x148] sm:$0xff] }
 0x47c   :  { %v14828_v60 = vpop.f32.mrb[33].mxu1  ;;  %v7295_v63 = vpop.f32.mrb[35].mxu0  ;;  %7596 = vmatprep.subr.bf16.mxu0 %v13256_v47  ;;  %v13297_v47 = vcombine.low %v4494_v56, %v4498_v31  ;;  %v13306_v5 = vcombine.high %v4502_v44, %v4506_v58  ;;  %v4514_v61 = vld [vmem:[#allocation9 + $0xf78] sm:$0xff]  ;;  %v7817_v56 = vld [vmem:[#allocation12 + $0x60] sm:$0xff] }
 0x47d   :  { %v7458_v35 = vpop.f32.mrb[34].mxu1  ;;  %7759 = vmatpush1.bf16.msra.mxu1 %v13249_v46  ;;  %v13295_v46 = vcombine.low %v4493_v45, %v4497_v38  ;;  %v13312_v63 = vcombine.high %v4509_v50, %v4513_v57  ;;  %v13313_v7 = vcombine.low %v4510_v36, %v4514_v61  ;;  %v7790_v45 = vmax.f32 %v13997_v25, 0.0  ;;  %v7813_v38 = vld [vmem:[#allocation12 + $0x40] sm:$0xff]  ;;  %v7858_v25 = vld [vmem:[#allocation12 + $0x1a8] sm:$0xff] }
 0x47e   :  { %v7459_v20 = vpop.f32.mrb[35].mxu1  ;;  %7760 = vmatprep.subr.bf16.mxu1 %v13258_v8  ;;  %v13304_v8 = vcombine.high %v4501_v33, %v4505_v41  ;;  %v13305_v35 = vcombine.low %v4502_v44, %v4506_v58  ;;  %v7822_v58 = vld [vmem:[#allocation12 + $0x88] sm:$0xff]  ;;  %v7829_v57 = vld [vmem:[#allocation12 + $0xc0] sm:$0xff] }
 0x47f   :  { %7597 = vmatpush1.bf16.msra.mxu0 %v13255_v18  ;;  %v13303_v18 = vcombine.low %v4501_v33, %v4505_v41  ;;  %v4521_v20 = vld [vmem:[#allocation9 + $0xfb0] sm:$0xff]  ;;  %v7825_v33 = vld [vmem:[#allocation12 + $0xa0] sm:$0xff]  ;;  %v14835_v41 = vpack.c.bf16 %v7790_v45, %v7790_v45 }
 0x480   :  { %7598 = vmatprep.subr.bf16.mxu0 %v13264_v42  ;;  %v4517_v42 = vld [vmem:[#allocation9 + $0xf90] sm:$0xff] }
 0x481   :  { %7761 = vmatpush1.bf16.msra.mxu1 %v13257_v16  ;;  %v13314_v16 = vcombine.high %v4510_v36, %v4514_v61  ;;  %v13319_v21 = vcombine.low %v4517_v42, %v4521_v20  ;;  %v7833_v36 = vld [vmem:[#allocation12 + $0xe0] sm:$0xff]  ;;  %v7830_v61 = vld [vmem:[#allocation12 + $0xc8] sm:$0xff] }
 0x482   :  { %7762 = vmatprep.subr.bf16.mxu1 %v13266_v0  ;;  %v4518_v0 = vld [vmem:[#allocation9 + $0xf98] sm:$0xff]  ;;  %v7862_v45 = vld [vmem:[#allocation12 + $0x1c8] sm:$0xff] }
 0x483   :  { %7599 = vmatpush1.bf16.msra.mxu0 %v13263_v29  ;;  %v13320_v29 = vcombine.high %v4517_v42, %v4521_v20  ;;  %v7837_v42 = vld [vmem:[#allocation12 + $0x100] sm:$0xff] }
 0x484   :  { %7600 = vmatprep.subr.bf16.mxu0 %v13272_v10  ;;  %v4525_v10 = vld [vmem:[#allocation9 + $0xfd0] sm:$0xff]  ;;  %v7841_v20 = vld [vmem:[#allocation12 + $0x120] sm:$0xff] }
 0x485   :  { %7763 = vmatpush1.bf16.msra.mxu1 %v13265_v51  ;;  %v13322_v51 = vcombine.high %v4518_v0, %v4522_v1 }
 0x486   :  { %7764 = vmatprep.subr.bf16.mxu1 %v13274_v11  ;;  %v4529_v11 = vld [vmem:[#allocation9 + $0xff0] sm:$0xff] }
 0x487   :  { %7601 = vmatpush1.bf16.msra.mxu0 %v13271_v53  ;;  %v13321_v53 = vcombine.low %v4518_v0, %v4522_v1  ;;  %v7838_v0 = vld [vmem:[#allocation12 + $0x108] sm:$0xff] }
 0x488   :  { %7602 = vmatprep.subr.bf16.mxu0 %v13280_v23  ;;  %v13330_v23 = vcombine.high %v4526_v14, %v4530_v17  ;;  %v7842_v1 = vld [vmem:[#allocation12 + $0x128] sm:$0xff] }
 0x489   :  { %7765 = vmatpush1.bf16.msra.mxu1 %v13273_v9  ;;  %v13328_v9 = vcombine.high %v4525_v10, %v4529_v11 }
 0x48a   :  { %7766 = vmatprep.subr.bf16.mxu1 %v13282_v24  ;;  %v7805_v24 = vld [vmem:[#allocation12] sm:$0xff] }
 0x48b   :  { %7603 = vmatpush1.bf16.msra.mxu0 %v13279_v26  ;;  %v13327_v26 = vcombine.low %v4525_v10, %v4529_v11  ;;  %v13331_v31 = vcombine.low %v7805_v24, %v7809_v34  ;;  %v7845_v10 = vld [vmem:[#allocation12 + $0x140] sm:$0xff] }
 0x48c   :  { %7604 = vmatprep.subr.bf16.mxu0 %v13288_v27  ;;  %v13332_v27 = vcombine.high %v7805_v24, %v7809_v34  ;;  %v7849_v11 = vld [vmem:[#allocation12 + $0x160] sm:$0xff]  ;;  %v7854_v34 = vld [vmem:[#allocation12 + $0x188] sm:$0xff] }
 0x48d   :  { %7767 = vmatpush1.bf16.msra.mxu1 %v13281_v22  ;;  %v13329_v22 = vcombine.low %v4526_v14, %v4530_v17  ;;  %v7850_v14 = vld [vmem:[#allocation12 + $0x168] sm:$0xff]  ;;  %v13363_v17 = vcombine.low %v7837_v42, %v7841_v20  ;;  %v7857_v24 = vld [vmem:[#allocation12 + $0x1a0] sm:$0xff] }
 0x48e   :  { %7768 = vmatprep.subr.bf16.mxu1 %v13290_v30  ;;  %v13334_v30 = vcombine.high %v7806_v13, %v7810_v54  ;;  %v13371_v13 = vcombine.low %v7845_v10, %v7849_v11  ;;  %v13373_v54 = vcombine.low %v7846_v12, %v7850_v14 }
 0x48f   :  { %7605 = vmatpush1.bf16.msra.mxu0 %v13287_v32  ;;  %v7814_v32 = vld [vmem:[#allocation12 + $0x48] sm:$0xff] }
 0x490   :  { %7606 = vmatprep.subr.bf16.mxu0 %v13296_v62  ;;  %v13340_v62 = vcombine.high %v7813_v38, %v7817_v56 }
 0x491   :  { %7769 = vmatpush1.bf16.msra.mxu1 %v13289_v40  ;;  %v7818_v40 = vld [vmem:[#allocation12 + $0x68] sm:$0xff] }
 0x492   :  { %7770 = vmatprep.subr.bf16.mxu1 %v13298_v37  ;;  %v7821_v37 = vld [vmem:[#allocation12 + $0x80] sm:$0xff]  ;;  %v13342_v44 = vcombine.high %v7814_v32, %v7818_v40 }
 0x493   :  { %7607 = vmatpush1.bf16.msra.mxu0 %v13295_v46  ;;  %v7826_v46 = vld [vmem:[#allocation12 + $0xa8] sm:$0xff] }
 0x494   :  { %7608 = vmatprep.subr.bf16.mxu0 %v13304_v8  ;;  %v13341_v8 = vcombine.low %v7814_v32, %v7818_v40  ;;  %v13350_v50 = vcombine.high %v7822_v58, %v7826_v46 }
 0x495   :  { %7771 = vmatpush1.bf16.msra.mxu1 %v13297_v47  ;;  %v13339_v47 = vcombine.low %v7813_v38, %v7817_v56  ;;  %v7866_v38 = vld [vmem:[#allocation12 + $0x1e8] sm:$0xff] }
 0x496   :  { %7772 = vmatprep.subr.bf16.mxu1 %v13306_v5  ;;  %v13348_v5 = vcombine.high %v7821_v37, %v7825_v33  ;;  %v13390_v40 = vcombine.high %v7862_v45, %v7866_v38 }
 0x497   :  { %7609 = vmatpush1.bf16.msra.mxu0 %v13303_v18  ;;  %v7834_v18 = vld [vmem:[#allocation12 + $0xe8] sm:$0xff] }
 0x498   :  { %7610 = vmatprep.subr.bf16.mxu0 %v13312_v63  ;;  %v13356_v63 = vcombine.high %v7829_v57, %v7833_v36 }
 0x499   :  { %7773 = vmatpush1.bf16.msra.mxu1 %v13305_v35  ;;  %v13347_v35 = vcombine.low %v7821_v37, %v7825_v33  ;;  %v7870_v37 = vld [vmem:[#allocation12 + $0x208] sm:$0xff] }
 0x49a   :  { %7774 = vmatprep.subr.bf16.mxu1 %v13314_v16  ;;  %v13358_v16 = vcombine.high %v7830_v61, %v7834_v18  ;;  %v7874_v33 = vld [vmem:[#allocation12 + $0x228] sm:$0xff] }
 0x49b   :  { %7611 = vmatpush1.bf16.msra.mxu0 %v13311_v3  ;;  %v13355_v3 = vcombine.low %v7829_v57, %v7833_v36  ;;  %v7882_v57 = vld [vmem:[#allocation12 + $0x268] sm:$0xff] }
 0x49c   :  { %7612 = vmatprep.subr.bf16.mxu0 %v13320_v29  ;;  %v13364_v29 = vcombine.high %v7837_v42, %v7841_v20  ;;  %v7890_v42 = vld [vmem:[#allocation12 + $0x2a8] sm:$0xff] }
 0x49d   :  { %7775 = vmatpush1.bf16.msra.mxu1 %v13313_v7  ;;  %v13357_v7 = vcombine.low %v7830_v61, %v7834_v18  ;;  %v13397_v61 = vcombine.low %v7870_v37, %v7874_v33 }
 0x49e   :  { %7776 = vmatprep.subr.bf16.mxu1 %v13322_v51  ;;  %v13366_v51 = vcombine.high %v7838_v0, %v7842_v1 }
 0x49f   :  { %7613 = vmatpush1.bf16.msra.mxu0 %v13319_v21  ;;  %v13365_v21 = vcombine.low %v7838_v0, %v7842_v1 }
 0x4a0   :  { %7614 = vmatprep.subr.bf16.mxu0 %v13328_v9  ;;  %v13374_v9 = vcombine.high %v7846_v12, %v7850_v14 }
 0x4a1   :  { %7777 = vmatpush1.bf16.msra.mxu1 %v13321_v53  ;;  %v13372_v53 = vcombine.high %v7845_v10, %v7849_v11  ;;  %v7898_v10 = vld [vmem:[#allocation12 + $0x2e8] sm:$0xff] }
 0x4a2   :  { %7778 = vmatprep.subr.bf16.mxu1 %v13330_v23  ;;  %v7853_v23 = vld [vmem:[#allocation12 + $0x180] sm:$0xff] }
 0x4a3   :  { %7615 = vmatpush1.bf16.msra.mxu0 %v13327_v26  ;;  %v13380_v26 = vcombine.high %v7853_v23, %v7857_v24  ;;  %v13379_v56 = vcombine.low %v7853_v23, %v7857_v24  ;;  %v7906_v23 = vld [vmem:[#allocation12 + $0x328] sm:$0xff] }
 0x4a4   :  { %10919 = vmatprep.subr.bf16.mxu0 %v13332_v27  ;;  %v7861_v27 = vld [vmem:[#allocation12 + $0x1c0] sm:$0xff] }
 0x4a5   :  { %7779 = vmatpush1.bf16.msra.mxu1 %v13329_v22  ;;  %v13382_v22 = vcombine.high %v7854_v34, %v7858_v25 }
 0x4a6   :  { %11083 = vmatprep.subr.bf16.mxu1 %v13334_v30  ;;  %7617 = vmatmul.mubr.bf16.vlgmr.msra.gmra.mrb[36].mxu0 %v14804_v28  ;;  %v7865_v30 = vld [vmem:[#allocation12 + $0x1e0] sm:$0xff] }
 0x4a7   :  { %10920 = vmatpush1.bf16.msra.mxu0 %v13331_v31  ;;  %10951 = vmatprep.mubr.bf16.mxu0 %v14835_v41  ;;  %v13381_v31 = vcombine.low %v7854_v34, %v7858_v25  ;;  %v13388_v32 = vcombine.high %v7861_v27, %v7865_v30 }
 0x4a8   :  { %7781 = vmatmul.mubr.bf16.vlgmr.msra.gmra.mrb[36].mxu1 %v14804_v28  ;;  %10921 = vmatprep.subr.bf16.mxu0 %v13340_v62  ;;  %v13349_v28 = vcombine.low %v7822_v58, %v7826_v46  ;;  %v7873_v62 = vld [vmem:[#allocation12 + $0x220] sm:$0xff]  ;;  %v13389_v58 = vcombine.low %v7862_v45, %v7866_v38 }
 0x4a9   :  { %11084 = vmatpush1.bf16.msra.mxu1 %v13333_v55  ;;  %11115 = vmatprep.mubr.bf16.mxu1 %v14835_v41  ;;  %v7869_v55 = vld [vmem:[#allocation12 + $0x200] sm:$0xff] }
 0x4aa   :  { %11085 = vmatprep.subr.bf16.mxu1 %v13342_v44  ;;  %v13387_v44 = vcombine.low %v7861_v27, %v7865_v30  ;;  %v13396_v46 = vcombine.high %v7869_v55, %v7873_v62  ;;  %v13395_v36 = vcombine.low %v7869_v55, %v7873_v62  ;;  %v7914_v27 = vld [vmem:[#allocation12 + $0x368] sm:$0xff] }
 0x4ab   :  { %10922 = vmatpush1.bf16.msra.mxu0 %v13339_v47  ;;  %v13398_v47 = vcombine.high %v7870_v37, %v7874_v33  ;;  %v7922_v55 = vld [vmem:[#allocation12 + $0x3a8] sm:$0xff]  ;;  %v4536_v37 = vrot.slane %v14830_v2, %v14724_v4 }
 0x4ac   :  { %10923 = vmatprep.subr.bf16.mxu0 %v13348_v5  ;;  %v7881_v5 = vld [vmem:[#allocation12 + $0x260] sm:$0xff] }
 0x4ad   :  { %11086 = vmatpush1.bf16.msra.mxu1 %v13341_v8  ;;  %v7877_v8 = vld [vmem:[#allocation12 + $0x240] sm:$0xff] }
 0x4ae   :  { %11087 = vmatprep.subr.bf16.mxu1 %v13350_v50  ;;  %v7878_v50 = vld [vmem:[#allocation12 + $0x248] sm:$0xff]  ;;  %v13404_v18 = vcombine.high %v7877_v8, %v7881_v5  ;;  %v13403_v20 = vcombine.low %v7877_v8, %v7881_v5  ;;  %v4548_v8 = vrot.slane %v14830_v2, %v14727_v49 }
 0x4af   :  { %10924 = vmatpush1.bf16.msra.mxu0 %v13347_v35  ;;  %v13406_v35 = vcombine.high %v7878_v50, %v7882_v57  ;;  %v13405_v0 = vcombine.low %v7878_v50, %v7882_v57  ;;  %v7926_v5 = vld [vmem:[#allocation12 + $0x3c8] sm:$0xff] }
 0x4b0   :  { %10925 = vmatprep.subr.bf16.mxu0 %v13356_v63  ;;  %v7889_v63 = vld [vmem:[#allocation12 + $0x2a0] sm:$0xff]  ;;  %v7930_v50 = vld [vmem:[#allocation12 + $0x3e8] sm:$0xff] }
 0x4b1   :  { %11088 = vmatpush1.bf16.msra.mxu1 %v13349_v28  ;;  %v7885_v28 = vld [vmem:[#allocation12 + $0x280] sm:$0xff] }
 0x4b2   :  { %11089 = vmatprep.subr.bf16.mxu1 %v13358_v16  ;;  %v7886_v16 = vld [vmem:[#allocation12 + $0x288] sm:$0xff]  ;;  %v13412_v1 = vcombine.high %v7885_v28, %v7889_v63  ;;  %v13411_v11 = vcombine.low %v7885_v28, %v7889_v63  ;;  %v7933_v28 = vld [vmem:[#allocation12 + $0x400] sm:$0xff] }
 0x4b3   :  { %10926 = vmatpush1.bf16.msra.mxu0 %v13355_v3  ;;  %v13414_v3 = vcombine.high %v7886_v16, %v7890_v42  ;;  %v13413_v12 = vcombine.low %v7886_v16, %v7890_v42  ;;  %v7937_v63 = vld [vmem:[#allocation12 + $0x420] sm:$0xff]  ;;  %v13999_v16 = vadd.f32 %v14828_v60, %v4548_v8  ;;  %v7934_v42 = vld [vmem:[#allocation12 + $0x408] sm:$0xff] }
 0x4b4   :  { %10927 = vmatprep.subr.bf16.mxu0 %v13364_v29  ;;  %v7897_v29 = vld [vmem:[#allocation12 + $0x2e0] sm:$0xff] }
 0x4b5   :  { %11090 = vmatpush1.bf16.msra.mxu1 %v13357_v7  ;;  %v7893_v7 = vld [vmem:[#allocation12 + $0x2c0] sm:$0xff] }
 0x4b6   :  { %11091 = vmatprep.subr.bf16.mxu1 %v13366_v51  ;;  %v7894_v51 = vld [vmem:[#allocation12 + $0x2c8] sm:$0xff]  ;;  %v13420_v14 = vcombine.high %v7893_v7, %v7897_v29  ;;  %v13419_v24 = vcombine.low %v7893_v7, %v7897_v29  ;;  %v13460_v7 = vcombine.high %v7933_v28, %v7937_v63  ;;  %v7792_v29 = vmax.f32 %v13999_v16, 0.0  ;;  %v7973_v8 = vld [vmem:[#allocation12 + $0x540] sm:$0xff] }
 0x4b7   :  { %10928 = vmatpush1.bf16.msra.mxu0 %v13363_v17  ;;  %v13422_v17 = vcombine.high %v7894_v51, %v7898_v10  ;;  %v13421_v34 = vcombine.low %v7894_v51, %v7898_v10  ;;  %v7941_v51 = vld [vmem:[#allocation12 + $0x440] sm:$0xff]  ;;  %v7982_v16 = vld [vmem:[#allocation12 + $0x588] sm:$0xff] }
 0x4b8   :  { %10929 = vmatprep.subr.bf16.mxu0 %v13372_v53  ;;  %v7905_v53 = vld [vmem:[#allocation12 + $0x320] sm:$0xff] }
 0x4b9   :  { %11092 = vmatpush1.bf16.msra.mxu1 %v13365_v21  ;;  %v7901_v21 = vld [vmem:[#allocation12 + $0x300] sm:$0xff] }
 0x4ba   :  { %11093 = vmatprep.subr.bf16.mxu1 %v13374_v9  ;;  %v7902_v9 = vld [vmem:[#allocation12 + $0x308] sm:$0xff]  ;;  %v13428_v25 = vcombine.high %v7901_v21, %v7905_v53  ;;  %v13427_v30 = vcombine.low %v7901_v21, %v7905_v53  ;;  %v7945_v10 = vld [vmem:[#allocation12 + $0x460] sm:$0xff] }
 0x4bb   :  { %10930 = vmatpush1.bf16.msra.mxu0 %v13371_v13  ;;  %v13430_v13 = vcombine.high %v7902_v9, %v7906_v23  ;;  %v13429_v45 = vcombine.low %v7902_v9, %v7906_v23  ;;  %v13468_v21 = vcombine.high %v7941_v51, %v7945_v10  ;;  %v7949_v53 = vld [vmem:[#allocation12 + $0x480] sm:$0xff]  ;;  %v14849_v23 = vpack.c.bf16 %v7792_v29, %v7792_v29  ;;  %v7990_v29 = vld [vmem:[#allocation12 + $0x5c8] sm:$0xff] }
 0x4bc   :  { %10931 = vmatprep.subr.bf16.mxu0 %v13380_v26  ;;  %v7913_v26 = vld [vmem:[#allocation12 + $0x360] sm:$0xff] }
 0x4bd   :  { %11094 = vmatpush1.bf16.msra.mxu1 %v13373_v54  ;;  %v7909_v54 = vld [vmem:[#allocation12 + $0x340] sm:$0xff] }
 0x4be   :  { %11095 = vmatprep.subr.bf16.mxu1 %v13382_v22  ;;  %v7910_v22 = vld [vmem:[#allocation12 + $0x348] sm:$0xff]  ;;  %v13436_v38 = vcombine.high %v7909_v54, %v7913_v26  ;;  %v13435_v62 = vcombine.low %v7909_v54, %v7913_v26  ;;  %v7953_v9 = vld [vmem:[#allocation12 + $0x4a0] sm:$0xff] }
 0x4bf   :  { %10932 = vmatpush1.bf16.msra.mxu0 %v13379_v56  ;;  %v13438_v56 = vcombine.high %v7910_v22, %v7914_v27  ;;  %v13437_v33 = vcombine.low %v7910_v22, %v7914_v27  ;;  %v13476_v26 = vcombine.high %v7949_v53, %v7953_v9  ;;  %v7957_v27 = vld [vmem:[#allocation12 + $0x4c0] sm:$0xff] }
 0x4c0   :  { %10933 = vmatprep.subr.bf16.mxu0 %v13388_v32  ;;  %v7921_v32 = vld [vmem:[#allocation12 + $0x3a0] sm:$0xff] }
 0x4c1   :  { %11096 = vmatpush1.bf16.msra.mxu1 %v13381_v31  ;;  %v7917_v31 = vld [vmem:[#allocation12 + $0x380] sm:$0xff] }
 0x4c2   :  { %11097 = vmatprep.subr.bf16.mxu1 %v13390_v40  ;;  %v7918_v40 = vld [vmem:[#allocation12 + $0x388] sm:$0xff]  ;;  %v13443_v57 = vcombine.low %v7917_v31, %v7921_v32 }
 0x4c3   :  { %10934 = vmatpush1.bf16.msra.mxu0 %v13387_v44  ;;  %v13444_v44 = vcombine.high %v7917_v31, %v7921_v32 }
 0x4c4   :  { %10935 = vmatprep.subr.bf16.mxu0 %v13396_v46  ;;  %v7925_v46 = vld [vmem:[#allocation12 + $0x3c0] sm:$0xff] }
 0x4c5   :  { %11098 = vmatpush1.bf16.msra.mxu1 %v13389_v58  ;;  %v13446_v58 = vcombine.high %v7918_v40, %v7922_v55 }
 0x4c6   :  { %11099 = vmatprep.subr.bf16.mxu1 %v13398_v47  ;;  %v7929_v47 = vld [vmem:[#allocation12 + $0x3e0] sm:$0xff] }
 0x4c7   :  { %10936 = vmatpush1.bf16.msra.mxu0 %v13395_v36  ;;  %v13996_v36 = vadd.f32 %v14822_v19, %v4536_v37  ;;  %v7966_v37 = vld [vmem:[#allocation12 + $0x508] sm:$0xff] }
 0x4c8   :  { %10937 = vmatprep.subr.bf16.mxu0 %v13404_v18  ;;  %v13452_v18 = vcombine.high %v7925_v46, %v7929_v47 }
 0x4c9   :  { %11100 = vmatpush1.bf16.msra.mxu1 %v13397_v61  ;;  %v13445_v61 = vcombine.low %v7918_v40, %v7922_v55  ;;  %v7965_v55 = vld [vmem:[#allocation12 + $0x500] sm:$0xff] }
 0x4ca   :  { %11101 = vmatprep.subr.bf16.mxu1 %v13406_v35  ;;  %v13454_v35 = vcombine.high %v7926_v5, %v7930_v50 }
 0x4cb   :  { %10938 = vmatpush1.bf16.msra.mxu0 %v13403_v20  ;;  %v7938_v20 = vld [vmem:[#allocation12 + $0x428] sm:$0xff] }
 0x4cc   :  { %10939 = vmatprep.subr.bf16.mxu0 %v13412_v1  ;;  %v7789_v1 = vmax.f32 %v13996_v36, 0.0  ;;  %v13462_v19 = vcombine.high %v7934_v42, %v7938_v20  ;;  %v13461_v60 = vcombine.low %v7934_v42, %v7938_v20  ;;  %v7986_v42 = vld [vmem:[#allocation12 + $0x5a8] sm:$0xff] }
 0x4cd   :  { %11102 = vmatpush1.bf16.msra.mxu1 %v13405_v0  ;;  %v13451_v0 = vcombine.low %v7925_v46, %v7929_v47 }
 0x4ce   :  { %11103 = vmatprep.subr.bf16.mxu1 %v13414_v3  ;;  %v13453_v3 = vcombine.low %v7926_v5, %v7930_v50  ;;  %v7977_v5 = vld [vmem:[#allocation12 + $0x560] sm:$0xff]  ;;  %v7974_v50 = vld [vmem:[#allocation12 + $0x548] sm:$0xff] }
 0x4cf   :  { %10940 = vmatpush1.bf16.msra.mxu0 %v13411_v11  ;;  %v13459_v11 = vcombine.low %v7933_v28, %v7937_v63  ;;  %v7981_v28 = vld [vmem:[#allocation12 + $0x580] sm:$0xff]  ;;  %v13499_v20 = vcombine.low %v7973_v8, %v7977_v5 }
 0x4d0   :  { %10941 = vmatprep.subr.bf16.mxu0 %v13420_v14  ;;  %v7946_v14 = vld [vmem:[#allocation12 + $0x468] sm:$0xff]  ;;  %v7985_v63 = vld [vmem:[#allocation12 + $0x5a0] sm:$0xff] }
 0x4d1   :  { %11104 = vmatpush1.bf16.msra.mxu1 %v13413_v12  ;;  %v7942_v12 = vld [vmem:[#allocation12 + $0x448] sm:$0xff] }
 0x4d2   :  { %11105 = vmatprep.subr.bf16.mxu1 %v13422_v17  ;;  %v14847_v17 = vpack.c.bf16 %v7789_v1, %v7789_v1  ;;  %v13469_v54 = vcombine.low %v7942_v12, %v7946_v14  ;;  %v13508_v1 = vcombine.high %v7981_v28, %v7985_v63 }
 0x4d3   :  { %10942 = vmatpush1.bf16.msra.mxu0 %v13419_v24  ;;  %v13470_v24 = vcombine.high %v7942_v12, %v7946_v14 }
 0x4d4   :  { %10943 = vmatprep.subr.bf16.mxu0 %v13428_v25  ;;  %v7954_v25 = vld [vmem:[#allocation12 + $0x4a8] sm:$0xff] }
 0x4d5   :  { %11106 = vmatpush1.bf16.msra.mxu1 %v13421_v34  ;;  %v7950_v34 = vld [vmem:[#allocation12 + $0x488] sm:$0xff] }
 0x4d6   :  { %11107 = vmatprep.subr.bf16.mxu1 %v13430_v13  ;;  %v13467_v13 = vcombine.low %v7941_v51, %v7945_v10  ;;  %v13478_v22 = vcombine.high %v7950_v34, %v7954_v25  ;;  %v13477_v31 = vcombine.low %v7950_v34, %v7954_v25  ;;  %v7994_v51 = vld [vmem:[#allocation12 + $0x5e8] sm:$0xff]  ;;  %v13507_v10 = vcombine.low %v7981_v28, %v7985_v63 }
 0x4d7   :  { %10944 = vmatpush1.bf16.msra.mxu0 %v13427_v30  ;;  %v7961_v30 = vld [vmem:[#allocation12 + $0x4e0] sm:$0xff]  ;;  %v13518_v14 = vcombine.high %v7990_v29, %v7994_v51  ;;  %v13517_v34 = vcombine.low %v7990_v29, %v7994_v51  ;;  %v8034_v28 = vld [vmem:[#allocation12 + $0x728] sm:$0xff] }
 0x4d8   :  { %10945 = vmatprep.subr.bf16.mxu0 %v13436_v38  ;;  %v7962_v38 = vld [vmem:[#allocation12 + $0x4e8] sm:$0xff]  ;;  %v13484_v32 = vcombine.high %v7957_v27, %v7961_v30 }
 0x4d9   :  { %11108 = vmatpush1.bf16.msra.mxu1 %v13429_v45  ;;  %v7958_v45 = vld [vmem:[#allocation12 + $0x4c8] sm:$0xff] }
 0x4da   :  { %11109 = vmatprep.subr.bf16.mxu1 %v13438_v56  ;;  %v13475_v56 = vcombine.low %v7949_v53, %v7953_v9  ;;  %v13486_v40 = vcombine.high %v7958_v45, %v7962_v38  ;;  %v7998_v53 = vld [vmem:[#allocation12 + $0x608] sm:$0xff] }
 0x4db   :  { %10946 = vmatpush1.bf16.msra.mxu0 %v13435_v62  ;;  %v7969_v62 = vld [vmem:[#allocation12 + $0x520] sm:$0xff]  ;;  %v8002_v9 = vld [vmem:[#allocation12 + $0x628] sm:$0xff] }
 0x4dc   :  { %10947 = vmatprep.subr.bf16.mxu0 %v13444_v44  ;;  %v13483_v44 = vcombine.low %v7957_v27, %v7961_v30  ;;  %v13492_v46 = vcombine.high %v7965_v55, %v7969_v62  ;;  %v13491_v36 = vcombine.low %v7965_v55, %v7969_v62  ;;  %v8010_v27 = vld [vmem:[#allocation12 + $0x668] sm:$0xff] }
 0x4dd   :  { %11110 = vmatpush1.bf16.msra.mxu1 %v13437_v33  ;;  %v7970_v33 = vld [vmem:[#allocation12 + $0x528] sm:$0xff] }
 0x4de   :  { %11111 = vmatprep.subr.bf16.mxu1 %v13446_v58  ;;  %v13485_v58 = vcombine.low %v7958_v45, %v7962_v38  ;;  %v13494_v47 = vcombine.high %v7966_v37, %v7970_v33  ;;  %v13525_v45 = vcombine.low %v7998_v53, %v8002_v9  ;;  %v8018_v55 = vld [vmem:[#allocation12 + $0x6a8] sm:$0xff] }
 0x4df   :  { %10948 = vmatpush1.bf16.msra.mxu0 %v13443_v57  ;;  %v7978_v57 = vld [vmem:[#allocation12 + $0x568] sm:$0xff] }
 0x4e0   :  { %10949 = vmatprep.subr.bf16.mxu0 %v13452_v18  ;;  %v13500_v18 = vcombine.high %v7973_v8, %v7977_v5  ;;  %v8026_v8 = vld [vmem:[#allocation12 + $0x6e8] sm:$0xff] }
 0x4e1   :  { %11112 = vmatpush1.bf16.msra.mxu1 %v13445_v61  ;;  %v13493_v61 = vcombine.low %v7966_v37, %v7970_v33 }
 0x4e2   :  { %11113 = vmatprep.subr.bf16.mxu1 %v13454_v35  ;;  %v13502_v35 = vcombine.high %v7974_v50, %v7978_v57 }
 0x4e3   :  { %10950 = vmatpush1.bf16.msra.mxu0 %v13451_v0  ;;  %v13501_v0 = vcombine.low %v7974_v50, %v7978_v57 }
 0x4e4   :  { %10960 = vmatprep.subr.bf16.mxu0 %v13460_v7  ;;  %v7989_v7 = vld [vmem:[#allocation12 + $0x5c0] sm:$0xff] }
 0x4e5   :  { %11114 = vmatpush1.bf16.msra.mxu1 %v13453_v3  ;;  %v13510_v3 = vcombine.high %v7982_v16, %v7986_v42 }
 0x4e6   :  { %11124 = vmatprep.subr.bf16.mxu1 %v13462_v19  ;;  %10952 = vmatmul.mubr.bf16.vlgmr.msra.gmra.mrb[40].mxu0 %v14847_v17  ;;  %v7993_v19 = vld [vmem:[#allocation12 + $0x5e0] sm:$0xff] }
 0x4e7   :  { %10961 = vmatpush1.bf16.msra.mxu0 %v13459_v11  ;;  %10992 = vmatprep.mubr.bf16.mxu0 %v14849_v23  ;;  %v13509_v11 = vcombine.low %v7982_v16, %v7986_v42  ;;  %v13516_v12 = vcombine.high %v7989_v7, %v7993_v19 }
 0x4e8   :  { %11116 = vmatmul.mubr.bf16.vlgmr.msra.gmra.mrb[40].mxu1 %v14847_v17  ;;  %10962 = vmatprep.subr.bf16.mxu0 %v13468_v21  ;;  %v8001_v21 = vld [vmem:[#allocation12 + $0x620] sm:$0xff] }
 0x4e9   :  { %11125 = vmatpush1.bf16.msra.mxu1 %v13461_v60  ;;  %11156 = vmatprep.mubr.bf16.mxu1 %v14849_v23  ;;  %v7997_v60 = vld [vmem:[#allocation12 + $0x600] sm:$0xff] }
 0x4ea   :  { %11126 = vmatprep.subr.bf16.mxu1 %v13470_v24  ;;  %v13515_v24 = vcombine.low %v7989_v7, %v7993_v19  ;;  %v13524_v25 = vcombine.high %v7997_v60, %v8001_v21  ;;  %v13523_v30 = vcombine.low %v7997_v60, %v8001_v21  ;;  %v8042_v7 = vld [vmem:[#allocation12 + $0x768] sm:$0xff] }
 0x4eb   :  { %10963 = vmatpush1.bf16.msra.mxu0 %v13467_v13  ;;  %v13526_v13 = vcombine.high %v7998_v53, %v8002_v9  ;;  %v8050_v60 = vld [vmem:[#allocation12 + $0x7a8] sm:$0xff]  ;;  %v4544_v53 = vrot.slane %v14830_v2, %v14750_v48 }
 0x4ec   :  { %10964 = vmatprep.subr.bf16.mxu0 %v13476_v26  ;;  %v8009_v26 = vld [vmem:[#allocation12 + $0x660] sm:$0xff] }
 0x4ed   :  { %11127 = vmatpush1.bf16.msra.mxu1 %v13469_v54  ;;  %v8005_v54 = vld [vmem:[#allocation12 + $0x640] sm:$0xff] }
 0x4ee   :  { %11128 = vmatprep.subr.bf16.mxu1 %v13478_v22  ;;  %v8006_v22 = vld [vmem:[#allocation12 + $0x648] sm:$0xff]  ;;  %v13532_v38 = vcombine.high %v8005_v54, %v8009_v26  ;;  %v13531_v62 = vcombine.low %v8005_v54, %v8009_v26 }
 0x4ef   :  { %10965 = vmatpush1.bf16.msra.mxu0 %v13475_v56  ;;  %v13534_v56 = vcombine.high %v8006_v22, %v8010_v27  ;;  %v13533_v37 = vcombine.low %v8006_v22, %v8010_v27  ;;  %v8054_v54 = vld [vmem:[#allocation12 + $0x7c8] sm:$0xff]  ;;  %v13998_v27 = vadd.f32 %v14824_v52, %v4544_v53  ;;  %v8069_v52 = vld [vmem:[#allocation12 + $0x840] sm:$0xff] }
 0x4f0   :  { %10966 = vmatprep.subr.bf16.mxu0 %v13484_v32  ;;  %v8017_v32 = vld [vmem:[#allocation12 + $0x6a0] sm:$0xff]  ;;  %v8058_v26 = vld [vmem:[#allocation12 + $0x7e8] sm:$0xff] }
 0x4f1   :  { %11129 = vmatpush1.bf16.msra.mxu1 %v13477_v31  ;;  %v8013_v31 = vld [vmem:[#allocation12 + $0x680] sm:$0xff]  ;;  %v13582_v2 = vcombine.high %v8054_v54, %v8058_v26 }
 0x4f2   :  { %11130 = vmatprep.subr.bf16.mxu1 %v13486_v40  ;;  %v8014_v40 = vld [vmem:[#allocation12 + $0x688] sm:$0xff]  ;;  %v13540_v33 = vcombine.high %v8013_v31, %v8017_v32  ;;  %v13539_v5 = vcombine.low %v8013_v31, %v8017_v32 }
 0x4f3   :  { %10967 = vmatpush1.bf16.msra.mxu0 %v13483_v44  ;;  %v13542_v44 = vcombine.high %v8014_v40, %v8018_v55  ;;  %v13541_v50 = vcombine.low %v8014_v40, %v8018_v55  ;;  %v8062_v31 = vld [vmem:[#allocation12 + $0x808] sm:$0xff]  ;;  %v7791_v55 = vmax.f32 %v13998_v27, 0.0 }
 0x4f4   :  { %10968 = vmatprep.subr.bf16.mxu0 %v13492_v46  ;;  %v8025_v46 = vld [vmem:[#allocation12 + $0x6e0] sm:$0xff]  ;;  %v8066_v32 = vld [vmem:[#allocation12 + $0x828] sm:$0xff] }
 0x4f5   :  { %11131 = vmatpush1.bf16.msra.mxu1 %v13485_v58  ;;  %v8021_v58 = vld [vmem:[#allocation12 + $0x6c0] sm:$0xff] }
 0x4f6   :  { %11132 = vmatprep.subr.bf16.mxu1 %v13494_v47  ;;  %v8022_v47 = vld [vmem:[#allocation12 + $0x6c8] sm:$0xff]  ;;  %v13548_v57 = vcombine.high %v8021_v58, %v8025_v46  ;;  %v13547_v63 = vcombine.low %v8021_v58, %v8025_v46 }
 0x4f7   :  { %10969 = vmatpush1.bf16.msra.mxu0 %v13491_v36  ;;  %v13550_v36 = vcombine.high %v8022_v47, %v8026_v8  ;;  %v13549_v16 = vcombine.low %v8022_v47, %v8026_v8  ;;  %v8070_v58 = vld [vmem:[#allocation12 + $0x848] sm:$0xff]  ;;  %v14858_v8 = vpack.c.bf16 %v7791_v55, %v7791_v55  ;;  %v8117_v55 = vld [vmem:[#allocation12 + $0x9c0] sm:$0xff] }
 0x4f8   :  { %10970 = vmatprep.subr.bf16.mxu0 %v13500_v18  ;;  %v8033_v18 = vld [vmem:[#allocation12 + $0x720] sm:$0xff]  ;;  %v8074_v46 = vld [vmem:[#allocation12 + $0x868] sm:$0xff] }
 0x4f9   :  { %11133 = vmatpush1.bf16.msra.mxu1 %v13493_v61  ;;  %v8029_v61 = vld [vmem:[#allocation12 + $0x700] sm:$0xff] }
 0x4fa   :  { %11134 = vmatprep.subr.bf16.mxu1 %v13502_v35  ;;  %v8030_v35 = vld [vmem:[#allocation12 + $0x708] sm:$0xff]  ;;  %v13556_v42 = vcombine.high %v8029_v61, %v8033_v18  ;;  %v13555_v19 = vcombine.low %v8029_v61, %v8033_v18  ;;  %v8081_v61 = vld [vmem:[#allocation12 + $0x8a0] sm:$0xff] }
 0x4fb   :  { %10971 = vmatpush1.bf16.msra.mxu0 %v13499_v20  ;;  %v13558_v20 = vcombine.high %v8030_v35, %v8034_v28  ;;  %v13557_v29 = vcombine.low %v8030_v35, %v8034_v28  ;;  %v8078_v18 = vld [vmem:[#allocation12 + $0x888] sm:$0xff] }
 0x4fc   :  { %10972 = vmatprep.subr.bf16.mxu0 %v13508_v1  ;;  %v8041_v1 = vld [vmem:[#allocation12 + $0x760] sm:$0xff]  ;;  %v8082_v35 = vld [vmem:[#allocation12 + $0x8a8] sm:$0xff] }
 0x4fd   :  { %11135 = vmatpush1.bf16.msra.mxu1 %v13501_v0  ;;  %v8037_v0 = vld [vmem:[#allocation12 + $0x740] sm:$0xff] }
 0x4fe   :  { %11136 = vmatprep.subr.bf16.mxu1 %v13510_v3  ;;  %v8038_v3 = vld [vmem:[#allocation12 + $0x748] sm:$0xff]  ;;  %v13564_v51 = vcombine.high %v8037_v0, %v8041_v1  ;;  %v13563_v21 = vcombine.low %v8037_v0, %v8041_v1  ;;  %v8089_v0 = vld [vmem:[#allocation12 + $0x8e0] sm:$0xff] }
 0x4ff   :  { %10973 = vmatpush1.bf16.msra.mxu0 %v13507_v10  ;;  %v13566_v10 = vcombine.high %v8038_v3, %v8042_v7  ;;  %v13565_v9 = vcombine.low %v8038_v3, %v8042_v7  ;;  %v8086_v1 = vld [vmem:[#allocation12 + $0x8c8] sm:$0xff] }
 0x500   :  { %10974 = vmatprep.subr.bf16.mxu0 %v13516_v12  ;;  %v8049_v12 = vld [vmem:[#allocation12 + $0x7a0] sm:$0xff]  ;;  %v8090_v3 = vld [vmem:[#allocation12 + $0x8e8] sm:$0xff] }
 0x501   :  { %11137 = vmatpush1.bf16.msra.mxu1 %v13509_v11  ;;  %v8045_v11 = vld [vmem:[#allocation12 + $0x780] sm:$0xff] }
 0x502   :  { %11138 = vmatprep.subr.bf16.mxu1 %v13518_v14  ;;  %v8046_v14 = vld [vmem:[#allocation12 + $0x788] sm:$0xff]  ;;  %v13571_v22 = vcombine.low %v8045_v11, %v8049_v12 }
 0x503   :  { %10975 = vmatpush1.bf16.msra.mxu0 %v13515_v24  ;;  %v13572_v24 = vcombine.high %v8045_v11, %v8049_v12  ;;  %v8097_v11 = vld [vmem:[#allocation12 + $0x920] sm:$0xff]  ;;  %v8094_v12 = vld [vmem:[#allocation12 + $0x908] sm:$0xff] }
 0x504   :  { %10976 = vmatprep.subr.bf16.mxu0 %v13524_v25  ;;  %v8053_v25 = vld [vmem:[#allocation12 + $0x7c0] sm:$0xff] }
 0x505   :  { %11139 = vmatpush1.bf16.msra.mxu1 %v13517_v34  ;;  %v13574_v34 = vcombine.high %v8046_v14, %v8050_v60 }
 0x506   :  { %11140 = vmatprep.subr.bf16.mxu1 %v13526_v13  ;;  %v8057_v13 = vld [vmem:[#allocation12 + $0x7e0] sm:$0xff] }
 0x507   :  { %10977 = vmatpush1.bf16.msra.mxu0 %v13523_v30  ;;  %v13573_v30 = vcombine.low %v8046_v14, %v8050_v60  ;;  %v13579_v40 = vcombine.low %v8053_v25, %v8057_v13  ;;  %v8098_v14 = vld [vmem:[#allocation12 + $0x928] sm:$0xff] }
 0x508   :  { %10978 = vmatprep.subr.bf16.mxu0 %v13532_v38  ;;  %v8061_v38 = vld [vmem:[#allocation12 + $0x800] sm:$0xff] }
 0x509   :  { %11141 = vmatpush1.bf16.msra.mxu1 %v13525_v45  ;;  %v13580_v45 = vcombine.high %v8053_v25, %v8057_v13  ;;  %v8102_v25 = vld [vmem:[#allocation12 + $0x948] sm:$0xff] }
 0x50a   :  { %11142 = vmatprep.subr.bf16.mxu1 %v13534_v56  ;;  %v8065_v56 = vld [vmem:[#allocation12 + $0x820] sm:$0xff]  ;;  %v8106_v13 = vld [vmem:[#allocation12 + $0x968] sm:$0xff] }
 0x50b   :  { %10979 = vmatpush1.bf16.msra.mxu0 %v13531_v62  ;;  %v13581_v62 = vcombine.low %v8054_v54, %v8058_v26  ;;  %v13587_v47 = vcombine.low %v8061_v38, %v8065_v56  ;;  %v13621_v26 = vcombine.low %v8094_v12, %v8098_v14  ;;  %v13630_v27 = vcombine.high %v8102_v25, %v8106_v13 }
 0x50c   :  { %10980 = vmatprep.subr.bf16.mxu0 %v13540_v33  ;;  %v13590_v33 = vcombine.high %v8062_v31, %v8066_v32 }
 0x50d   :  { %11143 = vmatpush1.bf16.msra.mxu1 %v13533_v37  ;;  %v13588_v37 = vcombine.high %v8061_v38, %v8065_v56  ;;  %v8114_v38 = vld [vmem:[#allocation12 + $0x9a8] sm:$0xff] }
 0x50e   :  { %11144 = vmatprep.subr.bf16.mxu1 %v13542_v44  ;;  %v8073_v44 = vld [vmem:[#allocation12 + $0x860] sm:$0xff] }
 0x50f   :  { %10981 = vmatpush1.bf16.msra.mxu0 %v13539_v5  ;;  %v13589_v5 = vcombine.low %v8062_v31, %v8066_v32  ;;  %v13595_v28 = vcombine.low %v8069_v52, %v8073_v44  ;;  %v13629_v31 = vcombine.low %v8102_v25, %v8106_v13 }
 0x510   :  { %10982 = vmatprep.subr.bf16.mxu0 %v13548_v57  ;;  %v13598_v57 = vcombine.high %v8070_v58, %v8074_v46 }
 0x511   :  { %11145 = vmatpush1.bf16.msra.mxu1 %v13541_v50  ;;  %v13596_v50 = vcombine.high %v8069_v52, %v8073_v44 }
 0x512   :  { %11146 = vmatprep.subr.bf16.mxu1 %v13550_v36  ;;  %v8077_v36 = vld [vmem:[#allocation12 + $0x880] sm:$0xff] }
 0x513   :  { %10983 = vmatpush1.bf16.msra.mxu0 %v13547_v63  ;;  %v13597_v63 = vcombine.low %v8070_v58, %v8074_v46  ;;  %v13603_v7 = vcombine.low %v8077_v36, %v8081_v61 }
 0x514   :  { %10984 = vmatprep.subr.bf16.mxu0 %v13556_v42  ;;  %v13606_v42 = vcombine.high %v8078_v18, %v8082_v35 }
 0x515   :  { %11147 = vmatpush1.bf16.msra.mxu1 %v13549_v16  ;;  %v13604_v16 = vcombine.high %v8077_v36, %v8081_v61 }
 0x516   :  { %11148 = vmatprep.subr.bf16.mxu1 %v13558_v20  ;;  %v8085_v20 = vld [vmem:[#allocation12 + $0x8c0] sm:$0xff] }
 0x517   :  { %10985 = vmatpush1.bf16.msra.mxu0 %v13555_v19  ;;  %v13605_v19 = vcombine.low %v8078_v18, %v8082_v35  ;;  %v13611_v60 = vcombine.low %v8085_v20, %v8089_v0 }
 0x518   :  { %10986 = vmatprep.subr.bf16.mxu0 %v13564_v51  ;;  %v13614_v51 = vcombine.high %v8086_v1, %v8090_v3 }
 0x519   :  { %11149 = vmatpush1.bf16.msra.mxu1 %v13557_v29  ;;  %v13612_v29 = vcombine.high %v8085_v20, %v8089_v0 }
 0x51a   :  { %11150 = vmatprep.subr.bf16.mxu1 %v13566_v10  ;;  %v8093_v10 = vld [vmem:[#allocation12 + $0x900] sm:$0xff] }
 0x51b   :  { %10987 = vmatpush1.bf16.msra.mxu0 %v13563_v21  ;;  %v13613_v21 = vcombine.low %v8086_v1, %v8090_v3  ;;  %v13620_v53 = vcombine.high %v8093_v10, %v8097_v11  ;;  %v13619_v54 = vcombine.low %v8093_v10, %v8097_v11 }
 0x51c   :  { %10988 = vmatprep.subr.bf16.mxu0 %v13572_v24  ;;  %v8101_v24 = vld [vmem:[#allocation12 + $0x940] sm:$0xff] }
 0x51d   :  { %11151 = vmatpush1.bf16.msra.mxu1 %v13565_v9  ;;  %v13622_v9 = vcombine.high %v8094_v12, %v8098_v14 }
 0x51e   :  { %11152 = vmatprep.subr.bf16.mxu1 %v13574_v34  ;;  %v8105_v34 = vld [vmem:[#allocation12 + $0x960] sm:$0xff] }
 0x51f   :  { %10989 = vmatpush1.bf16.msra.mxu0 %v13571_v22  ;;  %v13628_v22 = vcombine.high %v8101_v24, %v8105_v34  ;;  %v13627_v56 = vcombine.low %v8101_v24, %v8105_v34 }
 0x520   :  { %10990 = vmatprep.subr.bf16.mxu0 %v13580_v45  ;;  %v8113_v45 = vld [vmem:[#allocation12 + $0x9a0] sm:$0xff] }
 0x521   :  { %11153 = vmatpush1.bf16.msra.mxu1 %v13573_v30  ;;  %v8109_v30 = vld [vmem:[#allocation12 + $0x980] sm:$0xff] }
 0x522   :  { %11154 = vmatprep.subr.bf16.mxu1 %v13582_v2  ;;  %v8110_v2 = vld [vmem:[#allocation12 + $0x988] sm:$0xff]  ;;  %v13636_v32 = vcombine.high %v8109_v30, %v8113_v45  ;;  %v13635_v52 = vcombine.low %v8109_v30, %v8113_v45 }
 0x523   :  { %10991 = vmatpush1.bf16.msra.mxu0 %v13579_v40  ;;  %v13638_v40 = vcombine.high %v8110_v2, %v8114_v38  ;;  %v13637_v44 = vcombine.low %v8110_v2, %v8114_v38 }
 0x524   :  { %11001 = vmatprep.subr.bf16.mxu0 %v13588_v37  ;;  %v8118_v37 = vld [vmem:[#allocation12 + $0x9c8] sm:$0xff] }
 0x525   :  { %11155 = vmatpush1.bf16.msra.mxu1 %v13581_v62  ;;  %v8121_v62 = vld [vmem:[#allocation12 + $0x9e0] sm:$0xff] }
 0x526   :  { %11165 = vmatprep.subr.bf16.mxu1 %v13590_v33  ;;  %10993 = vmatmul.mubr.bf16.vlgmr.msra.gmra.mrb[40].mxu0 %v14858_v8  ;;  %v8122_v33 = vld [vmem:[#allocation12 + $0x9e8] sm:$0xff]  ;;  %v13644_v58 = vcombine.high %v8117_v55, %v8121_v62  ;;  %v13643_v36 = vcombine.low %v8117_v55, %v8121_v62 }
 0x527   :  { %11002 = vmatpush1.bf16.msra.mxu0 %v13587_v47  ;;  %v13646_v46 = vcombine.high %v8118_v37, %v8122_v33  ;;  %v8125_v47 = vld [vmem:[#allocation12 + $0xa00] sm:$0xff]  ;;  %v13645_v61 = vcombine.low %v8118_v37, %v8122_v33 }
 0x528   :  { %11157 = vmatmul.mubr.bf16.vlgmr.msra.gmra.mrb[40].mxu1 %v14858_v8  ;;  %11003 = vmatprep.subr.bf16.mxu0 %v13596_v50  ;;  %v8126_v50 = vld [vmem:[#allocation12 + $0xa08] sm:$0xff] }
 0x529   :  { %11166 = vmatpush1.bf16.msra.mxu1 %v13589_v5  ;;  %v8129_v5 = vld [vmem:[#allocation12 + $0xa20] sm:$0xff] }
 0x52a   :  { %11167 = vmatprep.subr.bf16.mxu1 %v13598_v57  ;;  %v8130_v57 = vld [vmem:[#allocation12 + $0xa28] sm:$0xff]  ;;  %v13652_v18 = vcombine.high %v8125_v47, %v8129_v5  ;;  %v13651_v20 = vcombine.low %v8125_v47, %v8129_v5 }
 0x52b   :  { %11004 = vmatpush1.bf16.msra.mxu0 %v13595_v28  ;;  %v13654_v35 = vcombine.high %v8126_v50, %v8130_v57  ;;  %v8133_v28 = vld [vmem:[#allocation12 + $0xa40] sm:$0xff]  ;;  %v13653_v0 = vcombine.low %v8126_v50, %v8130_v57 }
 0x52c   :  { %11005 = vmatprep.subr.bf16.mxu0 %v13604_v16  ;;  %v8134_v16 = vld [vmem:[#allocation12 + $0xa48] sm:$0xff] }
 0x52d   :  { %11168 = vmatpush1.bf16.msra.mxu1 %v13597_v63  ;;  %v8137_v63 = vld [vmem:[#allocation12 + $0xa60] sm:$0xff] }
 0x52e   :  { %11169 = vmatprep.subr.bf16.mxu1 %v13606_v42  ;;  %v8138_v42 = vld [vmem:[#allocation12 + $0xa68] sm:$0xff]  ;;  %v13660_v1 = vcombine.high %v8133_v28, %v8137_v63  ;;  %v13659_v10 = vcombine.low %v8133_v28, %v8137_v63 }
 0x52f   :  { %11006 = vmatpush1.bf16.msra.mxu0 %v13603_v7  ;;  %v13662_v3 = vcombine.high %v8134_v16, %v8138_v42  ;;  %v8141_v7 = vld [vmem:[#allocation12 + $0xa80] sm:$0xff]  ;;  %v13661_v11 = vcombine.low %v8134_v16, %v8138_v42 }
 0x530   :  { %11007 = vmatprep.subr.bf16.mxu0 %v13612_v29  ;;  %v8142_v29 = vld [vmem:[#allocation12 + $0xa88] sm:$0xff] }
 0x531   :  { %11170 = vmatpush1.bf16.msra.mxu1 %v13605_v19  ;;  %v8145_v19 = vld [vmem:[#allocation12 + $0xaa0] sm:$0xff] }
 0x532   :  { %11171 = vmatprep.subr.bf16.mxu1 %v13614_v51  ;;  %v8146_v51 = vld [vmem:[#allocation12 + $0xaa8] sm:$0xff]  ;;  %v13668_v12 = vcombine.high %v8141_v7, %v8145_v19  ;;  %v13667_v24 = vcombine.low %v8141_v7, %v8145_v19 }
 0x533   :  { %11008 = vmatpush1.bf16.msra.mxu0 %v13611_v60  ;;  %v13670_v14 = vcombine.high %v8142_v29, %v8146_v51  ;;  %v8149_v60 = vld [vmem:[#allocation12 + $0xac0] sm:$0xff]  ;;  %v13669_v34 = vcombine.low %v8142_v29, %v8146_v51 }
 0x534   :  { %11009 = vmatprep.subr.bf16.mxu0 %v13620_v53  ;;  %v8150_v53 = vld [vmem:[#allocation12 + $0xac8] sm:$0xff] }
 0x535   :  { %11172 = vmatpush1.bf16.msra.mxu1 %v13613_v21  ;;  %v8153_v21 = vld [vmem:[#allocation12 + $0xae0] sm:$0xff] }
 0x536   :  { %11173 = vmatprep.subr.bf16.mxu1 %v13622_v9  ;;  %v8154_v9 = vld [vmem:[#allocation12 + $0xae8] sm:$0xff]  ;;  %v13676_v25 = vcombine.high %v8149_v60, %v8153_v21  ;;  %v13675_v30 = vcombine.low %v8149_v60, %v8153_v21 }
 0x537   :  { %11010 = vmatpush1.bf16.msra.mxu0 %v13619_v54  ;;  %v13678_v13 = vcombine.high %v8150_v53, %v8154_v9  ;;  %v8157_v54 = vld [vmem:[#allocation12 + $0xb00] sm:$0xff]  ;;  %v13677_v45 = vcombine.low %v8150_v53, %v8154_v9 }
 0x538   :  { %11011 = vmatprep.subr.bf16.mxu0 %v13628_v22  ;;  %v8158_v22 = vld [vmem:[#allocation12 + $0xb08] sm:$0xff] }
 0x539   :  { %11174 = vmatpush1.bf16.msra.mxu1 %v13621_v26  ;;  %v8161_v26 = vld [vmem:[#allocation12 + $0xb20] sm:$0xff] }
 0x53a   :  { %11175 = vmatprep.subr.bf16.mxu1 %v13630_v27  ;;  %v8162_v27 = vld [vmem:[#allocation12 + $0xb28] sm:$0xff]  ;;  %v13684_v2 = vcombine.high %v8157_v54, %v8161_v26  ;;  %v13683_v55 = vcombine.low %v8157_v54, %v8161_v26 }
 0x53b   :  { %11012 = vmatpush1.bf16.msra.mxu0 %v13627_v56  ;;  %v13686_v38 = vcombine.high %v8158_v22, %v8162_v27  ;;  %v8165_v56 = vld [vmem:[#allocation12 + $0xb40] sm:$0xff]  ;;  %v13685_v62 = vcombine.low %v8158_v22, %v8162_v27 }
 0x53c   :  { %11013 = vmatprep.subr.bf16.mxu0 %v13636_v32  ;;  %v8166_v32 = vld [vmem:[#allocation12 + $0xb48] sm:$0xff] }
 0x53d   :  { %11176 = vmatpush1.bf16.msra.mxu1 %v13629_v31  ;;  %v8169_v31 = vld [vmem:[#allocation12 + $0xb60] sm:$0xff] }
 0x53e   :  { %11177 = vmatprep.subr.bf16.mxu1 %v13638_v40  ;;  %v8170_v40 = vld [vmem:[#allocation12 + $0xb68] sm:$0xff]  ;;  %v13692_v37 = vcombine.high %v8165_v56, %v8169_v31  ;;  %v13691_v47 = vcombine.low %v8165_v56, %v8169_v31 }
 0x53f   :  { %11014 = vmatpush1.bf16.msra.mxu0 %v13635_v52  ;;  %v13694_v33 = vcombine.high %v8166_v32, %v8170_v40  ;;  %v8173_v52 = vld [vmem:[#allocation12 + $0xb80] sm:$0xff]  ;;  %v13693_v5 = vcombine.low %v8166_v32, %v8170_v40  ;;  %v8198_v56 = vld [vmem:[#allocation12 + $0xc48] sm:$0xff] }
 0x540   :  { %11015 = vmatprep.subr.bf16.mxu0 %v13644_v58  ;;  %v8174_v58 = vld [vmem:[#allocation12 + $0xb88] sm:$0xff] }
 0x541   :  { %11178 = vmatpush1.bf16.msra.mxu1 %v13637_v44  ;;  %v8177_v44 = vld [vmem:[#allocation12 + $0xba0] sm:$0xff]  ;;  %v8202_v31 = vld [vmem:[#allocation12 + $0xc68] sm:$0xff] }
 0x542   :  { %11179 = vmatprep.subr.bf16.mxu1 %v13646_v46  ;;  %v8178_v46 = vld [vmem:[#allocation12 + $0xba8] sm:$0xff]  ;;  %v13700_v50 = vcombine.high %v8173_v52, %v8177_v44  ;;  %v13699_v28 = vcombine.low %v8173_v52, %v8177_v44  ;;  %v13726_v52 = vcombine.high %v8198_v56, %v8202_v31  ;;  %v8209_v44 = vld [vmem:[#allocation12 + $0xca0] sm:$0xff] }
 0x543   :  { %11016 = vmatpush1.bf16.msra.mxu0 %v13643_v36  ;;  %v13702_v57 = vcombine.high %v8174_v58, %v8178_v46  ;;  %v8181_v36 = vld [vmem:[#allocation12 + $0xbc0] sm:$0xff]  ;;  %v13701_v63 = vcombine.low %v8174_v58, %v8178_v46  ;;  %v8206_v58 = vld [vmem:[#allocation12 + $0xc88] sm:$0xff] }
 0x544   :  { %11017 = vmatprep.subr.bf16.mxu0 %v13652_v18  ;;  %v8182_v18 = vld [vmem:[#allocation12 + $0xbc8] sm:$0xff] }
 0x545   :  { %11180 = vmatpush1.bf16.msra.mxu1 %v13645_v61  ;;  %v8185_v61 = vld [vmem:[#allocation12 + $0xbe0] sm:$0xff]  ;;  %v8210_v46 = vld [vmem:[#allocation12 + $0xca8] sm:$0xff] }
 0x546   :  { %11181 = vmatprep.subr.bf16.mxu1 %v13654_v35  ;;  %v8186_v35 = vld [vmem:[#allocation12 + $0xbe8] sm:$0xff]  ;;  %v13708_v16 = vcombine.high %v8181_v36, %v8185_v61  ;;  %v13707_v7 = vcombine.low %v8181_v36, %v8185_v61  ;;  %v13734_v36 = vcombine.high %v8206_v58, %v8210_v46  ;;  %v8213_v61 = vld [vmem:[#allocation12 + $0xcc0] sm:$0xff] }
 0x547   :  { %11018 = vmatpush1.bf16.msra.mxu0 %v13651_v20  ;;  %v13710_v42 = vcombine.high %v8182_v18, %v8186_v35  ;;  %v8189_v20 = vld [vmem:[#allocation12 + $0xc00] sm:$0xff]  ;;  %v13709_v19 = vcombine.low %v8182_v18, %v8186_v35  ;;  %v8214_v35 = vld [vmem:[#allocation12 + $0xcc8] sm:$0xff] }
 0x548   :  { %11019 = vmatprep.subr.bf16.mxu0 %v13660_v1  ;;  %v8190_v1 = vld [vmem:[#allocation12 + $0xc08] sm:$0xff]  ;;  %v8217_v18 = vld [vmem:[#allocation12 + $0xce0] sm:$0xff] }
 0x549   :  { %11182 = vmatpush1.bf16.msra.mxu1 %v13653_v0  ;;  %v8193_v0 = vld [vmem:[#allocation12 + $0xc20] sm:$0xff] }
 0x54a   :  { %11183 = vmatprep.subr.bf16.mxu1 %v13662_v3  ;;  %v8194_v3 = vld [vmem:[#allocation12 + $0xc28] sm:$0xff]  ;;  %v13716_v29 = vcombine.high %v8189_v20, %v8193_v0  ;;  %v13715_v40 = vcombine.low %v8189_v20, %v8193_v0  ;;  %v8221_v0 = vld [vmem:[#allocation12 + $0xd00] sm:$0xff] }
 0x54b   :  { %11020 = vmatpush1.bf16.msra.mxu0 %v13659_v10  ;;  %v13718_v51 = vcombine.high %v8190_v1, %v8194_v3  ;;  %v14862_v10 = vld [vmem:[#allocation11] sm:$0xff] }
 0x54c   :  { %11021 = vmatprep.subr.bf16.mxu0 %v13668_v12  ;;  %v4556_v12 = vrot.slane %v14862_v10, %v14753_v6 }
 0x54d   :  { %11184 = vmatpush1.bf16.msra.mxu1 %v13661_v11  ;;  %v4552_v11 = vrot.slane %v14862_v10, %v14774_v43 }
 0x54e   :  { %11185 = vmatprep.subr.bf16.mxu1 %v13670_v14  ;;  %v4564_v14 = vrot.slane %v14862_v10, %v14786_v15 }
 0x54f   :  { %11022 = vmatpush1.bf16.msra.mxu0 %v13667_v24 }
 0x550   :  { %11023 = vmatprep.subr.bf16.mxu0 %v13676_v25 }
 0x551   :  { %11186 = vmatpush1.bf16.msra.mxu1 %v13669_v34 }
 0x552   :  { %11187 = vmatprep.subr.bf16.mxu1 %v13678_v13 }
 0x553   :  { %11024 = vmatpush1.bf16.msra.mxu0 %v13675_v30 }
 0x554   :  { %11025 = vmatprep.subr.bf16.mxu0 %v13684_v2 }
 0x555   :  { %11188 = vmatpush1.bf16.msra.mxu1 %v13677_v45  ;;  %v8197_v45 = vld [vmem:[#allocation12 + $0xc40] sm:$0xff] }
 0x556   :  { %11189 = vmatprep.subr.bf16.mxu1 %v13686_v38  ;;  %v8201_v38 = vld [vmem:[#allocation12 + $0xc60] sm:$0xff] }
 0x557   :  { %11026 = vmatpush1.bf16.msra.mxu0 %v13683_v55  ;;  %v13717_v55 = vcombine.low %v8190_v1, %v8194_v3  ;;  %v8225_v1 = vld [vmem:[#allocation12 + $0xd20] sm:$0xff]  ;;  %v8222_v3 = vld [vmem:[#allocation12 + $0xd08] sm:$0xff] }
 0x558   :  { %11027 = vmatprep.subr.bf16.mxu0 %v13692_v37  ;;  %v8205_v37 = vld [vmem:[#allocation12 + $0xc80] sm:$0xff] }
 0x559   :  { %11190 = vmatpush1.bf16.msra.mxu1 %v13685_v62 }
 0x55a   :  { %11191 = vmatprep.subr.bf16.mxu1 %v13694_v33  ;;  %v13724_v33 = vcombine.high %v8197_v45, %v8201_v38 }
 0x55b   :  { %11028 = vmatpush1.bf16.msra.mxu0 %v13691_v47 }
 0x55c   :  { %11029 = vmatprep.subr.bf16.mxu0 %v13700_v50  ;;  %v13725_v50 = vcombine.low %v8198_v56, %v8202_v31  ;;  %v8249_v56 = vld [vmem:[#allocation12 + $0xde0] sm:$0xff]  ;;  %v8246_v31 = vld [vmem:[#allocation12 + $0xdc8] sm:$0xff] }
 0x55d   :  { %11192 = vmatpush1.bf16.msra.mxu1 %v13693_v5  ;;  %v13723_v5 = vcombine.low %v8197_v45, %v8201_v38  ;;  %v8245_v38 = vld [vmem:[#allocation12 + $0xdc0] sm:$0xff] }
 0x55e   :  { %11193 = vmatprep.subr.bf16.mxu1 %v13702_v57  ;;  %v13732_v57 = vcombine.high %v8205_v37, %v8209_v44 }
 0x55f   :  { %11030 = vmatpush1.bf16.msra.mxu0 %v13699_v28  ;;  %v8218_v28 = vld [vmem:[#allocation12 + $0xce8] sm:$0xff] }
 0x560   :  { %11031 = vmatprep.subr.bf16.mxu0 %v13708_v16  ;;  %v13733_v16 = vcombine.low %v8206_v58, %v8210_v46  ;;  %v13742_v20 = vcombine.high %v8214_v35, %v8218_v28  ;;  %v8257_v58 = vld [vmem:[#allocation12 + $0xe20] sm:$0xff]  ;;  %v8254_v46 = vld [vmem:[#allocation12 + $0xe08] sm:$0xff] }
 0x561   :  { %11194 = vmatpush1.bf16.msra.mxu1 %v13701_v63  ;;  %v13731_v63 = vcombine.low %v8205_v37, %v8209_v44  ;;  %v8253_v44 = vld [vmem:[#allocation12 + $0xe00] sm:$0xff] }
 0x562   :  { %11195 = vmatprep.subr.bf16.mxu1 %v13710_v42  ;;  %v13740_v42 = vcombine.high %v8213_v61, %v8217_v18 }
 0x563   :  { %11032 = vmatpush1.bf16.msra.mxu0 %v13707_v7  ;;  %v8226_v7 = vld [vmem:[#allocation12 + $0xd28] sm:$0xff] }
 0x564   :  { %11042 = vmatprep.subr.bf16.mxu0 %v13716_v29  ;;  %v13741_v29 = vcombine.low %v8214_v35, %v8218_v28  ;;  %v8265_v35 = vld [vmem:[#allocation12 + $0xe60] sm:$0xff]  ;;  %v8262_v28 = vld [vmem:[#allocation12 + $0xe48] sm:$0xff] }
 0x565   :  { %11196 = vmatpush1.bf16.msra.mxu1 %v13709_v19  ;;  %v13739_v19 = vcombine.low %v8213_v61, %v8217_v18  ;;  %v8261_v18 = vld [vmem:[#allocation12 + $0xe40] sm:$0xff] }
 0x566   :  { %11206 = vmatprep.subr.bf16.mxu1 %v13718_v51  ;;  %v13748_v51 = vcombine.high %v8221_v0, %v8225_v1 }
 0x579   :  { %v7618_v60 = vpop.f32.mrb[36].mxu0 }
 0x57a   :  { %v14000_v21 = vadd.f32 %v7618_v60, %v4552_v11  ;;  %v7620_v9 = vpop.f32.mrb[37].mxu0  ;;  %v13750_v11 = vcombine.high %v8222_v3, %v8226_v7  ;;  %v8230_v60 = vld [vmem:[#allocation12 + $0xd48] sm:$0xff] }
 0x57b   :  { %v14870_v53 = vpop.f32.mrb[36].mxu1  ;;  %v14001_v24 = vadd.f32 %v7620_v9, %v4556_v12  ;;  %v7622_v25 = vpop.f32.mrb[38].mxu0  ;;  %v8229_v12 = vld [vmem:[#allocation12 + $0xd40] sm:$0xff]  ;;  %v13747_v9 = vcombine.low %v8221_v0, %v8225_v1 }
 0x57c   :  { %v7784_v34 = vpop.f32.mrb[37].mxu1  ;;  %v7793_v13 = vmax.f32 %v14000_v21, 0.0  ;;  %v7623_v22 = vpop.f32.mrb[39].mxu0  ;;  %v8234_v21 = vld [vmem:[#allocation12 + $0xd68] sm:$0xff]  ;;  %v8269_v1 = vld [vmem:[#allocation12 + $0xe80] sm:$0xff] }
 0x57d   :  { %v14003_v54 = vadd.f32 %v7784_v34, %v4564_v14  ;;  %v7786_v26 = vpop.f32.mrb[38].mxu1  ;;  %v7794_v27 = vmax.f32 %v14001_v24, 0.0  ;;  %v8233_v14 = vld [vmem:[#allocation12 + $0xd60] sm:$0xff]  ;;  %v13749_v24 = vcombine.low %v8222_v3, %v8226_v7  ;;  %v13758_v25 = vcombine.high %v8230_v60, %v8234_v21  ;;  %v8242_v22 = vld [vmem:[#allocation12 + $0xda8] sm:$0xff] }
 0x57e   :  { %v7787_v30 = vpop.f32.mrb[39].mxu1  ;;  %v14874_v62 = vpack.c.bf16 %v7793_v13, %v7793_v13  ;;  %v13756_v34 = vcombine.high %v8229_v12, %v8233_v14  ;;  %v8237_v13 = vld [vmem:[#allocation12 + $0xd80] sm:$0xff]  ;;  %v8238_v26 = vld [vmem:[#allocation12 + $0xd88] sm:$0xff] }
 0x57f   :  { %v7796_v2 = vmax.f32 %v14003_v54, 0.0  ;;  %v14872_v32 = vpack.c.bf16 %v7794_v27, %v7794_v27  ;;  %v8241_v54 = vld [vmem:[#allocation12 + $0xda0] sm:$0xff]  ;;  %v13755_v27 = vcombine.low %v8229_v12, %v8233_v14  ;;  %v13757_v30 = vcombine.low %v8230_v60, %v8234_v21  ;;  %v8270_v7 = vld [vmem:[#allocation12 + $0xe88] sm:$0xff] }
 0x580   :  { %v13764_v45 = vcombine.high %v8237_v13, %v8241_v54  ;;  %v13765_v37 = vcombine.low %v8238_v26, %v8242_v22  ;;  %v8273_v3 = vld [vmem:[#allocation12 + $0xea0] sm:$0xff]  ;;  %v8278_v21 = vld [vmem:[#allocation12 + $0xec8] sm:$0xff] }
 0x581   :  { %11033 = vmatprep.mubr.bf16.mxu0 %v14872_v32  ;;  %11197 = vmatprep.mubr.bf16.mxu1 %v14872_v32  ;;  %v14878_v47 = vpack.c.bf16 %v7796_v2, %v7796_v2  ;;  %v13766_v2 = vcombine.high %v8238_v26, %v8242_v22  ;;  %v8277_v14 = vld [vmem:[#allocation12 + $0xec0] sm:$0xff]  ;;  %v8286_v22 = vld [vmem:[#allocation12 + $0xf08] sm:$0xff] }
 0x582   :  { %11034 = vmatmul.mubr.bf16.vlgmr.msra.gmra.mrb[40].mxu0 %v14874_v62  ;;  %11198 = vmatmul.mubr.bf16.vlgmr.msra.gmra.mrb[40].mxu1 %v14874_v62  ;;  %v8281_v60 = vld [vmem:[#allocation12 + $0xee0] sm:$0xff] }
 0x583   :  { %11043 = vmatpush1.bf16.msra.mxu0 %v13715_v40  ;;  %11207 = vmatpush1.bf16.msra.mxu1 %v13717_v55  ;;  %v8250_v40 = vld [vmem:[#allocation12 + $0xde8] sm:$0xff]  ;;  %v13763_v55 = vcombine.low %v8237_v13, %v8241_v54  ;;  %v8285_v54 = vld [vmem:[#allocation12 + $0xf00] sm:$0xff] }
 0x584   :  { %11074 = vmatprep.mubr.bf16.mxu0 %v14878_v47  ;;  %11238 = vmatprep.mubr.bf16.mxu1 %v14878_v47  ;;  %v8289_v26 = vld [vmem:[#allocation12 + $0xf20] sm:$0xff] }
 0x585   :  { %11044 = vmatprep.subr.bf16.mxu0 %v13724_v33  ;;  %11208 = vmatprep.subr.bf16.mxu1 %v13726_v52  ;;  %v13772_v33 = vcombine.high %v8245_v38, %v8249_v56  ;;  %v13774_v52 = vcombine.high %v8246_v31, %v8250_v40 }
 0x587   :  { %11045 = vmatpush1.bf16.msra.mxu0 %v13723_v5  ;;  %11209 = vmatpush1.bf16.msra.mxu1 %v13725_v50  ;;  %v8258_v5 = vld [vmem:[#allocation12 + $0xe28] sm:$0xff]  ;;  %v13771_v50 = vcombine.low %v8245_v38, %v8249_v56  ;;  %v8293_v56 = vld [vmem:[#allocation12 + $0xf40] sm:$0xff] }
 0x588   :  { %11046 = vmatprep.subr.bf16.mxu0 %v13732_v57  ;;  %11210 = vmatprep.subr.bf16.mxu1 %v13734_v36  ;;  %v13773_v57 = vcombine.low %v8246_v31, %v8250_v40  ;;  %v13780_v36 = vcombine.high %v8253_v44, %v8257_v58  ;;  %v13782_v61 = vcombine.high %v8254_v46, %v8258_v5  ;;  %v8297_v31 = vld [vmem:[#allocation12 + $0xf60] sm:$0xff]  ;;  %v8294_v40 = vld [vmem:[#allocation12 + $0xf48] sm:$0xff] }
 0x58b   :  { %11047 = vmatpush1.bf16.msra.mxu0 %v13731_v63  ;;  %11211 = vmatpush1.bf16.msra.mxu1 %v13733_v16  ;;  %v8266_v63 = vld [vmem:[#allocation12 + $0xe68] sm:$0xff]  ;;  %v13779_v16 = vcombine.low %v8253_v44, %v8257_v58  ;;  %v8301_v58 = vld [vmem:[#allocation12 + $0xf80] sm:$0xff] }
 0x58c   :  { %11048 = vmatprep.subr.bf16.mxu0 %v13740_v42  ;;  %11212 = vmatprep.subr.bf16.mxu1 %v13742_v20  ;;  %v13781_v42 = vcombine.low %v8254_v46, %v8258_v5  ;;  %v13788_v20 = vcombine.high %v8261_v18, %v8265_v35  ;;  %v13790_v0 = vcombine.high %v8262_v28, %v8266_v63  ;;  %v8305_v46 = vld [vmem:[#allocation12 + $0xfa0] sm:$0xff]  ;;  %v8302_v5 = vld [vmem:[#allocation12 + $0xf88] sm:$0xff] }
 0x58f   :  { %11049 = vmatpush1.bf16.msra.mxu0 %v13739_v19  ;;  %11213 = vmatpush1.bf16.msra.mxu1 %v13741_v29  ;;  %v8274_v19 = vld [vmem:[#allocation12 + $0xea8] sm:$0xff]  ;;  %v13787_v29 = vcombine.low %v8261_v18, %v8265_v35  ;;  %v13828_v18 = vcombine.high %v8301_v58, %v8305_v46 }
 0x590   :  { %11050 = vmatprep.subr.bf16.mxu0 %v13748_v51  ;;  %11214 = vmatprep.subr.bf16.mxu1 %v13750_v11  ;;  %v13789_v51 = vcombine.low %v8262_v28, %v8266_v63  ;;  %v13796_v11 = vcombine.high %v8269_v1, %v8273_v3  ;;  %v13798_v12 = vcombine.high %v8270_v7, %v8274_v19  ;;  %v8309_v28 = vld [vmem:[#allocation12 + $0xfc0] sm:$0xff] }
 0x591   :  { %v8313_v63 = vld [vmem:[#allocation12 + $0xfe0] sm:$0xff] }
 0x593   :  { %11051 = vmatpush1.bf16.msra.mxu0 %v13747_v9  ;;  %11215 = vmatpush1.bf16.msra.mxu1 %v13749_v24  ;;  %v8282_v9 = vld [vmem:[#allocation12 + $0xee8] sm:$0xff]  ;;  %v13795_v24 = vcombine.low %v8269_v1, %v8273_v3  ;;  %v13836_v3 = vcombine.high %v8309_v28, %v8313_v63 }
 0x594   :  { %11052 = vmatprep.subr.bf16.mxu0 %v13756_v34  ;;  %11216 = vmatprep.subr.bf16.mxu1 %v13758_v25  ;;  %v13797_v34 = vcombine.low %v8270_v7, %v8274_v19  ;;  %v13804_v25 = vcombine.high %v8277_v14, %v8281_v60  ;;  %v13806_v13 = vcombine.high %v8278_v21, %v8282_v9  ;;  %v7807_v19 = vld [vmem:[#allocation12 + $0x10] sm:$0xff] }
 0x597   :  { %11053 = vmatpush1.bf16.msra.mxu0 %v13755_v27  ;;  %11217 = vmatpush1.bf16.msra.mxu1 %v13757_v30  ;;  %v8290_v27 = vld [vmem:[#allocation12 + $0xf28] sm:$0xff]  ;;  %v13803_v30 = vcombine.low %v8277_v14, %v8281_v60 }
 0x598   :  { %11054 = vmatprep.subr.bf16.mxu0 %v13764_v45  ;;  %11218 = vmatprep.subr.bf16.mxu1 %v13766_v2  ;;  %v13805_v45 = vcombine.low %v8278_v21, %v8282_v9  ;;  %v13812_v2 = vcombine.high %v8285_v54, %v8289_v26  ;;  %v13814_v38 = vcombine.high %v8286_v22, %v8290_v27  ;;  %v7815_v9 = vld [vmem:[#allocation12 + $0x50] sm:$0xff] }
 0x59b   :  { %11055 = vmatpush1.bf16.msra.mxu0 %v13763_v55  ;;  %11219 = vmatpush1.bf16.msra.mxu1 %v13765_v37  ;;  %v8298_v55 = vld [vmem:[#allocation12 + $0xf68] sm:$0xff]  ;;  %v13811_v37 = vcombine.low %v8285_v54, %v8289_v26 }
 0x59c   :  { %11056 = vmatprep.subr.bf16.mxu0 %v13772_v33  ;;  %11220 = vmatprep.subr.bf16.mxu1 %v13774_v52  ;;  %v13813_v33 = vcombine.low %v8286_v22, %v8290_v27  ;;  %v13820_v52 = vcombine.high %v8293_v56, %v8297_v31  ;;  %v13822_v44 = vcombine.high %v8294_v40, %v8298_v55  ;;  %v7823_v27 = vld [vmem:[#allocation12 + $0x90] sm:$0xff] }
 0x59f   :  { %11057 = vmatpush1.bf16.msra.mxu0 %v13771_v50  ;;  %11221 = vmatpush1.bf16.msra.mxu1 %v13773_v57  ;;  %v8306_v50 = vld [vmem:[#allocation12 + $0xfa8] sm:$0xff]  ;;  %v13819_v57 = vcombine.low %v8293_v56, %v8297_v31 }
 0x5a0   :  { %11058 = vmatprep.subr.bf16.mxu0 %v13780_v36  ;;  %11222 = vmatprep.subr.bf16.mxu1 %v13782_v61  ;;  %v13821_v36 = vcombine.low %v8294_v40, %v8298_v55  ;;  %v4560_v61 = vrot.slane %v14862_v10, %v14799_v39  ;;  %v13830_v35 = vcombine.high %v8302_v5, %v8306_v50  ;;  %v7811_v10 = vld [vmem:[#allocation12 + $0x30] sm:$0xff] }
 0x5a1   :  { %v13336_v60 = vcombine.high %v7807_v19, %v7811_v10  ;;  %v7831_v55 = vld [vmem:[#allocation12 + $0xd0] sm:$0xff] }
 0x5a2   :  { %v14002_v1 = vadd.f32 %v14870_v53, %v4560_v61  ;;  %v7816_v53 = vld [vmem:[#allocation12 + $0x58] sm:$0xff] }
 0x5a3   :  { %11059 = vmatpush1.bf16.msra.mxu0 %v13779_v16  ;;  %11223 = vmatpush1.bf16.msra.mxu1 %v13781_v42  ;;  %v8310_v16 = vld [vmem:[#allocation12 + $0xfc8] sm:$0xff] }
 0x5a4   :  { %11060 = vmatprep.subr.bf16.mxu0 %v13788_v20  ;;  %11224 = vmatprep.subr.bf16.mxu1 %v13790_v0  ;;  %v8314_v42 = vld [vmem:[#allocation12 + $0xfe8] sm:$0xff]  ;;  %v13827_v20 = vcombine.low %v8301_v58, %v8305_v46  ;;  %v13829_v0 = vcombine.low %v8302_v5, %v8306_v50  ;;  %v7795_v14 = vmax.f32 %v14002_v1, 0.0  ;;  %v7839_v50 = vld [vmem:[#allocation12 + $0x110] sm:$0xff] }
 0x5a5   :  { %v13838_v7 = vcombine.high %v8310_v16, %v8314_v42 }
 0x5a7   :  { %11061 = vmatpush1.bf16.msra.mxu0 %v13787_v29  ;;  %11225 = vmatpush1.bf16.msra.mxu1 %v13789_v51  ;;  %v7808_v29 = vld [vmem:[#allocation12 + $0x18] sm:$0xff] }
 0x5a8   :  { %11062 = vmatprep.subr.bf16.mxu0 %v13796_v11  ;;  %11226 = vmatprep.subr.bf16.mxu1 %v13798_v12  ;;  %v7812_v51 = vld [vmem:[#allocation12 + $0x38] sm:$0xff]  ;;  %v13835_v11 = vcombine.low %v8309_v28, %v8313_v63  ;;  %v13837_v12 = vcombine.low %v8310_v16, %v8314_v42  ;;  %v7847_v63 = vld [vmem:[#allocation12 + $0x150] sm:$0xff] }
 0x5a9   :  { %v13338_v21 = vcombine.high %v7808_v29, %v7812_v51  ;;  %v13337_v54 = vcombine.low %v7808_v29, %v7812_v51  ;;  %v7851_v16 = vld [vmem:[#allocation12 + $0x170] sm:$0xff]  ;;  %v7848_v42 = vld [vmem:[#allocation12 + $0x158] sm:$0xff] }
 0x5aa   :  { %v7856_v29 = vld [vmem:[#allocation12 + $0x198] sm:$0xff] }
 0x5ab   :  { %11063 = vmatpush1.bf16.msra.mxu0 %v13795_v24  ;;  %11227 = vmatpush1.bf16.msra.mxu1 %v13797_v34  ;;  %v7819_v24 = vld [vmem:[#allocation12 + $0x70] sm:$0xff]  ;;  %v7820_v34 = vld [vmem:[#allocation12 + $0x78] sm:$0xff] }
 0x5ac   :  { %11064 = vmatprep.subr.bf16.mxu0 %v13804_v25  ;;  %11228 = vmatprep.subr.bf16.mxu1 %v13806_v13  ;;  %v13335_v25 = vcombine.low %v7807_v19, %v7811_v10  ;;  %v14887_v13 = vpack.c.bf16 %v7795_v14, %v7795_v14  ;;  %v13344_v26 = vcombine.high %v7815_v9, %v7819_v24  ;;  %v7855_v19 = vld [vmem:[#allocation12 + $0x190] sm:$0xff]  ;;  %v7860_v51 = vld [vmem:[#allocation12 + $0x1b8] sm:$0xff] }
 0x5ad   :  { %v13346_v22 = vcombine.high %v7816_v53, %v7820_v34  ;;  %v13345_v56 = vcombine.low %v7816_v53, %v7820_v34  ;;  %v7859_v10 = vld [vmem:[#allocation12 + $0x1b0] sm:$0xff]  ;;  %v7868_v53 = vld [vmem:[#allocation12 + $0x1f8] sm:$0xff] }
 0x5ae   :  { %v13384_v14 = vcombine.high %v7855_v19, %v7859_v10  ;;  %v13383_v34 = vcombine.low %v7855_v19, %v7859_v10  ;;  %v7907_v19 = vld [vmem:[#allocation12 + $0x330] sm:$0xff]  ;;  %v7904_v10 = vld [vmem:[#allocation12 + $0x318] sm:$0xff] }
 0x5af   :  { %11065 = vmatpush1.bf16.msra.mxu0 %v13803_v30  ;;  %11229 = vmatpush1.bf16.msra.mxu1 %v13805_v45  ;;  %v7827_v30 = vld [vmem:[#allocation12 + $0xb0] sm:$0xff]  ;;  %v7824_v45 = vld [vmem:[#allocation12 + $0x98] sm:$0xff] }
 0x5b0   :  { %11066 = vmatprep.subr.bf16.mxu0 %v13812_v2  ;;  %11230 = vmatprep.subr.bf16.mxu1 %v13814_v38  ;;  %v7828_v2 = vld [vmem:[#allocation12 + $0xb8] sm:$0xff]  ;;  %v13343_v38 = vcombine.low %v7815_v9, %v7819_v24  ;;  %v13352_v31 = vcombine.high %v7823_v27, %v7827_v30  ;;  %v7867_v9 = vld [vmem:[#allocation12 + $0x1f0] sm:$0xff] }
 0x5b1   :  { %v13354_v40 = vcombine.high %v7824_v45, %v7828_v2  ;;  %v13353_v58 = vcombine.low %v7824_v45, %v7828_v2  ;;  %v7864_v24 = vld [vmem:[#allocation12 + $0x1d8] sm:$0xff] }
 0x5b2   :  { %v7876_v45 = vld [vmem:[#allocation12 + $0x238] sm:$0xff] }
 0x5b3   :  { %11067 = vmatpush1.bf16.msra.mxu0 %v13811_v37  ;;  %11231 = vmatpush1.bf16.msra.mxu1 %v13813_v33  ;;  %v7835_v37 = vld [vmem:[#allocation12 + $0xf0] sm:$0xff]  ;;  %v7832_v33 = vld [vmem:[#allocation12 + $0xd8] sm:$0xff] }
 0x5b4   :  { %11068 = vmatprep.subr.bf16.mxu0 %v13820_v52  ;;  %11232 = vmatprep.subr.bf16.mxu1 %v13822_v44  ;;  %v7836_v52 = vld [vmem:[#allocation12 + $0xf8] sm:$0xff]  ;;  %v13351_v44 = vcombine.low %v7823_v27, %v7827_v30  ;;  %v13360_v46 = vcombine.high %v7831_v55, %v7835_v37  ;;  %v13359_v61 = vcombine.low %v7831_v55, %v7835_v37  ;;  %v7875_v27 = vld [vmem:[#allocation12 + $0x230] sm:$0xff] }
 0x5b5   :  { %v13362_v5 = vcombine.high %v7832_v33, %v7836_v52  ;;  %v7872_v30 = vld [vmem:[#allocation12 + $0x218] sm:$0xff]  ;;  %v7883_v55 = vld [vmem:[#allocation12 + $0x270] sm:$0xff] }
 0x5b6   :  { %v7880_v37 = vld [vmem:[#allocation12 + $0x258] sm:$0xff] }
 0x5b7   :  { %11069 = vmatpush1.bf16.msra.mxu0 %v13819_v57  ;;  %11233 = vmatpush1.bf16.msra.mxu1 %v13821_v36  ;;  %v7843_v57 = vld [vmem:[#allocation12 + $0x130] sm:$0xff]  ;;  %v7844_v36 = vld [vmem:[#allocation12 + $0x138] sm:$0xff] }
 0x5b8   :  { %11070 = vmatprep.subr.bf16.mxu0 %v13828_v18  ;;  %11234 = vmatprep.subr.bf16.mxu1 %v13830_v35  ;;  %v13361_v18 = vcombine.low %v7832_v33, %v7836_v52  ;;  %v13368_v35 = vcombine.high %v7839_v50, %v7843_v57  ;;  %v7884_v33 = vld [vmem:[#allocation12 + $0x278] sm:$0xff] }
 0x5bb   :  { %11071 = vmatpush1.bf16.msra.mxu0 %v13827_v20  ;;  %11235 = vmatpush1.bf16.msra.mxu1 %v13829_v0  ;;  %v7852_v20 = vld [vmem:[#allocation12 + $0x178] sm:$0xff]  ;;  %v13367_v0 = vcombine.low %v7839_v50, %v7843_v57  ;;  %v7891_v50 = vld [vmem:[#allocation12 + $0x2b0] sm:$0xff] }
 0x5bc   :  { %11072 = vmatprep.subr.bf16.mxu0 %v13836_v3  ;;  %11236 = vmatprep.subr.bf16.mxu1 %v13838_v7  ;;  %v13376_v3 = vcombine.high %v7847_v63, %v7851_v16  ;;  %v13378_v7 = vcombine.high %v7848_v42, %v7852_v20  ;;  %v7888_v57 = vld [vmem:[#allocation12 + $0x298] sm:$0xff] }
 0x5bf   :  { %11073 = vmatpush1.bf16.msra.mxu0 %v13835_v11  ;;  %11237 = vmatpush1.bf16.msra.mxu1 %v13837_v12  ;;  %v13375_v11 = vcombine.low %v7847_v63, %v7851_v16  ;;  %v13377_v12 = vcombine.low %v7848_v42, %v7852_v20  ;;  %v7899_v63 = vld [vmem:[#allocation12 + $0x2f0] sm:$0xff]  ;;  %v7896_v16 = vld [vmem:[#allocation12 + $0x2d8] sm:$0xff] }
 0x5c0   :  { %11247 = vmatprep.subr.bf16.mxu0 %v13336_v60  ;;  %11411 = vmatprep.subr.bf16.mxu1 %v13338_v21  ;;  %v13386_v60 = vcombine.high %v7856_v29, %v7860_v51  ;;  %v7863_v21 = vld [vmem:[#allocation12 + $0x1d0] sm:$0xff]  ;;  %v7900_v42 = vld [vmem:[#allocation12 + $0x2f8] sm:$0xff] }
 0x5c1   :  { %v13391_v2 = vcombine.low %v7863_v21, %v7867_v9 }
 0x5c2   :  { %11075 = vmatmul.mubr.bf16.vlgmr.msra.gmra.mrb[40].mxu0 %v14887_v13  ;;  %11239 = vmatmul.mubr.bf16.vlgmr.msra.gmra.mrb[40].mxu1 %v14887_v13 }
 0x5c3   :  { %11248 = vmatpush1.bf16.msra.mxu0 %v13335_v25  ;;  %11279 = vmatprep.mubr.bf16.mxu0 %v14835_v41  ;;  %v13385_v25 = vcombine.low %v7856_v29, %v7860_v51  ;;  %v7908_v29 = vld [vmem:[#allocation12 + $0x338] sm:$0xff] }
 0x5c4   :  { %11412 = vmatpush1.bf16.msra.mxu1 %v13337_v54  ;;  %11443 = vmatprep.mubr.bf16.mxu1 %v14835_v41  ;;  %v7840_v41 = vld [vmem:[#allocation12 + $0x118] sm:$0xff]  ;;  %v13392_v54 = vcombine.high %v7863_v21, %v7867_v9  ;;  %v7915_v21 = vld [vmem:[#allocation12 + $0x370] sm:$0xff] }
 0x5c5   :  { %11249 = vmatprep.subr.bf16.mxu0 %v13344_v26  ;;  %11413 = vmatprep.subr.bf16.mxu1 %v13346_v22  ;;  %v13370_v28 = vcombine.high %v7840_v41, %v7844_v36  ;;  %v13369_v1 = vcombine.low %v7840_v41, %v7844_v36  ;;  %v13394_v26 = vcombine.high %v7864_v24, %v7868_v53  ;;  %v7871_v22 = vld [vmem:[#allocation12 + $0x210] sm:$0xff]  ;;  %v7892_v41 = vld [vmem:[#allocation12 + $0x2b8] sm:$0xff] }
 0x5c6   :  { %v13399_v52 = vcombine.low %v7871_v22, %v7875_v27  ;;  %v7912_v9 = vld [vmem:[#allocation12 + $0x358] sm:$0xff] }
 0x5c7   :  { %11250 = vmatpush1.bf16.msra.mxu0 %v13343_v38  ;;  %v13393_v38 = vcombine.low %v7864_v24, %v7868_v53  ;;  %v7916_v24 = vld [vmem:[#allocation12 + $0x378] sm:$0xff] }
 0x5c8   :  { %11414 = vmatpush1.bf16.msra.mxu1 %v13345_v56  ;;  %11251 = vmatprep.subr.bf16.mxu0 %v13352_v31  ;;  %v13400_v56 = vcombine.high %v7871_v22, %v7875_v27  ;;  %v13402_v31 = vcombine.high %v7872_v30, %v7876_v45  ;;  %v7923_v22 = vld [vmem:[#allocation12 + $0x3b0] sm:$0xff]  ;;  %v7920_v27 = vld [vmem:[#allocation12 + $0x398] sm:$0xff] }
 0x5c9   :  { %11415 = vmatprep.subr.bf16.mxu1 %v13354_v40  ;;  %v7879_v40 = vld [vmem:[#allocation12 + $0x250] sm:$0xff] }
 0x5ca   :  { %v13407_v36 = vcombine.low %v7879_v40, %v7883_v55 }
 0x5cb   :  { %11252 = vmatpush1.bf16.msra.mxu0 %v13351_v44  ;;  %v13401_v44 = vcombine.low %v7872_v30, %v7876_v45  ;;  %v7924_v30 = vld [vmem:[#allocation12 + $0x3b8] sm:$0xff] }
 0x5cc   :  { %11416 = vmatpush1.bf16.msra.mxu1 %v13353_v58  ;;  %11253 = vmatprep.subr.bf16.mxu0 %v13360_v46  ;;  %v13408_v58 = vcombine.high %v7879_v40, %v7883_v55  ;;  %v13410_v46 = vcombine.high %v7880_v37, %v7884_v33  ;;  %v7931_v40 = vld [vmem:[#allocation12 + $0x3f0] sm:$0xff]  ;;  %v7928_v55 = vld [vmem:[#allocation12 + $0x3d8] sm:$0xff] }
 0x5cd   :  { %11417 = vmatprep.subr.bf16.mxu1 %v13362_v5  ;;  %v7887_v5 = vld [vmem:[#allocation12 + $0x290] sm:$0xff] }
 0x5ce   :  { %v13415_v20 = vcombine.low %v7887_v5, %v7891_v50 }
 0x5cf   :  { %11254 = vmatpush1.bf16.msra.mxu0 %v13359_v61  ;;  %v13409_v61 = vcombine.low %v7880_v37, %v7884_v33  ;;  %v7932_v37 = vld [vmem:[#allocation12 + $0x3f8] sm:$0xff] }
 0x5d0   :  { %11418 = vmatpush1.bf16.msra.mxu1 %v13361_v18  ;;  %11255 = vmatprep.subr.bf16.mxu0 %v13368_v35  ;;  %v13416_v18 = vcombine.high %v7887_v5, %v7891_v50  ;;  %v13418_v35 = vcombine.high %v7888_v57, %v7892_v41  ;;  %v7939_v5 = vld [vmem:[#allocation12 + $0x430] sm:$0xff]  ;;  %v7936_v50 = vld [vmem:[#allocation12 + $0x418] sm:$0xff] }
 0x5d1   :  { %11419 = vmatprep.subr.bf16.mxu1 %v13370_v28  ;;  %v7895_v28 = vld [vmem:[#allocation12 + $0x2d0] sm:$0xff] }
 0x5d2   :  { %v13423_v51 = vcombine.low %v7895_v28, %v7899_v63 }
 0x5d3   :  { %11256 = vmatpush1.bf16.msra.mxu0 %v13367_v0  ;;  %v13417_v0 = vcombine.low %v7888_v57, %v7892_v41  ;;  %v7940_v57 = vld [vmem:[#allocation12 + $0x438] sm:$0xff] }
 0x5d4   :  { %11420 = vmatpush1.bf16.msra.mxu1 %v13369_v1  ;;  %11257 = vmatprep.subr.bf16.mxu0 %v13376_v3  ;;  %v13424_v1 = vcombine.high %v7895_v28, %v7899_v63  ;;  %v13426_v3 = vcombine.high %v7896_v16, %v7900_v42  ;;  %v7947_v28 = vld [vmem:[#allocation12 + $0x470] sm:$0xff] }
 0x5d5   :  { %11421 = vmatprep.subr.bf16.mxu1 %v13378_v7  ;;  %v7903_v7 = vld [vmem:[#allocation12 + $0x310] sm:$0xff] }
 0x5d6   :  { %v13431_v53 = vcombine.low %v7903_v7, %v7907_v19 }
 0x5d7   :  { %11258 = vmatpush1.bf16.msra.mxu0 %v13375_v11  ;;  %v13425_v11 = vcombine.low %v7896_v16, %v7900_v42  ;;  %v7944_v16 = vld [vmem:[#allocation12 + $0x458] sm:$0xff] }
 0x5d8   :  { %11422 = vmatpush1.bf16.msra.mxu1 %v13377_v12  ;;  %11259 = vmatprep.subr.bf16.mxu0 %v13384_v14  ;;  %v13432_v12 = vcombine.high %v7903_v7, %v7907_v19  ;;  %v13434_v14 = vcombine.high %v7904_v10, %v7908_v29  ;;  %v7948_v42 = vld [vmem:[#allocation12 + $0x478] sm:$0xff] }
 0x5d9   :  { %11423 = vmatprep.subr.bf16.mxu1 %v13386_v60  ;;  %v7911_v60 = vld [vmem:[#allocation12 + $0x350] sm:$0xff]  ;;  %v13474_v7 = vcombine.high %v7944_v16, %v7948_v42  ;;  %v7952_v19 = vld [vmem:[#allocation12 + $0x498] sm:$0xff] }
 0x5da   :  { %v13439_v45 = vcombine.low %v7911_v60, %v7915_v21 }
 0x5db   :  { %11260 = vmatpush1.bf16.msra.mxu0 %v13383_v34  ;;  %v13433_v34 = vcombine.low %v7904_v10, %v7908_v29  ;;  %v7956_v10 = vld [vmem:[#allocation12 + $0x4b8] sm:$0xff] }
 0x5dc   :  { %11424 = vmatpush1.bf16.msra.mxu1 %v13385_v25  ;;  %11261 = vmatprep.subr.bf16.mxu0 %v13392_v54  ;;  %v13440_v25 = vcombine.high %v7911_v60, %v7915_v21  ;;  %v13442_v54 = vcombine.high %v7912_v9, %v7916_v24  ;;  %v7963_v60 = vld [vmem:[#allocation12 + $0x4f0] sm:$0xff]  ;;  %v7960_v21 = vld [vmem:[#allocation12 + $0x4d8] sm:$0xff] }
 0x5dd   :  { %11425 = vmatprep.subr.bf16.mxu1 %v13394_v26  ;;  %v7919_v26 = vld [vmem:[#allocation12 + $0x390] sm:$0xff] }
 0x5de   :  { %v13447_v33 = vcombine.low %v7919_v26, %v7923_v22 }
 0x5df   :  { %11262 = vmatpush1.bf16.msra.mxu0 %v13391_v2  ;;  %v13441_v2 = vcombine.low %v7912_v9, %v7916_v24  ;;  %v7964_v9 = vld [vmem:[#allocation12 + $0x4f8] sm:$0xff] }
 0x5e0   :  { %11426 = vmatpush1.bf16.msra.mxu1 %v13393_v38  ;;  %11263 = vmatprep.subr.bf16.mxu0 %v13400_v56  ;;  %v13448_v38 = vcombine.high %v7919_v26, %v7923_v22  ;;  %v13450_v56 = vcombine.high %v7920_v27, %v7924_v30  ;;  %v7968_v26 = vld [vmem:[#allocation12 + $0x518] sm:$0xff] }
 0x5e1   :  { %11427 = vmatprep.subr.bf16.mxu1 %v13402_v31  ;;  %v7927_v31 = vld [vmem:[#allocation12 + $0x3d0] sm:$0xff]  ;;  %v7972_v22 = vld [vmem:[#allocation12 + $0x538] sm:$0xff] }
 0x5e2   :  { %v13455_v41 = vcombine.low %v7927_v31, %v7931_v40 }
 0x5e3   :  { %11264 = vmatpush1.bf16.msra.mxu0 %v13399_v52  ;;  %v13449_v52 = vcombine.low %v7920_v27, %v7924_v30  ;;  %v13489_v27 = vcombine.low %v7960_v21, %v7964_v9 }
 0x5e4   :  { %11428 = vmatpush1.bf16.msra.mxu1 %v13401_v44  ;;  %11265 = vmatprep.subr.bf16.mxu0 %v13408_v58  ;;  %v13456_v44 = vcombine.high %v7927_v31, %v7931_v40  ;;  %v13458_v58 = vcombine.high %v7928_v55, %v7932_v37  ;;  %v7980_v31 = vld [vmem:[#allocation12 + $0x578] sm:$0xff] }
 0x5e5   :  { %11429 = vmatprep.subr.bf16.mxu1 %v13410_v46  ;;  %v7935_v46 = vld [vmem:[#allocation12 + $0x410] sm:$0xff] }
 0x5e6   :  { %v13463_v63 = vcombine.low %v7935_v46, %v7939_v5 }
 0x5e7   :  { %11266 = vmatpush1.bf16.msra.mxu0 %v13407_v36  ;;  %v13457_v36 = vcombine.low %v7928_v55, %v7932_v37  ;;  %v13497_v55 = vcombine.low %v7968_v26, %v7972_v22 }
 0x5e8   :  { %11430 = vmatpush1.bf16.msra.mxu1 %v13409_v61  ;;  %11267 = vmatprep.subr.bf16.mxu0 %v13416_v18  ;;  %v13464_v61 = vcombine.high %v7935_v46, %v7939_v5  ;;  %v13466_v18 = vcombine.high %v7936_v50, %v7940_v57  ;;  %v7988_v46 = vld [vmem:[#allocation12 + $0x5b8] sm:$0xff] }
 0x5e9   :  { %11431 = vmatprep.subr.bf16.mxu1 %v13418_v35  ;;  %v7943_v35 = vld [vmem:[#allocation12 + $0x450] sm:$0xff] }
 0x5ea   :  { %v13471_v29 = vcombine.low %v7943_v35, %v7947_v28 }
 0x5eb   :  { %11268 = vmatpush1.bf16.msra.mxu0 %v13415_v20  ;;  %v13465_v20 = vcombine.low %v7936_v50, %v7940_v57 }
 0x5ec   :  { %11432 = vmatpush1.bf16.msra.mxu1 %v13417_v0  ;;  %11269 = vmatprep.subr.bf16.mxu0 %v13424_v1  ;;  %v13472_v0 = vcombine.high %v7943_v35, %v7947_v28  ;;  %v7951_v1 = vld [vmem:[#allocation12 + $0x490] sm:$0xff]  ;;  %v7996_v35 = vld [vmem:[#allocation12 + $0x5f8] sm:$0xff] }
 0x5ed   :  { %11433 = vmatprep.subr.bf16.mxu1 %v13426_v3  ;;  %v7955_v3 = vld [vmem:[#allocation12 + $0x4b0] sm:$0xff] }
 0x5ee   :  { %v13479_v24 = vcombine.low %v7951_v1, %v7955_v3 }
 0x5ef   :  { %11270 = vmatpush1.bf16.msra.mxu0 %v13423_v51  ;;  %v13473_v51 = vcombine.low %v7944_v16, %v7948_v42 }
 0x5f0   :  { %11434 = vmatpush1.bf16.msra.mxu1 %v13425_v11  ;;  %11271 = vmatprep.subr.bf16.mxu0 %v13432_v12  ;;  %v13480_v11 = vcombine.high %v7951_v1, %v7955_v3  ;;  %v13482_v12 = vcombine.high %v7952_v19, %v7956_v10  ;;  %v8000_v1 = vld [vmem:[#allocation12 + $0x618] sm:$0xff] }
 0x5f1   :  { %11435 = vmatprep.subr.bf16.mxu1 %v13434_v14  ;;  %v7959_v14 = vld [vmem:[#allocation12 + $0x4d0] sm:$0xff]  ;;  %v8004_v3 = vld [vmem:[#allocation12 + $0x638] sm:$0xff] }
 0x5f3   :  { %11272 = vmatpush1.bf16.msra.mxu0 %v13431_v53  ;;  %v13488_v53 = vcombine.high %v7959_v14, %v7963_v60 }
 0x5f4   :  { %11436 = vmatpush1.bf16.msra.mxu1 %v13433_v34  ;;  %11273 = vmatprep.subr.bf16.mxu0 %v13440_v25  ;;  %v13490_v34 = vcombine.high %v7960_v21, %v7964_v9  ;;  %v7967_v25 = vld [vmem:[#allocation12 + $0x510] sm:$0xff]  ;;  %v13529_v21 = vcombine.low %v8000_v1, %v8004_v3 }
 0x5f5   :  { %11437 = vmatprep.subr.bf16.mxu1 %v13442_v54  ;;  %v7971_v54 = vld [vmem:[#allocation12 + $0x530] sm:$0xff] }
 0x5f6   :  { %v13496_v30 = vcombine.high %v7967_v25, %v7971_v54  ;;  %v13495_v40 = vcombine.low %v7967_v25, %v7971_v54  ;;  %v8020_v25 = vld [vmem:[#allocation12 + $0x6b8] sm:$0xff] }
 0x5f7   :  { %11274 = vmatpush1.bf16.msra.mxu0 %v13439_v45  ;;  %v13498_v45 = vcombine.high %v7968_v26, %v7972_v22 }
 0x5f8   :  { %11438 = vmatpush1.bf16.msra.mxu1 %v13441_v2  ;;  %11275 = vmatprep.subr.bf16.mxu0 %v13448_v38  ;;  %v7975_v2 = vld [vmem:[#allocation12 + $0x550] sm:$0xff] }
 0x5f9   :  { %11439 = vmatprep.subr.bf16.mxu1 %v13450_v56  ;;  %v7979_v38 = vld [vmem:[#allocation12 + $0x570] sm:$0xff]  ;;  %v7976_v56 = vld [vmem:[#allocation12 + $0x558] sm:$0xff] }
 0x5fa   :  { %v13504_v37 = vcombine.high %v7975_v2, %v7979_v38  ;;  %v13503_v5 = vcombine.low %v7975_v2, %v7979_v38  ;;  %v13505_v50 = vcombine.low %v7976_v56, %v7980_v31  ;;  %v8028_v2 = vld [vmem:[#allocation12 + $0x6f8] sm:$0xff] }
 0x5fb   :  { %11276 = vmatpush1.bf16.msra.mxu0 %v13447_v33  ;;  %v13506_v33 = vcombine.high %v7976_v56, %v7980_v31 }
 0x5fc   :  { %11440 = vmatpush1.bf16.msra.mxu1 %v13449_v52  ;;  %11277 = vmatprep.subr.bf16.mxu0 %v13456_v44  ;;  %v7983_v52 = vld [vmem:[#allocation12 + $0x590] sm:$0xff] }
 0x5fd   :  { %11441 = vmatprep.subr.bf16.mxu1 %v13458_v58  ;;  %v7987_v44 = vld [vmem:[#allocation12 + $0x5b0] sm:$0xff]  ;;  %v7984_v58 = vld [vmem:[#allocation12 + $0x598] sm:$0xff] }
 0x5fe   :  { %v13512_v57 = vcombine.high %v7983_v52, %v7987_v44  ;;  %v13511_v28 = vcombine.low %v7983_v52, %v7987_v44  ;;  %v8036_v52 = vld [vmem:[#allocation12 + $0x738] sm:$0xff] }
 0x5ff   :  { %11278 = vmatpush1.bf16.msra.mxu0 %v13455_v41  ;;  %v13514_v41 = vcombine.high %v7984_v58, %v7988_v46 }
 0x600   :  { %11442 = vmatpush1.bf16.msra.mxu1 %v13457_v36  ;;  %11288 = vmatprep.subr.bf16.mxu0 %v13464_v61  ;;  %v7991_v36 = vld [vmem:[#allocation12 + $0x5d0] sm:$0xff] }
 0x601   :  { %11452 = vmatprep.subr.bf16.mxu1 %v13466_v18  ;;  %v7995_v61 = vld [vmem:[#allocation12 + $0x5f0] sm:$0xff]  ;;  %v7992_v18 = vld [vmem:[#allocation12 + $0x5d8] sm:$0xff] }
 0x602   :  { %11280 = vmatmul.mubr.bf16.vlgmr.msra.gmra.mrb[44].mxu0 %v14847_v17  ;;  %v13520_v16 = vcombine.high %v7991_v36, %v7995_v61  ;;  %v13522_v42 = vcombine.high %v7992_v18, %v7996_v35 }
 0x603   :  { %11444 = vmatmul.mubr.bf16.vlgmr.msra.gmra.mrb[44].mxu1 %v14847_v17  ;;  %11289 = vmatpush1.bf16.msra.mxu0 %v13463_v63  ;;  %v13481_v17 = vcombine.low %v7952_v19, %v7956_v10  ;;  %v13513_v63 = vcombine.low %v7984_v58, %v7988_v46  ;;  %v13521_v19 = vcombine.low %v7992_v18, %v7996_v35 }
 0x604   :  { %11320 = vmatprep.mubr.bf16.mxu0 %v14849_v23  ;;  %11453 = vmatpush1.bf16.msra.mxu1 %v13465_v20  ;;  %v7999_v20 = vld [vmem:[#allocation12 + $0x610] sm:$0xff] }
 0x605   :  { %11484 = vmatprep.mubr.bf16.mxu1 %v14849_v23  ;;  %11290 = vmatprep.subr.bf16.mxu0 %v13472_v0  ;;  %v13487_v23 = vcombine.low %v7959_v14, %v7963_v60  ;;  %v8003_v0 = vld [vmem:[#allocation12 + $0x630] sm:$0xff]  ;;  %v8012_v14 = vld [vmem:[#allocation12 + $0x678] sm:$0xff] }
 0x606   :  { %11454 = vmatprep.subr.bf16.mxu1 %v13474_v7  ;;  %v13519_v7 = vcombine.low %v7991_v36, %v7995_v61  ;;  %v13528_v10 = vcombine.high %v7999_v20, %v8003_v0  ;;  %v13527_v60 = vcombine.low %v7999_v20, %v8003_v0  ;;  %v8044_v36 = vld [vmem:[#allocation12 + $0x778] sm:$0xff] }
 0x607   :  { %11291 = vmatpush1.bf16.msra.mxu0 %v13471_v29  ;;  %v13530_v29 = vcombine.high %v8000_v1, %v8004_v3  ;;  %v8052_v20 = vld [vmem:[#allocation12 + $0x7b8] sm:$0xff] }
 0x608   :  { %11455 = vmatpush1.bf16.msra.mxu1 %v13473_v51  ;;  %11292 = vmatprep.subr.bf16.mxu0 %v13480_v11  ;;  %v8007_v51 = vld [vmem:[#allocation12 + $0x650] sm:$0xff] }
 0x609   :  { %11456 = vmatprep.subr.bf16.mxu1 %v13482_v12  ;;  %v8011_v11 = vld [vmem:[#allocation12 + $0x670] sm:$0xff]  ;;  %v8008_v12 = vld [vmem:[#allocation12 + $0x658] sm:$0xff] }
 0x60a   :  { %v13536_v9 = vcombine.high %v8007_v51, %v8011_v11  ;;  %v13535_v54 = vcombine.low %v8007_v51, %v8011_v11  ;;  %v13537_v26 = vcombine.low %v8008_v12, %v8012_v14  ;;  %v8060_v51 = vld [vmem:[#allocation12 + $0x7f8] sm:$0xff] }
 0x60b   :  { %11293 = vmatpush1.bf16.msra.mxu0 %v13479_v24  ;;  %v13538_v24 = vcombine.high %v8008_v12, %v8012_v14 }
 0x60c   :  { %11457 = vmatpush1.bf16.msra.mxu1 %v13481_v17  ;;  %11294 = vmatprep.subr.bf16.mxu0 %v13488_v53  ;;  %v8015_v17 = vld [vmem:[#allocation12 + $0x690] sm:$0xff] }
 0x60d   :  { %11458 = vmatprep.subr.bf16.mxu1 %v13490_v34  ;;  %v8019_v53 = vld [vmem:[#allocation12 + $0x6b0] sm:$0xff]  ;;  %v8016_v34 = vld [vmem:[#allocation12 + $0x698] sm:$0xff] }
 0x60e   :  { %v13544_v22 = vcombine.high %v8015_v17, %v8019_v53  ;;  %v13543_v38 = vcombine.low %v8015_v17, %v8019_v53  ;;  %v13545_v56 = vcombine.low %v8016_v34, %v8020_v25  ;;  %v8068_v17 = vld [vmem:[#allocation12 + $0x838] sm:$0xff] }
 0x60f   :  { %11295 = vmatpush1.bf16.msra.mxu0 %v13487_v23  ;;  %v13546_v23 = vcombine.high %v8016_v34, %v8020_v25 }
 0x610   :  { %11459 = vmatpush1.bf16.msra.mxu1 %v13489_v27  ;;  %11296 = vmatprep.subr.bf16.mxu0 %v13496_v30  ;;  %v8023_v27 = vld [vmem:[#allocation12 + $0x6d0] sm:$0xff] }
 0x611   :  { %11460 = vmatprep.subr.bf16.mxu1 %v13498_v45  ;;  %v8027_v30 = vld [vmem:[#allocation12 + $0x6f0] sm:$0xff]  ;;  %v8024_v45 = vld [vmem:[#allocation12 + $0x6d8] sm:$0xff] }
 0x612   :  { %v13552_v31 = vcombine.high %v8023_v27, %v8027_v30  ;;  %v13551_v44 = vcombine.low %v8023_v27, %v8027_v30  ;;  %v13553_v58 = vcombine.low %v8024_v45, %v8028_v2  ;;  %v8072_v27 = vld [vmem:[#allocation12 + $0x858] sm:$0xff] }
 0x613   :  { %11297 = vmatpush1.bf16.msra.mxu0 %v13495_v40  ;;  %v13554_v40 = vcombine.high %v8024_v45, %v8028_v2  ;;  %v8076_v30 = vld [vmem:[#allocation12 + $0x878] sm:$0xff] }
 0x614   :  { %11461 = vmatpush1.bf16.msra.mxu1 %v13497_v55  ;;  %11298 = vmatprep.subr.bf16.mxu0 %v13504_v37  ;;  %v8031_v55 = vld [vmem:[#allocation12 + $0x710] sm:$0xff] }
 0x615   :  { %11462 = vmatprep.subr.bf16.mxu1 %v13506_v33  ;;  %v8035_v37 = vld [vmem:[#allocation12 + $0x730] sm:$0xff]  ;;  %v8032_v33 = vld [vmem:[#allocation12 + $0x718] sm:$0xff] }
 0x616   :  { %v13560_v46 = vcombine.high %v8031_v55, %v8035_v37  ;;  %v13559_v61 = vcombine.low %v8031_v55, %v8035_v37  ;;  %v13561_v18 = vcombine.low %v8032_v33, %v8036_v52  ;;  %v8084_v55 = vld [vmem:[#allocation12 + $0x8b8] sm:$0xff] }
 0x617   :  { %11299 = vmatpush1.bf16.msra.mxu0 %v13503_v5  ;;  %v13562_v5 = vcombine.high %v8032_v33, %v8036_v52  ;;  %v13601_v33 = vcombine.low %v8072_v27, %v8076_v30 }
 0x618   :  { %11463 = vmatpush1.bf16.msra.mxu1 %v13505_v50  ;;  %11300 = vmatprep.subr.bf16.mxu0 %v13512_v57  ;;  %v8039_v50 = vld [vmem:[#allocation12 + $0x750] sm:$0xff] }
 0x619   :  { %11464 = vmatprep.subr.bf16.mxu1 %v13514_v41  ;;  %v8043_v57 = vld [vmem:[#allocation12 + $0x770] sm:$0xff]  ;;  %v8040_v41 = vld [vmem:[#allocation12 + $0x758] sm:$0xff] }
 0x61a   :  { %v13568_v35 = vcombine.high %v8039_v50, %v8043_v57  ;;  %v13567_v0 = vcombine.low %v8039_v50, %v8043_v57  ;;  %v13569_v1 = vcombine.low %v8040_v41, %v8044_v36  ;;  %v8092_v50 = vld [vmem:[#allocation12 + $0x8f8] sm:$0xff] }
 0x61b   :  { %11301 = vmatpush1.bf16.msra.mxu0 %v13511_v28  ;;  %v13570_v28 = vcombine.high %v8040_v41, %v8044_v36 }
 0x61c   :  { %11465 = vmatpush1.bf16.msra.mxu1 %v13513_v63  ;;  %11302 = vmatprep.subr.bf16.mxu0 %v13520_v16  ;;  %v8047_v63 = vld [vmem:[#allocation12 + $0x790] sm:$0xff] }
 0x61d   :  { %11466 = vmatprep.subr.bf16.mxu1 %v13522_v42  ;;  %v8051_v16 = vld [vmem:[#allocation12 + $0x7b0] sm:$0xff]  ;;  %v8048_v42 = vld [vmem:[#allocation12 + $0x798] sm:$0xff] }
 0x61e   :  { %v13576_v3 = vcombine.high %v8047_v63, %v8051_v16  ;;  %v13575_v11 = vcombine.low %v8047_v63, %v8051_v16  ;;  %v13577_v12 = vcombine.low %v8048_v42, %v8052_v20 }
 0x61f   :  { %11303 = vmatpush1.bf16.msra.mxu0 %v13519_v7  ;;  %v13578_v7 = vcombine.high %v8048_v42, %v8052_v20  ;;  %v8103_v20 = vld [vmem:[#allocation12 + $0x950] sm:$0xff] }
 0x620   :  { %11467 = vmatpush1.bf16.msra.mxu1 %v13521_v19  ;;  %11304 = vmatprep.subr.bf16.mxu0 %v13528_v10  ;;  %v8055_v19 = vld [vmem:[#allocation12 + $0x7d0] sm:$0xff] }
 0x621   :  { %11468 = vmatprep.subr.bf16.mxu1 %v13530_v29  ;;  %v8059_v10 = vld [vmem:[#allocation12 + $0x7f0] sm:$0xff]  ;;  %v8056_v29 = vld [vmem:[#allocation12 + $0x7d8] sm:$0xff] }
 0x622   :  { %v13584_v14 = vcombine.high %v8055_v19, %v8059_v10  ;;  %v13583_v53 = vcombine.low %v8055_v19, %v8059_v10  ;;  %v13585_v34 = vcombine.low %v8056_v29, %v8060_v51 }
 0x623   :  { %11305 = vmatpush1.bf16.msra.mxu0 %v13527_v60  ;;  %v13586_v60 = vcombine.high %v8056_v29, %v8060_v51  ;;  %v8111_v51 = vld [vmem:[#allocation12 + $0x990] sm:$0xff] }
 0x624   :  { %11469 = vmatpush1.bf16.msra.mxu1 %v13529_v21  ;;  %11306 = vmatprep.subr.bf16.mxu0 %v13536_v9  ;;  %v8063_v21 = vld [vmem:[#allocation12 + $0x810] sm:$0xff] }
 0x625   :  { %11470 = vmatprep.subr.bf16.mxu1 %v13538_v24  ;;  %v8067_v9 = vld [vmem:[#allocation12 + $0x830] sm:$0xff]  ;;  %v8064_v24 = vld [vmem:[#allocation12 + $0x818] sm:$0xff] }
 0x626   :  { %v13592_v25 = vcombine.high %v8063_v21, %v8067_v9  ;;  %v13593_v45 = vcombine.low %v8064_v24, %v8068_v17 }
 0x627   :  { %11307 = vmatpush1.bf16.msra.mxu0 %v13535_v54  ;;  %v13594_v54 = vcombine.high %v8064_v24, %v8068_v17  ;;  %v8119_v17 = vld [vmem:[#allocation12 + $0x9d0] sm:$0xff] }
 0x628   :  { %11471 = vmatpush1.bf16.msra.mxu1 %v13537_v26  ;;  %11308 = vmatprep.subr.bf16.mxu0 %v13544_v22  ;;  %v8071_v26 = vld [vmem:[#allocation12 + $0x850] sm:$0xff] }
 0x629   :  { %11472 = vmatprep.subr.bf16.mxu1 %v13546_v23  ;;  %v8075_v22 = vld [vmem:[#allocation12 + $0x870] sm:$0xff]  ;;  %v13591_v23 = vcombine.low %v8063_v21, %v8067_v9 }
 0x62a   :  { %v13600_v2 = vcombine.high %v8071_v26, %v8075_v22  ;;  %v13599_v37 = vcombine.low %v8071_v26, %v8075_v22 }
 0x62b   :  { %11309 = vmatpush1.bf16.msra.mxu0 %v13543_v38  ;;  %v8079_v38 = vld [vmem:[#allocation12 + $0x890] sm:$0xff] }
 0x62c   :  { %11473 = vmatpush1.bf16.msra.mxu1 %v13545_v56  ;;  %11310 = vmatprep.subr.bf16.mxu0 %v13552_v31  ;;  %v8083_v56 = vld [vmem:[#allocation12 + $0x8b0] sm:$0xff]  ;;  %v13602_v31 = vcombine.high %v8072_v27, %v8076_v30 }
 0x62d   :  { %11474 = vmatprep.subr.bf16.mxu1 %v13554_v40  ;;  %v8080_v40 = vld [vmem:[#allocation12 + $0x898] sm:$0xff]  ;;  %v13608_v52 = vcombine.high %v8079_v38, %v8083_v56  ;;  %v13607_v57 = vcombine.low %v8079_v38, %v8083_v56  ;;  %v8127_v27 = vld [vmem:[#allocation12 + $0xa10] sm:$0xff] }
 0x62e   :  { %v8131_v30 = vld [vmem:[#allocation12 + $0xa30] sm:$0xff] }
 0x62f   :  { %11311 = vmatpush1.bf16.msra.mxu0 %v13551_v44  ;;  %v13610_v44 = vcombine.high %v8080_v40, %v8084_v55 }
 0x630   :  { %11475 = vmatpush1.bf16.msra.mxu1 %v13553_v58  ;;  %11312 = vmatprep.subr.bf16.mxu0 %v13560_v46  ;;  %v8087_v58 = vld [vmem:[#allocation12 + $0x8d0] sm:$0xff] }
 0x631   :  { %11476 = vmatprep.subr.bf16.mxu1 %v13562_v5  ;;  %v8091_v46 = vld [vmem:[#allocation12 + $0x8f0] sm:$0xff]  ;;  %v8088_v5 = vld [vmem:[#allocation12 + $0x8d8] sm:$0xff] }
 0x632   :  { %v13616_v41 = vcombine.high %v8087_v58, %v8091_v46  ;;  %v13618_v36 = vcombine.high %v8088_v5, %v8092_v50  ;;  %v13617_v63 = vcombine.low %v8088_v5, %v8092_v50  ;;  %v8143_v50 = vld [vmem:[#allocation12 + $0xa90] sm:$0xff] }
 0x633   :  { %11313 = vmatpush1.bf16.msra.mxu0 %v13559_v61  ;;  %v8095_v61 = vld [vmem:[#allocation12 + $0x910] sm:$0xff] }
 0x634   :  { %11477 = vmatpush1.bf16.msra.mxu1 %v13561_v18  ;;  %11314 = vmatprep.subr.bf16.mxu0 %v13568_v35  ;;  %v8099_v18 = vld [vmem:[#allocation12 + $0x930] sm:$0xff]  ;;  %v8096_v35 = vld [vmem:[#allocation12 + $0x918] sm:$0xff] }
 0x635   :  { %11478 = vmatprep.subr.bf16.mxu1 %v13570_v28  ;;  %v8100_v28 = vld [vmem:[#allocation12 + $0x938] sm:$0xff]  ;;  %v13624_v16 = vcombine.high %v8095_v61, %v8099_v18 }
 0x636   :  { %v13626_v42 = vcombine.high %v8096_v35, %v8100_v28  ;;  %v13625_v19 = vcombine.low %v8096_v35, %v8100_v28  ;;  %v8151_v28 = vld [vmem:[#allocation12 + $0xad0] sm:$0xff] }
 0x637   :  { %11315 = vmatpush1.bf16.msra.mxu0 %v13567_v0  ;;  %v8107_v0 = vld [vmem:[#allocation12 + $0x970] sm:$0xff] }
 0x638   :  { %11479 = vmatpush1.bf16.msra.mxu1 %v13569_v1  ;;  %11316 = vmatprep.subr.bf16.mxu0 %v13576_v3  ;;  %v8104_v1 = vld [vmem:[#allocation12 + $0x958] sm:$0xff]  ;;  %v13632_v10 = vcombine.high %v8103_v20, %v8107_v0 }
 0x639   :  { %11480 = vmatprep.subr.bf16.mxu1 %v13578_v7  ;;  %v8108_v3 = vld [vmem:[#allocation12 + $0x978] sm:$0xff]  ;;  %v13623_v7 = vcombine.low %v8095_v61, %v8099_v18 }
 0x63a   :  { %v13634_v29 = vcombine.high %v8104_v1, %v8108_v3  ;;  %v13633_v21 = vcombine.low %v8104_v1, %v8108_v3  ;;  %v8159_v3 = vld [vmem:[#allocation12 + $0xb10] sm:$0xff] }
 0x63b   :  { %11317 = vmatpush1.bf16.msra.mxu0 %v13575_v11  ;;  %v8115_v11 = vld [vmem:[#allocation12 + $0x9b0] sm:$0xff] }
 0x63c   :  { %11481 = vmatpush1.bf16.msra.mxu1 %v13577_v12  ;;  %11318 = vmatprep.subr.bf16.mxu0 %v13584_v14  ;;  %v8112_v12 = vld [vmem:[#allocation12 + $0x998] sm:$0xff]  ;;  %v13640_v9 = vcombine.high %v8111_v51, %v8115_v11 }
 0x63d   :  { %11482 = vmatprep.subr.bf16.mxu1 %v13586_v60  ;;  %v8116_v14 = vld [vmem:[#allocation12 + $0x9b8] sm:$0xff]  ;;  %v13631_v60 = vcombine.low %v8103_v20, %v8107_v0 }
 0x63e   :  { %v13642_v24 = vcombine.high %v8112_v12, %v8116_v14  ;;  %v13641_v26 = vcombine.low %v8112_v12, %v8116_v14  ;;  %v8167_v14 = vld [vmem:[#allocation12 + $0xb50] sm:$0xff] }
 0x63f   :  { %11319 = vmatpush1.bf16.msra.mxu0 %v13583_v53  ;;  %v8123_v53 = vld [vmem:[#allocation12 + $0x9f0] sm:$0xff] }
 0x640   :  { %11483 = vmatpush1.bf16.msra.mxu1 %v13585_v34  ;;  %11329 = vmatprep.subr.bf16.mxu0 %v13592_v25  ;;  %v8120_v34 = vld [vmem:[#allocation12 + $0x9d8] sm:$0xff]  ;;  %v13648_v22 = vcombine.high %v8119_v17, %v8123_v53  ;;  %v13647_v38 = vcombine.low %v8119_v17, %v8123_v53 }
 0x641   :  { %11493 = vmatprep.subr.bf16.mxu1 %v13594_v54  ;;  %v8124_v25 = vld [vmem:[#allocation12 + $0x9f8] sm:$0xff]  ;;  %v13639_v54 = vcombine.low %v8111_v51, %v8115_v11 }
 0x642   :  { %11321 = vmatmul.mubr.bf16.vlgmr.msra.gmra.mrb[44].mxu0 %v14858_v8  ;;  %v13649_v56 = vcombine.low %v8120_v34, %v8124_v25 }
 0x643   :  { %11485 = vmatmul.mubr.bf16.vlgmr.msra.gmra.mrb[44].mxu1 %v14858_v8  ;;  %11330 = vmatpush1.bf16.msra.mxu0 %v13591_v23  ;;  %v13609_v8 = vcombine.low %v8080_v40, %v8084_v55  ;;  %v13650_v23 = vcombine.high %v8120_v34, %v8124_v25  ;;  %v8135_v55 = vld [vmem:[#allocation12 + $0xa50] sm:$0xff] }
 0x644   :  { %11361 = vmatprep.mubr.bf16.mxu0 %v14872_v32  ;;  %11494 = vmatpush1.bf16.msra.mxu1 %v13593_v45  ;;  %v8128_v45 = vld [vmem:[#allocation12 + $0xa18] sm:$0xff]  ;;  %v8175_v25 = vld [vmem:[#allocation12 + $0xb90] sm:$0xff] }
 0x645   :  { %11525 = vmatprep.mubr.bf16.mxu1 %v14872_v32  ;;  %11331 = vmatprep.subr.bf16.mxu0 %v13600_v2  ;;  %v13615_v32 = vcombine.low %v8087_v58, %v8091_v46  ;;  %v8132_v2 = vld [vmem:[#allocation12 + $0xa38] sm:$0xff] }
 0x646   :  { %11495 = vmatprep.subr.bf16.mxu1 %v13602_v31  ;;  %v13656_v31 = vcombine.high %v8127_v27, %v8131_v30  ;;  %v13658_v40 = vcombine.high %v8128_v45, %v8132_v2  ;;  %v13657_v58 = vcombine.low %v8128_v45, %v8132_v2  ;;  %v8183_v2 = vld [vmem:[#allocation12 + $0xbd0] sm:$0xff] }
 0x647   :  { %11332 = vmatpush1.bf16.msra.mxu0 %v13599_v37  ;;  %v8139_v37 = vld [vmem:[#allocation12 + $0xa70] sm:$0xff] }
 0x648   :  { %11496 = vmatpush1.bf16.msra.mxu1 %v13601_v33  ;;  %11333 = vmatprep.subr.bf16.mxu0 %v13608_v52  ;;  %v8136_v33 = vld [vmem:[#allocation12 + $0xa58] sm:$0xff]  ;;  %v13664_v46 = vcombine.high %v8135_v55, %v8139_v37 }
 0x649   :  { %11497 = vmatprep.subr.bf16.mxu1 %v13610_v44  ;;  %v8140_v52 = vld [vmem:[#allocation12 + $0xa78] sm:$0xff]  ;;  %v13655_v44 = vcombine.low %v8127_v27, %v8131_v30 }
 0x64a   :  { %v13666_v5 = vcombine.high %v8136_v33, %v8140_v52  ;;  %v13665_v61 = vcombine.low %v8136_v33, %v8140_v52  ;;  %v8191_v52 = vld [vmem:[#allocation12 + $0xc10] sm:$0xff] }
 0x64b   :  { %11334 = vmatpush1.bf16.msra.mxu0 %v13607_v57  ;;  %v8147_v57 = vld [vmem:[#allocation12 + $0xab0] sm:$0xff] }
 0x64c   :  { %11498 = vmatpush1.bf16.msra.mxu1 %v13609_v8  ;;  %11335 = vmatprep.subr.bf16.mxu0 %v13616_v41  ;;  %v8144_v8 = vld [vmem:[#allocation12 + $0xa98] sm:$0xff]  ;;  %v13672_v18 = vcombine.high %v8143_v50, %v8147_v57 }
 0x64d   :  { %11499 = vmatprep.subr.bf16.mxu1 %v13618_v36  ;;  %v8148_v41 = vld [vmem:[#allocation12 + $0xab8] sm:$0xff]  ;;  %v13663_v36 = vcombine.low %v8135_v55, %v8139_v37 }
 0x64e   :  { %v13674_v35 = vcombine.high %v8144_v8, %v8148_v41  ;;  %v13673_v20 = vcombine.low %v8144_v8, %v8148_v41  ;;  %v8199_v41 = vld [vmem:[#allocation12 + $0xc50] sm:$0xff] }
 0x64f   :  { %11336 = vmatpush1.bf16.msra.mxu0 %v13615_v32  ;;  %v8155_v32 = vld [vmem:[#allocation12 + $0xaf0] sm:$0xff] }
 0x650   :  { %11500 = vmatpush1.bf16.msra.mxu1 %v13617_v63  ;;  %11337 = vmatprep.subr.bf16.mxu0 %v13624_v16  ;;  %v8152_v63 = vld [vmem:[#allocation12 + $0xad8] sm:$0xff]  ;;  %v13680_v0 = vcombine.high %v8151_v28, %v8155_v32 }
 0x651   :  { %11501 = vmatprep.subr.bf16.mxu1 %v13626_v42  ;;  %v8156_v16 = vld [vmem:[#allocation12 + $0xaf8] sm:$0xff]  ;;  %v13671_v42 = vcombine.low %v8143_v50, %v8147_v57 }
 0x652   :  { %v13682_v1 = vcombine.high %v8152_v63, %v8156_v16  ;;  %v13681_v51 = vcombine.low %v8152_v63, %v8156_v16  ;;  %v8207_v63 = vld [vmem:[#allocation12 + $0xc90] sm:$0xff] }
 0x653   :  { %11338 = vmatpush1.bf16.msra.mxu0 %v13623_v7  ;;  %v8163_v7 = vld [vmem:[#allocation12 + $0xb30] sm:$0xff] }
 0x654   :  { %11502 = vmatpush1.bf16.msra.mxu1 %v13625_v19  ;;  %11339 = vmatprep.subr.bf16.mxu0 %v13632_v10  ;;  %v8160_v19 = vld [vmem:[#allocation12 + $0xb18] sm:$0xff]  ;;  %v13688_v11 = vcombine.high %v8159_v3, %v8163_v7  ;;  %v8211_v16 = vld [vmem:[#allocation12 + $0xcb0] sm:$0xff] }
 0x655   :  { %11503 = vmatprep.subr.bf16.mxu1 %v13634_v29  ;;  %v8164_v10 = vld [vmem:[#allocation12 + $0xb38] sm:$0xff]  ;;  %v13679_v29 = vcombine.low %v8151_v28, %v8155_v32 }
 0x656   :  { %v13690_v12 = vcombine.high %v8160_v19, %v8164_v10  ;;  %v13689_v17 = vcombine.low %v8160_v19, %v8164_v10  ;;  %v8215_v10 = vld [vmem:[#allocation12 + $0xcd0] sm:$0xff] }
 0x657   :  { %11340 = vmatpush1.bf16.msra.mxu0 %v13631_v60  ;;  %v8171_v60 = vld [vmem:[#allocation12 + $0xb70] sm:$0xff] }
 0x658   :  { %11504 = vmatpush1.bf16.msra.mxu1 %v13633_v21  ;;  %11341 = vmatprep.subr.bf16.mxu0 %v13640_v9  ;;  %v8168_v21 = vld [vmem:[#allocation12 + $0xb58] sm:$0xff]  ;;  %v13696_v53 = vcombine.high %v8167_v14, %v8171_v60 }
 0x659   :  { %11505 = vmatprep.subr.bf16.mxu1 %v13642_v24  ;;  %v8172_v9 = vld [vmem:[#allocation12 + $0xb78] sm:$0xff]  ;;  %v13687_v24 = vcombine.low %v8159_v3, %v8163_v7  ;;  %v13736_v7 = vcombine.high %v8207_v63, %v8211_v16 }
 0x65a   :  { %v13698_v34 = vcombine.high %v8168_v21, %v8172_v9  ;;  %v13697_v27 = vcombine.low %v8168_v21, %v8172_v9  ;;  %v8223_v21 = vld [vmem:[#allocation12 + $0xd10] sm:$0xff] }
 0x65b   :  { %11342 = vmatpush1.bf16.msra.mxu0 %v13639_v54  ;;  %v8179_v54 = vld [vmem:[#allocation12 + $0xbb0] sm:$0xff] }
 0x65c   :  { %11506 = vmatpush1.bf16.msra.mxu1 %v13641_v26  ;;  %11343 = vmatprep.subr.bf16.mxu0 %v13648_v22  ;;  %v8176_v26 = vld [vmem:[#allocation12 + $0xb98] sm:$0xff]  ;;  %v13704_v30 = vcombine.high %v8175_v25, %v8179_v54  ;;  %v8227_v9 = vld [vmem:[#allocation12 + $0xd30] sm:$0xff] }
 0x65d   :  { %11507 = vmatprep.subr.bf16.mxu1 %v13650_v23  ;;  %v8180_v22 = vld [vmem:[#allocation12 + $0xbb8] sm:$0xff]  ;;  %v13695_v23 = vcombine.low %v8167_v14, %v8171_v60 }
 0x65e   :  { %v13706_v45 = vcombine.high %v8176_v26, %v8180_v22  ;;  %v13705_v55 = vcombine.low %v8176_v26, %v8180_v22  ;;  %v8235_v26 = vld [vmem:[#allocation12 + $0xd70] sm:$0xff]  ;;  %v8232_v22 = vld [vmem:[#allocation12 + $0xd58] sm:$0xff] }
 0x65f   :  { %11344 = vmatpush1.bf16.msra.mxu0 %v13647_v38  ;;  %v8187_v38 = vld [vmem:[#allocation12 + $0xbf0] sm:$0xff] }
 0x660   :  { %11508 = vmatpush1.bf16.msra.mxu1 %v13649_v56  ;;  %11345 = vmatprep.subr.bf16.mxu0 %v13656_v31  ;;  %v8184_v56 = vld [vmem:[#allocation12 + $0xbd8] sm:$0xff]  ;;  %v13712_v37 = vcombine.high %v8183_v2, %v8187_v38 }
 0x661   :  { %11509 = vmatprep.subr.bf16.mxu1 %v13658_v40  ;;  %v8188_v31 = vld [vmem:[#allocation12 + $0xbf8] sm:$0xff]  ;;  %v13703_v40 = vcombine.low %v8175_v25, %v8179_v54  ;;  %v8231_v54 = vld [vmem:[#allocation12 + $0xd50] sm:$0xff] }
 0x662   :  { %v13714_v33 = vcombine.high %v8184_v56, %v8188_v31  ;;  %v13713_v50 = vcombine.low %v8184_v56, %v8188_v31  ;;  %v8243_v56 = vld [vmem:[#allocation12 + $0xdb0] sm:$0xff]  ;;  %v8240_v31 = vld [vmem:[#allocation12 + $0xd98] sm:$0xff] }
 0x663   :  { %11346 = vmatpush1.bf16.msra.mxu0 %v13655_v44  ;;  %v8195_v44 = vld [vmem:[#allocation12 + $0xc30] sm:$0xff] }
 0x664   :  { %11510 = vmatpush1.bf16.msra.mxu1 %v13657_v58  ;;  %11347 = vmatprep.subr.bf16.mxu0 %v13664_v46  ;;  %v8192_v58 = vld [vmem:[#allocation12 + $0xc18] sm:$0xff]  ;;  %v13720_v57 = vcombine.high %v8191_v52, %v8195_v44 }
 0x665   :  { %11511 = vmatprep.subr.bf16.mxu1 %v13666_v5  ;;  %v8196_v46 = vld [vmem:[#allocation12 + $0xc38] sm:$0xff]  ;;  %v13711_v5 = vcombine.low %v8183_v2, %v8187_v38  ;;  %v8239_v38 = vld [vmem:[#allocation12 + $0xd90] sm:$0xff] }
 0x666   :  { %v13722_v8 = vcombine.high %v8192_v58, %v8196_v46  ;;  %v13721_v28 = vcombine.low %v8192_v58, %v8196_v46  ;;  %v8247_v46 = vld [vmem:[#allocation12 + $0xdd0] sm:$0xff] }
 0x667   :  { %11348 = vmatpush1.bf16.msra.mxu0 %v13663_v36  ;;  %v8203_v36 = vld [vmem:[#allocation12 + $0xc70] sm:$0xff] }
 0x668   :  { %11512 = vmatpush1.bf16.msra.mxu1 %v13665_v61  ;;  %11349 = vmatprep.subr.bf16.mxu0 %v13672_v18  ;;  %v13719_v61 = vcombine.low %v8191_v52, %v8195_v44  ;;  %v8200_v18 = vld [vmem:[#allocation12 + $0xc58] sm:$0xff]  ;;  %v13728_v32 = vcombine.high %v8199_v41, %v8203_v36 }
 0x669   :  { %11513 = vmatprep.subr.bf16.mxu1 %v13674_v35  ;;  %v8204_v35 = vld [vmem:[#allocation12 + $0xc78] sm:$0xff] }
 0x66a   :  { %v13729_v3 = vcombine.low %v8200_v18, %v8204_v35 }
 0x66b   :  { %11350 = vmatpush1.bf16.msra.mxu0 %v13671_v42  ;;  %v13730_v42 = vcombine.high %v8200_v18, %v8204_v35  ;;  %v13767_v18 = vcombine.low %v8239_v38, %v8243_v56 }
 0x66c   :  { %11514 = vmatpush1.bf16.msra.mxu1 %v13673_v20  ;;  %11351 = vmatprep.subr.bf16.mxu0 %v13680_v0  ;;  %v8208_v20 = vld [vmem:[#allocation12 + $0xc98] sm:$0xff] }
 0x66d   :  { %11515 = vmatprep.subr.bf16.mxu1 %v13682_v1  ;;  %v8212_v0 = vld [vmem:[#allocation12 + $0xcb8] sm:$0xff]  ;;  %v13727_v1 = vcombine.low %v8199_v41, %v8203_v36 }
 0x66e   :  { %v13738_v19 = vcombine.high %v8208_v20, %v8212_v0  ;;  %v8252_v41 = vld [vmem:[#allocation12 + $0xdf8] sm:$0xff] }
 0x66f   :  { %11352 = vmatpush1.bf16.msra.mxu0 %v13679_v29  ;;  %v8219_v29 = vld [vmem:[#allocation12 + $0xcf0] sm:$0xff] }
 0x670   :  { %11516 = vmatpush1.bf16.msra.mxu1 %v13681_v51  ;;  %11353 = vmatprep.subr.bf16.mxu0 %v13688_v11  ;;  %v8216_v51 = vld [vmem:[#allocation12 + $0xcd8] sm:$0xff]  ;;  %v13744_v14 = vcombine.high %v8215_v10, %v8219_v29 }
 0x671   :  { %11517 = vmatprep.subr.bf16.mxu1 %v13690_v12  ;;  %v8220_v11 = vld [vmem:[#allocation12 + $0xcf8] sm:$0xff]  ;;  %v13735_v12 = vcombine.low %v8207_v63, %v8211_v16 }
 0x672   :  { %v13746_v60 = vcombine.high %v8216_v51, %v8220_v11 }
 0x673   :  { %11354 = vmatpush1.bf16.msra.mxu0 %v13687_v24  ;;  %v8224_v24 = vld [vmem:[#allocation12 + $0xd18] sm:$0xff] }
 0x674   :  { %11518 = vmatpush1.bf16.msra.mxu1 %v13689_v17  ;;  %11355 = vmatprep.subr.bf16.mxu0 %v13696_v53  ;;  %v8228_v17 = vld [vmem:[#allocation12 + $0xd38] sm:$0xff]  ;;  %v13745_v53 = vcombine.low %v8216_v51, %v8220_v11  ;;  %v8267_v51 = vld [vmem:[#allocation12 + $0xe70] sm:$0xff] }
 0x675   :  { %11519 = vmatprep.subr.bf16.mxu1 %v13698_v34  ;;  %v13752_v34 = vcombine.high %v8223_v21, %v8227_v9  ;;  %v13754_v25 = vcombine.high %v8224_v24, %v8228_v17  ;;  %v8264_v11 = vld [vmem:[#allocation12 + $0xe58] sm:$0xff] }
 0x677   :  { %11356 = vmatpush1.bf16.msra.mxu0 %v13695_v23  ;;  %v8236_v23 = vld [vmem:[#allocation12 + $0xd78] sm:$0xff] }
 0x678   :  { %11520 = vmatpush1.bf16.msra.mxu1 %v13697_v27  ;;  %11357 = vmatprep.subr.bf16.mxu0 %v13704_v30  ;;  %v13751_v27 = vcombine.low %v8223_v21, %v8227_v9  ;;  %v13753_v30 = vcombine.low %v8224_v24, %v8228_v17  ;;  %v13762_v2 = vcombine.high %v8232_v22, %v8236_v23  ;;  %v8271_v9 = vld [vmem:[#allocation12 + $0xe90] sm:$0xff]  ;;  %v8272_v17 = vld [vmem:[#allocation12 + $0xe98] sm:$0xff] }
 0x679   :  { %11521 = vmatprep.subr.bf16.mxu1 %v13706_v45  ;;  %v13760_v45 = vcombine.high %v8231_v54, %v8235_v26  ;;  %v8275_v24 = vld [vmem:[#allocation12 + $0xeb0] sm:$0xff] }
 0x67b   :  { %11358 = vmatpush1.bf16.msra.mxu0 %v13703_v40  ;;  %v8244_v40 = vld [vmem:[#allocation12 + $0xdb8] sm:$0xff] }
 0x67c   :  { %11522 = vmatpush1.bf16.msra.mxu1 %v13705_v55  ;;  %11359 = vmatprep.subr.bf16.mxu0 %v13712_v37  ;;  %v13759_v55 = vcombine.low %v8231_v54, %v8235_v26  ;;  %v13761_v37 = vcombine.low %v8232_v22, %v8236_v23  ;;  %v13770_v58 = vcombine.high %v8240_v31, %v8244_v40  ;;  %v8279_v26 = vld [vmem:[#allocation12 + $0xed0] sm:$0xff]  ;;  %v8280_v23 = vld [vmem:[#allocation12 + $0xed8] sm:$0xff] }
 0x67d   :  { %11523 = vmatprep.subr.bf16.mxu1 %v13714_v33  ;;  %v13768_v33 = vcombine.high %v8239_v38, %v8243_v56  ;;  %v8283_v22 = vld [vmem:[#allocation12 + $0xef0] sm:$0xff] }
 0x67e   :  { %v8287_v56 = vld [vmem:[#allocation12 + $0xf10] sm:$0xff] }
 0x67f   :  { %11360 = vmatpush1.bf16.msra.mxu0 %v13711_v5  ;;  %v8251_v5 = vld [vmem:[#allocation12 + $0xdf0] sm:$0xff] }
 0x680   :  { %11524 = vmatpush1.bf16.msra.mxu1 %v13713_v50  ;;  %11370 = vmatprep.subr.bf16.mxu0 %v13720_v57  ;;  %v13776_v63 = vcombine.high %v8247_v46, %v8251_v5 }
 0x681   :  { %11534 = vmatprep.subr.bf16.mxu1 %v13722_v8  ;;  %v8248_v8 = vld [vmem:[#allocation12 + $0xdd8] sm:$0xff] }
 0x682   :  { %11362 = vmatmul.mubr.bf16.vlgmr.msra.gmra.mrb[44].mxu0 %v14874_v62  ;;  %v13778_v16 = vcombine.high %v8248_v8, %v8252_v41 }
 0x683   :  { %11526 = vmatmul.mubr.bf16.vlgmr.msra.gmra.mrb[44].mxu1 %v14874_v62  ;;  %11371 = vmatpush1.bf16.msra.mxu0 %v13719_v61  ;;  %v13737_v62 = vcombine.low %v8208_v20, %v8212_v0  ;;  %v8259_v20 = vld [vmem:[#allocation12 + $0xe30] sm:$0xff]  ;;  %v8256_v0 = vld [vmem:[#allocation12 + $0xe18] sm:$0xff] }
 0x684   :  { %11402 = vmatprep.mubr.bf16.mxu0 %v14878_v47  ;;  %11535 = vmatpush1.bf16.msra.mxu1 %v13721_v28 }
 0x685   :  { %11566 = vmatprep.mubr.bf16.mxu1 %v14878_v47  ;;  %11372 = vmatprep.subr.bf16.mxu0 %v13728_v32  ;;  %v13743_v47 = vcombine.low %v8215_v10, %v8219_v29  ;;  %v13769_v32 = vcombine.low %v8240_v31, %v8244_v40  ;;  %v8263_v29 = vld [vmem:[#allocation12 + $0xe50] sm:$0xff]  ;;  %v8288_v40 = vld [vmem:[#allocation12 + $0xf18] sm:$0xff] }
 0x686   :  { %11536 = vmatprep.subr.bf16.mxu1 %v13730_v42  ;;  %v8255_v42 = vld [vmem:[#allocation12 + $0xe10] sm:$0xff] }
 0x687   :  { %11373 = vmatpush1.bf16.msra.mxu0 %v13727_v1  ;;  %v8260_v1 = vld [vmem:[#allocation12 + $0xe38] sm:$0xff]  ;;  %v8291_v31 = vld [vmem:[#allocation12 + $0xf30] sm:$0xff] }
 0x688   :  { %11537 = vmatpush1.bf16.msra.mxu1 %v13729_v3  ;;  %11374 = vmatprep.subr.bf16.mxu0 %v13736_v7  ;;  %v13775_v3 = vcombine.low %v8247_v46, %v8251_v5  ;;  %v13777_v7 = vcombine.low %v8248_v8, %v8252_v41  ;;  %v13786_v10 = vcombine.high %v8256_v0, %v8260_v1  ;;  %v8295_v5 = vld [vmem:[#allocation12 + $0xf50] sm:$0xff]  ;;  %v8296_v41 = vld [vmem:[#allocation12 + $0xf58] sm:$0xff] }
 0x689   :  { %11538 = vmatprep.subr.bf16.mxu1 %v13738_v19  ;;  %v13784_v19 = vcombine.high %v8255_v42, %v8259_v20  ;;  %v8299_v8 = vld [vmem:[#allocation12 + $0xf70] sm:$0xff] }
 0x68b   :  { %11375 = vmatpush1.bf16.msra.mxu0 %v13735_v12  ;;  %v8268_v12 = vld [vmem:[#allocation12 + $0xe78] sm:$0xff] }
 0x68c   :  { %11539 = vmatpush1.bf16.msra.mxu1 %v13737_v62  ;;  %11376 = vmatprep.subr.bf16.mxu0 %v13744_v14  ;;  %v13783_v62 = vcombine.low %v8255_v42, %v8259_v20  ;;  %v13785_v14 = vcombine.low %v8256_v0, %v8260_v1  ;;  %v13794_v21 = vcombine.high %v8264_v11, %v8268_v12  ;;  %v8308_v42 = vld [vmem:[#allocation12 + $0xfb8] sm:$0xff]  ;;  %v14913_v20 = vld [vmem:[#allocation14] sm:$0xff] }
 0x68d   :  { %11540 = vmatprep.subr.bf16.mxu1 %v13746_v60  ;;  %v13792_v60 = vcombine.high %v8263_v29, %v8267_v51  ;;  %v13823_v0 = vcombine.low %v8295_v5, %v8299_v8 }
 0x68f   :  { %11377 = vmatpush1.bf16.msra.mxu0 %v13743_v47  ;;  %v8276_v47 = vld [vmem:[#allocation12 + $0xeb8] sm:$0xff] }
 0x690   :  { %11541 = vmatpush1.bf16.msra.mxu1 %v13745_v53  ;;  %11378 = vmatprep.subr.bf16.mxu0 %v13752_v34  ;;  %v13791_v53 = vcombine.low %v8263_v29, %v8267_v51  ;;  %v13793_v34 = vcombine.low %v8264_v11, %v8268_v12  ;;  %v13802_v54 = vcombine.high %v8272_v17, %v8276_v47  ;;  %v8312_v51 = vld [vmem:[#allocation12 + $0xfd8] sm:$0xff] }
 0x691   :  { %11542 = vmatprep.subr.bf16.mxu1 %v13754_v25  ;;  %v13800_v25 = vcombine.high %v8271_v9, %v8275_v24  ;;  %v8326_v29 = vrot.slane %v14913_v20, %v14706_v59  ;;  %v8316_v11 = vld [vmem:[#allocation12 + $0xff8] sm:$0xff]  ;;  %v8334_v12 = vrot.slane %v14913_v20, %v14727_v49  ;;  %v14131_v49 = vld [vmem:[#allocation15 + $0xc0] sm:$0xff]  }
 0x692   :  { %v13841_v59 = vcombine.low %v8312_v51, %v8316_v11 }
 0x693   :  { %11379 = vmatpush1.bf16.msra.mxu0 %v13751_v27  ;;  %v8284_v27 = vld [vmem:[#allocation12 + $0xef8] sm:$0xff] }
 0x694   :  { %11543 = vmatpush1.bf16.msra.mxu1 %v13753_v30  ;;  %11380 = vmatprep.subr.bf16.mxu0 %v13760_v45  ;;  %v13799_v30 = vcombine.low %v8271_v9, %v8275_v24  ;;  %v13801_v45 = vcombine.low %v8272_v17, %v8276_v47  ;;  %v13810_v38 = vcombine.high %v8280_v23, %v8284_v27  ;;  %v14130_v47 = vld [vmem:[#allocation15 + $0x40] sm:$0xff]  }
 0x695   :  { %v14905_v52 = vpop.f32.mrb[40].mxu0  ;;  %v14907_v44 = vpop.f32.mrb[40].mxu1  ;;  %11544 = vmatprep.subr.bf16.mxu1 %v13762_v2  ;;  %v13808_v2 = vcombine.high %v8279_v26, %v8283_v22 }
 0x696   :  { %v14909_v50 = vpop.f32.mrb[41].mxu0  ;;  %v14911_v57 = vpop.f32.mrb[41].mxu1 }
 0x697   :  { %v11080_v36 = vpop.f32.mrb[42].mxu0  ;;  %v11244_v61 = vpop.f32.mrb[42].mxu1  ;;  %11381 = vmatpush1.bf16.msra.mxu0 %v13759_v55  ;;  %v8292_v55 = vld [vmem:[#allocation12 + $0xf38] sm:$0xff]  ;;  %v14005_v9 = vadd.f32 %v14909_v50, %v8326_v29  ;;  %v14007_v24 = vadd.f32 %v14911_v57, %v8334_v12  ;;  %v14135_v57 = vld [vmem:[#allocation15 + $0xc8] sm:$0xff]   ;;  %v14165_v29 = vld [vmem:[#allocation15 + $0x180] sm:$0xff]  }
 0x698   :  { %11545 = vmatpush1.bf16.msra.mxu1 %v13761_v37  ;;  %v11081_v35 = vpop.f32.mrb[43].mxu0  ;;  %v11245_v28 = vpop.f32.mrb[43].mxu1  ;;  %11382 = vmatprep.subr.bf16.mxu0 %v13768_v33  ;;  %v13807_v37 = vcombine.low %v8279_v26, %v8283_v22  ;;  %v13809_v33 = vcombine.low %v8280_v23, %v8284_v27  ;;  %v13818_v46 = vcombine.high %v8288_v40, %v8292_v55  ;;  %v8300_v36 = vld [vmem:[#allocation12 + $0xf78] sm:$0xff]  ;;  %v14134_v26 = vld [vmem:[#allocation15 + $0x48] sm:$0xff]  }
 0x699   :  { %11546 = vmatprep.subr.bf16.mxu1 %v13770_v58  ;;  %v13816_v58 = vcombine.high %v8287_v56, %v8291_v31  ;;  %v13815_v61 = vcombine.low %v8287_v56, %v8291_v31  ;;  %v13824_v35 = vcombine.high %v8295_v5, %v8299_v8  ;;  %v13826_v28 = vcombine.high %v8296_v41, %v8300_v36  ;;  %v14136_v23 = vld [vmem:[#allocation15 + $0x8] sm:$0xff]   ;;  %v14142_v56 = vld [vmem:[#allocation15 + $0x58] sm:$0xff]  }
 0x69a   :  { %v13825_v1 = vcombine.low %v8296_v41, %v8300_v36  ;;  %v14137_v27 = vld [vmem:[#allocation15 + $0x88] sm:$0xff]   ;;  %v14143_v31 = vld [vmem:[#allocation15 + $0xd8] sm:$0xff]   ;;  %v8322_v41 = vrot.slane %v14913_v20, %v14724_v4 }
 0x69b   :  { %11383 = vmatpush1.bf16.msra.mxu0 %v13767_v18  ;;  %v13817_v18 = vcombine.low %v8288_v40, %v8292_v55  ;;  %v14145_v40 = vld [vmem:[#allocation15 + $0x98] sm:$0xff]   ;;  %v14146_v55 = vld [vmem:[#allocation15 + $0x60] sm:$0xff]   ;;  %v14151_v5 = vld [vmem:[#allocation15 + $0xe8] sm:$0xff]  }
 0x69c   :  { %11547 = vmatpush1.bf16.msra.mxu1 %v13769_v32  ;;  %11384 = vmatprep.subr.bf16.mxu0 %v13776_v63  ;;  %v8303_v32 = vld [vmem:[#allocation12 + $0xf90] sm:$0xff]  ;;  %v14159_v4 = vld [vmem:[#allocation15 + $0xf8] sm:$0xff]  }
 0x69d   :  { %11548 = vmatprep.subr.bf16.mxu1 %v13778_v16  ;;  %v8307_v63 = vld [vmem:[#allocation12 + $0xfb0] sm:$0xff]  ;;  %v8304_v16 = vld [vmem:[#allocation12 + $0xf98] sm:$0xff] }
 0x69e   :  { %v14152_v8 = vld [vmem:[#allocation15 + $0x28] sm:$0xff]  }
 0x69f   :  { %11385 = vmatpush1.bf16.msra.mxu0 %v13775_v3  ;;  %v13832_v3 = vcombine.high %v8303_v32, %v8307_v63  ;;  %v14153_v36 = vld [vmem:[#allocation15 + $0xa8] sm:$0xff]  }
 0x6a0   :  { %11549 = vmatpush1.bf16.msra.mxu1 %v13777_v7  ;;  %11386 = vmatprep.subr.bf16.mxu0 %v13784_v19  ;;  %v13834_v7 = vcombine.high %v8304_v16, %v8308_v42  ;;  %v8311_v19 = vld [vmem:[#allocation12 + $0xfd0] sm:$0xff] }
 0x6a1   :  { %11550 = vmatprep.subr.bf16.mxu1 %v13786_v10  ;;  %v8315_v10 = vld [vmem:[#allocation12 + $0xff0] sm:$0xff] }
 0x6a2   :  { %v13839_v17 = vcombine.low %v8311_v19, %v8315_v10  ;;  %v14168_v12 = vld [vmem:[#allocation15 + $0x108] sm:$0xff]  }
 0x6a3   :  { %11387 = vmatpush1.bf16.msra.mxu0 %v13783_v62  ;;  %v13831_v62 = vcombine.low %v8303_v32, %v8307_v63  ;;  %v14004_v32 = vadd.f32 %v14905_v52, %v8322_v41  ;;  %v14157_v63 = vld [vmem:[#allocation15 + $0xb0] sm:$0xff]   ;;  %v14164_v52 = vld [vmem:[#allocation15 + $0x100] sm:$0xff]  }
 0x6a4   :  { %11551 = vmatpush1.bf16.msra.mxu1 %v13785_v14  ;;  %11388 = vmatprep.subr.bf16.mxu0 %v13792_v60  ;;  %v13833_v14 = vcombine.low %v8304_v16, %v8308_v42  ;;  %v13840_v60 = vcombine.high %v8311_v19, %v8315_v10  ;;  %v14158_v16 = vld [vmem:[#allocation15 + $0x78] sm:$0xff]   ;;  %v14163_v19 = vld [vmem:[#allocation15 + $0x1c0] sm:$0xff]  }
 0x6a5   :  { %11552 = vmatprep.subr.bf16.mxu1 %v13794_v21  ;;  %v13842_v21 = vcombine.high %v8312_v51, %v8316_v11  ;;  %v14166_v51 = vld [vmem:[#allocation15 + $0x148] sm:$0xff]  }
 0x6a6   :  { %v14167_v11 = vld [vmem:[#allocation15 + $0x1c8] sm:$0xff]  }
 0x6a7   :  { %11389 = vmatpush1.bf16.msra.mxu0 %v13791_v53  ;;  %v11576_v53 = vmax.f32 %v14005_v9, 0.0  ;;  %v14173_v9 = vld [vmem:[#allocation15 + $0x190] sm:$0xff]  }
 0x6a8   :  { %11553 = vmatpush1.bf16.msra.mxu1 %v13793_v34  ;;  %11390 = vmatprep.subr.bf16.mxu0 %v13800_v25  ;;  %v11578_v34 = vmax.f32 %v14007_v24, 0.0  ;;  %v14132_v25 = vld [vmem:[#allocation15] sm:$0xff]   ;;  %v14174_v24 = vld [vmem:[#allocation15 + $0x158] sm:$0xff]  }
 0x6a9   :  { %11554 = vmatprep.subr.bf16.mxu1 %v13802_v54  ;;  %v14133_v54 = vld [vmem:[#allocation15 + $0x80] sm:$0xff]   ;;  %v11584_v50 = vpack.c.bf16 %v11576_v53, %v11576_v53 }
 0x6aa   :  { %v11586_v22 = vpack.c.bf16 %v11578_v34, %v11578_v34  ;;  %v14179_v53 = vld [vmem:[#allocation15 + $0x1e0] sm:$0xff]  }
 0x6ab   :  { %11391 = vmatpush1.bf16.msra.mxu0 %v13799_v30  ;;  %v14138_v30 = vld [vmem:[#allocation15 + $0x50] sm:$0xff]   ;;  %v14180_v34 = vld [vmem:[#allocation15 + $0x120] sm:$0xff]  }
 0x6ac   :  { %11555 = vmatpush1.bf16.msra.mxu1 %v13801_v45  ;;  %11392 = vmatprep.subr.bf16.mxu0 %v13808_v2  ;;  %v14139_v45 = vld [vmem:[#allocation15 + $0xd0] sm:$0xff]  }
 0x6ad   :  { %11556 = vmatprep.subr.bf16.mxu1 %v13810_v38  ;;  %v14140_v2 = vld [vmem:[#allocation15 + $0x10] sm:$0xff]  }
 0x6ae   :  { %v14141_v38 = vld [vmem:[#allocation15 + $0x90] sm:$0xff]  }
 0x6af   :  { %11393 = vmatpush1.bf16.msra.mxu0 %v13807_v37  ;;  %v14147_v37 = vld [vmem:[#allocation15 + $0xe0] sm:$0xff]  }
 0x6b0   :  { %11557 = vmatpush1.bf16.msra.mxu1 %v13809_v33  ;;  %11394 = vmatprep.subr.bf16.mxu0 %v13816_v58  ;;  %v14148_v33 = vld [vmem:[#allocation15 + $0x20] sm:$0xff]  }
 0x6b1   :  { %11558 = vmatprep.subr.bf16.mxu1 %v13818_v46  ;;  %v14149_v58 = vld [vmem:[#allocation15 + $0xa0] sm:$0xff]   ;;  %v14150_v46 = vld [vmem:[#allocation15 + $0x68] sm:$0xff]  }
 0x6b3   :  { %11395 = vmatpush1.bf16.msra.mxu0 %v13815_v61  ;;  %v14154_v61 = vld [vmem:[#allocation15 + $0x70] sm:$0xff]  }
 0x6b4   :  { %11559 = vmatpush1.bf16.msra.mxu1 %v13817_v18  ;;  %11396 = vmatprep.subr.bf16.mxu0 %v13824_v35  ;;  %v8330_v18 = vrot.slane %v14913_v20, %v14750_v48  ;;  %v14155_v35 = vld [vmem:[#allocation15 + $0xf0] sm:$0xff]   ;;  %v14161_v48 = vld [vmem:[#allocation15 + $0xb8] sm:$0xff]  }
 0x6b5   :  { %11560 = vmatprep.subr.bf16.mxu1 %v13826_v28  ;;  %v14156_v28 = vld [vmem:[#allocation15 + $0x30] sm:$0xff]  }
 0x6b6   :  { %v14006_v42 = vadd.f32 %v14907_v44, %v8330_v18 }
 0x6b7   :  { %11397 = vmatpush1.bf16.msra.mxu0 %v13823_v0  ;;  %v14160_v0 = vld [vmem:[#allocation15 + $0x38] sm:$0xff]  }
 0x6b8   :  { %11561 = vmatpush1.bf16.msra.mxu1 %v13825_v1  ;;  %11398 = vmatprep.subr.bf16.mxu0 %v13832_v3  ;;  %v11575_v1 = vmax.f32 %v14004_v32, 0.0  ;;  %v14162_v3 = vld [vmem:[#allocation15 + $0x140] sm:$0xff]  }
 0x6b9   :  { %11562 = vmatprep.subr.bf16.mxu1 %v13834_v7  ;;  %v11577_v7 = vmax.f32 %v14006_v42, 0.0 }
 0x6ba   :  { %v11583_v10 = vpack.c.bf16 %v11575_v1, %v11575_v1 }
 0x6bb   :  { %11399 = vmatpush1.bf16.msra.mxu0 %v13831_v62  ;;  %v11585_v44 = vpack.c.bf16 %v11577_v7, %v11577_v7  ;;  %v14169_v62 = vld [vmem:[#allocation15 + $0x188] sm:$0xff]  }
 0x6bc   :  { %11563 = vmatpush1.bf16.msra.mxu1 %v13833_v14  ;;  %11400 = vmatprep.subr.bf16.mxu0 %v13840_v60  ;;  %v14170_v14 = vld [vmem:[#allocation15 + $0x150] sm:$0xff]  }
 0x6bd   :  { %11564 = vmatprep.subr.bf16.mxu1 %v13842_v21  ;;  %v14171_v60 = vld [vmem:[#allocation15 + $0x1d0] sm:$0xff]  }
 0x6be   :  { %v14172_v21 = vld [vmem:[#allocation15 + $0x110] sm:$0xff]  }
 0x6bf   :  { %11401 = vmatpush1.bf16.msra.mxu0 %v13839_v17  ;;  %v14175_v17 = vld [vmem:[#allocation15 + $0x1d8] sm:$0xff]  }
 0x6c0   :  { %11565 = vmatpush1.bf16.msra.mxu1 %v13841_v59  ;;  %13908 = vmatprep.subr.bf16.mxu0 %v14130_v47  ;;  %v14176_v59 = vld [vmem:[#allocation15 + $0x118] sm:$0xff]  }
 0x6c1   :  { %13930 = vmatprep.subr.bf16.mxu1 %v14131_v49  ;;  %v14177_v47 = vld [vmem:[#allocation15 + $0x198] sm:$0xff]   ;;  %v14178_v49 = vld [vmem:[#allocation15 + $0x160] sm:$0xff]  }
 0x6c2   :  { %11403 = vmatmul.mubr.bf16.vlgmr.msra.gmra.mrb[44].mxu0 %v14887_v13 }
 0x6c3   :  { %11567 = vmatmul.mubr.bf16.vlgmr.msra.gmra.mrb[44].mxu1 %v14887_v13  ;;  %13909 = vmatpush3.bf16.msra.mxu0 %v14132_v25  ;;  %v14144_v13 = vld [vmem:[#allocation15 + $0x18] sm:$0xff]   ;;  %v14181_v25 = vld [vmem:[#allocation15 + $0x1a0] sm:$0xff]  }
 0x6c4   :  { %12142 = vmatprep.mubr.bf16.mxu0 %v11584_v50  ;;  %13931 = vmatpush3.bf16.msra.mxu1 %v14133_v54  ;;  %v14182_v54 = vld [vmem:[#allocation15 + $0x168] sm:$0xff]  }
 0x6c5   :  { %12182 = vmatprep.mubr.bf16.mxu1 %v11586_v22  ;;  %13910 = vmatprep.subr.bf16.mxu0 %v14134_v26  ;;  %v14183_v26 = vld [vmem:[#allocation15 + $0x1e8] sm:$0xff]   ;;  %v14186_v22 = vld [vmem:[#allocation15 + $0x170] sm:$0xff]  }
 0x6c6   :  { %13932 = vmatprep.subr.bf16.mxu1 %v14135_v57  ;;  %v14184_v50 = vld [vmem:[#allocation15 + $0x128] sm:$0xff]  }
 0x6c7   :  { %13911 = vmatpush3.bf16.msra.mxu0 %v14136_v23  ;;  %v14185_v57 = vld [vmem:[#allocation15 + $0x1a8] sm:$0xff]   ;;  %v14187_v23 = vld [vmem:[#allocation15 + $0x1f0] sm:$0xff]  }
 0x6c8   :  { %13933 = vmatpush3.bf16.msra.mxu1 %v14137_v27  ;;  %13912 = vmatprep.subr.bf16.mxu0 %v14138_v30  ;;  %v14188_v27 = vld [vmem:[#allocation15 + $0x130] sm:$0xff]  }
 0x6c9   :  { %13934 = vmatprep.subr.bf16.mxu1 %v14139_v45  ;;  %v14189_v30 = vld [vmem:[#allocation15 + $0x1b0] sm:$0xff]   ;;  %v14190_v45 = vld [vmem:[#allocation15 + $0x178] sm:$0xff]  }
 0x6cb   :  { %13913 = vmatpush3.bf16.msra.mxu0 %v14140_v2  ;;  %v14191_v2 = vld [vmem:[#allocation15 + $0x1f8] sm:$0xff]  }
 0x6cc   :  { %13935 = vmatpush3.bf16.msra.mxu1 %v14141_v38  ;;  %13914 = vmatprep.subr.bf16.mxu0 %v14142_v56  ;;  %v14192_v38 = vld [vmem:[#allocation15 + $0x138] sm:$0xff]  }
 0x6cd   :  { %13936 = vmatprep.subr.bf16.mxu1 %v14143_v31  ;;  %v14193_v56 = vld [vmem:[#allocation15 + $0x1b8] sm:$0xff]   ;;  %v8338_v31 = vrot.slane %v14913_v20, %v14774_v43 }
 0x6cf   :  { %13915 = vmatpush3.bf16.msra.mxu0 %v14144_v13  ;;  %v8346_v13 = vrot.slane %v14913_v20, %v14799_v39 }
 0x6d0   :  { %13937 = vmatpush3.bf16.msra.mxu1 %v14145_v40  ;;  %13916 = vmatprep.subr.bf16.mxu0 %v14146_v55  ;;  %v8342_v40 = vrot.slane %v14913_v20, %v14753_v6  ;;  %v8350_v55 = vrot.slane %v14913_v20, %v14786_v15 }
 0x6d1   :  { %13938 = vmatprep.subr.bf16.mxu1 %v14147_v37 }
 0x6d3   :  { %13917 = vmatpush3.bf16.msra.mxu0 %v14148_v33 }
 0x6d4   :  { %13939 = vmatpush3.bf16.msra.mxu1 %v14149_v58  ;;  %13918 = vmatprep.subr.bf16.mxu0 %v14150_v46 }
 0x6d5   :  { %13940 = vmatprep.subr.bf16.mxu1 %v14151_v5 }
 0x6d7   :  { %13919 = vmatpush3.bf16.msra.mxu0 %v14152_v8 }
 0x6d8   :  { %13941 = vmatpush3.bf16.msra.mxu1 %v14153_v36  ;;  %13920 = vmatprep.subr.bf16.mxu0 %v14154_v61 }
 0x6d9   :  { %13942 = vmatprep.subr.bf16.mxu1 %v14155_v35 }
 0x6db   :  { %13921 = vmatpush3.bf16.msra.mxu0 %v14156_v28 }
 0x6dc   :  { %13943 = vmatpush3.bf16.msra.mxu1 %v14157_v63  ;;  %13922 = vmatprep.subr.bf16.mxu0 %v14158_v16 }
 0x6dd   :  { %13944 = vmatprep.subr.bf16.mxu1 %v14159_v4 }
 0x6df   :  { %13923 = vmatpush3.bf16.msra.mxu0 %v14160_v0  ;;  %v13843_v0 = vld [vmem:[#allocation17] ss:$0 sm:$0xff] }
 0x6e0   :  { %13945 = vmatpush3.bf16.msra.mxu1 %v14161_v48  ;;  %13952 = vmatprep.subr.bf16.mxu0 %v14162_v3 }
 0x6e1   :  { %13974 = vmatprep.subr.bf16.mxu1 %v14163_v19 }
 0x6e2   :  { %12143 = vmatmul.mubr.bf16.vlgmr.msra.gmra.mrb[48].mxu0 %v11583_v10 }
 0x6e3   :  { %12183 = vmatmul.mubr.bf16.vlgmr.msra.gmra.mrb[48].mxu1 %v11585_v44  ;;  %13953 = vmatpush3.bf16.msra.mxu0 %v14164_v52 }
 0x6e4   :  { %13975 = vmatpush3.bf16.msra.mxu1 %v14165_v29  ;;  %13954 = vmatprep.subr.bf16.mxu0 %v14166_v51 }
 0x6e5   :  { %13976 = vmatprep.subr.bf16.mxu1 %v14167_v11 }
 0x6e7   :  { %13955 = vmatpush3.bf16.msra.mxu0 %v14168_v12 }
 0x6e8   :  { %13977 = vmatpush3.bf16.msra.mxu1 %v14169_v62  ;;  %13956 = vmatprep.subr.bf16.mxu0 %v14170_v14 }
 0x6e9   :  { %13978 = vmatprep.subr.bf16.mxu1 %v14171_v60 }
 0x6eb   :  { %13957 = vmatpush3.bf16.msra.mxu0 %v14172_v21 }
 0x6ec   :  { %13979 = vmatpush3.bf16.msra.mxu1 %v14173_v9  ;;  %13958 = vmatprep.subr.bf16.mxu0 %v14174_v24 }
 0x6ed   :  { %13980 = vmatprep.subr.bf16.mxu1 %v14175_v17 }
 0x6ef   :  { %13959 = vmatpush3.bf16.msra.mxu0 %v14176_v59 }
 0x6f0   :  { %13981 = vmatpush3.bf16.msra.mxu1 %v14177_v47  ;;  %13960 = vmatprep.subr.bf16.mxu0 %v14178_v49 }
 0x6f1   :  { %13982 = vmatprep.subr.bf16.mxu1 %v14179_v53 }
 0x6f3   :  { %13961 = vmatpush3.bf16.msra.mxu0 %v14180_v34 }
 0x6f4   :  { %13983 = vmatpush3.bf16.msra.mxu1 %v14181_v25  ;;  %13962 = vmatprep.subr.bf16.mxu0 %v14182_v54 }
 0x6f5   :  { %13984 = vmatprep.subr.bf16.mxu1 %v14183_v26 }
 0x6f7   :  { %13963 = vmatpush3.bf16.msra.mxu0 %v14184_v50 }
 0x6f8   :  { %13985 = vmatpush3.bf16.msra.mxu1 %v14185_v57  ;;  %13964 = vmatprep.subr.bf16.mxu0 %v14186_v22 }
 0x6f9   :  { %13986 = vmatprep.subr.bf16.mxu1 %v14187_v23 }
 0x6fb   :  { %13965 = vmatpush3.bf16.msra.mxu0 %v14188_v27 }
 0x6fc   :  { %13987 = vmatpush3.bf16.msra.mxu1 %v14189_v30  ;;  %13966 = vmatprep.subr.bf16.mxu0 %v14190_v45 }
 0x6fd   :  { %13988 = vmatprep.subr.bf16.mxu1 %v14191_v2 }
 0x6ff   :  { %13967 = vmatpush3.bf16.msra.mxu0 %v14192_v38 }
 0x700   :  { %13989 = vmatpush3.bf16.msra.mxu1 %v14193_v56 }
 0x795   :  { %v11404_v37 = vpop.f32.mrb[44].mxu0 }
 0x796   :  { %v14008_v33 = vadd.f32 %v11404_v37, %v8338_v31  ;;  %v11568_v58 = vpop.f32.mrb[44].mxu1  ;;  %v11406_v46 = vpop.f32.mrb[45].mxu0 }
 0x797   :  { %v14010_v5 = vadd.f32 %v11568_v58, %v8346_v13  ;;  %v14009_v8 = vadd.f32 %v11406_v46, %v8342_v40  ;;  %v11570_v41 = vpop.f32.mrb[45].mxu1  ;;  %v11408_v36 = vpop.f32.mrb[46].mxu0 }
 0x798   :  { %v11579_v61 = vmax.f32 %v14008_v33, 0.0  ;;  %v14011_v18 = vadd.f32 %v11570_v41, %v8350_v55  ;;  %v11572_v43 = vpop.f32.mrb[46].mxu1  ;;  %v11409_v35 = vpop.f32.mrb[47].mxu0 }
 0x799   :  { %v11581_v28 = vmax.f32 %v14010_v5, 0.0  ;;  %v11580_v39 = vmax.f32 %v14009_v8, 0.0  ;;  %v11573_v32 = vpop.f32.mrb[47].mxu1 }
 0x79a   :  { %v11582_v63 = vmax.f32 %v14011_v18, 0.0  ;;  %v11587_v16 = vpack.c.bf16 %v11579_v61, %v11579_v61 }
 0x79b   :  { %v11588_v6 = vpack.c.bf16 %v11580_v39, %v11580_v39  ;;  %v11589_v15 = vpack.c.bf16 %v11581_v28, %v11581_v28 }
 0x79c   :  { %v11590_v42 = vpack.c.bf16 %v11582_v63, %v11582_v63 }
 0x79d   :  { %12222 = vmatprep.mubr.bf16.mxu0 %v11588_v6 }
 0x79e   :  { %12262 = vmatprep.mubr.bf16.mxu1 %v11590_v42  ;;  %12223 = vmatmul.mubr.bf16.vlgmr.msra.gmra.mrb[52].mxu0 %v11587_v16 }
 0x79f   :  { %12263 = vmatmul.mubr.bf16.vlgmr.msra.gmra.mrb[52].mxu1 %v11589_v15 }
 0x7b5   :  { %v13924_v20 = vpop.f32.mrb[48].mxu0 }
 0x7b6   :  { %v13946_v4 = vpop.f32.mrb[48].mxu1  ;;  %v13925_v1 = vpop.f32.mrb[49].mxu0 }
 0x7b7   :  { %v13926_v48 = vadd.f32 %v13925_v1, %v13924_v20  ;;  %v13947_v3 = vpop.f32.mrb[49].mxu1  ;;  %v13927_v7 = vpop.f32.mrb[50].mxu0 }
 0x7b8   :  { %v13948_v19 = vadd.f32 %v13947_v3, %v13946_v4  ;;  %v13949_v52 = vpop.f32.mrb[50].mxu1  ;;  %v13928_v10 = vpop.f32.mrb[51].mxu0 }
 0x7b9   :  { %v12145_v29 = vadd.f32 %v13926_v48, %v13843_v0  ;;  %v13950_v51 = vpop.f32.mrb[51].mxu1 }
 0x7bb   :  { %v12185_v44 = vadd.f32 %v13948_v19, %v12145_v29 }
 0x871   :  { %v13968_v11 = vpop.f32.mrb[52].mxu0 }
 0x872   :  { %v13990_v12 = vpop.f32.mrb[52].mxu1  ;;  %v13969_v62 = vpop.f32.mrb[53].mxu0 }
 0x873   :  { %v13970_v14 = vadd.f32 %v13969_v62, %v13968_v11  ;;  %v13991_v60 = vpop.f32.mrb[53].mxu1  ;;  %v13971_v21 = vpop.f32.mrb[54].mxu0 }
 0x874   :  { %v13992_v9 = vadd.f32 %v13991_v60, %v13990_v12  ;;  %v13993_v24 = vpop.f32.mrb[54].mxu1  ;;  %v13972_v17 = vpop.f32.mrb[55].mxu0 }
 0x875   :  { %v12225_v59 = vadd.f32 %v13970_v14, %v12185_v44  ;;  %v13994_v47 = vpop.f32.mrb[55].mxu1 }
 0x877   :  { %v12265_v49 = vadd.f32 %v13992_v9, %v12225_v59 }
 0x879   :  { %12270 = vmax.xlane.f32.xlu0 %v12265_v49 }
 0x906   :  { %v12271_v53 = vpop.xlane.xlu0 %12270 }
 0x907   :  { %v12272_v34 = vsub.f32 %v12265_v49, %v12271_v53 }
 0x909   :  { %v12273_v25 = vmul.f32 1.442695, %v12272_v34 }
 0x90b   :  { %14194 = vpow2.f32 %v12273_v25 }
 0x915   :  { %v14195_v54 = vpop.eup %14194 }
 0x916   :  { %12275 = vadd.xlane.f32.xlu0 %v14195_v54 }
 0x9a3   :  { %v12276_v26 = vpop.xlane.xlu0 %12275 }
 0x9a4   :  { %14196 = vrcp.f32 %v12276_v26 }
 0x9ae   :  { %v14197_v50 = vpop.eup %14196 }
 0x9af   :  { %v12278_v57 = vmul.f32 %v14197_v50, %v14195_v54 }
 0x9b1   :  { %12279 = vst [vmem:[#allocation18] sm:$0xff] %v12278_v57 }
 0x9b2   :  { %14409 = shalt.err (!%p14406_p6)
}
 0x9b3   :  { %s14410_s18 = scalar_lea.hbm %s14958_s9, 128 }
 0x9b4   :  { %p14411_p7 = scmp.ne.s32.totalorder %s14958_s9, %s14410_s18  ;;  %p14414_p8 = scmp.lt.u32.totalorder %s14410_s18, %s14958_s9 }
 0x9b6   :  { %p14416_p9 = pnand %p14414_p8, %p14411_p7 }
 0x9b8   :  { %14419 = shalt.err (!%p14416_p9)
}
 0x9b9   :  { %12289 = dma.vmem_to_hbm [thread:$0]  %s12287_s25, 128, %s14958_s9, [#allocation5]  }
 0x9ba   :  { %14430 = dma.done.wait [#allocation5], 128  }
 0x9bb   :  { %14431 = vsyncadd [#allocation5], 4294967168 }
 0x9bc   :  { %12293 = vsyncpa [#allocation4], 1 }
 0x9bd   :  { %12294 = vsyncpa [#allocation7], 1 }
 0x9be   :  { %12295 = vsyncpa [#allocation10], 1 }
 0x9bf   :  { %12296 = vsyncpa [#allocation13], 1 }
 0x9c0   :  { %12297 = vsyncpa [#allocation16], 1 }
 0x9c1   :  { %12298 = vsyncpa [#allocation5], 1 }

</bundles_post_ra>
